<compile_context>
chip_gen: v7x
topology: tpu7x:2x2x1
jax: 0.10.0
libtpu: 0.0.40
codegen_flags: <defaults>
</compile_context>

<pallas_src>
import jax
import jax.numpy as jnp
from jax import lax
from jax.experimental import pallas as pl
from jax.experimental.pallas import tpu as pltpu


# ------------------------------ encoder kernel ------------------------------

def gru_bn_kernel(x_ref,                                   # (L, B, E) time-major
                  wih0T_ref, whh0T_ref, bih0_ref, bhh0_ref,
                  wih1T_ref, whh1T_ref, bih1_ref, bhh1_ref,
                  out_ref,                                 # (L, B, H1)
                  gif_scr, gir_scr,                        # (L, B, 3Hh) (reused)
                  l0f_scr, l0r_scr, l1f_scr, l1r_scr):     # (L, B, Hh)
    L, B, E = x_ref.shape
    Hh = whh0T_ref.shape[1]
    G = 3 * Hh
    H1 = 2 * Hh
    TB = 2 * B

    def run_fused_layer(whhT_ref, bhh_ref, outf_scr, outr_scr):
        # Both directions fused: state rows [0:B] = forward, [B:2B] = reverse.
        whhf = whhT_ref[0]                                 # (Hh, G), pre-transposed
        whhr = whhT_ref[1]
        bhh = bhh_ref[...]                                 # (2B, G), per-half bias

        def body(i, h):                                    # h: (2B, Hh)
            rt = L - 1 - i
            gi = jnp.concatenate([gif_scr[i], gir_scr[rt]], axis=0)      # (2B, G)
            gh = jnp.concatenate(
                [jnp.dot(h[0:B], whhf, preferred_element_type=jnp.float32),
                 jnp.dot(h[B:TB], whhr, preferred_element_type=jnp.float32)],
                axis=0) + bhh
            # PyTorch GRU gate order: r, z, n
            r = jax.nn.sigmoid(gi[:, 0:Hh] + gh[:, 0:Hh])
            z = jax.nn.sigmoid(gi[:, Hh:2 * Hh] + gh[:, Hh:2 * Hh])
            n = jnp.tanh(gi[:, 2 * Hh:G] + r * gh[:, 2 * Hh:G])
            h_new = (1.0 - z) * n + z * h
            outf_scr[i] = h_new[0:B]
            outr_scr[rt] = h_new[B:TB]
            return h_new

        lax.fori_loop(0, L, body, jnp.zeros((TB, Hh), jnp.float32), unroll=True)

    # ---- layer 0: hoisted input projections (one big matmul per direction) ----
    x2d = x_ref[...].reshape(L * B, E)
    gif_scr[...] = (jnp.dot(x2d, wih0T_ref[0], preferred_element_type=jnp.float32)
                    + bih0_ref[0]).reshape(L, B, G)
    gir_scr[...] = (jnp.dot(x2d, wih0T_ref[1], preferred_element_type=jnp.float32)
                    + bih0_ref[1]).reshape(L, B, G)
    run_fused_layer(whh0T_ref, bhh0_ref, l0f_scr, l0r_scr)

    # TODO(synk): nn.GRU inter-layer dropout (p=0.2, train-mode only) not applied
    # here; this matches eval-mode semantics.

    # ---- layer 1: input = concat(l0 fwd, l0 rev); projections hoisted ----
    f2d = l0f_scr[...].reshape(L * B, Hh)
    r2d = l0r_scr[...].reshape(L * B, Hh)
    w1f = wih1T_ref[0]                                     # (H1, G)
    w1r = wih1T_ref[1]
    gif_scr[...] = (jnp.dot(f2d, w1f[0:Hh], preferred_element_type=jnp.float32)
                    + jnp.dot(r2d, w1f[Hh:H1], preferred_element_type=jnp.float32)
                    + bih1_ref[0]).reshape(L, B, G)
    gir_scr[...] = (jnp.dot(f2d, w1r[0:Hh], preferred_element_type=jnp.float32)
                    + jnp.dot(r2d, w1r[Hh:H1], preferred_element_type=jnp.float32)
                    + bih1_ref[1]).reshape(L, B, G)
    run_fused_layer(whh1T_ref, bhh1_ref, l1f_scr, l1r_scr)

    # ---- BatchNorm1d(H1, affine=False): train-mode batch stats over (B*L),
    #      biased variance, eps=1e-5.
    # TODO(synk): eval-mode running-statistics variant not implemented.
    y = jnp.concatenate([l1f_scr[...], l1r_scr[...]], axis=-1)           # (L, B, H1)
    flat = y.reshape(L * B, H1)
    mean = jnp.mean(flat, axis=0, keepdims=True)
    var = jnp.mean((flat - mean) ** 2, axis=0, keepdims=True)
    out_ref[...] = ((flat - mean) * lax.rsqrt(var + 1e-5)).reshape(L, B, H1)


# ------------------------------ decoder kernel ------------------------------

def decoder_kernel(x_ref, h0_ref, c0_ref,
                   wxT_ref, whlT_ref, bl_ref,
                   wtT_ref, tagb_ref, wlT_ref, w12T_ref, wvT_ref,
                   ent_ref, rel_ref,                       # (L,B,ENT), (L,L,B,REL)
                   gix_scr, s1_scr):                       # (L,B,4H2), (L,B,A)
    L, B, H1 = x_ref.shape
    H2 = h0_ref.shape[1]
    G4 = 4 * H2
    ENT = wtT_ref.shape[1]
    LE = wlT_ref.shape[1]
    A = wvT_ref.shape[0]
    REL = wvT_ref.shape[1]

    # Hoisted LSTM input projection for all timesteps; b_ih + b_hh folded in.
    gix_scr[...] = (jnp.dot(x_ref[...].reshape(L * B, H1), wxT_ref[...],
                            preferred_element_type=jnp.float32)
                    + bl_ref[...]).reshape(L, B, G4)
    # Keep the s1 cache zero-init: masked rows (j > t) must see finite values.
    s1_scr[...] = jnp.zeros_like(s1_scr)
    # ent_ref / rel_ref zero-fills dropped: each [t] slab is fully written below.

    Whl = whlT_ref[...]            # (H2+LE, 4H2): rows = [W_hh^T ; W_ih_label^T]
    WtT = wtT_ref[...]             # (H2, ENT)
    bt = tagb_ref[...]             # (1, ENT)
    WlT = wlT_ref[...]             # (ENT, LE)
    W12 = w12T_ref[...]            # (H2+LE, 2A): cols = [w1^T | w2^T]
    WvT = wvT_ref[...]             # (A, REL)

    e_iota = lax.broadcasted_iota(jnp.int32, (B, ENT), 1)
    j_iota = lax.broadcasted_iota(jnp.int32, (L, B, REL), 0)

    enc0 = jnp.concatenate([h0_ref[...], jnp.zeros((B, LE), jnp.float32)], axis=-1)

    def step(t, carry):
        c, enc = carry             # enc = cat(h_prev, label_prev): (B, H2+LE)

        # top_hidden LSTMCell on cat(now_token, label); PyTorch gate order i,f,g,o
        gates = gix_scr[t] + jnp.dot(enc, Whl, preferred_element_type=jnp.float32)
        i_g = jax.nn.sigmoid(gates[:, 0:H2])
        f_g = jax.nn.sigmoid(gates[:, H2:2 * H2])
        g_g = jnp.tanh(gates[:, 2 * H2:3 * H2])
        o_g = jax.nn.sigmoid(gates[:, 3 * H2:G4])
        c_n = f_g * c + i_g * g_g
        h_n = o_g * jnp.tanh(c_n)

        # hidden2tag + LogSoftmax(dim=1)
        to_tags = jnp.dot(h_n, WtT, preferred_element_type=jnp.float32) + bt
        m = jnp.max(to_tags, axis=-1, keepdims=True)
        zt = to_tags - m
        ent_out = zt - jnp.log(jnp.sum(jnp.exp(zt), axis=-1, keepdims=True))

        # label = label_embed(one_hot(argmax(ent_out)))   (greedy decoding)
        # TODO(synk): optional teacher-forcing path (batch_ent is not None) omitted.
        mx = jnp.max(ent_out, axis=-1, keepdims=True)
        idx = jnp.min(jnp.where(ent_out >= mx, e_iota, ENT),
                      axis=-1, keepdims=True)              # first argmax on ties
        onehot = (e_iota == idx).astype(jnp.float32)
        label_n = jnp.dot(onehot, WlT, preferred_element_type=jnp.float32)

        # Pointer-network attention over encoder_sequence[0..t]; enc_t = cat(h,label)
        enc_n = jnp.concatenate([h_n, label_n], axis=-1)                  # (B,H2+LE)
        sd = jnp.dot(enc_n, W12, preferred_element_type=jnp.float32)      # (B, 2A)
        s1_scr[t] = sd[:, 0:A]
        dec = sd[:, A:2 * A]
        energy = jnp.tanh(s1_scr[...] + dec[None, :, :])                  # (L, B, A)
        e = jnp.dot(energy.reshape(L * B, A), WvT,
                    preferred_element_type=jnp.float32).reshape(L, B, REL)
        m2 = jnp.max(e, axis=-1, keepdims=True)
        z2 = e - m2
        logp = z2 - jnp.log(jnp.sum(jnp.exp(z2), axis=-1, keepdims=True))
        logp = jnp.where(j_iota <= t, logp, 0.0)           # rows j>t stay exactly 0

        ent_ref[t] = ent_out
        rel_ref[t] = logp
        return (c_n, enc_n)

    lax.fori_loop(0, L, step, (c0_ref[...], enc0), unroll=True)


# --------------------------------- wrappers ---------------------------------

def _vmem_spec():
    return pl.BlockSpec(memory_space=pltpu.MemorySpace.VMEM)


def encoder_forward(embeds_tm, p):
    """embeds_tm: (L, B, E) time-major. Returns (L, B, H1) time-major, BN'd."""
    L, B, _ = embeds_tm.shape
    Hh = p['whh0'].shape[2]
    G = 3 * Hh
    H1 = 2 * Hh

    # Pre-transpose / pre-stack all weights once, outside the kernel.
    wih0T = jnp.transpose(p['wih0'], (0, 2, 1))            # (2, E, G)
    whh0T = jnp.transpose(p['whh0'], (0, 2, 1))            # (2, Hh, G)
    wih1T = jnp.transpose(p['wih1'], (0, 2, 1))            # (2, H1, G)
    whh1T = jnp.transpose(p['whh1'], (0, 2, 1))            # (2, Hh, G)
    bhh0s = jnp.concatenate([jnp.broadcast_to(p['bhh0'][0], (B, G)),
                             jnp.broadcast_to(p['bhh0'][1], (B, G))], axis=0)
    bhh1s = jnp.concatenate([jnp.broadcast_to(p['bhh1'][0], (B, G)),
                             jnp.broadcast_to(p['bhh1'][1], (B, G))], axis=0)

    return pl.pallas_call(
        gru_bn_kernel,
        out_shape=jax.ShapeDtypeStruct((L, B, H1), jnp.float32),
        in_specs=[_vmem_spec() for _ in range(9)],
        out_specs=_vmem_spec(),
        scratch_shapes=[pltpu.VMEM((L, B, G), jnp.float32),
                        pltpu.VMEM((L, B, G), jnp.float32),
                        pltpu.VMEM((L, B, Hh), jnp.float32),
                        pltpu.VMEM((L, B, Hh), jnp.float32),
                        pltpu.VMEM((L, B, Hh), jnp.float32),
                        pltpu.VMEM((L, B, Hh), jnp.float32)],
    )(embeds_tm, wih0T, whh0T, p['bih0'], bhh0s,
      wih1T, whh1T, p['bih1'], bhh1s)


def decoder_forward(enc_tm, h0, c0, p):
    """enc_tm: (L, B, H1) time-major. Returns (L,B,ENT), (L,L,B,REL) time-major."""
    L, B, H1 = enc_tm.shape
    H2 = p['lstm_whh'].shape[1]
    LE = p['label_w'].shape[0]
    ENT = p['tag_w'].shape[0]
    A = p['attn_w1'].shape[0]
    REL = p['attn_v'].shape[0]

    # Pre-transpose / fuse weights once, outside the kernel.
    wih = p['lstm_wih']                                    # (4H2, H1+LE)
    wxT = wih[:, 0:H1].T                                   # (H1, 4H2)
    whlT = jnp.concatenate([p['lstm_whh'].T,               # (H2, 4H2)
                            wih[:, H1:H1 + LE].T], axis=0)  # -> (H2+LE, 4H2)
    bl = p['lstm_bih'] + p['lstm_bhh']                     # (1, 4H2)
    wtT = p['tag_w'].T                                     # (H2, ENT)
    wlT = p['label_w'].T                                   # (ENT, LE)
    w12T = jnp.concatenate([p['attn_w1'].T, p['attn_w2'].T], axis=1)  # (H2+LE, 2A)
    wvT = p['attn_v'].T                                    # (A, REL)

    return pl.pallas_call(
        decoder_kernel,
        out_shape=(jax.ShapeDtypeStruct((L, B, ENT), jnp.float32),
                   jax.ShapeDtypeStruct((L, L, B, REL), jnp.float32)),
        in_specs=[_vmem_spec() for _ in range(11)],
        out_specs=(_vmem_spec(), _vmem_spec()),
        scratch_shapes=[pltpu.VMEM((L, B, 4 * H2), jnp.float32),
                        pltpu.VMEM((L, B, A), jnp.float32)],
    )(enc_tm, h0, c0, wxT, whlT, bl, wtT, p['tag_b'], wlT, w12T, wvT)


@jax.jit
def joint_ere_forward(params, sentence, h0, c0):
    """h0/c0 replace the in-forward .normal_()/randn_like draws (deterministic)."""
    embeds = params['embed'][sentence]                     # nn.Embedding (glue)
    embeds_tm = jnp.swapaxes(embeds, 0, 1)                 # (L, B, E) time-major
    enc_tm = encoder_forward(embeds_tm, params)            # (L, B, H1)
    ent_tm, rel_tm = decoder_forward(enc_tm, h0, c0, params)
    ent = jnp.swapaxes(ent_tm, 0, 1)                       # (B, L, ENT)
    rel = jnp.transpose(rel_tm, (2, 0, 1, 3))              # (B, L, L, REL)
    bilstm_out = jnp.swapaxes(enc_tm, 0, 1)                # (B, L, H1)
    return ent, rel, bilstm_out


# ----------------------------------- main ------------------------------------

if __name__ == "__main__":
    VOCAB, E, H1, H2, LE, A = 50, 16, 32, 32, 8, 16
    ENT, REL = 9, 5              # len(schema.ent2ix), len(schema.rel2ix)
    B, L = 2, 8
    Hh = H1 // 2
    D = H2 + LE

    key = jax.random.PRNGKey(0)
    keys = jax.random.split(key, 24)

    def nrm(k, shape, scale=0.3):
        return (scale * jax.random.normal(k, shape)).astype(jnp.float32)

    params = {
        'embed':    jax.random.normal(keys[0], (VOCAB, E), jnp.float32),
        # nn.GRU(E, Hh, num_layers=2, bidirectional=True): dim 0 = fwd/rev
        'wih0':     nrm(keys[1], (2, 3 * Hh, E)),
        'whh0':     nrm(keys[2], (2, 3 * Hh, Hh)),
        'bih0':     nrm(keys[3], (2, 1, 3 * Hh)),
        'bhh0':     nrm(keys[4], (2, 1, 3 * Hh)),
        'wih1':     nrm(keys[5], (2, 3 * Hh, H1)),
        'whh1':     nrm(keys[6], (2, 3 * Hh, Hh)),
        'bih1':     nrm(keys[7], (2, 1, 3 * Hh)),
        'bhh1':     nrm(keys[8], (2, 1, 3 * Hh)),
        # nn.LSTMCell(H1 + LE, H2)
        'lstm_wih': nrm(keys[9], (4 * H2, H1 + LE)),
        'lstm_whh': nrm(keys[10], (4 * H2, H2)),
        'lstm_bih': nrm(keys[11], (1, 4 * H2)),
        'lstm_bhh': nrm(keys[12], (1, 4 * H2)),
        # hidden2tag, label_embed
        'tag_w':    nrm(keys[13], (ENT, H2)),
        'tag_b':    nrm(keys[14], (1, ENT)),
        'label_w':  nrm(keys[15], (LE, ENT)),
        # Attn(H2 + LE, A, REL)
        'attn_w1':  nrm(keys[16], (A, D)),
        'attn_w2':  nrm(keys[17], (A, D)),
        'attn_v':   nrm(keys[18], (REL, A)),
    }

    sentence = jax.random.randint(keys[19], (B, L), 0, VOCAB)
    h0 = jax.random.normal(keys[20], (B, H2), jnp.float32)
    c0 = jax.random.normal(keys[21], (B, H2), jnp.float32)

    ent, rel, enc = joint_ere_forward(params, sentence, h0, c0)
    jax.block_until_ready((ent, rel, enc))

    # Shape / structure invariants of the reference semantics.
    assert ent.shape == (B, L, ENT) and rel.shape == (B, L, L, REL)
    assert bool(jnp.all(jnp.isfinite(ent))) and bool(jnp.all(jnp.isfinite(rel)))
    # entity rows are log-probabilities (LogSoftmax over ent_size)
    assert bool(jnp.allclose(jnp.sum(jnp.exp(ent), -1), 1.0, atol=1e-3))
    # rel: rows j<=t are log-probabilities over rel_size; rows j>t untouched (0)
    tri = jnp.tril(jnp.ones((L, L)))[None, :, :]
    probsum = jnp.sum(jnp.exp(rel), -1)
    assert bool(jnp.allclose(jnp.where(tri > 0, probsum, 1.0), 1.0, atol=1e-3))
    assert bool(jnp.allclose(jnp.where(tri > 0, 0.0, jnp.sum(rel, -1)), 0.0))
    # BatchNorm1d(affine=False) invariant on the encoder output
    flat = enc.reshape(-1, H1)
    assert bool(jnp.allclose(flat.mean(0), 0.0, atol=1e-4))
    assert bool(jnp.allclose(flat.var(0), 1.0, atol=5e-2))

    print("KERNEL_OK")
</pallas_src>

<mosaic_0001>
module attributes {stable_mosaic.version = 11 : i64} {
  func.func @decoder_kernel(%arg0: memref<8x2x32xf32, #tpu.memory_space<vmem>>, %arg1: memref<2x32xf32, #tpu.memory_space<vmem>>, %arg2: memref<2x32xf32, #tpu.memory_space<vmem>>, %arg3: memref<32x128xf32, #tpu.memory_space<vmem>>, %arg4: memref<40x128xf32, #tpu.memory_space<vmem>>, %arg5: memref<1x128xf32, #tpu.memory_space<vmem>>, %arg6: memref<32x9xf32, #tpu.memory_space<vmem>>, %arg7: memref<1x9xf32, #tpu.memory_space<vmem>>, %arg8: memref<9x8xf32, #tpu.memory_space<vmem>>, %arg9: memref<40x32xf32, #tpu.memory_space<vmem>>, %arg10: memref<16x5xf32, #tpu.memory_space<vmem>>, %arg11: memref<8x2x9xf32, #tpu.memory_space<vmem>>, %arg12: memref<8x8x2x5xf32, #tpu.memory_space<vmem>>, %arg13: memref<8x2x128xf32, #tpu.memory_space<vmem>>, %arg14: memref<8x2x16xf32, #tpu.memory_space<vmem>>) attributes {dimension_semantics = [], scalar_prefetch = 0 : i64, scratch_operands = 2 : i64, tpu.core_type = #tpu.core_type<tc>} {
    %c0 = arith.constant 0 : index
    %c0_0 = arith.constant 0 : index
    %c0_1 = arith.constant 0 : index
    %0 = vector.load %arg0[%c0, %c0_0, %c0_1] : memref<8x2x32xf32, #tpu.memory_space<vmem>>, vector<8x2x32xf32>
    %1 = vector.shape_cast %0 : vector<8x2x32xf32> to vector<16x32xf32>
    %c0_2 = arith.constant 0 : index
    %c0_3 = arith.constant 0 : index
    %2 = vector.load %arg3[%c0_2, %c0_3] : memref<32x128xf32, #tpu.memory_space<vmem>>, vector<32x128xf32>
    %cst = arith.constant dense<0.000000e+00> : vector<16x128xf32>
    %3 = tpu.matmul %1, %2, %cst {dimension_numbers = #tpu.dot_dimension_numbers<[1], [0], [0], [1], [0, 0, 1, 1], [], []>} : vector<16x32xf32>, vector<32x128xf32>, vector<16x128xf32> -> vector<16x128xf32>
    %c0_4 = arith.constant 0 : index
    %c0_5 = arith.constant 0 : index
    %4 = vector.load %arg5[%c0_4, %c0_5] : memref<1x128xf32, #tpu.memory_space<vmem>>, vector<1x128xf32>
    %5 = vector.broadcast %4 : vector<1x128xf32> to vector<16x128xf32>
    %6 = arith.addf %3, %5 : vector<16x128xf32>
    %7 = vector.shape_cast %6 : vector<16x128xf32> to vector<8x2x128xf32>
    %c0_6 = arith.constant 0 : index
    %c0_7 = arith.constant 0 : index
    %c0_8 = arith.constant 0 : index
    %8 = vector.load %arg13[%c0_6, %c0_7, %c0_8] : memref<8x2x128xf32, #tpu.memory_space<vmem>>, vector<8x2x128xf32>
    tpu.vector_store %arg13[%c0_6, %c0_7, %c0_8], %7 {strides = array<i32>} : memref<8x2x128xf32, #tpu.memory_space<vmem>>, vector<8x2x128xf32>,
    %cst_9 = arith.constant 0.000000e+00 : f32
    %9 = vector.broadcast %cst_9 : f32 to vector<8x2x16xf32>
    %c0_10 = arith.constant 0 : index
    %c0_11 = arith.constant 0 : index
    %c0_12 = arith.constant 0 : index
    %10 = vector.load %arg14[%c0_10, %c0_11, %c0_12] : memref<8x2x16xf32, #tpu.memory_space<vmem>>, vector<8x2x16xf32>
    tpu.vector_store %arg14[%c0_10, %c0_11, %c0_12], %9 {strides = array<i32>} : memref<8x2x16xf32, #tpu.memory_space<vmem>>, vector<8x2x16xf32>,
    %c0_13 = arith.constant 0 : index
    %c0_14 = arith.constant 0 : index
    %11 = vector.load %arg4[%c0_13, %c0_14] : memref<40x128xf32, #tpu.memory_space<vmem>>, vector<40x128xf32>
    %c0_15 = arith.constant 0 : index
    %c0_16 = arith.constant 0 : index
    %12 = vector.load %arg6[%c0_15, %c0_16] : memref<32x9xf32, #tpu.memory_space<vmem>>, vector<32x9xf32>
    %c0_17 = arith.constant 0 : index
    %c0_18 = arith.constant 0 : index
    %13 = vector.load %arg7[%c0_17, %c0_18] : memref<1x9xf32, #tpu.memory_space<vmem>>, vector<1x9xf32>
    %c0_19 = arith.constant 0 : index
    %c0_20 = arith.constant 0 : index
    %14 = vector.load %arg8[%c0_19, %c0_20] : memref<9x8xf32, #tpu.memory_space<vmem>>, vector<9x8xf32>
    %c0_21 = arith.constant 0 : index
    %c0_22 = arith.constant 0 : index
    %15 = vector.load %arg9[%c0_21, %c0_22] : memref<40x32xf32, #tpu.memory_space<vmem>>, vector<40x32xf32>
    %c0_23 = arith.constant 0 : index
    %c0_24 = arith.constant 0 : index
    %16 = vector.load %arg10[%c0_23, %c0_24] : memref<16x5xf32, #tpu.memory_space<vmem>>, vector<16x5xf32>
    %17 = tpu.iota {dimensions = array<i32: 1>} : vector<2x9xi32>
    %18 = tpu.iota {dimensions = array<i32: 0>} : vector<8x2x5xi32>
    %c0_25 = arith.constant 0 : index
    %c0_26 = arith.constant 0 : index
    %19 = vector.load %arg1[%c0_25, %c0_26] : memref<2x32xf32, #tpu.memory_space<vmem>>, vector<2x32xf32>
    %cst_27 = arith.constant 0.000000e+00 : f32
    %20 = vector.broadcast %cst_27 : f32 to vector<2x8xf32>
    %21 = tpu.concatenate %19, %20 in 1 : vector<2x32xf32>, vector<2x8xf32> -> vector<2x40xf32>
    %c0_28 = arith.constant 0 : index
    %c0_29 = arith.constant 0 : index
    %22 = vector.load %arg2[%c0_28, %c0_29] : memref<2x32xf32, #tpu.memory_space<vmem>>, vector<2x32xf32>
    %c0_i32 = arith.constant 0 : i32
    %23 = arith.index_cast %c0_i32 : i32 to index
    %c0_30 = arith.constant 0 : index
    %c0_31 = arith.constant 0 : index
    %24 = vector.load %arg13[%23, %c0_30, %c0_31] : memref<8x2x128xf32, #tpu.memory_space<vmem>>, vector<1x2x128xf32>
    %25 = vector.shape_cast %24 : vector<1x2x128xf32> to vector<2x128xf32>
    %cst_32 = arith.constant dense<0.000000e+00> : vector<2x128xf32>
    %26 = tpu.matmul %21, %11, %cst_32 {dimension_numbers = #tpu.dot_dimension_numbers<[1], [0], [0], [1], [0, 0, 1, 1], [], []>} : vector<2x40xf32>, vector<40x128xf32>, vector<2x128xf32> -> vector<2x128xf32>
    %27 = arith.addf %25, %26 : vector<2x128xf32>
    %28 = vector.extract_strided_slice %27 {offsets = [0, 0], sizes = [2, 32], strides = [1, 1]} : vector<2x128xf32> to vector<2x32xf32>
    %29 = arith.negf %28 : vector<2x32xf32>
    %30 = math.exp %29 : vector<2x32xf32>
    %cst_33 = arith.constant 1.000000e+00 : f32
    %31 = vector.broadcast %cst_33 : f32 to vector<2x32xf32>
    %32 = arith.addf %31, %30 : vector<2x32xf32>
    %33 = arith.divf %31, %32 : vector<2x32xf32>
    %34 = vector.extract_strided_slice %27 {offsets = [0, 32], sizes = [2, 32], strides = [1, 1]} : vector<2x128xf32> to vector<2x32xf32>
    %35 = arith.negf %34 : vector<2x32xf32>
    %36 = math.exp %35 : vector<2x32xf32>
    %cst_34 = arith.constant 1.000000e+00 : f32
    %37 = vector.broadcast %cst_34 : f32 to vector<2x32xf32>
    %38 = arith.addf %37, %36 : vector<2x32xf32>
    %39 = arith.divf %37, %38 : vector<2x32xf32>
    %40 = vector.extract_strided_slice %27 {offsets = [0, 64], sizes = [2, 32], strides = [1, 1]} : vector<2x128xf32> to vector<2x32xf32>
    %41 = math.tanh %40 : vector<2x32xf32>
    %42 = vector.extract_strided_slice %27 {offsets = [0, 96], sizes = [2, 32], strides = [1, 1]} : vector<2x128xf32> to vector<2x32xf32>
    %43 = arith.negf %42 : vector<2x32xf32>
    %44 = math.exp %43 : vector<2x32xf32>
    %cst_35 = arith.constant 1.000000e+00 : f32
    %45 = vector.broadcast %cst_35 : f32 to vector<2x32xf32>
    %46 = arith.addf %45, %44 : vector<2x32xf32>
    %47 = arith.divf %45, %46 : vector<2x32xf32>
    %48 = arith.mulf %39, %22 : vector<2x32xf32>
    %49 = arith.mulf %33, %41 : vector<2x32xf32>
    %50 = arith.addf %48, %49 : vector<2x32xf32>
    %51 = math.tanh %50 : vector<2x32xf32>
    %52 = arith.mulf %47, %51 : vector<2x32xf32>
    %cst_36 = arith.constant dense<0.000000e+00> : vector<2x9xf32>
    %53 = tpu.matmul %52, %12, %cst_36 {dimension_numbers = #tpu.dot_dimension_numbers<[1], [0], [0], [1], [0, 0, 1, 1], [], []>} : vector<2x32xf32>, vector<32x9xf32>, vector<2x9xf32> -> vector<2x9xf32>
    %54 = vector.broadcast %13 : vector<1x9xf32> to vector<2x9xf32>
    %55 = arith.addf %53, %54 : vector<2x9xf32>
    %cst_37 = arith.constant dense<0xFF800000> : vector<2xf32>
    %56 = vector.multi_reduction <maximumf>, %55, %cst_37 [1] : vector<2x9xf32> to vector<2xf32>
    %57 = vector.shape_cast %56 : vector<2xf32> to vector<2x1xf32>
    %58 = vector.broadcast %57 : vector<2x1xf32> to vector<2x9xf32>
    %59 = arith.subf %55, %58 : vector<2x9xf32>
    %60 = math.exp %59 : vector<2x9xf32>
    %cst_38 = arith.constant dense<0.000000e+00> : vector<2xf32>
    %61 = vector.multi_reduction <add>, %60, %cst_38 [1] : vector<2x9xf32> to vector<2xf32>
    %62 = vector.shape_cast %61 : vector<2xf32> to vector<2x1xf32>
    %63 = math.log %62 : vector<2x1xf32>
    %64 = vector.broadcast %63 : vector<2x1xf32> to vector<2x9xf32>
    %65 = arith.subf %59, %64 : vector<2x9xf32>
    %cst_39 = arith.constant dense<0xFF800000> : vector<2xf32>
    %66 = vector.multi_reduction <maximumf>, %65, %cst_39 [1] : vector<2x9xf32> to vector<2xf32>
    %67 = vector.shape_cast %66 : vector<2xf32> to vector<2x1xf32>
    %68 = vector.broadcast %67 : vector<2x1xf32> to vector<2x9xf32>
    %69 = arith.cmpf oge, %65, %68 : vector<2x9xf32>
    %c9_i32 = arith.constant 9 : i32
    %70 = vector.broadcast %c9_i32 : i32 to vector<2x9xi32>
    %71 = arith.select %69, %17, %70 : vector<2x9xi1>, vector<2x9xi32>
    %cst_40 = arith.constant dense<2147483647> : vector<2xi32>
    %72 = vector.multi_reduction <minsi>, %71, %cst_40 [1] : vector<2x9xi32> to vector<2xi32>
    %73 = vector.shape_cast %72 : vector<2xi32> to vector<2x1xi32>
    %74 = vector.broadcast %73 : vector<2x1xi32> to vector<2x9xi32>
    %75 = arith.cmpi eq, %17, %74 : vector<2x9xi32>
    %76 = arith.extui %75 : vector<2x9xi1> to vector<2x9xi32>
    %77 = arith.sitofp %76 : vector<2x9xi32> to vector<2x9xf32>
    %cst_41 = arith.constant dense<0.000000e+00> : vector<2x8xf32>
    %78 = tpu.matmul %77, %14, %cst_41 {dimension_numbers = #tpu.dot_dimension_numbers<[1], [0], [0], [1], [0, 0, 1, 1], [], []>} : vector<2x9xf32>, vector<9x8xf32>, vector<2x8xf32> -> vector<2x8xf32>
    %79 = tpu.concatenate %52, %78 in 1 : vector<2x32xf32>, vector<2x8xf32> -> vector<2x40xf32>
    %cst_42 = arith.constant dense<0.000000e+00> : vector<2x32xf32>
    %80 = tpu.matmul %79, %15, %cst_42 {dimension_numbers = #tpu.dot_dimension_numbers<[1], [0], [0], [1], [0, 0, 1, 1], [], []>} : vector<2x40xf32>, vector<40x32xf32>, vector<2x32xf32> -> vector<2x32xf32>
    %81 = vector.extract_strided_slice %80 {offsets = [0, 0], sizes = [2, 16], strides = [1, 1]} : vector<2x32xf32> to vector<2x16xf32>
    %82 = arith.index_cast %c0_i32 : i32 to index
    %c0_43 = arith.constant 0 : index
    %c0_44 = arith.constant 0 : index
    %83 = vector.load %arg14[%82, %c0_43, %c0_44] : memref<8x2x16xf32, #tpu.memory_space<vmem>>, vector<1x2x16xf32>
    %84 = vector.shape_cast %83 : vector<1x2x16xf32> to vector<2x16xf32>
    %85 = vector.shape_cast %81 : vector<2x16xf32> to vector<1x2x16xf32>
    tpu.vector_store %arg14[%82, %c0_43, %c0_44], %85 {strides = array<i32>} : memref<8x2x16xf32, #tpu.memory_space<vmem>>, vector<1x2x16xf32>,
    %86 = vector.extract_strided_slice %80 {offsets = [0, 16], sizes = [2, 16], strides = [1, 1]} : vector<2x32xf32> to vector<2x16xf32>
    %c0_45 = arith.constant 0 : index
    %c0_46 = arith.constant 0 : index
    %c0_47 = arith.constant 0 : index
    %87 = vector.load %arg14[%c0_45, %c0_46, %c0_47] : memref<8x2x16xf32, #tpu.memory_space<vmem>>, vector<8x2x16xf32>
    %88 = vector.shape_cast %86 : vector<2x16xf32> to vector<1x2x16xf32>
    %89 = vector.broadcast %88 : vector<1x2x16xf32> to vector<8x2x16xf32>
    %90 = arith.addf %87, %89 : vector<8x2x16xf32>
    %91 = math.tanh %90 : vector<8x2x16xf32>
    %92 = vector.shape_cast %91 : vector<8x2x16xf32> to vector<16x16xf32>
    %cst_48 = arith.constant dense<0.000000e+00> : vector<16x5xf32>
    %93 = tpu.matmul %92, %16, %cst_48 {dimension_numbers = #tpu.dot_dimension_numbers<[1], [0], [0], [1], [0, 0, 1, 1], [], []>} : vector<16x16xf32>, vector<16x5xf32>, vector<16x5xf32> -> vector<16x5xf32>
    %94 = vector.shape_cast %93 : vector<16x5xf32> to vector<8x2x5xf32>
    %cst_49 = arith.constant dense<0xFF800000> : vector<8x2xf32>
    %95 = vector.multi_reduction <maximumf>, %94, %cst_49 [2] : vector<8x2x5xf32> to vector<8x2xf32>
    %96 = vector.shape_cast %95 : vector<8x2xf32> to vector<8x2x1xf32>
    %97 = vector.broadcast %96 : vector<8x2x1xf32> to vector<8x2x5xf32>
    %98 = arith.subf %94, %97 : vector<8x2x5xf32>
    %99 = math.exp %98 : vector<8x2x5xf32>
    %cst_50 = arith.constant dense<0.000000e+00> : vector<8x2xf32>
    %100 = vector.multi_reduction <add>, %99, %cst_50 [2] : vector<8x2x5xf32> to vector<8x2xf32>
    %101 = vector.shape_cast %100 : vector<8x2xf32> to vector<8x2x1xf32>
    %102 = math.log %101 : vector<8x2x1xf32>
    %103 = vector.broadcast %102 : vector<8x2x1xf32> to vector<8x2x5xf32>
    %104 = arith.subf %98, %103 : vector<8x2x5xf32>
    %105 = vector.broadcast %c0_i32 : i32 to vector<8x2x5xi32>
    %106 = arith.cmpi sle, %18, %105 : vector<8x2x5xi32>
    %cst_51 = arith.constant 0.000000e+00 : f32
    %107 = vector.broadcast %cst_51 : f32 to vector<8x2x5xf32>
    %108 = arith.select %106, %104, %107 : vector<8x2x5xi1>, vector<8x2x5xf32>
    %109 = arith.index_cast %c0_i32 : i32 to index
    %c0_52 = arith.constant 0 : index
    %c0_53 = arith.constant 0 : index
    %110 = vector.load %arg11[%109, %c0_52, %c0_53] : memref<8x2x9xf32, #tpu.memory_space<vmem>>, vector<1x2x9xf32>
    %111 = vector.shape_cast %110 : vector<1x2x9xf32> to vector<2x9xf32>
    %112 = vector.shape_cast %65 : vector<2x9xf32> to vector<1x2x9xf32>
    tpu.vector_store %arg11[%109, %c0_52, %c0_53], %112 {strides = array<i32>} : memref<8x2x9xf32, #tpu.memory_space<vmem>>, vector<1x2x9xf32>,
    %113 = arith.index_cast %c0_i32 : i32 to index
    %c0_54 = arith.constant 0 : index
    %c0_55 = arith.constant 0 : index
    %c0_56 = arith.constant 0 : index
    %114 = vector.load %arg12[%113, %c0_54, %c0_55, %c0_56] : memref<8x8x2x5xf32, #tpu.memory_space<vmem>>, vector<1x8x2x5xf32>
    %115 = vector.shape_cast %114 : vector<1x8x2x5xf32> to vector<8x2x5xf32>
    %116 = vector.shape_cast %108 : vector<8x2x5xf32> to vector<1x8x2x5xf32>
    tpu.vector_store %arg12[%113, %c0_54, %c0_55, %c0_56], %116 {strides = array<i32>} : memref<8x8x2x5xf32, #tpu.memory_space<vmem>>, vector<1x8x2x5xf32>,
    %c1_i32 = arith.constant 1 : i32
    %117 = arith.index_cast %c1_i32 : i32 to index
    %c0_57 = arith.constant 0 : index
    %c0_58 = arith.constant 0 : index
    %118 = vector.load %arg13[%117, %c0_57, %c0_58] : memref<8x2x128xf32, #tpu.memory_space<vmem>>, vector<1x2x128xf32>
    %119 = vector.shape_cast %118 : vector<1x2x128xf32> to vector<2x128xf32>
    %cst_59 = arith.constant dense<0.000000e+00> : vector<2x128xf32>
    %120 = tpu.matmul %79, %11, %cst_59 {dimension_numbers = #tpu.dot_dimension_numbers<[1], [0], [0], [1], [0, 0, 1, 1], [], []>} : vector<2x40xf32>, vector<40x128xf32>, vector<2x128xf32> -> vector<2x128xf32>
    %121 = arith.addf %119, %120 : vector<2x128xf32>
    %122 = vector.extract_strided_slice %121 {offsets = [0, 0], sizes = [2, 32], strides = [1, 1]} : vector<2x128xf32> to vector<2x32xf32>
    %123 = arith.negf %122 : vector<2x32xf32>
    %124 = math.exp %123 : vector<2x32xf32>
    %cst_60 = arith.constant 1.000000e+00 : f32
    %125 = vector.broadcast %cst_60 : f32 to vector<2x32xf32>
    %126 = arith.addf %125, %124 : vector<2x32xf32>
    %127 = arith.divf %125, %126 : vector<2x32xf32>
    %128 = vector.extract_strided_slice %121 {offsets = [0, 32], sizes = [2, 32], strides = [1, 1]} : vector<2x128xf32> to vector<2x32xf32>
    %129 = arith.negf %128 : vector<2x32xf32>
    %130 = math.exp %129 : vector<2x32xf32>
    %cst_61 = arith.constant 1.000000e+00 : f32
    %131 = vector.broadcast %cst_61 : f32 to vector<2x32xf32>
    %132 = arith.addf %131, %130 : vector<2x32xf32>
    %133 = arith.divf %131, %132 : vector<2x32xf32>
    %134 = vector.extract_strided_slice %121 {offsets = [0, 64], sizes = [2, 32], strides = [1, 1]} : vector<2x128xf32> to vector<2x32xf32>
    %135 = math.tanh %134 : vector<2x32xf32>
    %136 = vector.extract_strided_slice %121 {offsets = [0, 96], sizes = [2, 32], strides = [1, 1]} : vector<2x128xf32> to vector<2x32xf32>
    %137 = arith.negf %136 : vector<2x32xf32>
    %138 = math.exp %137 : vector<2x32xf32>
    %cst_62 = arith.constant 1.000000e+00 : f32
    %139 = vector.broadcast %cst_62 : f32 to vector<2x32xf32>
    %140 = arith.addf %139, %138 : vector<2x32xf32>
    %141 = arith.divf %139, %140 : vector<2x32xf32>
    %142 = arith.mulf %133, %50 : vector<2x32xf32>
    %143 = arith.mulf %127, %135 : vector<2x32xf32>
    %144 = arith.addf %142, %143 : vector<2x32xf32>
    %145 = math.tanh %144 : vector<2x32xf32>
    %146 = arith.mulf %141, %145 : vector<2x32xf32>
    %cst_63 = arith.constant dense<0.000000e+00> : vector<2x9xf32>
    %147 = tpu.matmul %146, %12, %cst_63 {dimension_numbers = #tpu.dot_dimension_numbers<[1], [0], [0], [1], [0, 0, 1, 1], [], []>} : vector<2x32xf32>, vector<32x9xf32>, vector<2x9xf32> -> vector<2x9xf32>
    %148 = vector.broadcast %13 : vector<1x9xf32> to vector<2x9xf32>
    %149 = arith.addf %147, %148 : vector<2x9xf32>
    %cst_64 = arith.constant dense<0xFF800000> : vector<2xf32>
    %150 = vector.multi_reduction <maximumf>, %149, %cst_64 [1] : vector<2x9xf32> to vector<2xf32>
    %151 = vector.shape_cast %150 : vector<2xf32> to vector<2x1xf32>
    %152 = vector.broadcast %151 : vector<2x1xf32> to vector<2x9xf32>
    %153 = arith.subf %149, %152 : vector<2x9xf32>
    %154 = math.exp %153 : vector<2x9xf32>
    %cst_65 = arith.constant dense<0.000000e+00> : vector<2xf32>
    %155 = vector.multi_reduction <add>, %154, %cst_65 [1] : vector<2x9xf32> to vector<2xf32>
    %156 = vector.shape_cast %155 : vector<2xf32> to vector<2x1xf32>
    %157 = math.log %156 : vector<2x1xf32>
    %158 = vector.broadcast %157 : vector<2x1xf32> to vector<2x9xf32>
    %159 = arith.subf %153, %158 : vector<2x9xf32>
    %cst_66 = arith.constant dense<0xFF800000> : vector<2xf32>
    %160 = vector.multi_reduction <maximumf>, %159, %cst_66 [1] : vector<2x9xf32> to vector<2xf32>
    %161 = vector.shape_cast %160 : vector<2xf32> to vector<2x1xf32>
    %162 = vector.broadcast %161 : vector<2x1xf32> to vector<2x9xf32>
    %163 = arith.cmpf oge, %159, %162 : vector<2x9xf32>
    %c9_i32_67 = arith.constant 9 : i32
    %164 = vector.broadcast %c9_i32_67 : i32 to vector<2x9xi32>
    %165 = arith.select %163, %17, %164 : vector<2x9xi1>, vector<2x9xi32>
    %cst_68 = arith.constant dense<2147483647> : vector<2xi32>
    %166 = vector.multi_reduction <minsi>, %165, %cst_68 [1] : vector<2x9xi32> to vector<2xi32>
    %167 = vector.shape_cast %166 : vector<2xi32> to vector<2x1xi32>
    %168 = vector.broadcast %167 : vector<2x1xi32> to vector<2x9xi32>
    %169 = arith.cmpi eq, %17, %168 : vector<2x9xi32>
    %170 = arith.extui %169 : vector<2x9xi1> to vector<2x9xi32>
    %171 = arith.sitofp %170 : vector<2x9xi32> to vector<2x9xf32>
    %cst_69 = arith.constant dense<0.000000e+00> : vector<2x8xf32>
    %172 = tpu.matmul %171, %14, %cst_69 {dimension_numbers = #tpu.dot_dimension_numbers<[1], [0], [0], [1], [0, 0, 1, 1], [], []>} : vector<2x9xf32>, vector<9x8xf32>, vector<2x8xf32> -> vector<2x8xf32>
    %173 = tpu.concatenate %146, %172 in 1 : vector<2x32xf32>, vector<2x8xf32> -> vector<2x40xf32>
    %cst_70 = arith.constant dense<0.000000e+00> : vector<2x32xf32>
    %174 = tpu.matmul %173, %15, %cst_70 {dimension_numbers = #tpu.dot_dimension_numbers<[1], [0], [0], [1], [0, 0, 1, 1], [], []>} : vector<2x40xf32>, vector<40x32xf32>, vector<2x32xf32> -> vector<2x32xf32>
    %175 = vector.extract_strided_slice %174 {offsets = [0, 0], sizes = [2, 16], strides = [1, 1]} : vector<2x32xf32> to vector<2x16xf32>
    %176 = arith.index_cast %c1_i32 : i32 to index
    %c0_71 = arith.constant 0 : index
    %c0_72 = arith.constant 0 : index
    %177 = vector.load %arg14[%176, %c0_71, %c0_72] : memref<8x2x16xf32, #tpu.memory_space<vmem>>, vector<1x2x16xf32>
    %178 = vector.shape_cast %177 : vector<1x2x16xf32> to vector<2x16xf32>
    %179 = vector.shape_cast %175 : vector<2x16xf32> to vector<1x2x16xf32>
    tpu.vector_store %arg14[%176, %c0_71, %c0_72], %179 {strides = array<i32>} : memref<8x2x16xf32, #tpu.memory_space<vmem>>, vector<1x2x16xf32>,
    %180 = vector.extract_strided_slice %174 {offsets = [0, 16], sizes = [2, 16], strides = [1, 1]} : vector<2x32xf32> to vector<2x16xf32>
    %c0_73 = arith.constant 0 : index
    %c0_74 = arith.constant 0 : index
    %c0_75 = arith.constant 0 : index
    %181 = vector.load %arg14[%c0_73, %c0_74, %c0_75] : memref<8x2x16xf32, #tpu.memory_space<vmem>>, vector<8x2x16xf32>
    %182 = vector.shape_cast %180 : vector<2x16xf32> to vector<1x2x16xf32>
    %183 = vector.broadcast %182 : vector<1x2x16xf32> to vector<8x2x16xf32>
    %184 = arith.addf %181, %183 : vector<8x2x16xf32>
    %185 = math.tanh %184 : vector<8x2x16xf32>
    %186 = vector.shape_cast %185 : vector<8x2x16xf32> to vector<16x16xf32>
    %cst_76 = arith.constant dense<0.000000e+00> : vector<16x5xf32>
    %187 = tpu.matmul %186, %16, %cst_76 {dimension_numbers = #tpu.dot_dimension_numbers<[1], [0], [0], [1], [0, 0, 1, 1], [], []>} : vector<16x16xf32>, vector<16x5xf32>, vector<16x5xf32> -> vector<16x5xf32>
    %188 = vector.shape_cast %187 : vector<16x5xf32> to vector<8x2x5xf32>
    %cst_77 = arith.constant dense<0xFF800000> : vector<8x2xf32>
    %189 = vector.multi_reduction <maximumf>, %188, %cst_77 [2] : vector<8x2x5xf32> to vector<8x2xf32>
    %190 = vector.shape_cast %189 : vector<8x2xf32> to vector<8x2x1xf32>
    %191 = vector.broadcast %190 : vector<8x2x1xf32> to vector<8x2x5xf32>
    %192 = arith.subf %188, %191 : vector<8x2x5xf32>
    %193 = math.exp %192 : vector<8x2x5xf32>
    %cst_78 = arith.constant dense<0.000000e+00> : vector<8x2xf32>
    %194 = vector.multi_reduction <add>, %193, %cst_78 [2] : vector<8x2x5xf32> to vector<8x2xf32>
    %195 = vector.shape_cast %194 : vector<8x2xf32> to vector<8x2x1xf32>
    %196 = math.log %195 : vector<8x2x1xf32>
    %197 = vector.broadcast %196 : vector<8x2x1xf32> to vector<8x2x5xf32>
    %198 = arith.subf %192, %197 : vector<8x2x5xf32>
    %199 = vector.broadcast %c1_i32 : i32 to vector<8x2x5xi32>
    %200 = arith.cmpi sle, %18, %199 : vector<8x2x5xi32>
    %cst_79 = arith.constant 0.000000e+00 : f32
    %201 = vector.broadcast %cst_79 : f32 to vector<8x2x5xf32>
    %202 = arith.select %200, %198, %201 : vector<8x2x5xi1>, vector<8x2x5xf32>
    %203 = arith.index_cast %c1_i32 : i32 to index
    %c0_80 = arith.constant 0 : index
    %c0_81 = arith.constant 0 : index
    %204 = vector.load %arg11[%203, %c0_80, %c0_81] : memref<8x2x9xf32, #tpu.memory_space<vmem>>, vector<1x2x9xf32>
    %205 = vector.shape_cast %204 : vector<1x2x9xf32> to vector<2x9xf32>
    %206 = vector.shape_cast %159 : vector<2x9xf32> to vector<1x2x9xf32>
    tpu.vector_store %arg11[%203, %c0_80, %c0_81], %206 {strides = array<i32>} : memref<8x2x9xf32, #tpu.memory_space<vmem>>, vector<1x2x9xf32>,
    %207 = arith.index_cast %c1_i32 : i32 to index
    %c0_82 = arith.constant 0 : index
    %c0_83 = arith.constant 0 : index
    %c0_84 = arith.constant 0 : index
    %208 = vector.load %arg12[%207, %c0_82, %c0_83, %c0_84] : memref<8x8x2x5xf32, #tpu.memory_space<vmem>>, vector<1x8x2x5xf32>
    %209 = vector.shape_cast %208 : vector<1x8x2x5xf32> to vector<8x2x5xf32>
    %210 = vector.shape_cast %202 : vector<8x2x5xf32> to vector<1x8x2x5xf32>
    tpu.vector_store %arg12[%207, %c0_82, %c0_83, %c0_84], %210 {strides = array<i32>} : memref<8x8x2x5xf32, #tpu.memory_space<vmem>>, vector<1x8x2x5xf32>,
    %c2_i32 = arith.constant 2 : i32
    %211 = arith.index_cast %c2_i32 : i32 to index
    %c0_85 = arith.constant 0 : index
    %c0_86 = arith.constant 0 : index
    %212 = vector.load %arg13[%211, %c0_85, %c0_86] : memref<8x2x128xf32, #tpu.memory_space<vmem>>, vector<1x2x128xf32>
    %213 = vector.shape_cast %212 : vector<1x2x128xf32> to vector<2x128xf32>
    %cst_87 = arith.constant dense<0.000000e+00> : vector<2x128xf32>
    %214 = tpu.matmul %173, %11, %cst_87 {dimension_numbers = #tpu.dot_dimension_numbers<[1], [0], [0], [1], [0, 0, 1, 1], [], []>} : vector<2x40xf32>, vector<40x128xf32>, vector<2x128xf32> -> vector<2x128xf32>
    %215 = arith.addf %213, %214 : vector<2x128xf32>
    %216 = vector.extract_strided_slice %215 {offsets = [0, 0], sizes = [2, 32], strides = [1, 1]} : vector<2x128xf32> to vector<2x32xf32>
    %217 = arith.negf %216 : vector<2x32xf32>
    %218 = math.exp %217 : vector<2x32xf32>
    %cst_88 = arith.constant 1.000000e+00 : f32
    %219 = vector.broadcast %cst_88 : f32 to vector<2x32xf32>
    %220 = arith.addf %219, %218 : vector<2x32xf32>
    %221 = arith.divf %219, %220 : vector<2x32xf32>
    %222 = vector.extract_strided_slice %215 {offsets = [0, 32], sizes = [2, 32], strides = [1, 1]} : vector<2x128xf32> to vector<2x32xf32>
    %223 = arith.negf %222 : vector<2x32xf32>
    %224 = math.exp %223 : vector<2x32xf32>
    %cst_89 = arith.constant 1.000000e+00 : f32
    %225 = vector.broadcast %cst_89 : f32 to vector<2x32xf32>
    %226 = arith.addf %225, %224 : vector<2x32xf32>
    %227 = arith.divf %225, %226 : vector<2x32xf32>
    %228 = vector.extract_strided_slice %215 {offsets = [0, 64], sizes = [2, 32], strides = [1, 1]} : vector<2x128xf32> to vector<2x32xf32>
    %229 = math.tanh %228 : vector<2x32xf32>
    %230 = vector.extract_strided_slice %215 {offsets = [0, 96], sizes = [2, 32], strides = [1, 1]} : vector<2x128xf32> to vector<2x32xf32>
    %231 = arith.negf %230 : vector<2x32xf32>
    %232 = math.exp %231 : vector<2x32xf32>
    %cst_90 = arith.constant 1.000000e+00 : f32
    %233 = vector.broadcast %cst_90 : f32 to vector<2x32xf32>
    %234 = arith.addf %233, %232 : vector<2x32xf32>
    %235 = arith.divf %233, %234 : vector<2x32xf32>
    %236 = arith.mulf %227, %144 : vector<2x32xf32>
    %237 = arith.mulf %221, %229 : vector<2x32xf32>
    %238 = arith.addf %236, %237 : vector<2x32xf32>
    %239 = math.tanh %238 : vector<2x32xf32>
    %240 = arith.mulf %235, %239 : vector<2x32xf32>
    %cst_91 = arith.constant dense<0.000000e+00> : vector<2x9xf32>
    %241 = tpu.matmul %240, %12, %cst_91 {dimension_numbers = #tpu.dot_dimension_numbers<[1], [0], [0], [1], [0, 0, 1, 1], [], []>} : vector<2x32xf32>, vector<32x9xf32>, vector<2x9xf32> -> vector<2x9xf32>
    %242 = vector.broadcast %13 : vector<1x9xf32> to vector<2x9xf32>
    %243 = arith.addf %241, %242 : vector<2x9xf32>
    %cst_92 = arith.constant dense<0xFF800000> : vector<2xf32>
    %244 = vector.multi_reduction <maximumf>, %243, %cst_92 [1] : vector<2x9xf32> to vector<2xf32>
    %245 = vector.shape_cast %244 : vector<2xf32> to vector<2x1xf32>
    %246 = vector.broadcast %245 : vector<2x1xf32> to vector<2x9xf32>
    %247 = arith.subf %243, %246 : vector<2x9xf32>
    %248 = math.exp %247 : vector<2x9xf32>
    %cst_93 = arith.constant dense<0.000000e+00> : vector<2xf32>
    %249 = vector.multi_reduction <add>, %248, %cst_93 [1] : vector<2x9xf32> to vector<2xf32>
    %250 = vector.shape_cast %249 : vector<2xf32> to vector<2x1xf32>
    %251 = math.log %250 : vector<2x1xf32>
    %252 = vector.broadcast %251 : vector<2x1xf32> to vector<2x9xf32>
    %253 = arith.subf %247, %252 : vector<2x9xf32>
    %cst_94 = arith.constant dense<0xFF800000> : vector<2xf32>
    %254 = vector.multi_reduction <maximumf>, %253, %cst_94 [1] : vector<2x9xf32> to vector<2xf32>
    %255 = vector.shape_cast %254 : vector<2xf32> to vector<2x1xf32>
    %256 = vector.broadcast %255 : vector<2x1xf32> to vector<2x9xf32>
    %257 = arith.cmpf oge, %253, %256 : vector<2x9xf32>
    %c9_i32_95 = arith.constant 9 : i32
    %258 = vector.broadcast %c9_i32_95 : i32 to vector<2x9xi32>
    %259 = arith.select %257, %17, %258 : vector<2x9xi1>, vector<2x9xi32>
    %cst_96 = arith.constant dense<2147483647> : vector<2xi32>
    %260 = vector.multi_reduction <minsi>, %259, %cst_96 [1] : vector<2x9xi32> to vector<2xi32>
    %261 = vector.shape_cast %260 : vector<2xi32> to vector<2x1xi32>
    %262 = vector.broadcast %261 : vector<2x1xi32> to vector<2x9xi32>
    %263 = arith.cmpi eq, %17, %262 : vector<2x9xi32>
    %264 = arith.extui %263 : vector<2x9xi1> to vector<2x9xi32>
    %265 = arith.sitofp %264 : vector<2x9xi32> to vector<2x9xf32>
    %cst_97 = arith.constant dense<0.000000e+00> : vector<2x8xf32>
    %266 = tpu.matmul %265, %14, %cst_97 {dimension_numbers = #tpu.dot_dimension_numbers<[1], [0], [0], [1], [0, 0, 1, 1], [], []>} : vector<2x9xf32>, vector<9x8xf32>, vector<2x8xf32> -> vector<2x8xf32>
    %267 = tpu.concatenate %240, %266 in 1 : vector<2x32xf32>, vector<2x8xf32> -> vector<2x40xf32>
    %cst_98 = arith.constant dense<0.000000e+00> : vector<2x32xf32>
    %268 = tpu.matmul %267, %15, %cst_98 {dimension_numbers = #tpu.dot_dimension_numbers<[1], [0], [0], [1], [0, 0, 1, 1], [], []>} : vector<2x40xf32>, vector<40x32xf32>, vector<2x32xf32> -> vector<2x32xf32>
    %269 = vector.extract_strided_slice %268 {offsets = [0, 0], sizes = [2, 16], strides = [1, 1]} : vector<2x32xf32> to vector<2x16xf32>
    %270 = arith.index_cast %c2_i32 : i32 to index
    %c0_99 = arith.constant 0 : index
    %c0_100 = arith.constant 0 : index
    %271 = vector.load %arg14[%270, %c0_99, %c0_100] : memref<8x2x16xf32, #tpu.memory_space<vmem>>, vector<1x2x16xf32>
    %272 = vector.shape_cast %271 : vector<1x2x16xf32> to vector<2x16xf32>
    %273 = vector.shape_cast %269 : vector<2x16xf32> to vector<1x2x16xf32>
    tpu.vector_store %arg14[%270, %c0_99, %c0_100], %273 {strides = array<i32>} : memref<8x2x16xf32, #tpu.memory_space<vmem>>, vector<1x2x16xf32>,
    %274 = vector.extract_strided_slice %268 {offsets = [0, 16], sizes = [2, 16], strides = [1, 1]} : vector<2x32xf32> to vector<2x16xf32>
    %c0_101 = arith.constant 0 : index
    %c0_102 = arith.constant 0 : index
    %c0_103 = arith.constant 0 : index
    %275 = vector.load %arg14[%c0_101, %c0_102, %c0_103] : memref<8x2x16xf32, #tpu.memory_space<vmem>>, vector<8x2x16xf32>
    %276 = vector.shape_cast %274 : vector<2x16xf32> to vector<1x2x16xf32>
    %277 = vector.broadcast %276 : vector<1x2x16xf32> to vector<8x2x16xf32>
    %278 = arith.addf %275, %277 : vector<8x2x16xf32>
    %279 = math.tanh %278 : vector<8x2x16xf32>
    %280 = vector.shape_cast %279 : vector<8x2x16xf32> to vector<16x16xf32>
    %cst_104 = arith.constant dense<0.000000e+00> : vector<16x5xf32>
    %281 = tpu.matmul %280, %16, %cst_104 {dimension_numbers = #tpu.dot_dimension_numbers<[1], [0], [0], [1], [0, 0, 1, 1], [], []>} : vector<16x16xf32>, vector<16x5xf32>, vector<16x5xf32> -> vector<16x5xf32>
    %282 = vector.shape_cast %281 : vector<16x5xf32> to vector<8x2x5xf32>
    %cst_105 = arith.constant dense<0xFF800000> : vector<8x2xf32>
    %283 = vector.multi_reduction <maximumf>, %282, %cst_105 [2] : vector<8x2x5xf32> to vector<8x2xf32>
    %284 = vector.shape_cast %283 : vector<8x2xf32> to vector<8x2x1xf32>
    %285 = vector.broadcast %284 : vector<8x2x1xf32> to vector<8x2x5xf32>
    %286 = arith.subf %282, %285 : vector<8x2x5xf32>
    %287 = math.exp %286 : vector<8x2x5xf32>
    %cst_106 = arith.constant dense<0.000000e+00> : vector<8x2xf32>
    %288 = vector.multi_reduction <add>, %287, %cst_106 [2] : vector<8x2x5xf32> to vector<8x2xf32>
    %289 = vector.shape_cast %288 : vector<8x2xf32> to vector<8x2x1xf32>
    %290 = math.log %289 : vector<8x2x1xf32>
    %291 = vector.broadcast %290 : vector<8x2x1xf32> to vector<8x2x5xf32>
    %292 = arith.subf %286, %291 : vector<8x2x5xf32>
    %293 = vector.broadcast %c2_i32 : i32 to vector<8x2x5xi32>
    %294 = arith.cmpi sle, %18, %293 : vector<8x2x5xi32>
    %cst_107 = arith.constant 0.000000e+00 : f32
    %295 = vector.broadcast %cst_107 : f32 to vector<8x2x5xf32>
    %296 = arith.select %294, %292, %295 : vector<8x2x5xi1>, vector<8x2x5xf32>
    %297 = arith.index_cast %c2_i32 : i32 to index
    %c0_108 = arith.constant 0 : index
    %c0_109 = arith.constant 0 : index
    %298 = vector.load %arg11[%297, %c0_108, %c0_109] : memref<8x2x9xf32, #tpu.memory_space<vmem>>, vector<1x2x9xf32>
    %299 = vector.shape_cast %298 : vector<1x2x9xf32> to vector<2x9xf32>
    %300 = vector.shape_cast %253 : vector<2x9xf32> to vector<1x2x9xf32>
    tpu.vector_store %arg11[%297, %c0_108, %c0_109], %300 {strides = array<i32>} : memref<8x2x9xf32, #tpu.memory_space<vmem>>, vector<1x2x9xf32>,
    %301 = arith.index_cast %c2_i32 : i32 to index
    %c0_110 = arith.constant 0 : index
    %c0_111 = arith.constant 0 : index
    %c0_112 = arith.constant 0 : index
    %302 = vector.load %arg12[%301, %c0_110, %c0_111, %c0_112] : memref<8x8x2x5xf32, #tpu.memory_space<vmem>>, vector<1x8x2x5xf32>
    %303 = vector.shape_cast %302 : vector<1x8x2x5xf32> to vector<8x2x5xf32>
    %304 = vector.shape_cast %296 : vector<8x2x5xf32> to vector<1x8x2x5xf32>
    tpu.vector_store %arg12[%301, %c0_110, %c0_111, %c0_112], %304 {strides = array<i32>} : memref<8x8x2x5xf32, #tpu.memory_space<vmem>>, vector<1x8x2x5xf32>,
    %c3_i32 = arith.constant 3 : i32
    %305 = arith.index_cast %c3_i32 : i32 to index
    %c0_113 = arith.constant 0 : index
    %c0_114 = arith.constant 0 : index
    %306 = vector.load %arg13[%305, %c0_113, %c0_114] : memref<8x2x128xf32, #tpu.memory_space<vmem>>, vector<1x2x128xf32>
    %307 = vector.shape_cast %306 : vector<1x2x128xf32> to vector<2x128xf32>
    %cst_115 = arith.constant dense<0.000000e+00> : vector<2x128xf32>
    %308 = tpu.matmul %267, %11, %cst_115 {dimension_numbers = #tpu.dot_dimension_numbers<[1], [0], [0], [1], [0, 0, 1, 1], [], []>} : vector<2x40xf32>, vector<40x128xf32>, vector<2x128xf32> -> vector<2x128xf32>
    %309 = arith.addf %307, %308 : vector<2x128xf32>
    %310 = vector.extract_strided_slice %309 {offsets = [0, 0], sizes = [2, 32], strides = [1, 1]} : vector<2x128xf32> to vector<2x32xf32>
    %311 = arith.negf %310 : vector<2x32xf32>
    %312 = math.exp %311 : vector<2x32xf32>
    %cst_116 = arith.constant 1.000000e+00 : f32
    %313 = vector.broadcast %cst_116 : f32 to vector<2x32xf32>
    %314 = arith.addf %313, %312 : vector<2x32xf32>
    %315 = arith.divf %313, %314 : vector<2x32xf32>
    %316 = vector.extract_strided_slice %309 {offsets = [0, 32], sizes = [2, 32], strides = [1, 1]} : vector<2x128xf32> to vector<2x32xf32>
    %317 = arith.negf %316 : vector<2x32xf32>
    %318 = math.exp %317 : vector<2x32xf32>
    %cst_117 = arith.constant 1.000000e+00 : f32
    %319 = vector.broadcast %cst_117 : f32 to vector<2x32xf32>
    %320 = arith.addf %319, %318 : vector<2x32xf32>
    %321 = arith.divf %319, %320 : vector<2x32xf32>
    %322 = vector.extract_strided_slice %309 {offsets = [0, 64], sizes = [2, 32], strides = [1, 1]} : vector<2x128xf32> to vector<2x32xf32>
    %323 = math.tanh %322 : vector<2x32xf32>
    %324 = vector.extract_strided_slice %309 {offsets = [0, 96], sizes = [2, 32], strides = [1, 1]} : vector<2x128xf32> to vector<2x32xf32>
    %325 = arith.negf %324 : vector<2x32xf32>
    %326 = math.exp %325 : vector<2x32xf32>
    %cst_118 = arith.constant 1.000000e+00 : f32
    %327 = vector.broadcast %cst_118 : f32 to vector<2x32xf32>
    %328 = arith.addf %327, %326 : vector<2x32xf32>
    %329 = arith.divf %327, %328 : vector<2x32xf32>
    %330 = arith.mulf %321, %238 : vector<2x32xf32>
    %331 = arith.mulf %315, %323 : vector<2x32xf32>
    %332 = arith.addf %330, %331 : vector<2x32xf32>
    %333 = math.tanh %332 : vector<2x32xf32>
    %334 = arith.mulf %329, %333 : vector<2x32xf32>
    %cst_119 = arith.constant dense<0.000000e+00> : vector<2x9xf32>
    %335 = tpu.matmul %334, %12, %cst_119 {dimension_numbers = #tpu.dot_dimension_numbers<[1], [0], [0], [1], [0, 0, 1, 1], [], []>} : vector<2x32xf32>, vector<32x9xf32>, vector<2x9xf32> -> vector<2x9xf32>
    %336 = vector.broadcast %13 : vector<1x9xf32> to vector<2x9xf32>
    %337 = arith.addf %335, %336 : vector<2x9xf32>
    %cst_120 = arith.constant dense<0xFF800000> : vector<2xf32>
    %338 = vector.multi_reduction <maximumf>, %337, %cst_120 [1] : vector<2x9xf32> to vector<2xf32>
    %339 = vector.shape_cast %338 : vector<2xf32> to vector<2x1xf32>
    %340 = vector.broadcast %339 : vector<2x1xf32> to vector<2x9xf32>
    %341 = arith.subf %337, %340 : vector<2x9xf32>
    %342 = math.exp %341 : vector<2x9xf32>
    %cst_121 = arith.constant dense<0.000000e+00> : vector<2xf32>
    %343 = vector.multi_reduction <add>, %342, %cst_121 [1] : vector<2x9xf32> to vector<2xf32>
    %344 = vector.shape_cast %343 : vector<2xf32> to vector<2x1xf32>
    %345 = math.log %344 : vector<2x1xf32>
    %346 = vector.broadcast %345 : vector<2x1xf32> to vector<2x9xf32>
    %347 = arith.subf %341, %346 : vector<2x9xf32>
    %cst_122 = arith.constant dense<0xFF800000> : vector<2xf32>
    %348 = vector.multi_reduction <maximumf>, %347, %cst_122 [1] : vector<2x9xf32> to vector<2xf32>
    %349 = vector.shape_cast %348 : vector<2xf32> to vector<2x1xf32>
    %350 = vector.broadcast %349 : vector<2x1xf32> to vector<2x9xf32>
    %351 = arith.cmpf oge, %347, %350 : vector<2x9xf32>
    %c9_i32_123 = arith.constant 9 : i32
    %352 = vector.broadcast %c9_i32_123 : i32 to vector<2x9xi32>
    %353 = arith.select %351, %17, %352 : vector<2x9xi1>, vector<2x9xi32>
    %cst_124 = arith.constant dense<2147483647> : vector<2xi32>
    %354 = vector.multi_reduction <minsi>, %353, %cst_124 [1] : vector<2x9xi32> to vector<2xi32>
    %355 = vector.shape_cast %354 : vector<2xi32> to vector<2x1xi32>
    %356 = vector.broadcast %355 : vector<2x1xi32> to vector<2x9xi32>
    %357 = arith.cmpi eq, %17, %356 : vector<2x9xi32>
    %358 = arith.extui %357 : vector<2x9xi1> to vector<2x9xi32>
    %359 = arith.sitofp %358 : vector<2x9xi32> to vector<2x9xf32>
    %cst_125 = arith.constant dense<0.000000e+00> : vector<2x8xf32>
    %360 = tpu.matmul %359, %14, %cst_125 {dimension_numbers = #tpu.dot_dimension_numbers<[1], [0], [0], [1], [0, 0, 1, 1], [], []>} : vector<2x9xf32>, vector<9x8xf32>, vector<2x8xf32> -> vector<2x8xf32>
    %361 = tpu.concatenate %334, %360 in 1 : vector<2x32xf32>, vector<2x8xf32> -> vector<2x40xf32>
    %cst_126 = arith.constant dense<0.000000e+00> : vector<2x32xf32>
    %362 = tpu.matmul %361, %15, %cst_126 {dimension_numbers = #tpu.dot_dimension_numbers<[1], [0], [0], [1], [0, 0, 1, 1], [], []>} : vector<2x40xf32>, vector<40x32xf32>, vector<2x32xf32> -> vector<2x32xf32>
    %363 = vector.extract_strided_slice %362 {offsets = [0, 0], sizes = [2, 16], strides = [1, 1]} : vector<2x32xf32> to vector<2x16xf32>
    %364 = arith.index_cast %c3_i32 : i32 to index
    %c0_127 = arith.constant 0 : index
    %c0_128 = arith.constant 0 : index
    %365 = vector.load %arg14[%364, %c0_127, %c0_128] : memref<8x2x16xf32, #tpu.memory_space<vmem>>, vector<1x2x16xf32>
    %366 = vector.shape_cast %365 : vector<1x2x16xf32> to vector<2x16xf32>
    %367 = vector.shape_cast %363 : vector<2x16xf32> to vector<1x2x16xf32>
    tpu.vector_store %arg14[%364, %c0_127, %c0_128], %367 {strides = array<i32>} : memref<8x2x16xf32, #tpu.memory_space<vmem>>, vector<1x2x16xf32>,
    %368 = vector.extract_strided_slice %362 {offsets = [0, 16], sizes = [2, 16], strides = [1, 1]} : vector<2x32xf32> to vector<2x16xf32>
    %c0_129 = arith.constant 0 : index
    %c0_130 = arith.constant 0 : index
    %c0_131 = arith.constant 0 : index
    %369 = vector.load %arg14[%c0_129, %c0_130, %c0_131] : memref<8x2x16xf32, #tpu.memory_space<vmem>>, vector<8x2x16xf32>
    %370 = vector.shape_cast %368 : vector<2x16xf32> to vector<1x2x16xf32>
    %371 = vector.broadcast %370 : vector<1x2x16xf32> to vector<8x2x16xf32>
    %372 = arith.addf %369, %371 : vector<8x2x16xf32>
    %373 = math.tanh %372 : vector<8x2x16xf32>
    %374 = vector.shape_cast %373 : vector<8x2x16xf32> to vector<16x16xf32>
    %cst_132 = arith.constant dense<0.000000e+00> : vector<16x5xf32>
    %375 = tpu.matmul %374, %16, %cst_132 {dimension_numbers = #tpu.dot_dimension_numbers<[1], [0], [0], [1], [0, 0, 1, 1], [], []>} : vector<16x16xf32>, vector<16x5xf32>, vector<16x5xf32> -> vector<16x5xf32>
    %376 = vector.shape_cast %375 : vector<16x5xf32> to vector<8x2x5xf32>
    %cst_133 = arith.constant dense<0xFF800000> : vector<8x2xf32>
    %377 = vector.multi_reduction <maximumf>, %376, %cst_133 [2] : vector<8x2x5xf32> to vector<8x2xf32>
    %378 = vector.shape_cast %377 : vector<8x2xf32> to vector<8x2x1xf32>
    %379 = vector.broadcast %378 : vector<8x2x1xf32> to vector<8x2x5xf32>
    %380 = arith.subf %376, %379 : vector<8x2x5xf32>
    %381 = math.exp %380 : vector<8x2x5xf32>
    %cst_134 = arith.constant dense<0.000000e+00> : vector<8x2xf32>
    %382 = vector.multi_reduction <add>, %381, %cst_134 [2] : vector<8x2x5xf32> to vector<8x2xf32>
    %383 = vector.shape_cast %382 : vector<8x2xf32> to vector<8x2x1xf32>
    %384 = math.log %383 : vector<8x2x1xf32>
    %385 = vector.broadcast %384 : vector<8x2x1xf32> to vector<8x2x5xf32>
    %386 = arith.subf %380, %385 : vector<8x2x5xf32>
    %387 = vector.broadcast %c3_i32 : i32 to vector<8x2x5xi32>
    %388 = arith.cmpi sle, %18, %387 : vector<8x2x5xi32>
    %cst_135 = arith.constant 0.000000e+00 : f32
    %389 = vector.broadcast %cst_135 : f32 to vector<8x2x5xf32>
    %390 = arith.select %388, %386, %389 : vector<8x2x5xi1>, vector<8x2x5xf32>
    %391 = arith.index_cast %c3_i32 : i32 to index
    %c0_136 = arith.constant 0 : index
    %c0_137 = arith.constant 0 : index
    %392 = vector.load %arg11[%391, %c0_136, %c0_137] : memref<8x2x9xf32, #tpu.memory_space<vmem>>, vector<1x2x9xf32>
    %393 = vector.shape_cast %392 : vector<1x2x9xf32> to vector<2x9xf32>
    %394 = vector.shape_cast %347 : vector<2x9xf32> to vector<1x2x9xf32>
    tpu.vector_store %arg11[%391, %c0_136, %c0_137], %394 {strides = array<i32>} : memref<8x2x9xf32, #tpu.memory_space<vmem>>, vector<1x2x9xf32>,
    %395 = arith.index_cast %c3_i32 : i32 to index
    %c0_138 = arith.constant 0 : index
    %c0_139 = arith.constant 0 : index
    %c0_140 = arith.constant 0 : index
    %396 = vector.load %arg12[%395, %c0_138, %c0_139, %c0_140] : memref<8x8x2x5xf32, #tpu.memory_space<vmem>>, vector<1x8x2x5xf32>
    %397 = vector.shape_cast %396 : vector<1x8x2x5xf32> to vector<8x2x5xf32>
    %398 = vector.shape_cast %390 : vector<8x2x5xf32> to vector<1x8x2x5xf32>
    tpu.vector_store %arg12[%395, %c0_138, %c0_139, %c0_140], %398 {strides = array<i32>} : memref<8x8x2x5xf32, #tpu.memory_space<vmem>>, vector<1x8x2x5xf32>,
    %c4_i32 = arith.constant 4 : i32
    %399 = arith.index_cast %c4_i32 : i32 to index
    %c0_141 = arith.constant 0 : index
    %c0_142 = arith.constant 0 : index
    %400 = vector.load %arg13[%399, %c0_141, %c0_142] : memref<8x2x128xf32, #tpu.memory_space<vmem>>, vector<1x2x128xf32>
    %401 = vector.shape_cast %400 : vector<1x2x128xf32> to vector<2x128xf32>
    %cst_143 = arith.constant dense<0.000000e+00> : vector<2x128xf32>
    %402 = tpu.matmul %361, %11, %cst_143 {dimension_numbers = #tpu.dot_dimension_numbers<[1], [0], [0], [1], [0, 0, 1, 1], [], []>} : vector<2x40xf32>, vector<40x128xf32>, vector<2x128xf32> -> vector<2x128xf32>
    %403 = arith.addf %401, %402 : vector<2x128xf32>
    %404 = vector.extract_strided_slice %403 {offsets = [0, 0], sizes = [2, 32], strides = [1, 1]} : vector<2x128xf32> to vector<2x32xf32>
    %405 = arith.negf %404 : vector<2x32xf32>
    %406 = math.exp %405 : vector<2x32xf32>
    %cst_144 = arith.constant 1.000000e+00 : f32
    %407 = vector.broadcast %cst_144 : f32 to vector<2x32xf32>
    %408 = arith.addf %407, %406 : vector<2x32xf32>
    %409 = arith.divf %407, %408 : vector<2x32xf32>
    %410 = vector.extract_strided_slice %403 {offsets = [0, 32], sizes = [2, 32], strides = [1, 1]} : vector<2x128xf32> to vector<2x32xf32>
    %411 = arith.negf %410 : vector<2x32xf32>
    %412 = math.exp %411 : vector<2x32xf32>
    %cst_145 = arith.constant 1.000000e+00 : f32
    %413 = vector.broadcast %cst_145 : f32 to vector<2x32xf32>
    %414 = arith.addf %413, %412 : vector<2x32xf32>
    %415 = arith.divf %413, %414 : vector<2x32xf32>
    %416 = vector.extract_strided_slice %403 {offsets = [0, 64], sizes = [2, 32], strides = [1, 1]} : vector<2x128xf32> to vector<2x32xf32>
    %417 = math.tanh %416 : vector<2x32xf32>
    %418 = vector.extract_strided_slice %403 {offsets = [0, 96], sizes = [2, 32], strides = [1, 1]} : vector<2x128xf32> to vector<2x32xf32>
    %419 = arith.negf %418 : vector<2x32xf32>
    %420 = math.exp %419 : vector<2x32xf32>
    %cst_146 = arith.constant 1.000000e+00 : f32
    %421 = vector.broadcast %cst_146 : f32 to vector<2x32xf32>
    %422 = arith.addf %421, %420 : vector<2x32xf32>
    %423 = arith.divf %421, %422 : vector<2x32xf32>
    %424 = arith.mulf %415, %332 : vector<2x32xf32>
    %425 = arith.mulf %409, %417 : vector<2x32xf32>
    %426 = arith.addf %424, %425 : vector<2x32xf32>
    %427 = math.tanh %426 : vector<2x32xf32>
    %428 = arith.mulf %423, %427 : vector<2x32xf32>
    %cst_147 = arith.constant dense<0.000000e+00> : vector<2x9xf32>
    %429 = tpu.matmul %428, %12, %cst_147 {dimension_numbers = #tpu.dot_dimension_numbers<[1], [0], [0], [1], [0, 0, 1, 1], [], []>} : vector<2x32xf32>, vector<32x9xf32>, vector<2x9xf32> -> vector<2x9xf32>
    %430 = vector.broadcast %13 : vector<1x9xf32> to vector<2x9xf32>
    %431 = arith.addf %429, %430 : vector<2x9xf32>
    %cst_148 = arith.constant dense<0xFF800000> : vector<2xf32>
    %432 = vector.multi_reduction <maximumf>, %431, %cst_148 [1] : vector<2x9xf32> to vector<2xf32>
    %433 = vector.shape_cast %432 : vector<2xf32> to vector<2x1xf32>
    %434 = vector.broadcast %433 : vector<2x1xf32> to vector<2x9xf32>
    %435 = arith.subf %431, %434 : vector<2x9xf32>
    %436 = math.exp %435 : vector<2x9xf32>
    %cst_149 = arith.constant dense<0.000000e+00> : vector<2xf32>
    %437 = vector.multi_reduction <add>, %436, %cst_149 [1] : vector<2x9xf32> to vector<2xf32>
    %438 = vector.shape_cast %437 : vector<2xf32> to vector<2x1xf32>
    %439 = math.log %438 : vector<2x1xf32>
    %440 = vector.broadcast %439 : vector<2x1xf32> to vector<2x9xf32>
    %441 = arith.subf %435, %440 : vector<2x9xf32>
    %cst_150 = arith.constant dense<0xFF800000> : vector<2xf32>
    %442 = vector.multi_reduction <maximumf>, %441, %cst_150 [1] : vector<2x9xf32> to vector<2xf32>
    %443 = vector.shape_cast %442 : vector<2xf32> to vector<2x1xf32>
    %444 = vector.broadcast %443 : vector<2x1xf32> to vector<2x9xf32>
    %445 = arith.cmpf oge, %441, %444 : vector<2x9xf32>
    %c9_i32_151 = arith.constant 9 : i32
    %446 = vector.broadcast %c9_i32_151 : i32 to vector<2x9xi32>
    %447 = arith.select %445, %17, %446 : vector<2x9xi1>, vector<2x9xi32>
    %cst_152 = arith.constant dense<2147483647> : vector<2xi32>
    %448 = vector.multi_reduction <minsi>, %447, %cst_152 [1] : vector<2x9xi32> to vector<2xi32>
    %449 = vector.shape_cast %448 : vector<2xi32> to vector<2x1xi32>
    %450 = vector.broadcast %449 : vector<2x1xi32> to vector<2x9xi32>
    %451 = arith.cmpi eq, %17, %450 : vector<2x9xi32>
    %452 = arith.extui %451 : vector<2x9xi1> to vector<2x9xi32>
    %453 = arith.sitofp %452 : vector<2x9xi32> to vector<2x9xf32>
    %cst_153 = arith.constant dense<0.000000e+00> : vector<2x8xf32>
    %454 = tpu.matmul %453, %14, %cst_153 {dimension_numbers = #tpu.dot_dimension_numbers<[1], [0], [0], [1], [0, 0, 1, 1], [], []>} : vector<2x9xf32>, vector<9x8xf32>, vector<2x8xf32> -> vector<2x8xf32>
    %455 = tpu.concatenate %428, %454 in 1 : vector<2x32xf32>, vector<2x8xf32> -> vector<2x40xf32>
    %cst_154 = arith.constant dense<0.000000e+00> : vector<2x32xf32>
    %456 = tpu.matmul %455, %15, %cst_154 {dimension_numbers = #tpu.dot_dimension_numbers<[1], [0], [0], [1], [0, 0, 1, 1], [], []>} : vector<2x40xf32>, vector<40x32xf32>, vector<2x32xf32> -> vector<2x32xf32>
    %457 = vector.extract_strided_slice %456 {offsets = [0, 0], sizes = [2, 16], strides = [1, 1]} : vector<2x32xf32> to vector<2x16xf32>
    %458 = arith.index_cast %c4_i32 : i32 to index
    %c0_155 = arith.constant 0 : index
    %c0_156 = arith.constant 0 : index
    %459 = vector.load %arg14[%458, %c0_155, %c0_156] : memref<8x2x16xf32, #tpu.memory_space<vmem>>, vector<1x2x16xf32>
    %460 = vector.shape_cast %459 : vector<1x2x16xf32> to vector<2x16xf32>
    %461 = vector.shape_cast %457 : vector<2x16xf32> to vector<1x2x16xf32>
    tpu.vector_store %arg14[%458, %c0_155, %c0_156], %461 {strides = array<i32>} : memref<8x2x16xf32, #tpu.memory_space<vmem>>, vector<1x2x16xf32>,
    %462 = vector.extract_strided_slice %456 {offsets = [0, 16], sizes = [2, 16], strides = [1, 1]} : vector<2x32xf32> to vector<2x16xf32>
    %c0_157 = arith.constant 0 : index
    %c0_158 = arith.constant 0 : index
    %c0_159 = arith.constant 0 : index
    %463 = vector.load %arg14[%c0_157, %c0_158, %c0_159] : memref<8x2x16xf32, #tpu.memory_space<vmem>>, vector<8x2x16xf32>
    %464 = vector.shape_cast %462 : vector<2x16xf32> to vector<1x2x16xf32>
    %465 = vector.broadcast %464 : vector<1x2x16xf32> to vector<8x2x16xf32>
    %466 = arith.addf %463, %465 : vector<8x2x16xf32>
    %467 = math.tanh %466 : vector<8x2x16xf32>
    %468 = vector.shape_cast %467 : vector<8x2x16xf32> to vector<16x16xf32>
    %cst_160 = arith.constant dense<0.000000e+00> : vector<16x5xf32>
    %469 = tpu.matmul %468, %16, %cst_160 {dimension_numbers = #tpu.dot_dimension_numbers<[1], [0], [0], [1], [0, 0, 1, 1], [], []>} : vector<16x16xf32>, vector<16x5xf32>, vector<16x5xf32> -> vector<16x5xf32>
    %470 = vector.shape_cast %469 : vector<16x5xf32> to vector<8x2x5xf32>
    %cst_161 = arith.constant dense<0xFF800000> : vector<8x2xf32>
    %471 = vector.multi_reduction <maximumf>, %470, %cst_161 [2] : vector<8x2x5xf32> to vector<8x2xf32>
    %472 = vector.shape_cast %471 : vector<8x2xf32> to vector<8x2x1xf32>
    %473 = vector.broadcast %472 : vector<8x2x1xf32> to vector<8x2x5xf32>
    %474 = arith.subf %470, %473 : vector<8x2x5xf32>
    %475 = math.exp %474 : vector<8x2x5xf32>
    %cst_162 = arith.constant dense<0.000000e+00> : vector<8x2xf32>
    %476 = vector.multi_reduction <add>, %475, %cst_162 [2] : vector<8x2x5xf32> to vector<8x2xf32>
    %477 = vector.shape_cast %476 : vector<8x2xf32> to vector<8x2x1xf32>
    %478 = math.log %477 : vector<8x2x1xf32>
    %479 = vector.broadcast %478 : vector<8x2x1xf32> to vector<8x2x5xf32>
    %480 = arith.subf %474, %479 : vector<8x2x5xf32>
    %481 = vector.broadcast %c4_i32 : i32 to vector<8x2x5xi32>
    %482 = arith.cmpi sle, %18, %481 : vector<8x2x5xi32>
    %cst_163 = arith.constant 0.000000e+00 : f32
    %483 = vector.broadcast %cst_163 : f32 to vector<8x2x5xf32>
    %484 = arith.select %482, %480, %483 : vector<8x2x5xi1>, vector<8x2x5xf32>
    %485 = arith.index_cast %c4_i32 : i32 to index
    %c0_164 = arith.constant 0 : index
    %c0_165 = arith.constant 0 : index
    %486 = vector.load %arg11[%485, %c0_164, %c0_165] : memref<8x2x9xf32, #tpu.memory_space<vmem>>, vector<1x2x9xf32>
    %487 = vector.shape_cast %486 : vector<1x2x9xf32> to vector<2x9xf32>
    %488 = vector.shape_cast %441 : vector<2x9xf32> to vector<1x2x9xf32>
    tpu.vector_store %arg11[%485, %c0_164, %c0_165], %488 {strides = array<i32>} : memref<8x2x9xf32, #tpu.memory_space<vmem>>, vector<1x2x9xf32>,
    %489 = arith.index_cast %c4_i32 : i32 to index
    %c0_166 = arith.constant 0 : index
    %c0_167 = arith.constant 0 : index
    %c0_168 = arith.constant 0 : index
    %490 = vector.load %arg12[%489, %c0_166, %c0_167, %c0_168] : memref<8x8x2x5xf32, #tpu.memory_space<vmem>>, vector<1x8x2x5xf32>
    %491 = vector.shape_cast %490 : vector<1x8x2x5xf32> to vector<8x2x5xf32>
    %492 = vector.shape_cast %484 : vector<8x2x5xf32> to vector<1x8x2x5xf32>
    tpu.vector_store %arg12[%489, %c0_166, %c0_167, %c0_168], %492 {strides = array<i32>} : memref<8x8x2x5xf32, #tpu.memory_space<vmem>>, vector<1x8x2x5xf32>,
    %c5_i32 = arith.constant 5 : i32
    %493 = arith.index_cast %c5_i32 : i32 to index
    %c0_169 = arith.constant 0 : index
    %c0_170 = arith.constant 0 : index
    %494 = vector.load %arg13[%493, %c0_169, %c0_170] : memref<8x2x128xf32, #tpu.memory_space<vmem>>, vector<1x2x128xf32>
    %495 = vector.shape_cast %494 : vector<1x2x128xf32> to vector<2x128xf32>
    %cst_171 = arith.constant dense<0.000000e+00> : vector<2x128xf32>
    %496 = tpu.matmul %455, %11, %cst_171 {dimension_numbers = #tpu.dot_dimension_numbers<[1], [0], [0], [1], [0, 0, 1, 1], [], []>} : vector<2x40xf32>, vector<40x128xf32>, vector<2x128xf32> -> vector<2x128xf32>
    %497 = arith.addf %495, %496 : vector<2x128xf32>
    %498 = vector.extract_strided_slice %497 {offsets = [0, 0], sizes = [2, 32], strides = [1, 1]} : vector<2x128xf32> to vector<2x32xf32>
    %499 = arith.negf %498 : vector<2x32xf32>
    %500 = math.exp %499 : vector<2x32xf32>
    %cst_172 = arith.constant 1.000000e+00 : f32
    %501 = vector.broadcast %cst_172 : f32 to vector<2x32xf32>
    %502 = arith.addf %501, %500 : vector<2x32xf32>
    %503 = arith.divf %501, %502 : vector<2x32xf32>
    %504 = vector.extract_strided_slice %497 {offsets = [0, 32], sizes = [2, 32], strides = [1, 1]} : vector<2x128xf32> to vector<2x32xf32>
    %505 = arith.negf %504 : vector<2x32xf32>
    %506 = math.exp %505 : vector<2x32xf32>
    %cst_173 = arith.constant 1.000000e+00 : f32
    %507 = vector.broadcast %cst_173 : f32 to vector<2x32xf32>
    %508 = arith.addf %507, %506 : vector<2x32xf32>
    %509 = arith.divf %507, %508 : vector<2x32xf32>
    %510 = vector.extract_strided_slice %497 {offsets = [0, 64], sizes = [2, 32], strides = [1, 1]} : vector<2x128xf32> to vector<2x32xf32>
    %511 = math.tanh %510 : vector<2x32xf32>
    %512 = vector.extract_strided_slice %497 {offsets = [0, 96], sizes = [2, 32], strides = [1, 1]} : vector<2x128xf32> to vector<2x32xf32>
    %513 = arith.negf %512 : vector<2x32xf32>
    %514 = math.exp %513 : vector<2x32xf32>
    %cst_174 = arith.constant 1.000000e+00 : f32
    %515 = vector.broadcast %cst_174 : f32 to vector<2x32xf32>
    %516 = arith.addf %515, %514 : vector<2x32xf32>
    %517 = arith.divf %515, %516 : vector<2x32xf32>
    %518 = arith.mulf %509, %426 : vector<2x32xf32>
    %519 = arith.mulf %503, %511 : vector<2x32xf32>
    %520 = arith.addf %518, %519 : vector<2x32xf32>
    %521 = math.tanh %520 : vector<2x32xf32>
    %522 = arith.mulf %517, %521 : vector<2x32xf32>
    %cst_175 = arith.constant dense<0.000000e+00> : vector<2x9xf32>
    %523 = tpu.matmul %522, %12, %cst_175 {dimension_numbers = #tpu.dot_dimension_numbers<[1], [0], [0], [1], [0, 0, 1, 1], [], []>} : vector<2x32xf32>, vector<32x9xf32>, vector<2x9xf32> -> vector<2x9xf32>
    %524 = vector.broadcast %13 : vector<1x9xf32> to vector<2x9xf32>
    %525 = arith.addf %523, %524 : vector<2x9xf32>
    %cst_176 = arith.constant dense<0xFF800000> : vector<2xf32>
    %526 = vector.multi_reduction <maximumf>, %525, %cst_176 [1] : vector<2x9xf32> to vector<2xf32>
    %527 = vector.shape_cast %526 : vector<2xf32> to vector<2x1xf32>
    %528 = vector.broadcast %527 : vector<2x1xf32> to vector<2x9xf32>
    %529 = arith.subf %525, %528 : vector<2x9xf32>
    %530 = math.exp %529 : vector<2x9xf32>
    %cst_177 = arith.constant dense<0.000000e+00> : vector<2xf32>
    %531 = vector.multi_reduction <add>, %530, %cst_177 [1] : vector<2x9xf32> to vector<2xf32>
    %532 = vector.shape_cast %531 : vector<2xf32> to vector<2x1xf32>
    %533 = math.log %532 : vector<2x1xf32>
    %534 = vector.broadcast %533 : vector<2x1xf32> to vector<2x9xf32>
    %535 = arith.subf %529, %534 : vector<2x9xf32>
    %cst_178 = arith.constant dense<0xFF800000> : vector<2xf32>
    %536 = vector.multi_reduction <maximumf>, %535, %cst_178 [1] : vector<2x9xf32> to vector<2xf32>
    %537 = vector.shape_cast %536 : vector<2xf32> to vector<2x1xf32>
    %538 = vector.broadcast %537 : vector<2x1xf32> to vector<2x9xf32>
    %539 = arith.cmpf oge, %535, %538 : vector<2x9xf32>
    %c9_i32_179 = arith.constant 9 : i32
    %540 = vector.broadcast %c9_i32_179 : i32 to vector<2x9xi32>
    %541 = arith.select %539, %17, %540 : vector<2x9xi1>, vector<2x9xi32>
    %cst_180 = arith.constant dense<2147483647> : vector<2xi32>
    %542 = vector.multi_reduction <minsi>, %541, %cst_180 [1] : vector<2x9xi32> to vector<2xi32>
    %543 = vector.shape_cast %542 : vector<2xi32> to vector<2x1xi32>
    %544 = vector.broadcast %543 : vector<2x1xi32> to vector<2x9xi32>
    %545 = arith.cmpi eq, %17, %544 : vector<2x9xi32>
    %546 = arith.extui %545 : vector<2x9xi1> to vector<2x9xi32>
    %547 = arith.sitofp %546 : vector<2x9xi32> to vector<2x9xf32>
    %cst_181 = arith.constant dense<0.000000e+00> : vector<2x8xf32>
    %548 = tpu.matmul %547, %14, %cst_181 {dimension_numbers = #tpu.dot_dimension_numbers<[1], [0], [0], [1], [0, 0, 1, 1], [], []>} : vector<2x9xf32>, vector<9x8xf32>, vector<2x8xf32> -> vector<2x8xf32>
    %549 = tpu.concatenate %522, %548 in 1 : vector<2x32xf32>, vector<2x8xf32> -> vector<2x40xf32>
    %cst_182 = arith.constant dense<0.000000e+00> : vector<2x32xf32>
    %550 = tpu.matmul %549, %15, %cst_182 {dimension_numbers = #tpu.dot_dimension_numbers<[1], [0], [0], [1], [0, 0, 1, 1], [], []>} : vector<2x40xf32>, vector<40x32xf32>, vector<2x32xf32> -> vector<2x32xf32>
    %551 = vector.extract_strided_slice %550 {offsets = [0, 0], sizes = [2, 16], strides = [1, 1]} : vector<2x32xf32> to vector<2x16xf32>
    %552 = arith.index_cast %c5_i32 : i32 to index
    %c0_183 = arith.constant 0 : index
    %c0_184 = arith.constant 0 : index
    %553 = vector.load %arg14[%552, %c0_183, %c0_184] : memref<8x2x16xf32, #tpu.memory_space<vmem>>, vector<1x2x16xf32>
    %554 = vector.shape_cast %553 : vector<1x2x16xf32> to vector<2x16xf32>
    %555 = vector.shape_cast %551 : vector<2x16xf32> to vector<1x2x16xf32>
    tpu.vector_store %arg14[%552, %c0_183, %c0_184], %555 {strides = array<i32>} : memref<8x2x16xf32, #tpu.memory_space<vmem>>, vector<1x2x16xf32>,
    %556 = vector.extract_strided_slice %550 {offsets = [0, 16], sizes = [2, 16], strides = [1, 1]} : vector<2x32xf32> to vector<2x16xf32>
    %c0_185 = arith.constant 0 : index
    %c0_186 = arith.constant 0 : index
    %c0_187 = arith.constant 0 : index
    %557 = vector.load %arg14[%c0_185, %c0_186, %c0_187] : memref<8x2x16xf32, #tpu.memory_space<vmem>>, vector<8x2x16xf32>
    %558 = vector.shape_cast %556 : vector<2x16xf32> to vector<1x2x16xf32>
    %559 = vector.broadcast %558 : vector<1x2x16xf32> to vector<8x2x16xf32>
    %560 = arith.addf %557, %559 : vector<8x2x16xf32>
    %561 = math.tanh %560 : vector<8x2x16xf32>
    %562 = vector.shape_cast %561 : vector<8x2x16xf32> to vector<16x16xf32>
    %cst_188 = arith.constant dense<0.000000e+00> : vector<16x5xf32>
    %563 = tpu.matmul %562, %16, %cst_188 {dimension_numbers = #tpu.dot_dimension_numbers<[1], [0], [0], [1], [0, 0, 1, 1], [], []>} : vector<16x16xf32>, vector<16x5xf32>, vector<16x5xf32> -> vector<16x5xf32>
    %564 = vector.shape_cast %563 : vector<16x5xf32> to vector<8x2x5xf32>
    %cst_189 = arith.constant dense<0xFF800000> : vector<8x2xf32>
    %565 = vector.multi_reduction <maximumf>, %564, %cst_189 [2] : vector<8x2x5xf32> to vector<8x2xf32>
    %566 = vector.shape_cast %565 : vector<8x2xf32> to vector<8x2x1xf32>
    %567 = vector.broadcast %566 : vector<8x2x1xf32> to vector<8x2x5xf32>
    %568 = arith.subf %564, %567 : vector<8x2x5xf32>
    %569 = math.exp %568 : vector<8x2x5xf32>
    %cst_190 = arith.constant dense<0.000000e+00> : vector<8x2xf32>
    %570 = vector.multi_reduction <add>, %569, %cst_190 [2] : vector<8x2x5xf32> to vector<8x2xf32>
    %571 = vector.shape_cast %570 : vector<8x2xf32> to vector<8x2x1xf32>
    %572 = math.log %571 : vector<8x2x1xf32>
    %573 = vector.broadcast %572 : vector<8x2x1xf32> to vector<8x2x5xf32>
    %574 = arith.subf %568, %573 : vector<8x2x5xf32>
    %575 = vector.broadcast %c5_i32 : i32 to vector<8x2x5xi32>
    %576 = arith.cmpi sle, %18, %575 : vector<8x2x5xi32>
    %cst_191 = arith.constant 0.000000e+00 : f32
    %577 = vector.broadcast %cst_191 : f32 to vector<8x2x5xf32>
    %578 = arith.select %576, %574, %577 : vector<8x2x5xi1>, vector<8x2x5xf32>
    %579 = arith.index_cast %c5_i32 : i32 to index
    %c0_192 = arith.constant 0 : index
    %c0_193 = arith.constant 0 : index
    %580 = vector.load %arg11[%579, %c0_192, %c0_193] : memref<8x2x9xf32, #tpu.memory_space<vmem>>, vector<1x2x9xf32>
    %581 = vector.shape_cast %580 : vector<1x2x9xf32> to vector<2x9xf32>
    %582 = vector.shape_cast %535 : vector<2x9xf32> to vector<1x2x9xf32>
    tpu.vector_store %arg11[%579, %c0_192, %c0_193], %582 {strides = array<i32>} : memref<8x2x9xf32, #tpu.memory_space<vmem>>, vector<1x2x9xf32>,
    %583 = arith.index_cast %c5_i32 : i32 to index
    %c0_194 = arith.constant 0 : index
    %c0_195 = arith.constant 0 : index
    %c0_196 = arith.constant 0 : index
    %584 = vector.load %arg12[%583, %c0_194, %c0_195, %c0_196] : memref<8x8x2x5xf32, #tpu.memory_space<vmem>>, vector<1x8x2x5xf32>
    %585 = vector.shape_cast %584 : vector<1x8x2x5xf32> to vector<8x2x5xf32>
    %586 = vector.shape_cast %578 : vector<8x2x5xf32> to vector<1x8x2x5xf32>
    tpu.vector_store %arg12[%583, %c0_194, %c0_195, %c0_196], %586 {strides = array<i32>} : memref<8x8x2x5xf32, #tpu.memory_space<vmem>>, vector<1x8x2x5xf32>,
    %c6_i32 = arith.constant 6 : i32
    %587 = arith.index_cast %c6_i32 : i32 to index
    %c0_197 = arith.constant 0 : index
    %c0_198 = arith.constant 0 : index
    %588 = vector.load %arg13[%587, %c0_197, %c0_198] : memref<8x2x128xf32, #tpu.memory_space<vmem>>, vector<1x2x128xf32>
    %589 = vector.shape_cast %588 : vector<1x2x128xf32> to vector<2x128xf32>
    %cst_199 = arith.constant dense<0.000000e+00> : vector<2x128xf32>
    %590 = tpu.matmul %549, %11, %cst_199 {dimension_numbers = #tpu.dot_dimension_numbers<[1], [0], [0], [1], [0, 0, 1, 1], [], []>} : vector<2x40xf32>, vector<40x128xf32>, vector<2x128xf32> -> vector<2x128xf32>
    %591 = arith.addf %589, %590 : vector<2x128xf32>
    %592 = vector.extract_strided_slice %591 {offsets = [0, 0], sizes = [2, 32], strides = [1, 1]} : vector<2x128xf32> to vector<2x32xf32>
    %593 = arith.negf %592 : vector<2x32xf32>
    %594 = math.exp %593 : vector<2x32xf32>
    %cst_200 = arith.constant 1.000000e+00 : f32
    %595 = vector.broadcast %cst_200 : f32 to vector<2x32xf32>
    %596 = arith.addf %595, %594 : vector<2x32xf32>
    %597 = arith.divf %595, %596 : vector<2x32xf32>
    %598 = vector.extract_strided_slice %591 {offsets = [0, 32], sizes = [2, 32], strides = [1, 1]} : vector<2x128xf32> to vector<2x32xf32>
    %599 = arith.negf %598 : vector<2x32xf32>
    %600 = math.exp %599 : vector<2x32xf32>
    %cst_201 = arith.constant 1.000000e+00 : f32
    %601 = vector.broadcast %cst_201 : f32 to vector<2x32xf32>
    %602 = arith.addf %601, %600 : vector<2x32xf32>
    %603 = arith.divf %601, %602 : vector<2x32xf32>
    %604 = vector.extract_strided_slice %591 {offsets = [0, 64], sizes = [2, 32], strides = [1, 1]} : vector<2x128xf32> to vector<2x32xf32>
    %605 = math.tanh %604 : vector<2x32xf32>
    %606 = vector.extract_strided_slice %591 {offsets = [0, 96], sizes = [2, 32], strides = [1, 1]} : vector<2x128xf32> to vector<2x32xf32>
    %607 = arith.negf %606 : vector<2x32xf32>
    %608 = math.exp %607 : vector<2x32xf32>
    %cst_202 = arith.constant 1.000000e+00 : f32
    %609 = vector.broadcast %cst_202 : f32 to vector<2x32xf32>
    %610 = arith.addf %609, %608 : vector<2x32xf32>
    %611 = arith.divf %609, %610 : vector<2x32xf32>
    %612 = arith.mulf %603, %520 : vector<2x32xf32>
    %613 = arith.mulf %597, %605 : vector<2x32xf32>
    %614 = arith.addf %612, %613 : vector<2x32xf32>
    %615 = math.tanh %614 : vector<2x32xf32>
    %616 = arith.mulf %611, %615 : vector<2x32xf32>
    %cst_203 = arith.constant dense<0.000000e+00> : vector<2x9xf32>
    %617 = tpu.matmul %616, %12, %cst_203 {dimension_numbers = #tpu.dot_dimension_numbers<[1], [0], [0], [1], [0, 0, 1, 1], [], []>} : vector<2x32xf32>, vector<32x9xf32>, vector<2x9xf32> -> vector<2x9xf32>
    %618 = vector.broadcast %13 : vector<1x9xf32> to vector<2x9xf32>
    %619 = arith.addf %617, %618 : vector<2x9xf32>
    %cst_204 = arith.constant dense<0xFF800000> : vector<2xf32>
    %620 = vector.multi_reduction <maximumf>, %619, %cst_204 [1] : vector<2x9xf32> to vector<2xf32>
    %621 = vector.shape_cast %620 : vector<2xf32> to vector<2x1xf32>
    %622 = vector.broadcast %621 : vector<2x1xf32> to vector<2x9xf32>
    %623 = arith.subf %619, %622 : vector<2x9xf32>
    %624 = math.exp %623 : vector<2x9xf32>
    %cst_205 = arith.constant dense<0.000000e+00> : vector<2xf32>
    %625 = vector.multi_reduction <add>, %624, %cst_205 [1] : vector<2x9xf32> to vector<2xf32>
    %626 = vector.shape_cast %625 : vector<2xf32> to vector<2x1xf32>
    %627 = math.log %626 : vector<2x1xf32>
    %628 = vector.broadcast %627 : vector<2x1xf32> to vector<2x9xf32>
    %629 = arith.subf %623, %628 : vector<2x9xf32>
    %cst_206 = arith.constant dense<0xFF800000> : vector<2xf32>
    %630 = vector.multi_reduction <maximumf>, %629, %cst_206 [1] : vector<2x9xf32> to vector<2xf32>
    %631 = vector.shape_cast %630 : vector<2xf32> to vector<2x1xf32>
    %632 = vector.broadcast %631 : vector<2x1xf32> to vector<2x9xf32>
    %633 = arith.cmpf oge, %629, %632 : vector<2x9xf32>
    %c9_i32_207 = arith.constant 9 : i32
    %634 = vector.broadcast %c9_i32_207 : i32 to vector<2x9xi32>
    %635 = arith.select %633, %17, %634 : vector<2x9xi1>, vector<2x9xi32>
    %cst_208 = arith.constant dense<2147483647> : vector<2xi32>
    %636 = vector.multi_reduction <minsi>, %635, %cst_208 [1] : vector<2x9xi32> to vector<2xi32>
    %637 = vector.shape_cast %636 : vector<2xi32> to vector<2x1xi32>
    %638 = vector.broadcast %637 : vector<2x1xi32> to vector<2x9xi32>
    %639 = arith.cmpi eq, %17, %638 : vector<2x9xi32>
    %640 = arith.extui %639 : vector<2x9xi1> to vector<2x9xi32>
    %641 = arith.sitofp %640 : vector<2x9xi32> to vector<2x9xf32>
    %cst_209 = arith.constant dense<0.000000e+00> : vector<2x8xf32>
    %642 = tpu.matmul %641, %14, %cst_209 {dimension_numbers = #tpu.dot_dimension_numbers<[1], [0], [0], [1], [0, 0, 1, 1], [], []>} : vector<2x9xf32>, vector<9x8xf32>, vector<2x8xf32> -> vector<2x8xf32>
    %643 = tpu.concatenate %616, %642 in 1 : vector<2x32xf32>, vector<2x8xf32> -> vector<2x40xf32>
    %cst_210 = arith.constant dense<0.000000e+00> : vector<2x32xf32>
    %644 = tpu.matmul %643, %15, %cst_210 {dimension_numbers = #tpu.dot_dimension_numbers<[1], [0], [0], [1], [0, 0, 1, 1], [], []>} : vector<2x40xf32>, vector<40x32xf32>, vector<2x32xf32> -> vector<2x32xf32>
    %645 = vector.extract_strided_slice %644 {offsets = [0, 0], sizes = [2, 16], strides = [1, 1]} : vector<2x32xf32> to vector<2x16xf32>
    %646 = arith.index_cast %c6_i32 : i32 to index
    %c0_211 = arith.constant 0 : index
    %c0_212 = arith.constant 0 : index
    %647 = vector.load %arg14[%646, %c0_211, %c0_212] : memref<8x2x16xf32, #tpu.memory_space<vmem>>, vector<1x2x16xf32>
    %648 = vector.shape_cast %647 : vector<1x2x16xf32> to vector<2x16xf32>
    %649 = vector.shape_cast %645 : vector<2x16xf32> to vector<1x2x16xf32>
    tpu.vector_store %arg14[%646, %c0_211, %c0_212], %649 {strides = array<i32>} : memref<8x2x16xf32, #tpu.memory_space<vmem>>, vector<1x2x16xf32>,
    %650 = vector.extract_strided_slice %644 {offsets = [0, 16], sizes = [2, 16], strides = [1, 1]} : vector<2x32xf32> to vector<2x16xf32>
    %c0_213 = arith.constant 0 : index
    %c0_214 = arith.constant 0 : index
    %c0_215 = arith.constant 0 : index
    %651 = vector.load %arg14[%c0_213, %c0_214, %c0_215] : memref<8x2x16xf32, #tpu.memory_space<vmem>>, vector<8x2x16xf32>
    %652 = vector.shape_cast %650 : vector<2x16xf32> to vector<1x2x16xf32>
    %653 = vector.broadcast %652 : vector<1x2x16xf32> to vector<8x2x16xf32>
    %654 = arith.addf %651, %653 : vector<8x2x16xf32>
    %655 = math.tanh %654 : vector<8x2x16xf32>
    %656 = vector.shape_cast %655 : vector<8x2x16xf32> to vector<16x16xf32>
    %cst_216 = arith.constant dense<0.000000e+00> : vector<16x5xf32>
    %657 = tpu.matmul %656, %16, %cst_216 {dimension_numbers = #tpu.dot_dimension_numbers<[1], [0], [0], [1], [0, 0, 1, 1], [], []>} : vector<16x16xf32>, vector<16x5xf32>, vector<16x5xf32> -> vector<16x5xf32>
    %658 = vector.shape_cast %657 : vector<16x5xf32> to vector<8x2x5xf32>
    %cst_217 = arith.constant dense<0xFF800000> : vector<8x2xf32>
    %659 = vector.multi_reduction <maximumf>, %658, %cst_217 [2] : vector<8x2x5xf32> to vector<8x2xf32>
    %660 = vector.shape_cast %659 : vector<8x2xf32> to vector<8x2x1xf32>
    %661 = vector.broadcast %660 : vector<8x2x1xf32> to vector<8x2x5xf32>
    %662 = arith.subf %658, %661 : vector<8x2x5xf32>
    %663 = math.exp %662 : vector<8x2x5xf32>
    %cst_218 = arith.constant dense<0.000000e+00> : vector<8x2xf32>
    %664 = vector.multi_reduction <add>, %663, %cst_218 [2] : vector<8x2x5xf32> to vector<8x2xf32>
    %665 = vector.shape_cast %664 : vector<8x2xf32> to vector<8x2x1xf32>
    %666 = math.log %665 : vector<8x2x1xf32>
    %667 = vector.broadcast %666 : vector<8x2x1xf32> to vector<8x2x5xf32>
    %668 = arith.subf %662, %667 : vector<8x2x5xf32>
    %669 = vector.broadcast %c6_i32 : i32 to vector<8x2x5xi32>
    %670 = arith.cmpi sle, %18, %669 : vector<8x2x5xi32>
    %cst_219 = arith.constant 0.000000e+00 : f32
    %671 = vector.broadcast %cst_219 : f32 to vector<8x2x5xf32>
    %672 = arith.select %670, %668, %671 : vector<8x2x5xi1>, vector<8x2x5xf32>
    %673 = arith.index_cast %c6_i32 : i32 to index
    %c0_220 = arith.constant 0 : index
    %c0_221 = arith.constant 0 : index
    %674 = vector.load %arg11[%673, %c0_220, %c0_221] : memref<8x2x9xf32, #tpu.memory_space<vmem>>, vector<1x2x9xf32>
    %675 = vector.shape_cast %674 : vector<1x2x9xf32> to vector<2x9xf32>
    %676 = vector.shape_cast %629 : vector<2x9xf32> to vector<1x2x9xf32>
    tpu.vector_store %arg11[%673, %c0_220, %c0_221], %676 {strides = array<i32>} : memref<8x2x9xf32, #tpu.memory_space<vmem>>, vector<1x2x9xf32>,
    %677 = arith.index_cast %c6_i32 : i32 to index
    %c0_222 = arith.constant 0 : index
    %c0_223 = arith.constant 0 : index
    %c0_224 = arith.constant 0 : index
    %678 = vector.load %arg12[%677, %c0_222, %c0_223, %c0_224] : memref<8x8x2x5xf32, #tpu.memory_space<vmem>>, vector<1x8x2x5xf32>
    %679 = vector.shape_cast %678 : vector<1x8x2x5xf32> to vector<8x2x5xf32>
    %680 = vector.shape_cast %672 : vector<8x2x5xf32> to vector<1x8x2x5xf32>
    tpu.vector_store %arg12[%677, %c0_222, %c0_223, %c0_224], %680 {strides = array<i32>} : memref<8x8x2x5xf32, #tpu.memory_space<vmem>>, vector<1x8x2x5xf32>,
    %c7_i32 = arith.constant 7 : i32
    %681 = arith.index_cast %c7_i32 : i32 to index
    %c0_225 = arith.constant 0 : index
    %c0_226 = arith.constant 0 : index
    %682 = vector.load %arg13[%681, %c0_225, %c0_226] : memref<8x2x128xf32, #tpu.memory_space<vmem>>, vector<1x2x128xf32>
    %683 = vector.shape_cast %682 : vector<1x2x128xf32> to vector<2x128xf32>
    %cst_227 = arith.constant dense<0.000000e+00> : vector<2x128xf32>
    %684 = tpu.matmul %643, %11, %cst_227 {dimension_numbers = #tpu.dot_dimension_numbers<[1], [0], [0], [1], [0, 0, 1, 1], [], []>} : vector<2x40xf32>, vector<40x128xf32>, vector<2x128xf32> -> vector<2x128xf32>
    %685 = arith.addf %683, %684 : vector<2x128xf32>
    %686 = vector.extract_strided_slice %685 {offsets = [0, 0], sizes = [2, 32], strides = [1, 1]} : vector<2x128xf32> to vector<2x32xf32>
    %687 = arith.negf %686 : vector<2x32xf32>
    %688 = math.exp %687 : vector<2x32xf32>
    %cst_228 = arith.constant 1.000000e+00 : f32
    %689 = vector.broadcast %cst_228 : f32 to vector<2x32xf32>
    %690 = arith.addf %689, %688 : vector<2x32xf32>
    %691 = arith.divf %689, %690 : vector<2x32xf32>
    %692 = vector.extract_strided_slice %685 {offsets = [0, 32], sizes = [2, 32], strides = [1, 1]} : vector<2x128xf32> to vector<2x32xf32>
    %693 = arith.negf %692 : vector<2x32xf32>
    %694 = math.exp %693 : vector<2x32xf32>
    %cst_229 = arith.constant 1.000000e+00 : f32
    %695 = vector.broadcast %cst_229 : f32 to vector<2x32xf32>
    %696 = arith.addf %695, %694 : vector<2x32xf32>
    %697 = arith.divf %695, %696 : vector<2x32xf32>
    %698 = vector.extract_strided_slice %685 {offsets = [0, 64], sizes = [2, 32], strides = [1, 1]} : vector<2x128xf32> to vector<2x32xf32>
    %699 = math.tanh %698 : vector<2x32xf32>
    %700 = vector.extract_strided_slice %685 {offsets = [0, 96], sizes = [2, 32], strides = [1, 1]} : vector<2x128xf32> to vector<2x32xf32>
    %701 = arith.negf %700 : vector<2x32xf32>
    %702 = math.exp %701 : vector<2x32xf32>
    %cst_230 = arith.constant 1.000000e+00 : f32
    %703 = vector.broadcast %cst_230 : f32 to vector<2x32xf32>
    %704 = arith.addf %703, %702 : vector<2x32xf32>
    %705 = arith.divf %703, %704 : vector<2x32xf32>
    %706 = arith.mulf %697, %614 : vector<2x32xf32>
    %707 = arith.mulf %691, %699 : vector<2x32xf32>
    %708 = arith.addf %706, %707 : vector<2x32xf32>
    %709 = math.tanh %708 : vector<2x32xf32>
    %710 = arith.mulf %705, %709 : vector<2x32xf32>
    %cst_231 = arith.constant dense<0.000000e+00> : vector<2x9xf32>
    %711 = tpu.matmul %710, %12, %cst_231 {dimension_numbers = #tpu.dot_dimension_numbers<[1], [0], [0], [1], [0, 0, 1, 1], [], []>} : vector<2x32xf32>, vector<32x9xf32>, vector<2x9xf32> -> vector<2x9xf32>
    %712 = vector.broadcast %13 : vector<1x9xf32> to vector<2x9xf32>
    %713 = arith.addf %711, %712 : vector<2x9xf32>
    %cst_232 = arith.constant dense<0xFF800000> : vector<2xf32>
    %714 = vector.multi_reduction <maximumf>, %713, %cst_232 [1] : vector<2x9xf32> to vector<2xf32>
    %715 = vector.shape_cast %714 : vector<2xf32> to vector<2x1xf32>
    %716 = vector.broadcast %715 : vector<2x1xf32> to vector<2x9xf32>
    %717 = arith.subf %713, %716 : vector<2x9xf32>
    %718 = math.exp %717 : vector<2x9xf32>
    %cst_233 = arith.constant dense<0.000000e+00> : vector<2xf32>
    %719 = vector.multi_reduction <add>, %718, %cst_233 [1] : vector<2x9xf32> to vector<2xf32>
    %720 = vector.shape_cast %719 : vector<2xf32> to vector<2x1xf32>
    %721 = math.log %720 : vector<2x1xf32>
    %722 = vector.broadcast %721 : vector<2x1xf32> to vector<2x9xf32>
    %723 = arith.subf %717, %722 : vector<2x9xf32>
    %cst_234 = arith.constant dense<0xFF800000> : vector<2xf32>
    %724 = vector.multi_reduction <maximumf>, %723, %cst_234 [1] : vector<2x9xf32> to vector<2xf32>
    %725 = vector.shape_cast %724 : vector<2xf32> to vector<2x1xf32>
    %726 = vector.broadcast %725 : vector<2x1xf32> to vector<2x9xf32>
    %727 = arith.cmpf oge, %723, %726 : vector<2x9xf32>
    %c9_i32_235 = arith.constant 9 : i32
    %728 = vector.broadcast %c9_i32_235 : i32 to vector<2x9xi32>
    %729 = arith.select %727, %17, %728 : vector<2x9xi1>, vector<2x9xi32>
    %cst_236 = arith.constant dense<2147483647> : vector<2xi32>
    %730 = vector.multi_reduction <minsi>, %729, %cst_236 [1] : vector<2x9xi32> to vector<2xi32>
    %731 = vector.shape_cast %730 : vector<2xi32> to vector<2x1xi32>
    %732 = vector.broadcast %731 : vector<2x1xi32> to vector<2x9xi32>
    %733 = arith.cmpi eq, %17, %732 : vector<2x9xi32>
    %734 = arith.extui %733 : vector<2x9xi1> to vector<2x9xi32>
    %735 = arith.sitofp %734 : vector<2x9xi32> to vector<2x9xf32>
    %cst_237 = arith.constant dense<0.000000e+00> : vector<2x8xf32>
    %736 = tpu.matmul %735, %14, %cst_237 {dimension_numbers = #tpu.dot_dimension_numbers<[1], [0], [0], [1], [0, 0, 1, 1], [], []>} : vector<2x9xf32>, vector<9x8xf32>, vector<2x8xf32> -> vector<2x8xf32>
    %737 = tpu.concatenate %710, %736 in 1 : vector<2x32xf32>, vector<2x8xf32> -> vector<2x40xf32>
    %cst_238 = arith.constant dense<0.000000e+00> : vector<2x32xf32>
    %738 = tpu.matmul %737, %15, %cst_238 {dimension_numbers = #tpu.dot_dimension_numbers<[1], [0], [0], [1], [0, 0, 1, 1], [], []>} : vector<2x40xf32>, vector<40x32xf32>, vector<2x32xf32> -> vector<2x32xf32>
    %739 = vector.extract_strided_slice %738 {offsets = [0, 0], sizes = [2, 16], strides = [1, 1]} : vector<2x32xf32> to vector<2x16xf32>
    %740 = arith.index_cast %c7_i32 : i32 to index
    %c0_239 = arith.constant 0 : index
    %c0_240 = arith.constant 0 : index
    %741 = vector.load %arg14[%740, %c0_239, %c0_240] : memref<8x2x16xf32, #tpu.memory_space<vmem>>, vector<1x2x16xf32>
    %742 = vector.shape_cast %741 : vector<1x2x16xf32> to vector<2x16xf32>
    %743 = vector.shape_cast %739 : vector<2x16xf32> to vector<1x2x16xf32>
    tpu.vector_store %arg14[%740, %c0_239, %c0_240], %743 {strides = array<i32>} : memref<8x2x16xf32, #tpu.memory_space<vmem>>, vector<1x2x16xf32>,
    %744 = vector.extract_strided_slice %738 {offsets = [0, 16], sizes = [2, 16], strides = [1, 1]} : vector<2x32xf32> to vector<2x16xf32>
    %c0_241 = arith.constant 0 : index
    %c0_242 = arith.constant 0 : index
    %c0_243 = arith.constant 0 : index
    %745 = vector.load %arg14[%c0_241, %c0_242, %c0_243] : memref<8x2x16xf32, #tpu.memory_space<vmem>>, vector<8x2x16xf32>
    %746 = vector.shape_cast %744 : vector<2x16xf32> to vector<1x2x16xf32>
    %747 = vector.broadcast %746 : vector<1x2x16xf32> to vector<8x2x16xf32>
    %748 = arith.addf %745, %747 : vector<8x2x16xf32>
    %749 = math.tanh %748 : vector<8x2x16xf32>
    %750 = vector.shape_cast %749 : vector<8x2x16xf32> to vector<16x16xf32>
    %cst_244 = arith.constant dense<0.000000e+00> : vector<16x5xf32>
    %751 = tpu.matmul %750, %16, %cst_244 {dimension_numbers = #tpu.dot_dimension_numbers<[1], [0], [0], [1], [0, 0, 1, 1], [], []>} : vector<16x16xf32>, vector<16x5xf32>, vector<16x5xf32> -> vector<16x5xf32>
    %752 = vector.shape_cast %751 : vector<16x5xf32> to vector<8x2x5xf32>
    %cst_245 = arith.constant dense<0xFF800000> : vector<8x2xf32>
    %753 = vector.multi_reduction <maximumf>, %752, %cst_245 [2] : vector<8x2x5xf32> to vector<8x2xf32>
    %754 = vector.shape_cast %753 : vector<8x2xf32> to vector<8x2x1xf32>
    %755 = vector.broadcast %754 : vector<8x2x1xf32> to vector<8x2x5xf32>
    %756 = arith.subf %752, %755 : vector<8x2x5xf32>
    %757 = math.exp %756 : vector<8x2x5xf32>
    %cst_246 = arith.constant dense<0.000000e+00> : vector<8x2xf32>
    %758 = vector.multi_reduction <add>, %757, %cst_246 [2] : vector<8x2x5xf32> to vector<8x2xf32>
    %759 = vector.shape_cast %758 : vector<8x2xf32> to vector<8x2x1xf32>
    %760 = math.log %759 : vector<8x2x1xf32>
    %761 = vector.broadcast %760 : vector<8x2x1xf32> to vector<8x2x5xf32>
    %762 = arith.subf %756, %761 : vector<8x2x5xf32>
    %763 = vector.broadcast %c7_i32 : i32 to vector<8x2x5xi32>
    %764 = arith.cmpi sle, %18, %763 : vector<8x2x5xi32>
    %cst_247 = arith.constant 0.000000e+00 : f32
    %765 = vector.broadcast %cst_247 : f32 to vector<8x2x5xf32>
    %766 = arith.select %764, %762, %765 : vector<8x2x5xi1>, vector<8x2x5xf32>
    %767 = arith.index_cast %c7_i32 : i32 to index
    %c0_248 = arith.constant 0 : index
    %c0_249 = arith.constant 0 : index
    %768 = vector.load %arg11[%767, %c0_248, %c0_249] : memref<8x2x9xf32, #tpu.memory_space<vmem>>, vector<1x2x9xf32>
    %769 = vector.shape_cast %768 : vector<1x2x9xf32> to vector<2x9xf32>
    %770 = vector.shape_cast %723 : vector<2x9xf32> to vector<1x2x9xf32>
    tpu.vector_store %arg11[%767, %c0_248, %c0_249], %770 {strides = array<i32>} : memref<8x2x9xf32, #tpu.memory_space<vmem>>, vector<1x2x9xf32>,
    %771 = arith.index_cast %c7_i32 : i32 to index
    %c0_250 = arith.constant 0 : index
    %c0_251 = arith.constant 0 : index
    %c0_252 = arith.constant 0 : index
    %772 = vector.load %arg12[%771, %c0_250, %c0_251, %c0_252] : memref<8x8x2x5xf32, #tpu.memory_space<vmem>>, vector<1x8x2x5xf32>
    %773 = vector.shape_cast %772 : vector<1x8x2x5xf32> to vector<8x2x5xf32>
    %774 = vector.shape_cast %766 : vector<8x2x5xf32> to vector<1x8x2x5xf32>
    tpu.vector_store %arg12[%771, %c0_250, %c0_251, %c0_252], %774 {strides = array<i32>} : memref<8x8x2x5xf32, #tpu.memory_space<vmem>>, vector<1x8x2x5xf32>,
    %c8_i32 = arith.constant 8 : i32
    return
  }
}

module attributes {stable_mosaic.version = 11 : i64} {
  func.func @gru_bn_kernel(%arg0: memref<8x2x16xf32, #tpu.memory_space<vmem>>, %arg1: memref<2x16x48xf32, #tpu.memory_space<vmem>>, %arg2: memref<2x16x48xf32, #tpu.memory_space<vmem>>, %arg3: memref<2x1x48xf32, #tpu.memory_space<vmem>>, %arg4: memref<4x48xf32, #tpu.memory_space<vmem>>, %arg5: memref<2x32x48xf32, #tpu.memory_space<vmem>>, %arg6: memref<2x16x48xf32, #tpu.memory_space<vmem>>, %arg7: memref<2x1x48xf32, #tpu.memory_space<vmem>>, %arg8: memref<4x48xf32, #tpu.memory_space<vmem>>, %arg9: memref<8x2x32xf32, #tpu.memory_space<vmem>>, %arg10: memref<8x2x48xf32, #tpu.memory_space<vmem>>, %arg11: memref<8x2x48xf32, #tpu.memory_space<vmem>>, %arg12: memref<8x2x16xf32, #tpu.memory_space<vmem>>, %arg13: memref<8x2x16xf32, #tpu.memory_space<vmem>>, %arg14: memref<8x2x16xf32, #tpu.memory_space<vmem>>, %arg15: memref<8x2x16xf32, #tpu.memory_space<vmem>>) attributes {dimension_semantics = [], scalar_prefetch = 0 : i64, scratch_operands = 6 : i64, tpu.core_type = #tpu.core_type<tc>} {
    %c0 = arith.constant 0 : index
    %c0_0 = arith.constant 0 : index
    %c0_1 = arith.constant 0 : index
    %0 = vector.load %arg0[%c0, %c0_0, %c0_1] : memref<8x2x16xf32, #tpu.memory_space<vmem>>, vector<8x2x16xf32>
    %1 = vector.shape_cast %0 : vector<8x2x16xf32> to vector<16x16xf32>
    %c0_2 = arith.constant 0 : index
    %c0_3 = arith.constant 0 : index
    %c0_4 = arith.constant 0 : index
    %2 = vector.load %arg1[%c0_2, %c0_3, %c0_4] : memref<2x16x48xf32, #tpu.memory_space<vmem>>, vector<1x16x48xf32>
    %3 = vector.shape_cast %2 : vector<1x16x48xf32> to vector<16x48xf32>
    %cst = arith.constant dense<0.000000e+00> : vector<16x48xf32>
    %4 = tpu.matmul %1, %3, %cst {dimension_numbers = #tpu.dot_dimension_numbers<[1], [0], [0], [1], [0, 0, 1, 1], [], []>} : vector<16x16xf32>, vector<16x48xf32>, vector<16x48xf32> -> vector<16x48xf32>
    %c0_5 = arith.constant 0 : index
    %c0_6 = arith.constant 0 : index
    %c0_7 = arith.constant 0 : index
    %5 = vector.load %arg3[%c0_5, %c0_6, %c0_7] : memref<2x1x48xf32, #tpu.memory_space<vmem>>, vector<1x1x48xf32>
    %6 = vector.shape_cast %5 : vector<1x1x48xf32> to vector<1x48xf32>
    %7 = vector.broadcast %6 : vector<1x48xf32> to vector<16x48xf32>
    %8 = arith.addf %4, %7 : vector<16x48xf32>
    %9 = vector.shape_cast %8 : vector<16x48xf32> to vector<8x2x48xf32>
    %c0_8 = arith.constant 0 : index
    %c0_9 = arith.constant 0 : index
    %c0_10 = arith.constant 0 : index
    %10 = vector.load %arg10[%c0_8, %c0_9, %c0_10] : memref<8x2x48xf32, #tpu.memory_space<vmem>>, vector<8x2x48xf32>
    tpu.vector_store %arg10[%c0_8, %c0_9, %c0_10], %9 {strides = array<i32>} : memref<8x2x48xf32, #tpu.memory_space<vmem>>, vector<8x2x48xf32>,
    %c1 = arith.constant 1 : index
    %c0_11 = arith.constant 0 : index
    %c0_12 = arith.constant 0 : index
    %11 = vector.load %arg1[%c1, %c0_11, %c0_12] : memref<2x16x48xf32, #tpu.memory_space<vmem>>, vector<1x16x48xf32>
    %12 = vector.shape_cast %11 : vector<1x16x48xf32> to vector<16x48xf32>
    %cst_13 = arith.constant dense<0.000000e+00> : vector<16x48xf32>
    %13 = tpu.matmul %1, %12, %cst_13 {dimension_numbers = #tpu.dot_dimension_numbers<[1], [0], [0], [1], [0, 0, 1, 1], [], []>} : vector<16x16xf32>, vector<16x48xf32>, vector<16x48xf32> -> vector<16x48xf32>
    %c1_14 = arith.constant 1 : index
    %c0_15 = arith.constant 0 : index
    %c0_16 = arith.constant 0 : index
    %14 = vector.load %arg3[%c1_14, %c0_15, %c0_16] : memref<2x1x48xf32, #tpu.memory_space<vmem>>, vector<1x1x48xf32>
    %15 = vector.shape_cast %14 : vector<1x1x48xf32> to vector<1x48xf32>
    %16 = vector.broadcast %15 : vector<1x48xf32> to vector<16x48xf32>
    %17 = arith.addf %13, %16 : vector<16x48xf32>
    %18 = vector.shape_cast %17 : vector<16x48xf32> to vector<8x2x48xf32>
    %c0_17 = arith.constant 0 : index
    %c0_18 = arith.constant 0 : index
    %c0_19 = arith.constant 0 : index
    %19 = vector.load %arg11[%c0_17, %c0_18, %c0_19] : memref<8x2x48xf32, #tpu.memory_space<vmem>>, vector<8x2x48xf32>
    tpu.vector_store %arg11[%c0_17, %c0_18, %c0_19], %18 {strides = array<i32>} : memref<8x2x48xf32, #tpu.memory_space<vmem>>, vector<8x2x48xf32>,
    %c0_20 = arith.constant 0 : index
    %c0_21 = arith.constant 0 : index
    %c0_22 = arith.constant 0 : index
    %20 = vector.load %arg2[%c0_20, %c0_21, %c0_22] : memref<2x16x48xf32, #tpu.memory_space<vmem>>, vector<1x16x48xf32>
    %21 = vector.shape_cast %20 : vector<1x16x48xf32> to vector<16x48xf32>
    %c1_23 = arith.constant 1 : index
    %c0_24 = arith.constant 0 : index
    %c0_25 = arith.constant 0 : index
    %22 = vector.load %arg2[%c1_23, %c0_24, %c0_25] : memref<2x16x48xf32, #tpu.memory_space<vmem>>, vector<1x16x48xf32>
    %23 = vector.shape_cast %22 : vector<1x16x48xf32> to vector<16x48xf32>
    %c0_26 = arith.constant 0 : index
    %c0_27 = arith.constant 0 : index
    %24 = vector.load %arg4[%c0_26, %c0_27] : memref<4x48xf32, #tpu.memory_space<vmem>>, vector<4x48xf32>
    %cst_28 = arith.constant 0.000000e+00 : f32
    %25 = vector.broadcast %cst_28 : f32 to vector<4x16xf32>
    %c0_i32 = arith.constant 0 : i32
    %c7_i32 = arith.constant 7 : i32
    %26 = arith.subi %c7_i32, %c0_i32 : i32
    %27 = arith.index_cast %c0_i32 : i32 to index
    %c0_29 = arith.constant 0 : index
    %c0_30 = arith.constant 0 : index
    %28 = vector.load %arg10[%27, %c0_29, %c0_30] : memref<8x2x48xf32, #tpu.memory_space<vmem>>, vector<1x2x48xf32>
    %29 = vector.shape_cast %28 : vector<1x2x48xf32> to vector<2x48xf32>
    %30 = arith.index_cast %26 : i32 to index
    %c0_31 = arith.constant 0 : index
    %c0_32 = arith.constant 0 : index
    %31 = vector.load %arg11[%30, %c0_31, %c0_32] : memref<8x2x48xf32, #tpu.memory_space<vmem>>, vector<1x2x48xf32>
    %32 = vector.shape_cast %31 : vector<1x2x48xf32> to vector<2x48xf32>
    %33 = tpu.concatenate %29, %32 in 0 : vector<2x48xf32>, vector<2x48xf32> -> vector<4x48xf32>
    %34 = vector.extract_strided_slice %25 {offsets = [0, 0], sizes = [2, 16], strides = [1, 1]} : vector<4x16xf32> to vector<2x16xf32>
    %cst_33 = arith.constant dense<0.000000e+00> : vector<2x48xf32>
    %35 = tpu.matmul %34, %21, %cst_33 {dimension_numbers = #tpu.dot_dimension_numbers<[1], [0], [0], [1], [0, 0, 1, 1], [], []>} : vector<2x16xf32>, vector<16x48xf32>, vector<2x48xf32> -> vector<2x48xf32>
    %36 = vector.extract_strided_slice %25 {offsets = [2, 0], sizes = [2, 16], strides = [1, 1]} : vector<4x16xf32> to vector<2x16xf32>
    %cst_34 = arith.constant dense<0.000000e+00> : vector<2x48xf32>
    %37 = tpu.matmul %36, %23, %cst_34 {dimension_numbers = #tpu.dot_dimension_numbers<[1], [0], [0], [1], [0, 0, 1, 1], [], []>} : vector<2x16xf32>, vector<16x48xf32>, vector<2x48xf32> -> vector<2x48xf32>
    %38 = tpu.concatenate %35, %37 in 0 : vector<2x48xf32>, vector<2x48xf32> -> vector<4x48xf32>
    %39 = arith.addf %38, %24 : vector<4x48xf32>
    %40 = vector.extract_strided_slice %33 {offsets = [0, 0], sizes = [4, 16], strides = [1, 1]} : vector<4x48xf32> to vector<4x16xf32>
    %41 = vector.extract_strided_slice %39 {offsets = [0, 0], sizes = [4, 16], strides = [1, 1]} : vector<4x48xf32> to vector<4x16xf32>
    %42 = arith.addf %40, %41 : vector<4x16xf32>
    %43 = arith.negf %42 : vector<4x16xf32>
    %44 = math.exp %43 : vector<4x16xf32>
    %cst_35 = arith.constant 1.000000e+00 : f32
    %45 = vector.broadcast %cst_35 : f32 to vector<4x16xf32>
    %46 = arith.addf %45, %44 : vector<4x16xf32>
    %47 = arith.divf %45, %46 : vector<4x16xf32>
    %48 = vector.extract_strided_slice %33 {offsets = [0, 16], sizes = [4, 16], strides = [1, 1]} : vector<4x48xf32> to vector<4x16xf32>
    %49 = vector.extract_strided_slice %39 {offsets = [0, 16], sizes = [4, 16], strides = [1, 1]} : vector<4x48xf32> to vector<4x16xf32>
    %50 = arith.addf %48, %49 : vector<4x16xf32>
    %51 = arith.negf %50 : vector<4x16xf32>
    %52 = math.exp %51 : vector<4x16xf32>
    %cst_36 = arith.constant 1.000000e+00 : f32
    %53 = vector.broadcast %cst_36 : f32 to vector<4x16xf32>
    %54 = arith.addf %53, %52 : vector<4x16xf32>
    %55 = arith.divf %53, %54 : vector<4x16xf32>
    %56 = vector.extract_strided_slice %33 {offsets = [0, 32], sizes = [4, 16], strides = [1, 1]} : vector<4x48xf32> to vector<4x16xf32>
    %57 = vector.extract_strided_slice %39 {offsets = [0, 32], sizes = [4, 16], strides = [1, 1]} : vector<4x48xf32> to vector<4x16xf32>
    %58 = arith.mulf %47, %57 : vector<4x16xf32>
    %59 = arith.addf %56, %58 : vector<4x16xf32>
    %60 = math.tanh %59 : vector<4x16xf32>
    %cst_37 = arith.constant 1.000000e+00 : f32
    %61 = vector.broadcast %cst_37 : f32 to vector<4x16xf32>
    %62 = arith.subf %61, %55 : vector<4x16xf32>
    %63 = arith.mulf %62, %60 : vector<4x16xf32>
    %64 = arith.mulf %55, %25 : vector<4x16xf32>
    %65 = arith.addf %63, %64 : vector<4x16xf32>
    %66 = vector.extract_strided_slice %65 {offsets = [0, 0], sizes = [2, 16], strides = [1, 1]} : vector<4x16xf32> to vector<2x16xf32>
    %67 = arith.index_cast %c0_i32 : i32 to index
    %c0_38 = arith.constant 0 : index
    %c0_39 = arith.constant 0 : index
    %68 = vector.load %arg12[%67, %c0_38, %c0_39] : memref<8x2x16xf32, #tpu.memory_space<vmem>>, vector<1x2x16xf32>
    %69 = vector.shape_cast %68 : vector<1x2x16xf32> to vector<2x16xf32>
    %70 = vector.shape_cast %66 : vector<2x16xf32> to vector<1x2x16xf32>
    tpu.vector_store %arg12[%67, %c0_38, %c0_39], %70 {strides = array<i32>} : memref<8x2x16xf32, #tpu.memory_space<vmem>>, vector<1x2x16xf32>,
    %71 = vector.extract_strided_slice %65 {offsets = [2, 0], sizes = [2, 16], strides = [1, 1]} : vector<4x16xf32> to vector<2x16xf32>
    %72 = arith.index_cast %26 : i32 to index
    %c0_40 = arith.constant 0 : index
    %c0_41 = arith.constant 0 : index
    %73 = vector.load %arg13[%72, %c0_40, %c0_41] : memref<8x2x16xf32, #tpu.memory_space<vmem>>, vector<1x2x16xf32>
    %74 = vector.shape_cast %73 : vector<1x2x16xf32> to vector<2x16xf32>
    %75 = vector.shape_cast %71 : vector<2x16xf32> to vector<1x2x16xf32>
    tpu.vector_store %arg13[%72, %c0_40, %c0_41], %75 {strides = array<i32>} : memref<8x2x16xf32, #tpu.memory_space<vmem>>, vector<1x2x16xf32>,
    %c1_i32 = arith.constant 1 : i32
    %c7_i32_42 = arith.constant 7 : i32
    %76 = arith.subi %c7_i32_42, %c1_i32 : i32
    %77 = arith.index_cast %c1_i32 : i32 to index
    %c0_43 = arith.constant 0 : index
    %c0_44 = arith.constant 0 : index
    %78 = vector.load %arg10[%77, %c0_43, %c0_44] : memref<8x2x48xf32, #tpu.memory_space<vmem>>, vector<1x2x48xf32>
    %79 = vector.shape_cast %78 : vector<1x2x48xf32> to vector<2x48xf32>
    %80 = arith.index_cast %76 : i32 to index
    %c0_45 = arith.constant 0 : index
    %c0_46 = arith.constant 0 : index
    %81 = vector.load %arg11[%80, %c0_45, %c0_46] : memref<8x2x48xf32, #tpu.memory_space<vmem>>, vector<1x2x48xf32>
    %82 = vector.shape_cast %81 : vector<1x2x48xf32> to vector<2x48xf32>
    %83 = tpu.concatenate %79, %82 in 0 : vector<2x48xf32>, vector<2x48xf32> -> vector<4x48xf32>
    %84 = vector.extract_strided_slice %65 {offsets = [0, 0], sizes = [2, 16], strides = [1, 1]} : vector<4x16xf32> to vector<2x16xf32>
    %cst_47 = arith.constant dense<0.000000e+00> : vector<2x48xf32>
    %85 = tpu.matmul %84, %21, %cst_47 {dimension_numbers = #tpu.dot_dimension_numbers<[1], [0], [0], [1], [0, 0, 1, 1], [], []>} : vector<2x16xf32>, vector<16x48xf32>, vector<2x48xf32> -> vector<2x48xf32>
    %86 = vector.extract_strided_slice %65 {offsets = [2, 0], sizes = [2, 16], strides = [1, 1]} : vector<4x16xf32> to vector<2x16xf32>
    %cst_48 = arith.constant dense<0.000000e+00> : vector<2x48xf32>
    %87 = tpu.matmul %86, %23, %cst_48 {dimension_numbers = #tpu.dot_dimension_numbers<[1], [0], [0], [1], [0, 0, 1, 1], [], []>} : vector<2x16xf32>, vector<16x48xf32>, vector<2x48xf32> -> vector<2x48xf32>
    %88 = tpu.concatenate %85, %87 in 0 : vector<2x48xf32>, vector<2x48xf32> -> vector<4x48xf32>
    %89 = arith.addf %88, %24 : vector<4x48xf32>
    %90 = vector.extract_strided_slice %83 {offsets = [0, 0], sizes = [4, 16], strides = [1, 1]} : vector<4x48xf32> to vector<4x16xf32>
    %91 = vector.extract_strided_slice %89 {offsets = [0, 0], sizes = [4, 16], strides = [1, 1]} : vector<4x48xf32> to vector<4x16xf32>
    %92 = arith.addf %90, %91 : vector<4x16xf32>
    %93 = arith.negf %92 : vector<4x16xf32>
    %94 = math.exp %93 : vector<4x16xf32>
    %cst_49 = arith.constant 1.000000e+00 : f32
    %95 = vector.broadcast %cst_49 : f32 to vector<4x16xf32>
    %96 = arith.addf %95, %94 : vector<4x16xf32>
    %97 = arith.divf %95, %96 : vector<4x16xf32>
    %98 = vector.extract_strided_slice %83 {offsets = [0, 16], sizes = [4, 16], strides = [1, 1]} : vector<4x48xf32> to vector<4x16xf32>
    %99 = vector.extract_strided_slice %89 {offsets = [0, 16], sizes = [4, 16], strides = [1, 1]} : vector<4x48xf32> to vector<4x16xf32>
    %100 = arith.addf %98, %99 : vector<4x16xf32>
    %101 = arith.negf %100 : vector<4x16xf32>
    %102 = math.exp %101 : vector<4x16xf32>
    %cst_50 = arith.constant 1.000000e+00 : f32
    %103 = vector.broadcast %cst_50 : f32 to vector<4x16xf32>
    %104 = arith.addf %103, %102 : vector<4x16xf32>
    %105 = arith.divf %103, %104 : vector<4x16xf32>
    %106 = vector.extract_strided_slice %83 {offsets = [0, 32], sizes = [4, 16], strides = [1, 1]} : vector<4x48xf32> to vector<4x16xf32>
    %107 = vector.extract_strided_slice %89 {offsets = [0, 32], sizes = [4, 16], strides = [1, 1]} : vector<4x48xf32> to vector<4x16xf32>
    %108 = arith.mulf %97, %107 : vector<4x16xf32>
    %109 = arith.addf %106, %108 : vector<4x16xf32>
    %110 = math.tanh %109 : vector<4x16xf32>
    %cst_51 = arith.constant 1.000000e+00 : f32
    %111 = vector.broadcast %cst_51 : f32 to vector<4x16xf32>
    %112 = arith.subf %111, %105 : vector<4x16xf32>
    %113 = arith.mulf %112, %110 : vector<4x16xf32>
    %114 = arith.mulf %105, %65 : vector<4x16xf32>
    %115 = arith.addf %113, %114 : vector<4x16xf32>
    %116 = vector.extract_strided_slice %115 {offsets = [0, 0], sizes = [2, 16], strides = [1, 1]} : vector<4x16xf32> to vector<2x16xf32>
    %117 = arith.index_cast %c1_i32 : i32 to index
    %c0_52 = arith.constant 0 : index
    %c0_53 = arith.constant 0 : index
    %118 = vector.load %arg12[%117, %c0_52, %c0_53] : memref<8x2x16xf32, #tpu.memory_space<vmem>>, vector<1x2x16xf32>
    %119 = vector.shape_cast %118 : vector<1x2x16xf32> to vector<2x16xf32>
    %120 = vector.shape_cast %116 : vector<2x16xf32> to vector<1x2x16xf32>
    tpu.vector_store %arg12[%117, %c0_52, %c0_53], %120 {strides = array<i32>} : memref<8x2x16xf32, #tpu.memory_space<vmem>>, vector<1x2x16xf32>,
    %121 = vector.extract_strided_slice %115 {offsets = [2, 0], sizes = [2, 16], strides = [1, 1]} : vector<4x16xf32> to vector<2x16xf32>
    %122 = arith.index_cast %76 : i32 to index
    %c0_54 = arith.constant 0 : index
    %c0_55 = arith.constant 0 : index
    %123 = vector.load %arg13[%122, %c0_54, %c0_55] : memref<8x2x16xf32, #tpu.memory_space<vmem>>, vector<1x2x16xf32>
    %124 = vector.shape_cast %123 : vector<1x2x16xf32> to vector<2x16xf32>
    %125 = vector.shape_cast %121 : vector<2x16xf32> to vector<1x2x16xf32>
    tpu.vector_store %arg13[%122, %c0_54, %c0_55], %125 {strides = array<i32>} : memref<8x2x16xf32, #tpu.memory_space<vmem>>, vector<1x2x16xf32>,
    %c2_i32 = arith.constant 2 : i32
    %c7_i32_56 = arith.constant 7 : i32
    %126 = arith.subi %c7_i32_56, %c2_i32 : i32
    %127 = arith.index_cast %c2_i32 : i32 to index
    %c0_57 = arith.constant 0 : index
    %c0_58 = arith.constant 0 : index
    %128 = vector.load %arg10[%127, %c0_57, %c0_58] : memref<8x2x48xf32, #tpu.memory_space<vmem>>, vector<1x2x48xf32>
    %129 = vector.shape_cast %128 : vector<1x2x48xf32> to vector<2x48xf32>
    %130 = arith.index_cast %126 : i32 to index
    %c0_59 = arith.constant 0 : index
    %c0_60 = arith.constant 0 : index
    %131 = vector.load %arg11[%130, %c0_59, %c0_60] : memref<8x2x48xf32, #tpu.memory_space<vmem>>, vector<1x2x48xf32>
    %132 = vector.shape_cast %131 : vector<1x2x48xf32> to vector<2x48xf32>
    %133 = tpu.concatenate %129, %132 in 0 : vector<2x48xf32>, vector<2x48xf32> -> vector<4x48xf32>
    %134 = vector.extract_strided_slice %115 {offsets = [0, 0], sizes = [2, 16], strides = [1, 1]} : vector<4x16xf32> to vector<2x16xf32>
    %cst_61 = arith.constant dense<0.000000e+00> : vector<2x48xf32>
    %135 = tpu.matmul %134, %21, %cst_61 {dimension_numbers = #tpu.dot_dimension_numbers<[1], [0], [0], [1], [0, 0, 1, 1], [], []>} : vector<2x16xf32>, vector<16x48xf32>, vector<2x48xf32> -> vector<2x48xf32>
    %136 = vector.extract_strided_slice %115 {offsets = [2, 0], sizes = [2, 16], strides = [1, 1]} : vector<4x16xf32> to vector<2x16xf32>
    %cst_62 = arith.constant dense<0.000000e+00> : vector<2x48xf32>
    %137 = tpu.matmul %136, %23, %cst_62 {dimension_numbers = #tpu.dot_dimension_numbers<[1], [0], [0], [1], [0, 0, 1, 1], [], []>} : vector<2x16xf32>, vector<16x48xf32>, vector<2x48xf32> -> vector<2x48xf32>
    %138 = tpu.concatenate %135, %137 in 0 : vector<2x48xf32>, vector<2x48xf32> -> vector<4x48xf32>
    %139 = arith.addf %138, %24 : vector<4x48xf32>
    %140 = vector.extract_strided_slice %133 {offsets = [0, 0], sizes = [4, 16], strides = [1, 1]} : vector<4x48xf32> to vector<4x16xf32>
    %141 = vector.extract_strided_slice %139 {offsets = [0, 0], sizes = [4, 16], strides = [1, 1]} : vector<4x48xf32> to vector<4x16xf32>
    %142 = arith.addf %140, %141 : vector<4x16xf32>
    %143 = arith.negf %142 : vector<4x16xf32>
    %144 = math.exp %143 : vector<4x16xf32>
    %cst_63 = arith.constant 1.000000e+00 : f32
    %145 = vector.broadcast %cst_63 : f32 to vector<4x16xf32>
    %146 = arith.addf %145, %144 : vector<4x16xf32>
    %147 = arith.divf %145, %146 : vector<4x16xf32>
    %148 = vector.extract_strided_slice %133 {offsets = [0, 16], sizes = [4, 16], strides = [1, 1]} : vector<4x48xf32> to vector<4x16xf32>
    %149 = vector.extract_strided_slice %139 {offsets = [0, 16], sizes = [4, 16], strides = [1, 1]} : vector<4x48xf32> to vector<4x16xf32>
    %150 = arith.addf %148, %149 : vector<4x16xf32>
    %151 = arith.negf %150 : vector<4x16xf32>
    %152 = math.exp %151 : vector<4x16xf32>
    %cst_64 = arith.constant 1.000000e+00 : f32
    %153 = vector.broadcast %cst_64 : f32 to vector<4x16xf32>
    %154 = arith.addf %153, %152 : vector<4x16xf32>
    %155 = arith.divf %153, %154 : vector<4x16xf32>
    %156 = vector.extract_strided_slice %133 {offsets = [0, 32], sizes = [4, 16], strides = [1, 1]} : vector<4x48xf32> to vector<4x16xf32>
    %157 = vector.extract_strided_slice %139 {offsets = [0, 32], sizes = [4, 16], strides = [1, 1]} : vector<4x48xf32> to vector<4x16xf32>
    %158 = arith.mulf %147, %157 : vector<4x16xf32>
    %159 = arith.addf %156, %158 : vector<4x16xf32>
    %160 = math.tanh %159 : vector<4x16xf32>
    %cst_65 = arith.constant 1.000000e+00 : f32
    %161 = vector.broadcast %cst_65 : f32 to vector<4x16xf32>
    %162 = arith.subf %161, %155 : vector<4x16xf32>
    %163 = arith.mulf %162, %160 : vector<4x16xf32>
    %164 = arith.mulf %155, %115 : vector<4x16xf32>
    %165 = arith.addf %163, %164 : vector<4x16xf32>
    %166 = vector.extract_strided_slice %165 {offsets = [0, 0], sizes = [2, 16], strides = [1, 1]} : vector<4x16xf32> to vector<2x16xf32>
    %167 = arith.index_cast %c2_i32 : i32 to index
    %c0_66 = arith.constant 0 : index
    %c0_67 = arith.constant 0 : index
    %168 = vector.load %arg12[%167, %c0_66, %c0_67] : memref<8x2x16xf32, #tpu.memory_space<vmem>>, vector<1x2x16xf32>
    %169 = vector.shape_cast %168 : vector<1x2x16xf32> to vector<2x16xf32>
    %170 = vector.shape_cast %166 : vector<2x16xf32> to vector<1x2x16xf32>
    tpu.vector_store %arg12[%167, %c0_66, %c0_67], %170 {strides = array<i32>} : memref<8x2x16xf32, #tpu.memory_space<vmem>>, vector<1x2x16xf32>,
    %171 = vector.extract_strided_slice %165 {offsets = [2, 0], sizes = [2, 16], strides = [1, 1]} : vector<4x16xf32> to vector<2x16xf32>
    %172 = arith.index_cast %126 : i32 to index
    %c0_68 = arith.constant 0 : index
    %c0_69 = arith.constant 0 : index
    %173 = vector.load %arg13[%172, %c0_68, %c0_69] : memref<8x2x16xf32, #tpu.memory_space<vmem>>, vector<1x2x16xf32>
    %174 = vector.shape_cast %173 : vector<1x2x16xf32> to vector<2x16xf32>
    %175 = vector.shape_cast %171 : vector<2x16xf32> to vector<1x2x16xf32>
    tpu.vector_store %arg13[%172, %c0_68, %c0_69], %175 {strides = array<i32>} : memref<8x2x16xf32, #tpu.memory_space<vmem>>, vector<1x2x16xf32>,
    %c3_i32 = arith.constant 3 : i32
    %c7_i32_70 = arith.constant 7 : i32
    %176 = arith.subi %c7_i32_70, %c3_i32 : i32
    %177 = arith.index_cast %c3_i32 : i32 to index
    %c0_71 = arith.constant 0 : index
    %c0_72 = arith.constant 0 : index
    %178 = vector.load %arg10[%177, %c0_71, %c0_72] : memref<8x2x48xf32, #tpu.memory_space<vmem>>, vector<1x2x48xf32>
    %179 = vector.shape_cast %178 : vector<1x2x48xf32> to vector<2x48xf32>
    %180 = arith.index_cast %176 : i32 to index
    %c0_73 = arith.constant 0 : index
    %c0_74 = arith.constant 0 : index
    %181 = vector.load %arg11[%180, %c0_73, %c0_74] : memref<8x2x48xf32, #tpu.memory_space<vmem>>, vector<1x2x48xf32>
    %182 = vector.shape_cast %181 : vector<1x2x48xf32> to vector<2x48xf32>
    %183 = tpu.concatenate %179, %182 in 0 : vector<2x48xf32>, vector<2x48xf32> -> vector<4x48xf32>
    %184 = vector.extract_strided_slice %165 {offsets = [0, 0], sizes = [2, 16], strides = [1, 1]} : vector<4x16xf32> to vector<2x16xf32>
    %cst_75 = arith.constant dense<0.000000e+00> : vector<2x48xf32>
    %185 = tpu.matmul %184, %21, %cst_75 {dimension_numbers = #tpu.dot_dimension_numbers<[1], [0], [0], [1], [0, 0, 1, 1], [], []>} : vector<2x16xf32>, vector<16x48xf32>, vector<2x48xf32> -> vector<2x48xf32>
    %186 = vector.extract_strided_slice %165 {offsets = [2, 0], sizes = [2, 16], strides = [1, 1]} : vector<4x16xf32> to vector<2x16xf32>
    %cst_76 = arith.constant dense<0.000000e+00> : vector<2x48xf32>
    %187 = tpu.matmul %186, %23, %cst_76 {dimension_numbers = #tpu.dot_dimension_numbers<[1], [0], [0], [1], [0, 0, 1, 1], [], []>} : vector<2x16xf32>, vector<16x48xf32>, vector<2x48xf32> -> vector<2x48xf32>
    %188 = tpu.concatenate %185, %187 in 0 : vector<2x48xf32>, vector<2x48xf32> -> vector<4x48xf32>
    %189 = arith.addf %188, %24 : vector<4x48xf32>
    %190 = vector.extract_strided_slice %183 {offsets = [0, 0], sizes = [4, 16], strides = [1, 1]} : vector<4x48xf32> to vector<4x16xf32>
    %191 = vector.extract_strided_slice %189 {offsets = [0, 0], sizes = [4, 16], strides = [1, 1]} : vector<4x48xf32> to vector<4x16xf32>
    %192 = arith.addf %190, %191 : vector<4x16xf32>
    %193 = arith.negf %192 : vector<4x16xf32>
    %194 = math.exp %193 : vector<4x16xf32>
    %cst_77 = arith.constant 1.000000e+00 : f32
    %195 = vector.broadcast %cst_77 : f32 to vector<4x16xf32>
    %196 = arith.addf %195, %194 : vector<4x16xf32>
    %197 = arith.divf %195, %196 : vector<4x16xf32>
    %198 = vector.extract_strided_slice %183 {offsets = [0, 16], sizes = [4, 16], strides = [1, 1]} : vector<4x48xf32> to vector<4x16xf32>
    %199 = vector.extract_strided_slice %189 {offsets = [0, 16], sizes = [4, 16], strides = [1, 1]} : vector<4x48xf32> to vector<4x16xf32>
    %200 = arith.addf %198, %199 : vector<4x16xf32>
    %201 = arith.negf %200 : vector<4x16xf32>
    %202 = math.exp %201 : vector<4x16xf32>
    %cst_78 = arith.constant 1.000000e+00 : f32
    %203 = vector.broadcast %cst_78 : f32 to vector<4x16xf32>
    %204 = arith.addf %203, %202 : vector<4x16xf32>
    %205 = arith.divf %203, %204 : vector<4x16xf32>
    %206 = vector.extract_strided_slice %183 {offsets = [0, 32], sizes = [4, 16], strides = [1, 1]} : vector<4x48xf32> to vector<4x16xf32>
    %207 = vector.extract_strided_slice %189 {offsets = [0, 32], sizes = [4, 16], strides = [1, 1]} : vector<4x48xf32> to vector<4x16xf32>
    %208 = arith.mulf %197, %207 : vector<4x16xf32>
    %209 = arith.addf %206, %208 : vector<4x16xf32>
    %210 = math.tanh %209 : vector<4x16xf32>
    %cst_79 = arith.constant 1.000000e+00 : f32
    %211 = vector.broadcast %cst_79 : f32 to vector<4x16xf32>
    %212 = arith.subf %211, %205 : vector<4x16xf32>
    %213 = arith.mulf %212, %210 : vector<4x16xf32>
    %214 = arith.mulf %205, %165 : vector<4x16xf32>
    %215 = arith.addf %213, %214 : vector<4x16xf32>
    %216 = vector.extract_strided_slice %215 {offsets = [0, 0], sizes = [2, 16], strides = [1, 1]} : vector<4x16xf32> to vector<2x16xf32>
    %217 = arith.index_cast %c3_i32 : i32 to index
    %c0_80 = arith.constant 0 : index
    %c0_81 = arith.constant 0 : index
    %218 = vector.load %arg12[%217, %c0_80, %c0_81] : memref<8x2x16xf32, #tpu.memory_space<vmem>>, vector<1x2x16xf32>
    %219 = vector.shape_cast %218 : vector<1x2x16xf32> to vector<2x16xf32>
    %220 = vector.shape_cast %216 : vector<2x16xf32> to vector<1x2x16xf32>
    tpu.vector_store %arg12[%217, %c0_80, %c0_81], %220 {strides = array<i32>} : memref<8x2x16xf32, #tpu.memory_space<vmem>>, vector<1x2x16xf32>,
    %221 = vector.extract_strided_slice %215 {offsets = [2, 0], sizes = [2, 16], strides = [1, 1]} : vector<4x16xf32> to vector<2x16xf32>
    %222 = arith.index_cast %176 : i32 to index
    %c0_82 = arith.constant 0 : index
    %c0_83 = arith.constant 0 : index
    %223 = vector.load %arg13[%222, %c0_82, %c0_83] : memref<8x2x16xf32, #tpu.memory_space<vmem>>, vector<1x2x16xf32>
    %224 = vector.shape_cast %223 : vector<1x2x16xf32> to vector<2x16xf32>
    %225 = vector.shape_cast %221 : vector<2x16xf32> to vector<1x2x16xf32>
    tpu.vector_store %arg13[%222, %c0_82, %c0_83], %225 {strides = array<i32>} : memref<8x2x16xf32, #tpu.memory_space<vmem>>, vector<1x2x16xf32>,
    %c4_i32 = arith.constant 4 : i32
    %c7_i32_84 = arith.constant 7 : i32
    %226 = arith.subi %c7_i32_84, %c4_i32 : i32
    %227 = arith.index_cast %c4_i32 : i32 to index
    %c0_85 = arith.constant 0 : index
    %c0_86 = arith.constant 0 : index
    %228 = vector.load %arg10[%227, %c0_85, %c0_86] : memref<8x2x48xf32, #tpu.memory_space<vmem>>, vector<1x2x48xf32>
    %229 = vector.shape_cast %228 : vector<1x2x48xf32> to vector<2x48xf32>
    %230 = arith.index_cast %226 : i32 to index
    %c0_87 = arith.constant 0 : index
    %c0_88 = arith.constant 0 : index
    %231 = vector.load %arg11[%230, %c0_87, %c0_88] : memref<8x2x48xf32, #tpu.memory_space<vmem>>, vector<1x2x48xf32>
    %232 = vector.shape_cast %231 : vector<1x2x48xf32> to vector<2x48xf32>
    %233 = tpu.concatenate %229, %232 in 0 : vector<2x48xf32>, vector<2x48xf32> -> vector<4x48xf32>
    %234 = vector.extract_strided_slice %215 {offsets = [0, 0], sizes = [2, 16], strides = [1, 1]} : vector<4x16xf32> to vector<2x16xf32>
    %cst_89 = arith.constant dense<0.000000e+00> : vector<2x48xf32>
    %235 = tpu.matmul %234, %21, %cst_89 {dimension_numbers = #tpu.dot_dimension_numbers<[1], [0], [0], [1], [0, 0, 1, 1], [], []>} : vector<2x16xf32>, vector<16x48xf32>, vector<2x48xf32> -> vector<2x48xf32>
    %236 = vector.extract_strided_slice %215 {offsets = [2, 0], sizes = [2, 16], strides = [1, 1]} : vector<4x16xf32> to vector<2x16xf32>
    %cst_90 = arith.constant dense<0.000000e+00> : vector<2x48xf32>
    %237 = tpu.matmul %236, %23, %cst_90 {dimension_numbers = #tpu.dot_dimension_numbers<[1], [0], [0], [1], [0, 0, 1, 1], [], []>} : vector<2x16xf32>, vector<16x48xf32>, vector<2x48xf32> -> vector<2x48xf32>
    %238 = tpu.concatenate %235, %237 in 0 : vector<2x48xf32>, vector<2x48xf32> -> vector<4x48xf32>
    %239 = arith.addf %238, %24 : vector<4x48xf32>
    %240 = vector.extract_strided_slice %233 {offsets = [0, 0], sizes = [4, 16], strides = [1, 1]} : vector<4x48xf32> to vector<4x16xf32>
    %241 = vector.extract_strided_slice %239 {offsets = [0, 0], sizes = [4, 16], strides = [1, 1]} : vector<4x48xf32> to vector<4x16xf32>
    %242 = arith.addf %240, %241 : vector<4x16xf32>
    %243 = arith.negf %242 : vector<4x16xf32>
    %244 = math.exp %243 : vector<4x16xf32>
    %cst_91 = arith.constant 1.000000e+00 : f32
    %245 = vector.broadcast %cst_91 : f32 to vector<4x16xf32>
    %246 = arith.addf %245, %244 : vector<4x16xf32>
    %247 = arith.divf %245, %246 : vector<4x16xf32>
    %248 = vector.extract_strided_slice %233 {offsets = [0, 16], sizes = [4, 16], strides = [1, 1]} : vector<4x48xf32> to vector<4x16xf32>
    %249 = vector.extract_strided_slice %239 {offsets = [0, 16], sizes = [4, 16], strides = [1, 1]} : vector<4x48xf32> to vector<4x16xf32>
    %250 = arith.addf %248, %249 : vector<4x16xf32>
    %251 = arith.negf %250 : vector<4x16xf32>
    %252 = math.exp %251 : vector<4x16xf32>
    %cst_92 = arith.constant 1.000000e+00 : f32
    %253 = vector.broadcast %cst_92 : f32 to vector<4x16xf32>
    %254 = arith.addf %253, %252 : vector<4x16xf32>
    %255 = arith.divf %253, %254 : vector<4x16xf32>
    %256 = vector.extract_strided_slice %233 {offsets = [0, 32], sizes = [4, 16], strides = [1, 1]} : vector<4x48xf32> to vector<4x16xf32>
    %257 = vector.extract_strided_slice %239 {offsets = [0, 32], sizes = [4, 16], strides = [1, 1]} : vector<4x48xf32> to vector<4x16xf32>
    %258 = arith.mulf %247, %257 : vector<4x16xf32>
    %259 = arith.addf %256, %258 : vector<4x16xf32>
    %260 = math.tanh %259 : vector<4x16xf32>
    %cst_93 = arith.constant 1.000000e+00 : f32
    %261 = vector.broadcast %cst_93 : f32 to vector<4x16xf32>
    %262 = arith.subf %261, %255 : vector<4x16xf32>
    %263 = arith.mulf %262, %260 : vector<4x16xf32>
    %264 = arith.mulf %255, %215 : vector<4x16xf32>
    %265 = arith.addf %263, %264 : vector<4x16xf32>
    %266 = vector.extract_strided_slice %265 {offsets = [0, 0], sizes = [2, 16], strides = [1, 1]} : vector<4x16xf32> to vector<2x16xf32>
    %267 = arith.index_cast %c4_i32 : i32 to index
    %c0_94 = arith.constant 0 : index
    %c0_95 = arith.constant 0 : index
    %268 = vector.load %arg12[%267, %c0_94, %c0_95] : memref<8x2x16xf32, #tpu.memory_space<vmem>>, vector<1x2x16xf32>
    %269 = vector.shape_cast %268 : vector<1x2x16xf32> to vector<2x16xf32>
    %270 = vector.shape_cast %266 : vector<2x16xf32> to vector<1x2x16xf32>
    tpu.vector_store %arg12[%267, %c0_94, %c0_95], %270 {strides = array<i32>} : memref<8x2x16xf32, #tpu.memory_space<vmem>>, vector<1x2x16xf32>,
    %271 = vector.extract_strided_slice %265 {offsets = [2, 0], sizes = [2, 16], strides = [1, 1]} : vector<4x16xf32> to vector<2x16xf32>
    %272 = arith.index_cast %226 : i32 to index
    %c0_96 = arith.constant 0 : index
    %c0_97 = arith.constant 0 : index
    %273 = vector.load %arg13[%272, %c0_96, %c0_97] : memref<8x2x16xf32, #tpu.memory_space<vmem>>, vector<1x2x16xf32>
    %274 = vector.shape_cast %273 : vector<1x2x16xf32> to vector<2x16xf32>
    %275 = vector.shape_cast %271 : vector<2x16xf32> to vector<1x2x16xf32>
    tpu.vector_store %arg13[%272, %c0_96, %c0_97], %275 {strides = array<i32>} : memref<8x2x16xf32, #tpu.memory_space<vmem>>, vector<1x2x16xf32>,
    %c5_i32 = arith.constant 5 : i32
    %c7_i32_98 = arith.constant 7 : i32
    %276 = arith.subi %c7_i32_98, %c5_i32 : i32
    %277 = arith.index_cast %c5_i32 : i32 to index
    %c0_99 = arith.constant 0 : index
    %c0_100 = arith.constant 0 : index
    %278 = vector.load %arg10[%277, %c0_99, %c0_100] : memref<8x2x48xf32, #tpu.memory_space<vmem>>, vector<1x2x48xf32>
    %279 = vector.shape_cast %278 : vector<1x2x48xf32> to vector<2x48xf32>
    %280 = arith.index_cast %276 : i32 to index
    %c0_101 = arith.constant 0 : index
    %c0_102 = arith.constant 0 : index
    %281 = vector.load %arg11[%280, %c0_101, %c0_102] : memref<8x2x48xf32, #tpu.memory_space<vmem>>, vector<1x2x48xf32>
    %282 = vector.shape_cast %281 : vector<1x2x48xf32> to vector<2x48xf32>
    %283 = tpu.concatenate %279, %282 in 0 : vector<2x48xf32>, vector<2x48xf32> -> vector<4x48xf32>
    %284 = vector.extract_strided_slice %265 {offsets = [0, 0], sizes = [2, 16], strides = [1, 1]} : vector<4x16xf32> to vector<2x16xf32>
    %cst_103 = arith.constant dense<0.000000e+00> : vector<2x48xf32>
    %285 = tpu.matmul %284, %21, %cst_103 {dimension_numbers = #tpu.dot_dimension_numbers<[1], [0], [0], [1], [0, 0, 1, 1], [], []>} : vector<2x16xf32>, vector<16x48xf32>, vector<2x48xf32> -> vector<2x48xf32>
    %286 = vector.extract_strided_slice %265 {offsets = [2, 0], sizes = [2, 16], strides = [1, 1]} : vector<4x16xf32> to vector<2x16xf32>
    %cst_104 = arith.constant dense<0.000000e+00> : vector<2x48xf32>
    %287 = tpu.matmul %286, %23, %cst_104 {dimension_numbers = #tpu.dot_dimension_numbers<[1], [0], [0], [1], [0, 0, 1, 1], [], []>} : vector<2x16xf32>, vector<16x48xf32>, vector<2x48xf32> -> vector<2x48xf32>
    %288 = tpu.concatenate %285, %287 in 0 : vector<2x48xf32>, vector<2x48xf32> -> vector<4x48xf32>
    %289 = arith.addf %288, %24 : vector<4x48xf32>
    %290 = vector.extract_strided_slice %283 {offsets = [0, 0], sizes = [4, 16], strides = [1, 1]} : vector<4x48xf32> to vector<4x16xf32>
    %291 = vector.extract_strided_slice %289 {offsets = [0, 0], sizes = [4, 16], strides = [1, 1]} : vector<4x48xf32> to vector<4x16xf32>
    %292 = arith.addf %290, %291 : vector<4x16xf32>
    %293 = arith.negf %292 : vector<4x16xf32>
    %294 = math.exp %293 : vector<4x16xf32>
    %cst_105 = arith.constant 1.000000e+00 : f32
    %295 = vector.broadcast %cst_105 : f32 to vector<4x16xf32>
    %296 = arith.addf %295, %294 : vector<4x16xf32>
    %297 = arith.divf %295, %296 : vector<4x16xf32>
    %298 = vector.extract_strided_slice %283 {offsets = [0, 16], sizes = [4, 16], strides = [1, 1]} : vector<4x48xf32> to vector<4x16xf32>
    %299 = vector.extract_strided_slice %289 {offsets = [0, 16], sizes = [4, 16], strides = [1, 1]} : vector<4x48xf32> to vector<4x16xf32>
    %300 = arith.addf %298, %299 : vector<4x16xf32>
    %301 = arith.negf %300 : vector<4x16xf32>
    %302 = math.exp %301 : vector<4x16xf32>
    %cst_106 = arith.constant 1.000000e+00 : f32
    %303 = vector.broadcast %cst_106 : f32 to vector<4x16xf32>
    %304 = arith.addf %303, %302 : vector<4x16xf32>
    %305 = arith.divf %303, %304 : vector<4x16xf32>
    %306 = vector.extract_strided_slice %283 {offsets = [0, 32], sizes = [4, 16], strides = [1, 1]} : vector<4x48xf32> to vector<4x16xf32>
    %307 = vector.extract_strided_slice %289 {offsets = [0, 32], sizes = [4, 16], strides = [1, 1]} : vector<4x48xf32> to vector<4x16xf32>
    %308 = arith.mulf %297, %307 : vector<4x16xf32>
    %309 = arith.addf %306, %308 : vector<4x16xf32>
    %310 = math.tanh %309 : vector<4x16xf32>
    %cst_107 = arith.constant 1.000000e+00 : f32
    %311 = vector.broadcast %cst_107 : f32 to vector<4x16xf32>
    %312 = arith.subf %311, %305 : vector<4x16xf32>
    %313 = arith.mulf %312, %310 : vector<4x16xf32>
    %314 = arith.mulf %305, %265 : vector<4x16xf32>
    %315 = arith.addf %313, %314 : vector<4x16xf32>
    %316 = vector.extract_strided_slice %315 {offsets = [0, 0], sizes = [2, 16], strides = [1, 1]} : vector<4x16xf32> to vector<2x16xf32>
    %317 = arith.index_cast %c5_i32 : i32 to index
    %c0_108 = arith.constant 0 : index
    %c0_109 = arith.constant 0 : index
    %318 = vector.load %arg12[%317, %c0_108, %c0_109] : memref<8x2x16xf32, #tpu.memory_space<vmem>>, vector<1x2x16xf32>
    %319 = vector.shape_cast %318 : vector<1x2x16xf32> to vector<2x16xf32>
    %320 = vector.shape_cast %316 : vector<2x16xf32> to vector<1x2x16xf32>
    tpu.vector_store %arg12[%317, %c0_108, %c0_109], %320 {strides = array<i32>} : memref<8x2x16xf32, #tpu.memory_space<vmem>>, vector<1x2x16xf32>,
    %321 = vector.extract_strided_slice %315 {offsets = [2, 0], sizes = [2, 16], strides = [1, 1]} : vector<4x16xf32> to vector<2x16xf32>
    %322 = arith.index_cast %276 : i32 to index
    %c0_110 = arith.constant 0 : index
    %c0_111 = arith.constant 0 : index
    %323 = vector.load %arg13[%322, %c0_110, %c0_111] : memref<8x2x16xf32, #tpu.memory_space<vmem>>, vector<1x2x16xf32>
    %324 = vector.shape_cast %323 : vector<1x2x16xf32> to vector<2x16xf32>
    %325 = vector.shape_cast %321 : vector<2x16xf32> to vector<1x2x16xf32>
    tpu.vector_store %arg13[%322, %c0_110, %c0_111], %325 {strides = array<i32>} : memref<8x2x16xf32, #tpu.memory_space<vmem>>, vector<1x2x16xf32>,
    %c6_i32 = arith.constant 6 : i32
    %c7_i32_112 = arith.constant 7 : i32
    %326 = arith.subi %c7_i32_112, %c6_i32 : i32
    %327 = arith.index_cast %c6_i32 : i32 to index
    %c0_113 = arith.constant 0 : index
    %c0_114 = arith.constant 0 : index
    %328 = vector.load %arg10[%327, %c0_113, %c0_114] : memref<8x2x48xf32, #tpu.memory_space<vmem>>, vector<1x2x48xf32>
    %329 = vector.shape_cast %328 : vector<1x2x48xf32> to vector<2x48xf32>
    %330 = arith.index_cast %326 : i32 to index
    %c0_115 = arith.constant 0 : index
    %c0_116 = arith.constant 0 : index
    %331 = vector.load %arg11[%330, %c0_115, %c0_116] : memref<8x2x48xf32, #tpu.memory_space<vmem>>, vector<1x2x48xf32>
    %332 = vector.shape_cast %331 : vector<1x2x48xf32> to vector<2x48xf32>
    %333 = tpu.concatenate %329, %332 in 0 : vector<2x48xf32>, vector<2x48xf32> -> vector<4x48xf32>
    %334 = vector.extract_strided_slice %315 {offsets = [0, 0], sizes = [2, 16], strides = [1, 1]} : vector<4x16xf32> to vector<2x16xf32>
    %cst_117 = arith.constant dense<0.000000e+00> : vector<2x48xf32>
    %335 = tpu.matmul %334, %21, %cst_117 {dimension_numbers = #tpu.dot_dimension_numbers<[1], [0], [0], [1], [0, 0, 1, 1], [], []>} : vector<2x16xf32>, vector<16x48xf32>, vector<2x48xf32> -> vector<2x48xf32>
    %336 = vector.extract_strided_slice %315 {offsets = [2, 0], sizes = [2, 16], strides = [1, 1]} : vector<4x16xf32> to vector<2x16xf32>
    %cst_118 = arith.constant dense<0.000000e+00> : vector<2x48xf32>
    %337 = tpu.matmul %336, %23, %cst_118 {dimension_numbers = #tpu.dot_dimension_numbers<[1], [0], [0], [1], [0, 0, 1, 1], [], []>} : vector<2x16xf32>, vector<16x48xf32>, vector<2x48xf32> -> vector<2x48xf32>
    %338 = tpu.concatenate %335, %337 in 0 : vector<2x48xf32>, vector<2x48xf32> -> vector<4x48xf32>
    %339 = arith.addf %338, %24 : vector<4x48xf32>
    %340 = vector.extract_strided_slice %333 {offsets = [0, 0], sizes = [4, 16], strides = [1, 1]} : vector<4x48xf32> to vector<4x16xf32>
    %341 = vector.extract_strided_slice %339 {offsets = [0, 0], sizes = [4, 16], strides = [1, 1]} : vector<4x48xf32> to vector<4x16xf32>
    %342 = arith.addf %340, %341 : vector<4x16xf32>
    %343 = arith.negf %342 : vector<4x16xf32>
    %344 = math.exp %343 : vector<4x16xf32>
    %cst_119 = arith.constant 1.000000e+00 : f32
    %345 = vector.broadcast %cst_119 : f32 to vector<4x16xf32>
    %346 = arith.addf %345, %344 : vector<4x16xf32>
    %347 = arith.divf %345, %346 : vector<4x16xf32>
    %348 = vector.extract_strided_slice %333 {offsets = [0, 16], sizes = [4, 16], strides = [1, 1]} : vector<4x48xf32> to vector<4x16xf32>
    %349 = vector.extract_strided_slice %339 {offsets = [0, 16], sizes = [4, 16], strides = [1, 1]} : vector<4x48xf32> to vector<4x16xf32>
    %350 = arith.addf %348, %349 : vector<4x16xf32>
    %351 = arith.negf %350 : vector<4x16xf32>
    %352 = math.exp %351 : vector<4x16xf32>
    %cst_120 = arith.constant 1.000000e+00 : f32
    %353 = vector.broadcast %cst_120 : f32 to vector<4x16xf32>
    %354 = arith.addf %353, %352 : vector<4x16xf32>
    %355 = arith.divf %353, %354 : vector<4x16xf32>
    %356 = vector.extract_strided_slice %333 {offsets = [0, 32], sizes = [4, 16], strides = [1, 1]} : vector<4x48xf32> to vector<4x16xf32>
    %357 = vector.extract_strided_slice %339 {offsets = [0, 32], sizes = [4, 16], strides = [1, 1]} : vector<4x48xf32> to vector<4x16xf32>
    %358 = arith.mulf %347, %357 : vector<4x16xf32>
    %359 = arith.addf %356, %358 : vector<4x16xf32>
    %360 = math.tanh %359 : vector<4x16xf32>
    %cst_121 = arith.constant 1.000000e+00 : f32
    %361 = vector.broadcast %cst_121 : f32 to vector<4x16xf32>
    %362 = arith.subf %361, %355 : vector<4x16xf32>
    %363 = arith.mulf %362, %360 : vector<4x16xf32>
    %364 = arith.mulf %355, %315 : vector<4x16xf32>
    %365 = arith.addf %363, %364 : vector<4x16xf32>
    %366 = vector.extract_strided_slice %365 {offsets = [0, 0], sizes = [2, 16], strides = [1, 1]} : vector<4x16xf32> to vector<2x16xf32>
    %367 = arith.index_cast %c6_i32 : i32 to index
    %c0_122 = arith.constant 0 : index
    %c0_123 = arith.constant 0 : index
    %368 = vector.load %arg12[%367, %c0_122, %c0_123] : memref<8x2x16xf32, #tpu.memory_space<vmem>>, vector<1x2x16xf32>
    %369 = vector.shape_cast %368 : vector<1x2x16xf32> to vector<2x16xf32>
    %370 = vector.shape_cast %366 : vector<2x16xf32> to vector<1x2x16xf32>
    tpu.vector_store %arg12[%367, %c0_122, %c0_123], %370 {strides = array<i32>} : memref<8x2x16xf32, #tpu.memory_space<vmem>>, vector<1x2x16xf32>,
    %371 = vector.extract_strided_slice %365 {offsets = [2, 0], sizes = [2, 16], strides = [1, 1]} : vector<4x16xf32> to vector<2x16xf32>
    %372 = arith.index_cast %326 : i32 to index
    %c0_124 = arith.constant 0 : index
    %c0_125 = arith.constant 0 : index
    %373 = vector.load %arg13[%372, %c0_124, %c0_125] : memref<8x2x16xf32, #tpu.memory_space<vmem>>, vector<1x2x16xf32>
    %374 = vector.shape_cast %373 : vector<1x2x16xf32> to vector<2x16xf32>
    %375 = vector.shape_cast %371 : vector<2x16xf32> to vector<1x2x16xf32>
    tpu.vector_store %arg13[%372, %c0_124, %c0_125], %375 {strides = array<i32>} : memref<8x2x16xf32, #tpu.memory_space<vmem>>, vector<1x2x16xf32>,
    %c7_i32_126 = arith.constant 7 : i32
    %c7_i32_127 = arith.constant 7 : i32
    %376 = arith.subi %c7_i32_127, %c7_i32_126 : i32
    %377 = arith.index_cast %c7_i32_126 : i32 to index
    %c0_128 = arith.constant 0 : index
    %c0_129 = arith.constant 0 : index
    %378 = vector.load %arg10[%377, %c0_128, %c0_129] : memref<8x2x48xf32, #tpu.memory_space<vmem>>, vector<1x2x48xf32>
    %379 = vector.shape_cast %378 : vector<1x2x48xf32> to vector<2x48xf32>
    %380 = arith.index_cast %376 : i32 to index
    %c0_130 = arith.constant 0 : index
    %c0_131 = arith.constant 0 : index
    %381 = vector.load %arg11[%380, %c0_130, %c0_131] : memref<8x2x48xf32, #tpu.memory_space<vmem>>, vector<1x2x48xf32>
    %382 = vector.shape_cast %381 : vector<1x2x48xf32> to vector<2x48xf32>
    %383 = tpu.concatenate %379, %382 in 0 : vector<2x48xf32>, vector<2x48xf32> -> vector<4x48xf32>
    %384 = vector.extract_strided_slice %365 {offsets = [0, 0], sizes = [2, 16], strides = [1, 1]} : vector<4x16xf32> to vector<2x16xf32>
    %cst_132 = arith.constant dense<0.000000e+00> : vector<2x48xf32>
    %385 = tpu.matmul %384, %21, %cst_132 {dimension_numbers = #tpu.dot_dimension_numbers<[1], [0], [0], [1], [0, 0, 1, 1], [], []>} : vector<2x16xf32>, vector<16x48xf32>, vector<2x48xf32> -> vector<2x48xf32>
    %386 = vector.extract_strided_slice %365 {offsets = [2, 0], sizes = [2, 16], strides = [1, 1]} : vector<4x16xf32> to vector<2x16xf32>
    %cst_133 = arith.constant dense<0.000000e+00> : vector<2x48xf32>
    %387 = tpu.matmul %386, %23, %cst_133 {dimension_numbers = #tpu.dot_dimension_numbers<[1], [0], [0], [1], [0, 0, 1, 1], [], []>} : vector<2x16xf32>, vector<16x48xf32>, vector<2x48xf32> -> vector<2x48xf32>
    %388 = tpu.concatenate %385, %387 in 0 : vector<2x48xf32>, vector<2x48xf32> -> vector<4x48xf32>
    %389 = arith.addf %388, %24 : vector<4x48xf32>
    %390 = vector.extract_strided_slice %383 {offsets = [0, 0], sizes = [4, 16], strides = [1, 1]} : vector<4x48xf32> to vector<4x16xf32>
    %391 = vector.extract_strided_slice %389 {offsets = [0, 0], sizes = [4, 16], strides = [1, 1]} : vector<4x48xf32> to vector<4x16xf32>
    %392 = arith.addf %390, %391 : vector<4x16xf32>
    %393 = arith.negf %392 : vector<4x16xf32>
    %394 = math.exp %393 : vector<4x16xf32>
    %cst_134 = arith.constant 1.000000e+00 : f32
    %395 = vector.broadcast %cst_134 : f32 to vector<4x16xf32>
    %396 = arith.addf %395, %394 : vector<4x16xf32>
    %397 = arith.divf %395, %396 : vector<4x16xf32>
    %398 = vector.extract_strided_slice %383 {offsets = [0, 16], sizes = [4, 16], strides = [1, 1]} : vector<4x48xf32> to vector<4x16xf32>
    %399 = vector.extract_strided_slice %389 {offsets = [0, 16], sizes = [4, 16], strides = [1, 1]} : vector<4x48xf32> to vector<4x16xf32>
    %400 = arith.addf %398, %399 : vector<4x16xf32>
    %401 = arith.negf %400 : vector<4x16xf32>
    %402 = math.exp %401 : vector<4x16xf32>
    %cst_135 = arith.constant 1.000000e+00 : f32
    %403 = vector.broadcast %cst_135 : f32 to vector<4x16xf32>
    %404 = arith.addf %403, %402 : vector<4x16xf32>
    %405 = arith.divf %403, %404 : vector<4x16xf32>
    %406 = vector.extract_strided_slice %383 {offsets = [0, 32], sizes = [4, 16], strides = [1, 1]} : vector<4x48xf32> to vector<4x16xf32>
    %407 = vector.extract_strided_slice %389 {offsets = [0, 32], sizes = [4, 16], strides = [1, 1]} : vector<4x48xf32> to vector<4x16xf32>
    %408 = arith.mulf %397, %407 : vector<4x16xf32>
    %409 = arith.addf %406, %408 : vector<4x16xf32>
    %410 = math.tanh %409 : vector<4x16xf32>
    %cst_136 = arith.constant 1.000000e+00 : f32
    %411 = vector.broadcast %cst_136 : f32 to vector<4x16xf32>
    %412 = arith.subf %411, %405 : vector<4x16xf32>
    %413 = arith.mulf %412, %410 : vector<4x16xf32>
    %414 = arith.mulf %405, %365 : vector<4x16xf32>
    %415 = arith.addf %413, %414 : vector<4x16xf32>
    %416 = vector.extract_strided_slice %415 {offsets = [0, 0], sizes = [2, 16], strides = [1, 1]} : vector<4x16xf32> to vector<2x16xf32>
    %417 = arith.index_cast %c7_i32_126 : i32 to index
    %c0_137 = arith.constant 0 : index
    %c0_138 = arith.constant 0 : index
    %418 = vector.load %arg12[%417, %c0_137, %c0_138] : memref<8x2x16xf32, #tpu.memory_space<vmem>>, vector<1x2x16xf32>
    %419 = vector.shape_cast %418 : vector<1x2x16xf32> to vector<2x16xf32>
    %420 = vector.shape_cast %416 : vector<2x16xf32> to vector<1x2x16xf32>
    tpu.vector_store %arg12[%417, %c0_137, %c0_138], %420 {strides = array<i32>} : memref<8x2x16xf32, #tpu.memory_space<vmem>>, vector<1x2x16xf32>,
    %421 = vector.extract_strided_slice %415 {offsets = [2, 0], sizes = [2, 16], strides = [1, 1]} : vector<4x16xf32> to vector<2x16xf32>
    %422 = arith.index_cast %376 : i32 to index
    %c0_139 = arith.constant 0 : index
    %c0_140 = arith.constant 0 : index
    %423 = vector.load %arg13[%422, %c0_139, %c0_140] : memref<8x2x16xf32, #tpu.memory_space<vmem>>, vector<1x2x16xf32>
    %424 = vector.shape_cast %423 : vector<1x2x16xf32> to vector<2x16xf32>
    %425 = vector.shape_cast %421 : vector<2x16xf32> to vector<1x2x16xf32>
    tpu.vector_store %arg13[%422, %c0_139, %c0_140], %425 {strides = array<i32>} : memref<8x2x16xf32, #tpu.memory_space<vmem>>, vector<1x2x16xf32>,
    %c8_i32 = arith.constant 8 : i32
    %c0_141 = arith.constant 0 : index
    %c0_142 = arith.constant 0 : index
    %c0_143 = arith.constant 0 : index
    %426 = vector.load %arg12[%c0_141, %c0_142, %c0_143] : memref<8x2x16xf32, #tpu.memory_space<vmem>>, vector<8x2x16xf32>
    %427 = vector.shape_cast %426 : vector<8x2x16xf32> to vector<16x16xf32>
    %c0_144 = arith.constant 0 : index
    %c0_145 = arith.constant 0 : index
    %c0_146 = arith.constant 0 : index
    %428 = vector.load %arg13[%c0_144, %c0_145, %c0_146] : memref<8x2x16xf32, #tpu.memory_space<vmem>>, vector<8x2x16xf32>
    %429 = vector.shape_cast %428 : vector<8x2x16xf32> to vector<16x16xf32>
    %c0_147 = arith.constant 0 : index
    %c0_148 = arith.constant 0 : index
    %c0_149 = arith.constant 0 : index
    %430 = vector.load %arg5[%c0_147, %c0_148, %c0_149] : memref<2x32x48xf32, #tpu.memory_space<vmem>>, vector<1x32x48xf32>
    %431 = vector.shape_cast %430 : vector<1x32x48xf32> to vector<32x48xf32>
    %c1_150 = arith.constant 1 : index
    %c0_151 = arith.constant 0 : index
    %c0_152 = arith.constant 0 : index
    %432 = vector.load %arg5[%c1_150, %c0_151, %c0_152] : memref<2x32x48xf32, #tpu.memory_space<vmem>>, vector<1x32x48xf32>
    %433 = vector.shape_cast %432 : vector<1x32x48xf32> to vector<32x48xf32>
    %434 = vector.extract_strided_slice %431 {offsets = [0, 0], sizes = [16, 48], strides = [1, 1]} : vector<32x48xf32> to vector<16x48xf32>
    %cst_153 = arith.constant dense<0.000000e+00> : vector<16x48xf32>
    %435 = tpu.matmul %427, %434, %cst_153 {dimension_numbers = #tpu.dot_dimension_numbers<[1], [0], [0], [1], [0, 0, 1, 1], [], []>} : vector<16x16xf32>, vector<16x48xf32>, vector<16x48xf32> -> vector<16x48xf32>
    %436 = vector.extract_strided_slice %431 {offsets = [16, 0], sizes = [16, 48], strides = [1, 1]} : vector<32x48xf32> to vector<16x48xf32>
    %cst_154 = arith.constant dense<0.000000e+00> : vector<16x48xf32>
    %437 = tpu.matmul %429, %436, %cst_154 {dimension_numbers = #tpu.dot_dimension_numbers<[1], [0], [0], [1], [0, 0, 1, 1], [], []>} : vector<16x16xf32>, vector<16x48xf32>, vector<16x48xf32> -> vector<16x48xf32>
    %438 = arith.addf %435, %437 : vector<16x48xf32>
    %c0_155 = arith.constant 0 : index
    %c0_156 = arith.constant 0 : index
    %c0_157 = arith.constant 0 : index
    %439 = vector.load %arg7[%c0_155, %c0_156, %c0_157] : memref<2x1x48xf32, #tpu.memory_space<vmem>>, vector<1x1x48xf32>
    %440 = vector.shape_cast %439 : vector<1x1x48xf32> to vector<1x48xf32>
    %441 = vector.broadcast %440 : vector<1x48xf32> to vector<16x48xf32>
    %442 = arith.addf %438, %441 : vector<16x48xf32>
    %443 = vector.shape_cast %442 : vector<16x48xf32> to vector<8x2x48xf32>
    %c0_158 = arith.constant 0 : index
    %c0_159 = arith.constant 0 : index
    %c0_160 = arith.constant 0 : index
    %444 = vector.load %arg10[%c0_158, %c0_159, %c0_160] : memref<8x2x48xf32, #tpu.memory_space<vmem>>, vector<8x2x48xf32>
    tpu.vector_store %arg10[%c0_158, %c0_159, %c0_160], %443 {strides = array<i32>} : memref<8x2x48xf32, #tpu.memory_space<vmem>>, vector<8x2x48xf32>,
    %445 = vector.extract_strided_slice %433 {offsets = [0, 0], sizes = [16, 48], strides = [1, 1]} : vector<32x48xf32> to vector<16x48xf32>
    %cst_161 = arith.constant dense<0.000000e+00> : vector<16x48xf32>
    %446 = tpu.matmul %427, %445, %cst_161 {dimension_numbers = #tpu.dot_dimension_numbers<[1], [0], [0], [1], [0, 0, 1, 1], [], []>} : vector<16x16xf32>, vector<16x48xf32>, vector<16x48xf32> -> vector<16x48xf32>
    %447 = vector.extract_strided_slice %433 {offsets = [16, 0], sizes = [16, 48], strides = [1, 1]} : vector<32x48xf32> to vector<16x48xf32>
    %cst_162 = arith.constant dense<0.000000e+00> : vector<16x48xf32>
    %448 = tpu.matmul %429, %447, %cst_162 {dimension_numbers = #tpu.dot_dimension_numbers<[1], [0], [0], [1], [0, 0, 1, 1], [], []>} : vector<16x16xf32>, vector<16x48xf32>, vector<16x48xf32> -> vector<16x48xf32>
    %449 = arith.addf %446, %448 : vector<16x48xf32>
    %c1_163 = arith.constant 1 : index
    %c0_164 = arith.constant 0 : index
    %c0_165 = arith.constant 0 : index
    %450 = vector.load %arg7[%c1_163, %c0_164, %c0_165] : memref<2x1x48xf32, #tpu.memory_space<vmem>>, vector<1x1x48xf32>
    %451 = vector.shape_cast %450 : vector<1x1x48xf32> to vector<1x48xf32>
    %452 = vector.broadcast %451 : vector<1x48xf32> to vector<16x48xf32>
    %453 = arith.addf %449, %452 : vector<16x48xf32>
    %454 = vector.shape_cast %453 : vector<16x48xf32> to vector<8x2x48xf32>
    %c0_166 = arith.constant 0 : index
    %c0_167 = arith.constant 0 : index
    %c0_168 = arith.constant 0 : index
    %455 = vector.load %arg11[%c0_166, %c0_167, %c0_168] : memref<8x2x48xf32, #tpu.memory_space<vmem>>, vector<8x2x48xf32>
    tpu.vector_store %arg11[%c0_166, %c0_167, %c0_168], %454 {strides = array<i32>} : memref<8x2x48xf32, #tpu.memory_space<vmem>>, vector<8x2x48xf32>,
    %c0_169 = arith.constant 0 : index
    %c0_170 = arith.constant 0 : index
    %c0_171 = arith.constant 0 : index
    %456 = vector.load %arg6[%c0_169, %c0_170, %c0_171] : memref<2x16x48xf32, #tpu.memory_space<vmem>>, vector<1x16x48xf32>
    %457 = vector.shape_cast %456 : vector<1x16x48xf32> to vector<16x48xf32>
    %c1_172 = arith.constant 1 : index
    %c0_173 = arith.constant 0 : index
    %c0_174 = arith.constant 0 : index
    %458 = vector.load %arg6[%c1_172, %c0_173, %c0_174] : memref<2x16x48xf32, #tpu.memory_space<vmem>>, vector<1x16x48xf32>
    %459 = vector.shape_cast %458 : vector<1x16x48xf32> to vector<16x48xf32>
    %c0_175 = arith.constant 0 : index
    %c0_176 = arith.constant 0 : index
    %460 = vector.load %arg8[%c0_175, %c0_176] : memref<4x48xf32, #tpu.memory_space<vmem>>, vector<4x48xf32>
    %cst_177 = arith.constant 0.000000e+00 : f32
    %461 = vector.broadcast %cst_177 : f32 to vector<4x16xf32>
    %c0_i32_178 = arith.constant 0 : i32
    %c7_i32_179 = arith.constant 7 : i32
    %462 = arith.subi %c7_i32_179, %c0_i32_178 : i32
    %463 = arith.index_cast %c0_i32_178 : i32 to index
    %c0_180 = arith.constant 0 : index
    %c0_181 = arith.constant 0 : index
    %464 = vector.load %arg10[%463, %c0_180, %c0_181] : memref<8x2x48xf32, #tpu.memory_space<vmem>>, vector<1x2x48xf32>
    %465 = vector.shape_cast %464 : vector<1x2x48xf32> to vector<2x48xf32>
    %466 = arith.index_cast %462 : i32 to index
    %c0_182 = arith.constant 0 : index
    %c0_183 = arith.constant 0 : index
    %467 = vector.load %arg11[%466, %c0_182, %c0_183] : memref<8x2x48xf32, #tpu.memory_space<vmem>>, vector<1x2x48xf32>
    %468 = vector.shape_cast %467 : vector<1x2x48xf32> to vector<2x48xf32>
    %469 = tpu.concatenate %465, %468 in 0 : vector<2x48xf32>, vector<2x48xf32> -> vector<4x48xf32>
    %470 = vector.extract_strided_slice %461 {offsets = [0, 0], sizes = [2, 16], strides = [1, 1]} : vector<4x16xf32> to vector<2x16xf32>
    %cst_184 = arith.constant dense<0.000000e+00> : vector<2x48xf32>
    %471 = tpu.matmul %470, %457, %cst_184 {dimension_numbers = #tpu.dot_dimension_numbers<[1], [0], [0], [1], [0, 0, 1, 1], [], []>} : vector<2x16xf32>, vector<16x48xf32>, vector<2x48xf32> -> vector<2x48xf32>
    %472 = vector.extract_strided_slice %461 {offsets = [2, 0], sizes = [2, 16], strides = [1, 1]} : vector<4x16xf32> to vector<2x16xf32>
    %cst_185 = arith.constant dense<0.000000e+00> : vector<2x48xf32>
    %473 = tpu.matmul %472, %459, %cst_185 {dimension_numbers = #tpu.dot_dimension_numbers<[1], [0], [0], [1], [0, 0, 1, 1], [], []>} : vector<2x16xf32>, vector<16x48xf32>, vector<2x48xf32> -> vector<2x48xf32>
    %474 = tpu.concatenate %471, %473 in 0 : vector<2x48xf32>, vector<2x48xf32> -> vector<4x48xf32>
    %475 = arith.addf %474, %460 : vector<4x48xf32>
    %476 = vector.extract_strided_slice %469 {offsets = [0, 0], sizes = [4, 16], strides = [1, 1]} : vector<4x48xf32> to vector<4x16xf32>
    %477 = vector.extract_strided_slice %475 {offsets = [0, 0], sizes = [4, 16], strides = [1, 1]} : vector<4x48xf32> to vector<4x16xf32>
    %478 = arith.addf %476, %477 : vector<4x16xf32>
    %479 = arith.negf %478 : vector<4x16xf32>
    %480 = math.exp %479 : vector<4x16xf32>
    %cst_186 = arith.constant 1.000000e+00 : f32
    %481 = vector.broadcast %cst_186 : f32 to vector<4x16xf32>
    %482 = arith.addf %481, %480 : vector<4x16xf32>
    %483 = arith.divf %481, %482 : vector<4x16xf32>
    %484 = vector.extract_strided_slice %469 {offsets = [0, 16], sizes = [4, 16], strides = [1, 1]} : vector<4x48xf32> to vector<4x16xf32>
    %485 = vector.extract_strided_slice %475 {offsets = [0, 16], sizes = [4, 16], strides = [1, 1]} : vector<4x48xf32> to vector<4x16xf32>
    %486 = arith.addf %484, %485 : vector<4x16xf32>
    %487 = arith.negf %486 : vector<4x16xf32>
    %488 = math.exp %487 : vector<4x16xf32>
    %cst_187 = arith.constant 1.000000e+00 : f32
    %489 = vector.broadcast %cst_187 : f32 to vector<4x16xf32>
    %490 = arith.addf %489, %488 : vector<4x16xf32>
    %491 = arith.divf %489, %490 : vector<4x16xf32>
    %492 = vector.extract_strided_slice %469 {offsets = [0, 32], sizes = [4, 16], strides = [1, 1]} : vector<4x48xf32> to vector<4x16xf32>
    %493 = vector.extract_strided_slice %475 {offsets = [0, 32], sizes = [4, 16], strides = [1, 1]} : vector<4x48xf32> to vector<4x16xf32>
    %494 = arith.mulf %483, %493 : vector<4x16xf32>
    %495 = arith.addf %492, %494 : vector<4x16xf32>
    %496 = math.tanh %495 : vector<4x16xf32>
    %cst_188 = arith.constant 1.000000e+00 : f32
    %497 = vector.broadcast %cst_188 : f32 to vector<4x16xf32>
    %498 = arith.subf %497, %491 : vector<4x16xf32>
    %499 = arith.mulf %498, %496 : vector<4x16xf32>
    %500 = arith.mulf %491, %461 : vector<4x16xf32>
    %501 = arith.addf %499, %500 : vector<4x16xf32>
    %502 = vector.extract_strided_slice %501 {offsets = [0, 0], sizes = [2, 16], strides = [1, 1]} : vector<4x16xf32> to vector<2x16xf32>
    %503 = arith.index_cast %c0_i32_178 : i32 to index
    %c0_189 = arith.constant 0 : index
    %c0_190 = arith.constant 0 : index
    %504 = vector.load %arg14[%503, %c0_189, %c0_190] : memref<8x2x16xf32, #tpu.memory_space<vmem>>, vector<1x2x16xf32>
    %505 = vector.shape_cast %504 : vector<1x2x16xf32> to vector<2x16xf32>
    %506 = vector.shape_cast %502 : vector<2x16xf32> to vector<1x2x16xf32>
    tpu.vector_store %arg14[%503, %c0_189, %c0_190], %506 {strides = array<i32>} : memref<8x2x16xf32, #tpu.memory_space<vmem>>, vector<1x2x16xf32>,
    %507 = vector.extract_strided_slice %501 {offsets = [2, 0], sizes = [2, 16], strides = [1, 1]} : vector<4x16xf32> to vector<2x16xf32>
    %508 = arith.index_cast %462 : i32 to index
    %c0_191 = arith.constant 0 : index
    %c0_192 = arith.constant 0 : index
    %509 = vector.load %arg15[%508, %c0_191, %c0_192] : memref<8x2x16xf32, #tpu.memory_space<vmem>>, vector<1x2x16xf32>
    %510 = vector.shape_cast %509 : vector<1x2x16xf32> to vector<2x16xf32>
    %511 = vector.shape_cast %507 : vector<2x16xf32> to vector<1x2x16xf32>
    tpu.vector_store %arg15[%508, %c0_191, %c0_192], %511 {strides = array<i32>} : memref<8x2x16xf32, #tpu.memory_space<vmem>>, vector<1x2x16xf32>,
    %c1_i32_193 = arith.constant 1 : i32
    %c7_i32_194 = arith.constant 7 : i32
    %512 = arith.subi %c7_i32_194, %c1_i32_193 : i32
    %513 = arith.index_cast %c1_i32_193 : i32 to index
    %c0_195 = arith.constant 0 : index
    %c0_196 = arith.constant 0 : index
    %514 = vector.load %arg10[%513, %c0_195, %c0_196] : memref<8x2x48xf32, #tpu.memory_space<vmem>>, vector<1x2x48xf32>
    %515 = vector.shape_cast %514 : vector<1x2x48xf32> to vector<2x48xf32>
    %516 = arith.index_cast %512 : i32 to index
    %c0_197 = arith.constant 0 : index
    %c0_198 = arith.constant 0 : index
    %517 = vector.load %arg11[%516, %c0_197, %c0_198] : memref<8x2x48xf32, #tpu.memory_space<vmem>>, vector<1x2x48xf32>
    %518 = vector.shape_cast %517 : vector<1x2x48xf32> to vector<2x48xf32>
    %519 = tpu.concatenate %515, %518 in 0 : vector<2x48xf32>, vector<2x48xf32> -> vector<4x48xf32>
    %520 = vector.extract_strided_slice %501 {offsets = [0, 0], sizes = [2, 16], strides = [1, 1]} : vector<4x16xf32> to vector<2x16xf32>
    %cst_199 = arith.constant dense<0.000000e+00> : vector<2x48xf32>
    %521 = tpu.matmul %520, %457, %cst_199 {dimension_numbers = #tpu.dot_dimension_numbers<[1], [0], [0], [1], [0, 0, 1, 1], [], []>} : vector<2x16xf32>, vector<16x48xf32>, vector<2x48xf32> -> vector<2x48xf32>
    %522 = vector.extract_strided_slice %501 {offsets = [2, 0], sizes = [2, 16], strides = [1, 1]} : vector<4x16xf32> to vector<2x16xf32>
    %cst_200 = arith.constant dense<0.000000e+00> : vector<2x48xf32>
    %523 = tpu.matmul %522, %459, %cst_200 {dimension_numbers = #tpu.dot_dimension_numbers<[1], [0], [0], [1], [0, 0, 1, 1], [], []>} : vector<2x16xf32>, vector<16x48xf32>, vector<2x48xf32> -> vector<2x48xf32>
    %524 = tpu.concatenate %521, %523 in 0 : vector<2x48xf32>, vector<2x48xf32> -> vector<4x48xf32>
    %525 = arith.addf %524, %460 : vector<4x48xf32>
    %526 = vector.extract_strided_slice %519 {offsets = [0, 0], sizes = [4, 16], strides = [1, 1]} : vector<4x48xf32> to vector<4x16xf32>
    %527 = vector.extract_strided_slice %525 {offsets = [0, 0], sizes = [4, 16], strides = [1, 1]} : vector<4x48xf32> to vector<4x16xf32>
    %528 = arith.addf %526, %527 : vector<4x16xf32>
    %529 = arith.negf %528 : vector<4x16xf32>
    %530 = math.exp %529 : vector<4x16xf32>
    %cst_201 = arith.constant 1.000000e+00 : f32
    %531 = vector.broadcast %cst_201 : f32 to vector<4x16xf32>
    %532 = arith.addf %531, %530 : vector<4x16xf32>
    %533 = arith.divf %531, %532 : vector<4x16xf32>
    %534 = vector.extract_strided_slice %519 {offsets = [0, 16], sizes = [4, 16], strides = [1, 1]} : vector<4x48xf32> to vector<4x16xf32>
    %535 = vector.extract_strided_slice %525 {offsets = [0, 16], sizes = [4, 16], strides = [1, 1]} : vector<4x48xf32> to vector<4x16xf32>
    %536 = arith.addf %534, %535 : vector<4x16xf32>
    %537 = arith.negf %536 : vector<4x16xf32>
    %538 = math.exp %537 : vector<4x16xf32>
    %cst_202 = arith.constant 1.000000e+00 : f32
    %539 = vector.broadcast %cst_202 : f32 to vector<4x16xf32>
    %540 = arith.addf %539, %538 : vector<4x16xf32>
    %541 = arith.divf %539, %540 : vector<4x16xf32>
    %542 = vector.extract_strided_slice %519 {offsets = [0, 32], sizes = [4, 16], strides = [1, 1]} : vector<4x48xf32> to vector<4x16xf32>
    %543 = vector.extract_strided_slice %525 {offsets = [0, 32], sizes = [4, 16], strides = [1, 1]} : vector<4x48xf32> to vector<4x16xf32>
    %544 = arith.mulf %533, %543 : vector<4x16xf32>
    %545 = arith.addf %542, %544 : vector<4x16xf32>
    %546 = math.tanh %545 : vector<4x16xf32>
    %cst_203 = arith.constant 1.000000e+00 : f32
    %547 = vector.broadcast %cst_203 : f32 to vector<4x16xf32>
    %548 = arith.subf %547, %541 : vector<4x16xf32>
    %549 = arith.mulf %548, %546 : vector<4x16xf32>
    %550 = arith.mulf %541, %501 : vector<4x16xf32>
    %551 = arith.addf %549, %550 : vector<4x16xf32>
    %552 = vector.extract_strided_slice %551 {offsets = [0, 0], sizes = [2, 16], strides = [1, 1]} : vector<4x16xf32> to vector<2x16xf32>
    %553 = arith.index_cast %c1_i32_193 : i32 to index
    %c0_204 = arith.constant 0 : index
    %c0_205 = arith.constant 0 : index
    %554 = vector.load %arg14[%553, %c0_204, %c0_205] : memref<8x2x16xf32, #tpu.memory_space<vmem>>, vector<1x2x16xf32>
    %555 = vector.shape_cast %554 : vector<1x2x16xf32> to vector<2x16xf32>
    %556 = vector.shape_cast %552 : vector<2x16xf32> to vector<1x2x16xf32>
    tpu.vector_store %arg14[%553, %c0_204, %c0_205], %556 {strides = array<i32>} : memref<8x2x16xf32, #tpu.memory_space<vmem>>, vector<1x2x16xf32>,
    %557 = vector.extract_strided_slice %551 {offsets = [2, 0], sizes = [2, 16], strides = [1, 1]} : vector<4x16xf32> to vector<2x16xf32>
    %558 = arith.index_cast %512 : i32 to index
    %c0_206 = arith.constant 0 : index
    %c0_207 = arith.constant 0 : index
    %559 = vector.load %arg15[%558, %c0_206, %c0_207] : memref<8x2x16xf32, #tpu.memory_space<vmem>>, vector<1x2x16xf32>
    %560 = vector.shape_cast %559 : vector<1x2x16xf32> to vector<2x16xf32>
    %561 = vector.shape_cast %557 : vector<2x16xf32> to vector<1x2x16xf32>
    tpu.vector_store %arg15[%558, %c0_206, %c0_207], %561 {strides = array<i32>} : memref<8x2x16xf32, #tpu.memory_space<vmem>>, vector<1x2x16xf32>,
    %c2_i32_208 = arith.constant 2 : i32
    %c7_i32_209 = arith.constant 7 : i32
    %562 = arith.subi %c7_i32_209, %c2_i32_208 : i32
    %563 = arith.index_cast %c2_i32_208 : i32 to index
    %c0_210 = arith.constant 0 : index
    %c0_211 = arith.constant 0 : index
    %564 = vector.load %arg10[%563, %c0_210, %c0_211] : memref<8x2x48xf32, #tpu.memory_space<vmem>>, vector<1x2x48xf32>
    %565 = vector.shape_cast %564 : vector<1x2x48xf32> to vector<2x48xf32>
    %566 = arith.index_cast %562 : i32 to index
    %c0_212 = arith.constant 0 : index
    %c0_213 = arith.constant 0 : index
    %567 = vector.load %arg11[%566, %c0_212, %c0_213] : memref<8x2x48xf32, #tpu.memory_space<vmem>>, vector<1x2x48xf32>
    %568 = vector.shape_cast %567 : vector<1x2x48xf32> to vector<2x48xf32>
    %569 = tpu.concatenate %565, %568 in 0 : vector<2x48xf32>, vector<2x48xf32> -> vector<4x48xf32>
    %570 = vector.extract_strided_slice %551 {offsets = [0, 0], sizes = [2, 16], strides = [1, 1]} : vector<4x16xf32> to vector<2x16xf32>
    %cst_214 = arith.constant dense<0.000000e+00> : vector<2x48xf32>
    %571 = tpu.matmul %570, %457, %cst_214 {dimension_numbers = #tpu.dot_dimension_numbers<[1], [0], [0], [1], [0, 0, 1, 1], [], []>} : vector<2x16xf32>, vector<16x48xf32>, vector<2x48xf32> -> vector<2x48xf32>
    %572 = vector.extract_strided_slice %551 {offsets = [2, 0], sizes = [2, 16], strides = [1, 1]} : vector<4x16xf32> to vector<2x16xf32>
    %cst_215 = arith.constant dense<0.000000e+00> : vector<2x48xf32>
    %573 = tpu.matmul %572, %459, %cst_215 {dimension_numbers = #tpu.dot_dimension_numbers<[1], [0], [0], [1], [0, 0, 1, 1], [], []>} : vector<2x16xf32>, vector<16x48xf32>, vector<2x48xf32> -> vector<2x48xf32>
    %574 = tpu.concatenate %571, %573 in 0 : vector<2x48xf32>, vector<2x48xf32> -> vector<4x48xf32>
    %575 = arith.addf %574, %460 : vector<4x48xf32>
    %576 = vector.extract_strided_slice %569 {offsets = [0, 0], sizes = [4, 16], strides = [1, 1]} : vector<4x48xf32> to vector<4x16xf32>
    %577 = vector.extract_strided_slice %575 {offsets = [0, 0], sizes = [4, 16], strides = [1, 1]} : vector<4x48xf32> to vector<4x16xf32>
    %578 = arith.addf %576, %577 : vector<4x16xf32>
    %579 = arith.negf %578 : vector<4x16xf32>
    %580 = math.exp %579 : vector<4x16xf32>
    %cst_216 = arith.constant 1.000000e+00 : f32
    %581 = vector.broadcast %cst_216 : f32 to vector<4x16xf32>
    %582 = arith.addf %581, %580 : vector<4x16xf32>
    %583 = arith.divf %581, %582 : vector<4x16xf32>
    %584 = vector.extract_strided_slice %569 {offsets = [0, 16], sizes = [4, 16], strides = [1, 1]} : vector<4x48xf32> to vector<4x16xf32>
    %585 = vector.extract_strided_slice %575 {offsets = [0, 16], sizes = [4, 16], strides = [1, 1]} : vector<4x48xf32> to vector<4x16xf32>
    %586 = arith.addf %584, %585 : vector<4x16xf32>
    %587 = arith.negf %586 : vector<4x16xf32>
    %588 = math.exp %587 : vector<4x16xf32>
    %cst_217 = arith.constant 1.000000e+00 : f32
    %589 = vector.broadcast %cst_217 : f32 to vector<4x16xf32>
    %590 = arith.addf %589, %588 : vector<4x16xf32>
    %591 = arith.divf %589, %590 : vector<4x16xf32>
    %592 = vector.extract_strided_slice %569 {offsets = [0, 32], sizes = [4, 16], strides = [1, 1]} : vector<4x48xf32> to vector<4x16xf32>
    %593 = vector.extract_strided_slice %575 {offsets = [0, 32], sizes = [4, 16], strides = [1, 1]} : vector<4x48xf32> to vector<4x16xf32>
    %594 = arith.mulf %583, %593 : vector<4x16xf32>
    %595 = arith.addf %592, %594 : vector<4x16xf32>
    %596 = math.tanh %595 : vector<4x16xf32>
    %cst_218 = arith.constant 1.000000e+00 : f32
    %597 = vector.broadcast %cst_218 : f32 to vector<4x16xf32>
    %598 = arith.subf %597, %591 : vector<4x16xf32>
    %599 = arith.mulf %598, %596 : vector<4x16xf32>
    %600 = arith.mulf %591, %551 : vector<4x16xf32>
    %601 = arith.addf %599, %600 : vector<4x16xf32>
    %602 = vector.extract_strided_slice %601 {offsets = [0, 0], sizes = [2, 16], strides = [1, 1]} : vector<4x16xf32> to vector<2x16xf32>
    %603 = arith.index_cast %c2_i32_208 : i32 to index
    %c0_219 = arith.constant 0 : index
    %c0_220 = arith.constant 0 : index
    %604 = vector.load %arg14[%603, %c0_219, %c0_220] : memref<8x2x16xf32, #tpu.memory_space<vmem>>, vector<1x2x16xf32>
    %605 = vector.shape_cast %604 : vector<1x2x16xf32> to vector<2x16xf32>
    %606 = vector.shape_cast %602 : vector<2x16xf32> to vector<1x2x16xf32>
    tpu.vector_store %arg14[%603, %c0_219, %c0_220], %606 {strides = array<i32>} : memref<8x2x16xf32, #tpu.memory_space<vmem>>, vector<1x2x16xf32>,
    %607 = vector.extract_strided_slice %601 {offsets = [2, 0], sizes = [2, 16], strides = [1, 1]} : vector<4x16xf32> to vector<2x16xf32>
    %608 = arith.index_cast %562 : i32 to index
    %c0_221 = arith.constant 0 : index
    %c0_222 = arith.constant 0 : index
    %609 = vector.load %arg15[%608, %c0_221, %c0_222] : memref<8x2x16xf32, #tpu.memory_space<vmem>>, vector<1x2x16xf32>
    %610 = vector.shape_cast %609 : vector<1x2x16xf32> to vector<2x16xf32>
    %611 = vector.shape_cast %607 : vector<2x16xf32> to vector<1x2x16xf32>
    tpu.vector_store %arg15[%608, %c0_221, %c0_222], %611 {strides = array<i32>} : memref<8x2x16xf32, #tpu.memory_space<vmem>>, vector<1x2x16xf32>,
    %c3_i32_223 = arith.constant 3 : i32
    %c7_i32_224 = arith.constant 7 : i32
    %612 = arith.subi %c7_i32_224, %c3_i32_223 : i32
    %613 = arith.index_cast %c3_i32_223 : i32 to index
    %c0_225 = arith.constant 0 : index
    %c0_226 = arith.constant 0 : index
    %614 = vector.load %arg10[%613, %c0_225, %c0_226] : memref<8x2x48xf32, #tpu.memory_space<vmem>>, vector<1x2x48xf32>
    %615 = vector.shape_cast %614 : vector<1x2x48xf32> to vector<2x48xf32>
    %616 = arith.index_cast %612 : i32 to index
    %c0_227 = arith.constant 0 : index
    %c0_228 = arith.constant 0 : index
    %617 = vector.load %arg11[%616, %c0_227, %c0_228] : memref<8x2x48xf32, #tpu.memory_space<vmem>>, vector<1x2x48xf32>
    %618 = vector.shape_cast %617 : vector<1x2x48xf32> to vector<2x48xf32>
    %619 = tpu.concatenate %615, %618 in 0 : vector<2x48xf32>, vector<2x48xf32> -> vector<4x48xf32>
    %620 = vector.extract_strided_slice %601 {offsets = [0, 0], sizes = [2, 16], strides = [1, 1]} : vector<4x16xf32> to vector<2x16xf32>
    %cst_229 = arith.constant dense<0.000000e+00> : vector<2x48xf32>
    %621 = tpu.matmul %620, %457, %cst_229 {dimension_numbers = #tpu.dot_dimension_numbers<[1], [0], [0], [1], [0, 0, 1, 1], [], []>} : vector<2x16xf32>, vector<16x48xf32>, vector<2x48xf32> -> vector<2x48xf32>
    %622 = vector.extract_strided_slice %601 {offsets = [2, 0], sizes = [2, 16], strides = [1, 1]} : vector<4x16xf32> to vector<2x16xf32>
    %cst_230 = arith.constant dense<0.000000e+00> : vector<2x48xf32>
    %623 = tpu.matmul %622, %459, %cst_230 {dimension_numbers = #tpu.dot_dimension_numbers<[1], [0], [0], [1], [0, 0, 1, 1], [], []>} : vector<2x16xf32>, vector<16x48xf32>, vector<2x48xf32> -> vector<2x48xf32>
    %624 = tpu.concatenate %621, %623 in 0 : vector<2x48xf32>, vector<2x48xf32> -> vector<4x48xf32>
    %625 = arith.addf %624, %460 : vector<4x48xf32>
    %626 = vector.extract_strided_slice %619 {offsets = [0, 0], sizes = [4, 16], strides = [1, 1]} : vector<4x48xf32> to vector<4x16xf32>
    %627 = vector.extract_strided_slice %625 {offsets = [0, 0], sizes = [4, 16], strides = [1, 1]} : vector<4x48xf32> to vector<4x16xf32>
    %628 = arith.addf %626, %627 : vector<4x16xf32>
    %629 = arith.negf %628 : vector<4x16xf32>
    %630 = math.exp %629 : vector<4x16xf32>
    %cst_231 = arith.constant 1.000000e+00 : f32
    %631 = vector.broadcast %cst_231 : f32 to vector<4x16xf32>
    %632 = arith.addf %631, %630 : vector<4x16xf32>
    %633 = arith.divf %631, %632 : vector<4x16xf32>
    %634 = vector.extract_strided_slice %619 {offsets = [0, 16], sizes = [4, 16], strides = [1, 1]} : vector<4x48xf32> to vector<4x16xf32>
    %635 = vector.extract_strided_slice %625 {offsets = [0, 16], sizes = [4, 16], strides = [1, 1]} : vector<4x48xf32> to vector<4x16xf32>
    %636 = arith.addf %634, %635 : vector<4x16xf32>
    %637 = arith.negf %636 : vector<4x16xf32>
    %638 = math.exp %637 : vector<4x16xf32>
    %cst_232 = arith.constant 1.000000e+00 : f32
    %639 = vector.broadcast %cst_232 : f32 to vector<4x16xf32>
    %640 = arith.addf %639, %638 : vector<4x16xf32>
    %641 = arith.divf %639, %640 : vector<4x16xf32>
    %642 = vector.extract_strided_slice %619 {offsets = [0, 32], sizes = [4, 16], strides = [1, 1]} : vector<4x48xf32> to vector<4x16xf32>
    %643 = vector.extract_strided_slice %625 {offsets = [0, 32], sizes = [4, 16], strides = [1, 1]} : vector<4x48xf32> to vector<4x16xf32>
    %644 = arith.mulf %633, %643 : vector<4x16xf32>
    %645 = arith.addf %642, %644 : vector<4x16xf32>
    %646 = math.tanh %645 : vector<4x16xf32>
    %cst_233 = arith.constant 1.000000e+00 : f32
    %647 = vector.broadcast %cst_233 : f32 to vector<4x16xf32>
    %648 = arith.subf %647, %641 : vector<4x16xf32>
    %649 = arith.mulf %648, %646 : vector<4x16xf32>
    %650 = arith.mulf %641, %601 : vector<4x16xf32>
    %651 = arith.addf %649, %650 : vector<4x16xf32>
    %652 = vector.extract_strided_slice %651 {offsets = [0, 0], sizes = [2, 16], strides = [1, 1]} : vector<4x16xf32> to vector<2x16xf32>
    %653 = arith.index_cast %c3_i32_223 : i32 to index
    %c0_234 = arith.constant 0 : index
    %c0_235 = arith.constant 0 : index
    %654 = vector.load %arg14[%653, %c0_234, %c0_235] : memref<8x2x16xf32, #tpu.memory_space<vmem>>, vector<1x2x16xf32>
    %655 = vector.shape_cast %654 : vector<1x2x16xf32> to vector<2x16xf32>
    %656 = vector.shape_cast %652 : vector<2x16xf32> to vector<1x2x16xf32>
    tpu.vector_store %arg14[%653, %c0_234, %c0_235], %656 {strides = array<i32>} : memref<8x2x16xf32, #tpu.memory_space<vmem>>, vector<1x2x16xf32>,
    %657 = vector.extract_strided_slice %651 {offsets = [2, 0], sizes = [2, 16], strides = [1, 1]} : vector<4x16xf32> to vector<2x16xf32>
    %658 = arith.index_cast %612 : i32 to index
    %c0_236 = arith.constant 0 : index
    %c0_237 = arith.constant 0 : index
    %659 = vector.load %arg15[%658, %c0_236, %c0_237] : memref<8x2x16xf32, #tpu.memory_space<vmem>>, vector<1x2x16xf32>
    %660 = vector.shape_cast %659 : vector<1x2x16xf32> to vector<2x16xf32>
    %661 = vector.shape_cast %657 : vector<2x16xf32> to vector<1x2x16xf32>
    tpu.vector_store %arg15[%658, %c0_236, %c0_237], %661 {strides = array<i32>} : memref<8x2x16xf32, #tpu.memory_space<vmem>>, vector<1x2x16xf32>,
    %c4_i32_238 = arith.constant 4 : i32
    %c7_i32_239 = arith.constant 7 : i32
    %662 = arith.subi %c7_i32_239, %c4_i32_238 : i32
    %663 = arith.index_cast %c4_i32_238 : i32 to index
    %c0_240 = arith.constant 0 : index
    %c0_241 = arith.constant 0 : index
    %664 = vector.load %arg10[%663, %c0_240, %c0_241] : memref<8x2x48xf32, #tpu.memory_space<vmem>>, vector<1x2x48xf32>
    %665 = vector.shape_cast %664 : vector<1x2x48xf32> to vector<2x48xf32>
    %666 = arith.index_cast %662 : i32 to index
    %c0_242 = arith.constant 0 : index
    %c0_243 = arith.constant 0 : index
    %667 = vector.load %arg11[%666, %c0_242, %c0_243] : memref<8x2x48xf32, #tpu.memory_space<vmem>>, vector<1x2x48xf32>
    %668 = vector.shape_cast %667 : vector<1x2x48xf32> to vector<2x48xf32>
    %669 = tpu.concatenate %665, %668 in 0 : vector<2x48xf32>, vector<2x48xf32> -> vector<4x48xf32>
    %670 = vector.extract_strided_slice %651 {offsets = [0, 0], sizes = [2, 16], strides = [1, 1]} : vector<4x16xf32> to vector<2x16xf32>
    %cst_244 = arith.constant dense<0.000000e+00> : vector<2x48xf32>
    %671 = tpu.matmul %670, %457, %cst_244 {dimension_numbers = #tpu.dot_dimension_numbers<[1], [0], [0], [1], [0, 0, 1, 1], [], []>} : vector<2x16xf32>, vector<16x48xf32>, vector<2x48xf32> -> vector<2x48xf32>
    %672 = vector.extract_strided_slice %651 {offsets = [2, 0], sizes = [2, 16], strides = [1, 1]} : vector<4x16xf32> to vector<2x16xf32>
    %cst_245 = arith.constant dense<0.000000e+00> : vector<2x48xf32>
    %673 = tpu.matmul %672, %459, %cst_245 {dimension_numbers = #tpu.dot_dimension_numbers<[1], [0], [0], [1], [0, 0, 1, 1], [], []>} : vector<2x16xf32>, vector<16x48xf32>, vector<2x48xf32> -> vector<2x48xf32>
    %674 = tpu.concatenate %671, %673 in 0 : vector<2x48xf32>, vector<2x48xf32> -> vector<4x48xf32>
    %675 = arith.addf %674, %460 : vector<4x48xf32>
    %676 = vector.extract_strided_slice %669 {offsets = [0, 0], sizes = [4, 16], strides = [1, 1]} : vector<4x48xf32> to vector<4x16xf32>
    %677 = vector.extract_strided_slice %675 {offsets = [0, 0], sizes = [4, 16], strides = [1, 1]} : vector<4x48xf32> to vector<4x16xf32>
    %678 = arith.addf %676, %677 : vector<4x16xf32>
    %679 = arith.negf %678 : vector<4x16xf32>
    %680 = math.exp %679 : vector<4x16xf32>
    %cst_246 = arith.constant 1.000000e+00 : f32
    %681 = vector.broadcast %cst_246 : f32 to vector<4x16xf32>
    %682 = arith.addf %681, %680 : vector<4x16xf32>
    %683 = arith.divf %681, %682 : vector<4x16xf32>
    %684 = vector.extract_strided_slice %669 {offsets = [0, 16], sizes = [4, 16], strides = [1, 1]} : vector<4x48xf32> to vector<4x16xf32>
    %685 = vector.extract_strided_slice %675 {offsets = [0, 16], sizes = [4, 16], strides = [1, 1]} : vector<4x48xf32> to vector<4x16xf32>
    %686 = arith.addf %684, %685 : vector<4x16xf32>
    %687 = arith.negf %686 : vector<4x16xf32>
    %688 = math.exp %687 : vector<4x16xf32>
    %cst_247 = arith.constant 1.000000e+00 : f32
    %689 = vector.broadcast %cst_247 : f32 to vector<4x16xf32>
    %690 = arith.addf %689, %688 : vector<4x16xf32>
    %691 = arith.divf %689, %690 : vector<4x16xf32>
    %692 = vector.extract_strided_slice %669 {offsets = [0, 32], sizes = [4, 16], strides = [1, 1]} : vector<4x48xf32> to vector<4x16xf32>
    %693 = vector.extract_strided_slice %675 {offsets = [0, 32], sizes = [4, 16], strides = [1, 1]} : vector<4x48xf32> to vector<4x16xf32>
    %694 = arith.mulf %683, %693 : vector<4x16xf32>
    %695 = arith.addf %692, %694 : vector<4x16xf32>
    %696 = math.tanh %695 : vector<4x16xf32>
    %cst_248 = arith.constant 1.000000e+00 : f32
    %697 = vector.broadcast %cst_248 : f32 to vector<4x16xf32>
    %698 = arith.subf %697, %691 : vector<4x16xf32>
    %699 = arith.mulf %698, %696 : vector<4x16xf32>
    %700 = arith.mulf %691, %651 : vector<4x16xf32>
    %701 = arith.addf %699, %700 : vector<4x16xf32>
    %702 = vector.extract_strided_slice %701 {offsets = [0, 0], sizes = [2, 16], strides = [1, 1]} : vector<4x16xf32> to vector<2x16xf32>
    %703 = arith.index_cast %c4_i32_238 : i32 to index
    %c0_249 = arith.constant 0 : index
    %c0_250 = arith.constant 0 : index
    %704 = vector.load %arg14[%703, %c0_249, %c0_250] : memref<8x2x16xf32, #tpu.memory_space<vmem>>, vector<1x2x16xf32>
    %705 = vector.shape_cast %704 : vector<1x2x16xf32> to vector<2x16xf32>
    %706 = vector.shape_cast %702 : vector<2x16xf32> to vector<1x2x16xf32>
    tpu.vector_store %arg14[%703, %c0_249, %c0_250], %706 {strides = array<i32>} : memref<8x2x16xf32, #tpu.memory_space<vmem>>, vector<1x2x16xf32>,
    %707 = vector.extract_strided_slice %701 {offsets = [2, 0], sizes = [2, 16], strides = [1, 1]} : vector<4x16xf32> to vector<2x16xf32>
    %708 = arith.index_cast %662 : i32 to index
    %c0_251 = arith.constant 0 : index
    %c0_252 = arith.constant 0 : index
    %709 = vector.load %arg15[%708, %c0_251, %c0_252] : memref<8x2x16xf32, #tpu.memory_space<vmem>>, vector<1x2x16xf32>
    %710 = vector.shape_cast %709 : vector<1x2x16xf32> to vector<2x16xf32>
    %711 = vector.shape_cast %707 : vector<2x16xf32> to vector<1x2x16xf32>
    tpu.vector_store %arg15[%708, %c0_251, %c0_252], %711 {strides = array<i32>} : memref<8x2x16xf32, #tpu.memory_space<vmem>>, vector<1x2x16xf32>,
    %c5_i32_253 = arith.constant 5 : i32
    %c7_i32_254 = arith.constant 7 : i32
    %712 = arith.subi %c7_i32_254, %c5_i32_253 : i32
    %713 = arith.index_cast %c5_i32_253 : i32 to index
    %c0_255 = arith.constant 0 : index
    %c0_256 = arith.constant 0 : index
    %714 = vector.load %arg10[%713, %c0_255, %c0_256] : memref<8x2x48xf32, #tpu.memory_space<vmem>>, vector<1x2x48xf32>
    %715 = vector.shape_cast %714 : vector<1x2x48xf32> to vector<2x48xf32>
    %716 = arith.index_cast %712 : i32 to index
    %c0_257 = arith.constant 0 : index
    %c0_258 = arith.constant 0 : index
    %717 = vector.load %arg11[%716, %c0_257, %c0_258] : memref<8x2x48xf32, #tpu.memory_space<vmem>>, vector<1x2x48xf32>
    %718 = vector.shape_cast %717 : vector<1x2x48xf32> to vector<2x48xf32>
    %719 = tpu.concatenate %715, %718 in 0 : vector<2x48xf32>, vector<2x48xf32> -> vector<4x48xf32>
    %720 = vector.extract_strided_slice %701 {offsets = [0, 0], sizes = [2, 16], strides = [1, 1]} : vector<4x16xf32> to vector<2x16xf32>
    %cst_259 = arith.constant dense<0.000000e+00> : vector<2x48xf32>
    %721 = tpu.matmul %720, %457, %cst_259 {dimension_numbers = #tpu.dot_dimension_numbers<[1], [0], [0], [1], [0, 0, 1, 1], [], []>} : vector<2x16xf32>, vector<16x48xf32>, vector<2x48xf32> -> vector<2x48xf32>
    %722 = vector.extract_strided_slice %701 {offsets = [2, 0], sizes = [2, 16], strides = [1, 1]} : vector<4x16xf32> to vector<2x16xf32>
    %cst_260 = arith.constant dense<0.000000e+00> : vector<2x48xf32>
    %723 = tpu.matmul %722, %459, %cst_260 {dimension_numbers = #tpu.dot_dimension_numbers<[1], [0], [0], [1], [0, 0, 1, 1], [], []>} : vector<2x16xf32>, vector<16x48xf32>, vector<2x48xf32> -> vector<2x48xf32>
    %724 = tpu.concatenate %721, %723 in 0 : vector<2x48xf32>, vector<2x48xf32> -> vector<4x48xf32>
    %725 = arith.addf %724, %460 : vector<4x48xf32>
    %726 = vector.extract_strided_slice %719 {offsets = [0, 0], sizes = [4, 16], strides = [1, 1]} : vector<4x48xf32> to vector<4x16xf32>
    %727 = vector.extract_strided_slice %725 {offsets = [0, 0], sizes = [4, 16], strides = [1, 1]} : vector<4x48xf32> to vector<4x16xf32>
    %728 = arith.addf %726, %727 : vector<4x16xf32>
    %729 = arith.negf %728 : vector<4x16xf32>
    %730 = math.exp %729 : vector<4x16xf32>
    %cst_261 = arith.constant 1.000000e+00 : f32
    %731 = vector.broadcast %cst_261 : f32 to vector<4x16xf32>
    %732 = arith.addf %731, %730 : vector<4x16xf32>
    %733 = arith.divf %731, %732 : vector<4x16xf32>
    %734 = vector.extract_strided_slice %719 {offsets = [0, 16], sizes = [4, 16], strides = [1, 1]} : vector<4x48xf32> to vector<4x16xf32>
    %735 = vector.extract_strided_slice %725 {offsets = [0, 16], sizes = [4, 16], strides = [1, 1]} : vector<4x48xf32> to vector<4x16xf32>
    %736 = arith.addf %734, %735 : vector<4x16xf32>
    %737 = arith.negf %736 : vector<4x16xf32>
    %738 = math.exp %737 : vector<4x16xf32>
    %cst_262 = arith.constant 1.000000e+00 : f32
    %739 = vector.broadcast %cst_262 : f32 to vector<4x16xf32>
    %740 = arith.addf %739, %738 : vector<4x16xf32>
    %741 = arith.divf %739, %740 : vector<4x16xf32>
    %742 = vector.extract_strided_slice %719 {offsets = [0, 32], sizes = [4, 16], strides = [1, 1]} : vector<4x48xf32> to vector<4x16xf32>
    %743 = vector.extract_strided_slice %725 {offsets = [0, 32], sizes = [4, 16], strides = [1, 1]} : vector<4x48xf32> to vector<4x16xf32>
    %744 = arith.mulf %733, %743 : vector<4x16xf32>
    %745 = arith.addf %742, %744 : vector<4x16xf32>
    %746 = math.tanh %745 : vector<4x16xf32>
    %cst_263 = arith.constant 1.000000e+00 : f32
    %747 = vector.broadcast %cst_263 : f32 to vector<4x16xf32>
    %748 = arith.subf %747, %741 : vector<4x16xf32>
    %749 = arith.mulf %748, %746 : vector<4x16xf32>
    %750 = arith.mulf %741, %701 : vector<4x16xf32>
    %751 = arith.addf %749, %750 : vector<4x16xf32>
    %752 = vector.extract_strided_slice %751 {offsets = [0, 0], sizes = [2, 16], strides = [1, 1]} : vector<4x16xf32> to vector<2x16xf32>
    %753 = arith.index_cast %c5_i32_253 : i32 to index
    %c0_264 = arith.constant 0 : index
    %c0_265 = arith.constant 0 : index
    %754 = vector.load %arg14[%753, %c0_264, %c0_265] : memref<8x2x16xf32, #tpu.memory_space<vmem>>, vector<1x2x16xf32>
    %755 = vector.shape_cast %754 : vector<1x2x16xf32> to vector<2x16xf32>
    %756 = vector.shape_cast %752 : vector<2x16xf32> to vector<1x2x16xf32>
    tpu.vector_store %arg14[%753, %c0_264, %c0_265], %756 {strides = array<i32>} : memref<8x2x16xf32, #tpu.memory_space<vmem>>, vector<1x2x16xf32>,
    %757 = vector.extract_strided_slice %751 {offsets = [2, 0], sizes = [2, 16], strides = [1, 1]} : vector<4x16xf32> to vector<2x16xf32>
    %758 = arith.index_cast %712 : i32 to index
    %c0_266 = arith.constant 0 : index
    %c0_267 = arith.constant 0 : index
    %759 = vector.load %arg15[%758, %c0_266, %c0_267] : memref<8x2x16xf32, #tpu.memory_space<vmem>>, vector<1x2x16xf32>
    %760 = vector.shape_cast %759 : vector<1x2x16xf32> to vector<2x16xf32>
    %761 = vector.shape_cast %757 : vector<2x16xf32> to vector<1x2x16xf32>
    tpu.vector_store %arg15[%758, %c0_266, %c0_267], %761 {strides = array<i32>} : memref<8x2x16xf32, #tpu.memory_space<vmem>>, vector<1x2x16xf32>,
    %c6_i32_268 = arith.constant 6 : i32
    %c7_i32_269 = arith.constant 7 : i32
    %762 = arith.subi %c7_i32_269, %c6_i32_268 : i32
    %763 = arith.index_cast %c6_i32_268 : i32 to index
    %c0_270 = arith.constant 0 : index
    %c0_271 = arith.constant 0 : index
    %764 = vector.load %arg10[%763, %c0_270, %c0_271] : memref<8x2x48xf32, #tpu.memory_space<vmem>>, vector<1x2x48xf32>
    %765 = vector.shape_cast %764 : vector<1x2x48xf32> to vector<2x48xf32>
    %766 = arith.index_cast %762 : i32 to index
    %c0_272 = arith.constant 0 : index
    %c0_273 = arith.constant 0 : index
    %767 = vector.load %arg11[%766, %c0_272, %c0_273] : memref<8x2x48xf32, #tpu.memory_space<vmem>>, vector<1x2x48xf32>
    %768 = vector.shape_cast %767 : vector<1x2x48xf32> to vector<2x48xf32>
    %769 = tpu.concatenate %765, %768 in 0 : vector<2x48xf32>, vector<2x48xf32> -> vector<4x48xf32>
    %770 = vector.extract_strided_slice %751 {offsets = [0, 0], sizes = [2, 16], strides = [1, 1]} : vector<4x16xf32> to vector<2x16xf32>
    %cst_274 = arith.constant dense<0.000000e+00> : vector<2x48xf32>
    %771 = tpu.matmul %770, %457, %cst_274 {dimension_numbers = #tpu.dot_dimension_numbers<[1], [0], [0], [1], [0, 0, 1, 1], [], []>} : vector<2x16xf32>, vector<16x48xf32>, vector<2x48xf32> -> vector<2x48xf32>
    %772 = vector.extract_strided_slice %751 {offsets = [2, 0], sizes = [2, 16], strides = [1, 1]} : vector<4x16xf32> to vector<2x16xf32>
    %cst_275 = arith.constant dense<0.000000e+00> : vector<2x48xf32>
    %773 = tpu.matmul %772, %459, %cst_275 {dimension_numbers = #tpu.dot_dimension_numbers<[1], [0], [0], [1], [0, 0, 1, 1], [], []>} : vector<2x16xf32>, vector<16x48xf32>, vector<2x48xf32> -> vector<2x48xf32>
    %774 = tpu.concatenate %771, %773 in 0 : vector<2x48xf32>, vector<2x48xf32> -> vector<4x48xf32>
    %775 = arith.addf %774, %460 : vector<4x48xf32>
    %776 = vector.extract_strided_slice %769 {offsets = [0, 0], sizes = [4, 16], strides = [1, 1]} : vector<4x48xf32> to vector<4x16xf32>
    %777 = vector.extract_strided_slice %775 {offsets = [0, 0], sizes = [4, 16], strides = [1, 1]} : vector<4x48xf32> to vector<4x16xf32>
    %778 = arith.addf %776, %777 : vector<4x16xf32>
    %779 = arith.negf %778 : vector<4x16xf32>
    %780 = math.exp %779 : vector<4x16xf32>
    %cst_276 = arith.constant 1.000000e+00 : f32
    %781 = vector.broadcast %cst_276 : f32 to vector<4x16xf32>
    %782 = arith.addf %781, %780 : vector<4x16xf32>
    %783 = arith.divf %781, %782 : vector<4x16xf32>
    %784 = vector.extract_strided_slice %769 {offsets = [0, 16], sizes = [4, 16], strides = [1, 1]} : vector<4x48xf32> to vector<4x16xf32>
    %785 = vector.extract_strided_slice %775 {offsets = [0, 16], sizes = [4, 16], strides = [1, 1]} : vector<4x48xf32> to vector<4x16xf32>
    %786 = arith.addf %784, %785 : vector<4x16xf32>
    %787 = arith.negf %786 : vector<4x16xf32>
    %788 = math.exp %787 : vector<4x16xf32>
    %cst_277 = arith.constant 1.000000e+00 : f32
    %789 = vector.broadcast %cst_277 : f32 to vector<4x16xf32>
    %790 = arith.addf %789, %788 : vector<4x16xf32>
    %791 = arith.divf %789, %790 : vector<4x16xf32>
    %792 = vector.extract_strided_slice %769 {offsets = [0, 32], sizes = [4, 16], strides = [1, 1]} : vector<4x48xf32> to vector<4x16xf32>
    %793 = vector.extract_strided_slice %775 {offsets = [0, 32], sizes = [4, 16], strides = [1, 1]} : vector<4x48xf32> to vector<4x16xf32>
    %794 = arith.mulf %783, %793 : vector<4x16xf32>
    %795 = arith.addf %792, %794 : vector<4x16xf32>
    %796 = math.tanh %795 : vector<4x16xf32>
    %cst_278 = arith.constant 1.000000e+00 : f32
    %797 = vector.broadcast %cst_278 : f32 to vector<4x16xf32>
    %798 = arith.subf %797, %791 : vector<4x16xf32>
    %799 = arith.mulf %798, %796 : vector<4x16xf32>
    %800 = arith.mulf %791, %751 : vector<4x16xf32>
    %801 = arith.addf %799, %800 : vector<4x16xf32>
    %802 = vector.extract_strided_slice %801 {offsets = [0, 0], sizes = [2, 16], strides = [1, 1]} : vector<4x16xf32> to vector<2x16xf32>
    %803 = arith.index_cast %c6_i32_268 : i32 to index
    %c0_279 = arith.constant 0 : index
    %c0_280 = arith.constant 0 : index
    %804 = vector.load %arg14[%803, %c0_279, %c0_280] : memref<8x2x16xf32, #tpu.memory_space<vmem>>, vector<1x2x16xf32>
    %805 = vector.shape_cast %804 : vector<1x2x16xf32> to vector<2x16xf32>
    %806 = vector.shape_cast %802 : vector<2x16xf32> to vector<1x2x16xf32>
    tpu.vector_store %arg14[%803, %c0_279, %c0_280], %806 {strides = array<i32>} : memref<8x2x16xf32, #tpu.memory_space<vmem>>, vector<1x2x16xf32>,
    %807 = vector.extract_strided_slice %801 {offsets = [2, 0], sizes = [2, 16], strides = [1, 1]} : vector<4x16xf32> to vector<2x16xf32>
    %808 = arith.index_cast %762 : i32 to index
    %c0_281 = arith.constant 0 : index
    %c0_282 = arith.constant 0 : index
    %809 = vector.load %arg15[%808, %c0_281, %c0_282] : memref<8x2x16xf32, #tpu.memory_space<vmem>>, vector<1x2x16xf32>
    %810 = vector.shape_cast %809 : vector<1x2x16xf32> to vector<2x16xf32>
    %811 = vector.shape_cast %807 : vector<2x16xf32> to vector<1x2x16xf32>
    tpu.vector_store %arg15[%808, %c0_281, %c0_282], %811 {strides = array<i32>} : memref<8x2x16xf32, #tpu.memory_space<vmem>>, vector<1x2x16xf32>,
    %c7_i32_283 = arith.constant 7 : i32
    %c7_i32_284 = arith.constant 7 : i32
    %812 = arith.subi %c7_i32_284, %c7_i32_283 : i32
    %813 = arith.index_cast %c7_i32_283 : i32 to index
    %c0_285 = arith.constant 0 : index
    %c0_286 = arith.constant 0 : index
    %814 = vector.load %arg10[%813, %c0_285, %c0_286] : memref<8x2x48xf32, #tpu.memory_space<vmem>>, vector<1x2x48xf32>
    %815 = vector.shape_cast %814 : vector<1x2x48xf32> to vector<2x48xf32>
    %816 = arith.index_cast %812 : i32 to index
    %c0_287 = arith.constant 0 : index
    %c0_288 = arith.constant 0 : index
    %817 = vector.load %arg11[%816, %c0_287, %c0_288] : memref<8x2x48xf32, #tpu.memory_space<vmem>>, vector<1x2x48xf32>
    %818 = vector.shape_cast %817 : vector<1x2x48xf32> to vector<2x48xf32>
    %819 = tpu.concatenate %815, %818 in 0 : vector<2x48xf32>, vector<2x48xf32> -> vector<4x48xf32>
    %820 = vector.extract_strided_slice %801 {offsets = [0, 0], sizes = [2, 16], strides = [1, 1]} : vector<4x16xf32> to vector<2x16xf32>
    %cst_289 = arith.constant dense<0.000000e+00> : vector<2x48xf32>
    %821 = tpu.matmul %820, %457, %cst_289 {dimension_numbers = #tpu.dot_dimension_numbers<[1], [0], [0], [1], [0, 0, 1, 1], [], []>} : vector<2x16xf32>, vector<16x48xf32>, vector<2x48xf32> -> vector<2x48xf32>
    %822 = vector.extract_strided_slice %801 {offsets = [2, 0], sizes = [2, 16], strides = [1, 1]} : vector<4x16xf32> to vector<2x16xf32>
    %cst_290 = arith.constant dense<0.000000e+00> : vector<2x48xf32>
    %823 = tpu.matmul %822, %459, %cst_290 {dimension_numbers = #tpu.dot_dimension_numbers<[1], [0], [0], [1], [0, 0, 1, 1], [], []>} : vector<2x16xf32>, vector<16x48xf32>, vector<2x48xf32> -> vector<2x48xf32>
    %824 = tpu.concatenate %821, %823 in 0 : vector<2x48xf32>, vector<2x48xf32> -> vector<4x48xf32>
    %825 = arith.addf %824, %460 : vector<4x48xf32>
    %826 = vector.extract_strided_slice %819 {offsets = [0, 0], sizes = [4, 16], strides = [1, 1]} : vector<4x48xf32> to vector<4x16xf32>
    %827 = vector.extract_strided_slice %825 {offsets = [0, 0], sizes = [4, 16], strides = [1, 1]} : vector<4x48xf32> to vector<4x16xf32>
    %828 = arith.addf %826, %827 : vector<4x16xf32>
    %829 = arith.negf %828 : vector<4x16xf32>
    %830 = math.exp %829 : vector<4x16xf32>
    %cst_291 = arith.constant 1.000000e+00 : f32
    %831 = vector.broadcast %cst_291 : f32 to vector<4x16xf32>
    %832 = arith.addf %831, %830 : vector<4x16xf32>
    %833 = arith.divf %831, %832 : vector<4x16xf32>
    %834 = vector.extract_strided_slice %819 {offsets = [0, 16], sizes = [4, 16], strides = [1, 1]} : vector<4x48xf32> to vector<4x16xf32>
    %835 = vector.extract_strided_slice %825 {offsets = [0, 16], sizes = [4, 16], strides = [1, 1]} : vector<4x48xf32> to vector<4x16xf32>
    %836 = arith.addf %834, %835 : vector<4x16xf32>
    %837 = arith.negf %836 : vector<4x16xf32>
    %838 = math.exp %837 : vector<4x16xf32>
    %cst_292 = arith.constant 1.000000e+00 : f32
    %839 = vector.broadcast %cst_292 : f32 to vector<4x16xf32>
    %840 = arith.addf %839, %838 : vector<4x16xf32>
    %841 = arith.divf %839, %840 : vector<4x16xf32>
    %842 = vector.extract_strided_slice %819 {offsets = [0, 32], sizes = [4, 16], strides = [1, 1]} : vector<4x48xf32> to vector<4x16xf32>
    %843 = vector.extract_strided_slice %825 {offsets = [0, 32], sizes = [4, 16], strides = [1, 1]} : vector<4x48xf32> to vector<4x16xf32>
    %844 = arith.mulf %833, %843 : vector<4x16xf32>
    %845 = arith.addf %842, %844 : vector<4x16xf32>
    %846 = math.tanh %845 : vector<4x16xf32>
    %cst_293 = arith.constant 1.000000e+00 : f32
    %847 = vector.broadcast %cst_293 : f32 to vector<4x16xf32>
    %848 = arith.subf %847, %841 : vector<4x16xf32>
    %849 = arith.mulf %848, %846 : vector<4x16xf32>
    %850 = arith.mulf %841, %801 : vector<4x16xf32>
    %851 = arith.addf %849, %850 : vector<4x16xf32>
    %852 = vector.extract_strided_slice %851 {offsets = [0, 0], sizes = [2, 16], strides = [1, 1]} : vector<4x16xf32> to vector<2x16xf32>
    %853 = arith.index_cast %c7_i32_283 : i32 to index
    %c0_294 = arith.constant 0 : index
    %c0_295 = arith.constant 0 : index
    %854 = vector.load %arg14[%853, %c0_294, %c0_295] : memref<8x2x16xf32, #tpu.memory_space<vmem>>, vector<1x2x16xf32>
    %855 = vector.shape_cast %854 : vector<1x2x16xf32> to vector<2x16xf32>
    %856 = vector.shape_cast %852 : vector<2x16xf32> to vector<1x2x16xf32>
    tpu.vector_store %arg14[%853, %c0_294, %c0_295], %856 {strides = array<i32>} : memref<8x2x16xf32, #tpu.memory_space<vmem>>, vector<1x2x16xf32>,
    %857 = vector.extract_strided_slice %851 {offsets = [2, 0], sizes = [2, 16], strides = [1, 1]} : vector<4x16xf32> to vector<2x16xf32>
    %858 = arith.index_cast %812 : i32 to index
    %c0_296 = arith.constant 0 : index
    %c0_297 = arith.constant 0 : index
    %859 = vector.load %arg15[%858, %c0_296, %c0_297] : memref<8x2x16xf32, #tpu.memory_space<vmem>>, vector<1x2x16xf32>
    %860 = vector.shape_cast %859 : vector<1x2x16xf32> to vector<2x16xf32>
    %861 = vector.shape_cast %857 : vector<2x16xf32> to vector<1x2x16xf32>
    tpu.vector_store %arg15[%858, %c0_296, %c0_297], %861 {strides = array<i32>} : memref<8x2x16xf32, #tpu.memory_space<vmem>>, vector<1x2x16xf32>,
    %c8_i32_298 = arith.constant 8 : i32
    %c0_299 = arith.constant 0 : index
    %c0_300 = arith.constant 0 : index
    %c0_301 = arith.constant 0 : index
    %862 = vector.load %arg14[%c0_299, %c0_300, %c0_301] : memref<8x2x16xf32, #tpu.memory_space<vmem>>, vector<8x2x16xf32>
    %c0_302 = arith.constant 0 : index
    %c0_303 = arith.constant 0 : index
    %c0_304 = arith.constant 0 : index
    %863 = vector.load %arg15[%c0_302, %c0_303, %c0_304] : memref<8x2x16xf32, #tpu.memory_space<vmem>>, vector<8x2x16xf32>
    %864 = tpu.concatenate %862, %863 in 2 : vector<8x2x16xf32>, vector<8x2x16xf32> -> vector<8x2x32xf32>
    %865 = vector.shape_cast %864 : vector<8x2x32xf32> to vector<16x32xf32>
    %cst_305 = arith.constant dense<0.000000e+00> : vector<32xf32>
    %866 = vector.multi_reduction <add>, %865, %cst_305 [0] : vector<16x32xf32> to vector<32xf32>
    %867 = vector.shape_cast %866 : vector<32xf32> to vector<1x32xf32>
    %cst_306 = arith.constant 1.600000e+01 : f32
    %868 = vector.broadcast %cst_306 : f32 to vector<1x32xf32>
    %869 = arith.divf %867, %868 : vector<1x32xf32>
    %870 = vector.broadcast %869 : vector<1x32xf32> to vector<16x32xf32>
    %871 = arith.subf %865, %870 : vector<16x32xf32>
    %872 = arith.mulf %871, %871 : vector<16x32xf32>
    %cst_307 = arith.constant dense<0.000000e+00> : vector<32xf32>
    %873 = vector.multi_reduction <add>, %872, %cst_307 [0] : vector<16x32xf32> to vector<32xf32>
    %874 = vector.shape_cast %873 : vector<32xf32> to vector<1x32xf32>
    %cst_308 = arith.constant 1.600000e+01 : f32
    %875 = vector.broadcast %cst_308 : f32 to vector<1x32xf32>
    %876 = arith.divf %874, %875 : vector<1x32xf32>
    %877 = vector.broadcast %869 : vector<1x32xf32> to vector<16x32xf32>
    %878 = arith.subf %865, %877 : vector<16x32xf32>
    %cst_309 = arith.constant 9.99999974E-6 : f32
    %879 = vector.broadcast %cst_309 : f32 to vector<1x32xf32>
    %880 = arith.addf %876, %879 : vector<1x32xf32>
    %881 = math.rsqrt %880 : vector<1x32xf32>
    %882 = vector.broadcast %881 : vector<1x32xf32> to vector<16x32xf32>
    %883 = arith.mulf %878, %882 : vector<16x32xf32>
    %884 = vector.shape_cast %883 : vector<16x32xf32> to vector<8x2x32xf32>
    %c0_310 = arith.constant 0 : index
    %c0_311 = arith.constant 0 : index
    %c0_312 = arith.constant 0 : index
    %885 = vector.load %arg9[%c0_310, %c0_311, %c0_312] : memref<8x2x32xf32, #tpu.memory_space<vmem>>, vector<8x2x32xf32>
    tpu.vector_store %arg9[%c0_310, %c0_311, %c0_312], %884 {strides = array<i32>} : memref<8x2x32xf32, #tpu.memory_space<vmem>>, vector<8x2x32xf32>,
    return
  }
}

</mosaic_0001>

<bundles_post_ra>
// kernel: joint_ere_forward.3
= control target key start
LH: loop header
LB: loop body
LE: loop exit
PB: predicated region body
PF: predicated region fallthrough
CT: control target
= control target key end

     0   :  { %v72_v0 = vlaneseq  ;;  %v7000_v4 = vmov 1983009808   ;;  %v7001_v6 = vmov 0.0|0.0   ;;  %vm7002_vm0 = vmmov 0   ;;  %s7005_s21 = smov 32   ;;  %s7007_s28 = smov 112   ;;  %s8418_s3 = inlined_call_operand.vmem [shape: f32[32,128], index: 3, kind: input, shape index: {}]   ;;  %s8419_s0 = inlined_call_operand.vmem [shape: f32[8,2,32], index: 0, kind: input, shape index: {}]   ;;  %s8420_s4 = inlined_call_operand.vmem [shape: f32[40,128], index: 4, kind: input, shape index: {}]   ;;  %s8421_s1 = inlined_call_operand.vmem [shape: f32[2,32], index: 1, kind: input, shape index: {}]   ;;  %s8422_s5 = inlined_call_operand.vmem [shape: f32[1,128], index: 5, kind: input, shape index: {}]   ;;  %s8423_s2 = inlined_call_operand.vmem [shape: f32[2,32], index: 2, kind: input, shape index: {}]   ;;  %s8424_s6 = inlined_call_operand.vmem [shape: f32[32,9], index: 6, kind: input, shape index: {}]   ;;  %s8425_s7 = inlined_call_operand.vmem [shape: f32[1,9], index: 7, kind: input, shape index: {}]   ;;  %s8426_s11 = inlined_call_operand.vmem [shape: f32[8,2,9], index: 11, kind: output, shape index: {0}]   ;;  %s8427_s8 = inlined_call_operand.vmem [shape: f32[9,8], index: 8, kind: input, shape index: {}]   ;;  %s8428_s9 = inlined_call_operand.vmem [shape: f32[40,32], index: 9, kind: input, shape index: {}]   ;;  %s8429_s10 = inlined_call_operand.vmem [shape: f32[16,5], index: 10, kind: input, shape index: {}]   ;;  %s8430_s12 = inlined_call_operand.vmem [shape: f32[8,8,2,5], index: 12, kind: output, shape index: {1}]  }
   0x1   :  { %v48_v1 = vld [vmem:[%s8418_s3] sm:$0xff]  ;;  %v49_v2 = vld [vmem:[%s8418_s3 + $0x8] sm:$0xff]  ;;  %v50_v3 = vld [vmem:[%s8418_s3 + $0x10] sm:$0xff]  ;;  %v70_v5 = vunpack.c.l.s4 %v7000_v4  ;;  %6412 = vmatprep.subr.bf16.mxu1 %v7001_v6  ;;  %v7003_v12 = vmov 0.0   ;;  %vm101_vm1 = vcmask 261120   ;;  %vm267_vm2 = vcmask 326656  }
   0x2   :  { %v6404_v7 = vpack.c.bf16 %v49_v2, %v48_v1  ;;  %v51_v8 = vld [vmem:[%s8418_s3 + $0x18] sm:$0xff]  ;;  %v40_v9 = vld [vmem:[%s8419_s0] sm:$0x3]  ;;  %v41_v10 = vld [vmem:[%s8419_s0 + $0x2] sm:$0x3]  ;;  %v73_v11 = vshrl.u32 %v72_v0, 7  ;;  %6006 = vmatprep.mubr.msk.f32.mxu1 %vm7002_vm0, %v7003_v12 }
   0x3   :  { %v6408_v13 = vpack.c.bf16 %v51_v8, %v50_v3  ;;  %v42_v14 = vld [vmem:[%s8419_s0 + $0x4] sm:$0x3]  ;;  %v43_v15 = vld [vmem:[%s8419_s0 + $0x6] sm:$0x3]  ;;  %v67_v16 = vcombine.low %v40_v9, %v41_v10  ;;  %v71_v17 = vunpack.c.0.s8 %v70_v5  ;;  %v44_v18 = vld [vmem:[%s8419_s0 + $0x8] sm:$0x3] }
   0x4   :  { %6405 = vmatprep.subr.bf16.mxu0 %v6404_v7  ;;  %v68_v19 = vcombine.low %v42_v14, %v43_v15  ;;  %v45_v20 = vld [vmem:[%s8419_s0 + $0xa] sm:$0x3]  ;;  %v46_v21 = vld [vmem:[%s8419_s0 + $0xc] sm:$0x3]  ;;  %v47_v22 = vld [vmem:[%s8419_s0 + $0xe] sm:$0x3] }
   0x5   :  { %6407 = vmatpush3.bf16.msra.mxu0 %v6404_v7  ;;  %v7113_v23 = vsub.s32 %v71_v17, %v73_v11  ;;  %v84_v24 = vcombine.low %v44_v18, %v45_v20  ;;  %v85_v25 = vcombine.low %v46_v21, %v47_v22  ;;  %v242_v26 = vld [vmem:[%s8420_s4] sm:$0xff]  ;;  %v243_v27 = vld [vmem:[%s8420_s4 + $0x8] sm:$0xff]  ;;  %v244_v28 = vld [vmem:[%s8420_s4 + $0x10] sm:$0xff]  ;;  %vm451_vm3 = vcmask 66560  }
   0x6   :  { %6409 = vmatprep.subr.bf16.mxu0 %v6408_v13  ;;  %v7124_v29 = vpack.c.bf16 %v243_v27, %v242_v26  ;;  %v245_v30 = vld [vmem:[%s8420_s4 + $0x18] sm:$0xff]  ;;  %v263_v38 = vld [vmem:[%s8421_s1] sm:$0x3]  ;;  %v248_v11 = vld [vmem:[%s8424_s6 + $0x8] sm:$0xff]  ;;  %vm491_vm6 = vcmask 1040384   ;;  %vm7006_vm7 = vmmov 1  }
   0x7   :  { %v75_v31 = vrot.slane %v67_v16, %v7113_v23  ;;  %v82_v32 = vrot.slane %v68_v19, %v7113_v23  ;;  %v92_v33 = vrot.slane %v84_v24, %v7113_v23  ;;  %v99_v34 = vrot.slane %v85_v25, %v7113_v23  ;;  %v7148_v39 = vld [vmem:[%s8420_s4 + $0x20] sm:$0xff]  ;;  %v250_v15 = vld [vmem:[%s8424_s6 + $0x18] sm:$0xff]  ;;  %vm7225_vm8 = vmpackc.low %vm491_vm6, %vm7006_vm7 }
   0x8   :  { %6414 = vmatpush3.bf16.msra.mxu1 %v7124_v29  ;;  %v7134_v35 = vpack.c.bf16 %v245_v30, %v244_v28  ;;  %v264_v40 = vsel %vm101_vm1, %v263_v38, 0.0  ;;  %v5644_v41 = vld [vmem:[%s8422_s5] ss:$0 sm:$0xff]  ;;  %s7004_s5 = smov 64   ;;  %vm487_vm9 = vcmask 72704   ;;  %vm233_vm11 = vcmask 123904  }
   0x9   :  { %6411 = vmatpush3.bf16.msra.mxu0 %v6408_v13  ;;  %v83_v36 = vcombine.low %v75_v31, %v82_v32  ;;  %v100_v37 = vcombine.low %v92_v33, %v99_v34  ;;  %6415 = vmatprep.subr.bf16.mxu1 %v7001_v6  ;;  %v265_v61 = vld [vmem:[%s8423_s2] sm:$0x3]  ;;  %v249_v13 = vld [vmem:[%s8424_s6 + $0x10] sm:$0xff]  ;;  %234 = vst.msk [vmem:[#allocation3] sm:$0x3] %vm233_vm11, %v7003_v12  ;;  %vm715_vm12 = vcmask 130048  }
   0xa   :  { %6418 = vmatprep.subr.bf16.mxu0 %v7001_v6  ;;  %v247_v10 = vld [vmem:[%s8424_s6] sm:$0xff]  ;;  %v7189_v16 = vpack.c.bf16 %v250_v15, %v249_v13  ;;  %235 = vst.msk [vmem:[#allocation3 + $0x2] sm:$0x3] %vm233_vm11, %v7003_v12  ;;  %236 = vst.msk [vmem:[#allocation3 + $0x4] sm:$0x3] %vm233_vm11, %v7003_v12 }
   0xb   :  { %5993 = vmatprep.mubr.msk.f32.mxu0 %vm101_vm1, %v83_v36  ;;  %v7183_v14 = vpack.c.bf16 %v248_v11, %v247_v10  ;;  %v7202_v21 = vld [vmem:[%s8425_s7] ss:$0 sm:$0xff]  ;;  %237 = vst.msk [vmem:[#allocation3 + $0x6] sm:$0x3] %vm233_vm11, %v7003_v12  ;;  %238 = vst.msk [vmem:[#allocation3 + $0x8] sm:$0x3] %vm233_vm11, %v7003_v12 }
   0xc   :  { %5994 = vmatmul.mubr.msk.f32.vlgmr.msra.gmra.mrb[0].mxu0 %vm101_vm1, %v100_v37  ;;  %6417 = vmatpush3.bf16.msra.mxu1 %v7134_v35  ;;  %239 = vst.msk [vmem:[#allocation3 + $0xa] sm:$0x3] %vm233_vm11, %v7003_v12  ;;  %240 = vst.msk [vmem:[#allocation3 + $0xc] sm:$0x3] %vm233_vm11, %v7003_v12  ;;  %v260_v10 = vld [vmem:[%s8429_s10 + $0x8] sm:$0xff] }
   0xd   :  { %6004 = vmatprep.subr.mxu1 %v7003_v12  ;;  %6017 = vmatprep.mubr.msk.f32.mxu0 %vm7002_vm0, %v7003_v12  ;;  %241 = vst.msk [vmem:[#allocation3 + $0xe] sm:$0x3] %vm233_vm11, %v7003_v12 }
   0xe   :  { %6420 = vmatpush3.bf16.msra.mxu0 %v7183_v14 }
   0xf   :  { %6421 = vmatprep.subr.bf16.mxu0 %v7001_v6 }
  0x10   :  { %6005 = vmatpush3.msra.mxu1 %v7148_v39 }
  0x11   :  { %6007 = vmatmul.mubr.msk.f32.vlgmr.msra.gmra.mrb[0].mxu1 %vm267_vm2, %v264_v40  ;;  %6424 = vmatprep.subr.bf16.mxu1 %v7001_v6  ;;  %v7213_v40 = vand.u32 127, %v72_v0  ;;  %v252_v0 = vld [vmem:[%s8427_s8] sm:$0xff] }
  0x12   :  { %6024 = vmatprep.mubr.msk.f32.mxu1 %vm7002_vm0, %v7003_v12  ;;  %6423 = vmatpush3.bf16.msra.mxu0 %v7189_v16 }
  0xdf   :  { %v5995_v42 = vpop.f32.mrb[0].mxu0 }
  0xe0   :  { %v178_v43 = vadd.f32 %v5995_v42, %v5644_v41  ;;  %v172_v44 = vpop.f32.mrb[1].mxu0 }
  0xe1   :  { %v173_v45 = vadd.f32 %v5644_v41, %v172_v44 }
  0xe2   :  { %v200_v46 = vcombine.high %v178_v43, %v178_v43  ;;  %v207_v47 = vrot.slane %v178_v43, %v7113_v23  ;;  %5649 = vst.sshfl [vmem:[#allocation2 + $0x8] sm:$0x3 pattern:$0x76325410] %v178_v43 }
  0xe3   :  { %v183_v48 = vcombine.high %v173_v45, %v173_v45  ;;  %v190_v49 = vrot.slane %v173_v45, %v7113_v23  ;;  %5647 = vst.sshfl [vmem:[#allocation2] sm:$0x3 pattern:$0x76325410] %v173_v45 }
  0xe4   :  { %v214_v50 = vrot.slane %v200_v46, %v7113_v23  ;;  %v215_v51 = vcombine.high %v207_v47, %v207_v47  ;;  %5650 = vst.sshfl [vmem:[#allocation2 + $0xc] sm:$0x3 pattern:$0x76325410] %v200_v46  ;;  %v337_v52 = vpop.f32.mrb[0].mxu1 }
  0xe5   :  { %v197_v53 = vrot.slane %v183_v48, %v7113_v23  ;;  %v198_v54 = vcombine.high %v190_v49, %v190_v49  ;;  %5648 = vst.sshfl [vmem:[#allocation2 + $0x4] sm:$0x3 pattern:$0x76325410] %v183_v48  ;;  %v6008_v55 = vpop.f32.mrb[1].mxu1 }
  0xe6   :  { %v216_v56 = vcombine.high %v214_v50, %v214_v50  ;;  %230 = vst [vmem:[#allocation2 + $0xa] sm:$0x3] %v215_v51  ;;  %v253_v50 = vld [vmem:[%s8427_s8 + $0x8] sm:$0x1] }
  0xe7   :  { %v199_v57 = vcombine.high %v197_v53, %v197_v53  ;;  %226 = vst [vmem:[#allocation2 + $0x2] sm:$0x3] %v198_v54  ;;  %v7223_v51 = vpack.c.bf16 %v253_v50, %v252_v0 }
  0xe8   :  { %232 = vst [vmem:[#allocation2 + $0xe] sm:$0x3] %v216_v56 }
  0xe9   :  { %228 = vst [vmem:[#allocation2 + $0x6] sm:$0x3] %v199_v57  ;;  %6427 = vmatpush3.bf16.msk.msra.mxu1 %vm7225_vm8, %v7223_v51 }
  0xea   :  { %v266_v58 = vld [vmem:[#allocation2] sm:$0x3]  ;;  %6428 = vmatprep.subr.bf16.mxu1 %v7001_v6 }
  0xeb   :  { %v341_v59 = vadd.f32 %v337_v52, %v266_v58 }
  0xed   :  { %6628 = vtanh.f32 %v341_v59  ;;  %v5652_v62 = vmul.f32 -1.442695, %v341_v59  ;;  %v254_v59 = vld [vmem:[%s8428_s9] sm:$0xff] }
  0xef   :  { %6630 = vpow2.f32 %v5652_v62 }
  0xf7   :  { %v6629_v60 = vpop.eup %6628 }
  0xf8   :  { %355 = vrot.lane.b32.xlu0 %v6629_v60, %s7004_s5  ;;  %v255_v60 = vld [vmem:[%s8428_s9 + $0x8] sm:$0xff] }
  0xf9   :  { %v6631_v63 = vpop.eup %6630  ;;  %v7247_v62 = vpack.c.bf16 %v255_v60, %v254_v59 }
  0xfa   :  { %v345_v1 = vadd.f32 1.0, %v6631_v63  ;;  %v257_v63 = vld [vmem:[%s8428_s9 + $0x18] sm:$0xff] }
  0xfc   :  { %350 = vrot.lane.b32.xlu0 %v265_v61, %s7005_s21  ;;  %6632 = vrcp.f32 %v345_v1  ;;  %v256_v61 = vld [vmem:[%s8428_s9 + $0x10] sm:$0xff] }
  0xfd   :  { %v7253_v1 = vpack.c.bf16 %v257_v63, %v256_v61  ;;  %v954_v61 = vld [vmem:[#allocation2 + $0x2] sm:$0x3] }
 0x106   :  { %v6633_v2 = vpop.eup %6632 }
 0x16a   :  { %v356_v3 = vpop.permute.xlu0 %355 }
 0x16b   :  { %v358_v4 = vmul.f32 %v6633_v2, %v356_v3 }
 0x16d   :  { %360 = vrot.lane.b32.xlu1 %v358_v4, %s7005_s21 }
 0x16e   :  { %v351_v5 = vpop.permute.xlu0 %350 }
 0x16f   :  { %v353_v7 = vmul.f32 %v6633_v2, %v351_v5 }
 0x1df   :  { %v361_v8 = vpop.permute.xlu1 %360 }
 0x1e0   :  { %v7171_v9 = vadd.f32 %v361_v8, %v353_v7  ;;  %v259_v8 = vld [vmem:[%s8429_s10] sm:$0xff] }
 0x1e1   :  { %v7300_v11 = vpack.c.bf16 %v260_v10, %v259_v8 }
 0x1e2   :  { %6634 = vtanh.f32 %v7171_v9 }
 0x1e3   :  { %6435 = vmatprep.subr.bf16.mxu0 %v7300_v11 }
 0x1ec   :  { %v6635_v17 = vpop.eup %6634 }
 0x1ed   :  { %366 = vrot.lane.b32.xlu1 %v6635_v17, %s7004_s5  ;;  %v649_v17 = vld [vmem:[#allocation3 + $0x8] sm:$0x3] }
 0x25f   :  { %v367_v18 = vpop.permute.xlu1 %366 }
 0x260   :  { %v369_v19 = vmul.f32 %v6633_v2, %v367_v18  ;;  %v7261_v2 = vld [vmem:[%s8428_s9 + $0x20] sm:$0xff]  ;;  %v650_v18 = vld [vmem:[#allocation3 + $0xa] sm:$0x3] }
 0x262   :  { %377 = vrot.lane.b32.xlu0 %v369_v19, %s7005_s21  ;;  %v651_v19 = vld [vmem:[#allocation3 + $0xc] sm:$0x3] }
 0x2d4   :  { %v7195_v20 = vpop.permute.xlu0 %377 }
 0x2d5   :  { %6018 = vmatmul.mubr.msk.f32.vlgmr.msra.gmra.mrb[2].mxu0 %vm101_vm1, %v7195_v20 }
 0x2d6   :  { %6437 = vmatpush3.bf16.msra.mxu0 %v7300_v11 }
 0x2d7   :  { %6438 = vmatprep.subr.bf16.mxu0 %v7001_v6 }
 0x3a8   :  { %v447_v22 = vpop.f32.mrb[2].mxu0 }
 0x3a9   :  { %v448_v24 = vadd.f32 %v7202_v21, %v447_v22  ;;  %v6019_v25 = vpop.f32.mrb[3].mxu0 }
 0x3ab   :  { %v452_v26 = vsel %vm451_vm3, %v448_v24, -inf }
 0x3ac   :  { %453 = vmax.xlane.f32.xlu1 %v452_v26 }
 0x439   :  { %v454_v27 = vpop.xlane.xlu1 %453 }
 0x43a   :  { %v455_v28 = vsub.f32 %v448_v24, %v454_v27  ;;  %v646_v27 = vld [vmem:[#allocation3 + $0x2] sm:$0x3] }
 0x43c   :  { %v456_v30 = vmul.f32 1.442695, %v455_v28 }
 0x43e   :  { %6636 = vpow2.f32 %v456_v30 }
 0x448   :  { %v6637_v31 = vpop.eup %6636 }
 0x449   :  { %v458_v32 = vsel %vm451_vm3, %v6637_v31, 0.0  ;;  %v647_v31 = vld [vmem:[#allocation3 + $0x4] sm:$0x3] }
 0x44a   :  { %459 = vadd.xlane.f32.xlu0 %v458_v32  ;;  %v648_v32 = vld [vmem:[#allocation3 + $0x6] sm:$0x3] }
 0x4d7   :  { %v460_v33 = vpop.xlane.xlu0 %459 }
 0x4d8   :  { %6638 = vlog2.f32 %v460_v33 }
 0x4e2   :  { %v6639_v34 = vpop.eup %6638 }
 0x4e3   :  { %v462_v36 = vmul.f32 0.6931472, %v6639_v34 }
 0x4e5   :  { %v463_v37 = vsub.f32 %v455_v28, %v462_v36 }
 0x4e7   :  { %v464_v38 = vsel %vm451_vm3, %v463_v37, -inf  ;;  %944 = vst.msk [vmem:[%s8426_s11] sm:$0x3] %vm451_vm3, %v463_v37 }
 0x4e8   :  { %465 = vmax.xlane.f32.xlu0 %v464_v38 }
 0x575   :  { %v466_v41 = vpop.xlane.xlu0 %465 }
 0x576   :  { %vm467_vm4 = vcmp.ge.f32.partialorder %v463_v37, %v466_v41 }
 0x577   :  { %v468_v42 = vsel %vm467_vm4, %v7213_v40, 9 }
 0x578   :  { %v469_v43 = vsel %vm451_vm3, %v468_v42, 2147483647 }
 0x579   :  { %v471_v44 = vshra.s32 %v469_v43, 16  ;;  %v470_v46 = vand.u32 65535, %v469_v43 }
 0x57b   :  { %v473_v45 = vcvt.s32.f32 %v471_v44  ;;  %v472_v48 = vcvt.s32.f32 %v470_v46 }
 0x57d   :  { %474 = vmin.xlane.f32.xlu1 %v473_v45 }
 0x60a   :  { %v475_v47 = vpop.xlane.xlu1 %474 }
 0x60b   :  { %vm476_vm5 = vcmp.eq.f32.partialorder %v473_v45, %v475_v47  ;;  %v481_v53 = vcvt.f32.s32 %v475_v47 }
 0x60c   :  { %v477_v49 = vsel %vm476_vm5, %v472_v48, inf }
 0x60d   :  { %478 = vmin.xlane.f32.xlu0 %v477_v49  ;;  %v482_v55 = vshll.u32 %v481_v53, 16 }
 0x69a   :  { %v479_v54 = vpop.xlane.xlu0 %478 }
 0x69b   :  { %v480_v56 = vcvt.f32.s32 %v479_v54 }
 0x69d   :  { %v483_v57 = vadd.s32 %v482_v55, %v480_v56 }
 0x69f   :  { %vm484_vm10 = vcmp.eq.s32.totalorder %v7213_v40, %v483_v57 }
 0x6a0   :  { %v5655_v58 = vsel %vm484_vm10, 1.0, %v7003_v12 }
 0x6a1   :  { %6025 = vmatmul.mubr.msk.f32.vlgmr.msra.gmra.mrb[2].mxu1 %vm487_vm9, %v5655_v58 }
 0x6a2   :  { %6037 = vmatprep.mubr.msk.f32.mxu1 %vm7002_vm0, %v7003_v12  ;;  %6430 = vmatpush3.bf16.msra.mxu1 %v7247_v62 }
 0x6a3   :  { %6431 = vmatprep.subr.bf16.mxu1 %v7001_v6 }
 0x6a6   :  { %6433 = vmatpush3.bf16.msra.mxu1 %v7253_v1 }
 0x6a7   :  { %6035 = vmatprep.subr.mxu1 %v7003_v12 }
 0x6aa   :  { %6036 = vmatpush3.msra.mxu1 %v7261_v2 }
 0x6ab   :  { %6444 = vmatprep.subr.bf16.mxu1 %v7001_v6 }
 0x774   :  { %v561_v3 = vpop.f32.mrb[2].mxu1 }
 0x775   :  { %567 = vrot.lane.b32.xlu1 %v561_v3, %s7005_s21  ;;  %v6026_v4 = vpop.f32.mrb[3].mxu1 }
 0x7e7   :  { %v568_v5 = vpop.permute.xlu1 %567 }
 0x7e8   :  { %v7284_v7 = vsel %vm101_vm1, %v7195_v20, %v568_v5  ;;  %v652_v20 = vld [vmem:[#allocation3 + $0xe] sm:$0x3] }
 0x7e9   :  { %6038 = vmatmul.mubr.msk.f32.vlgmr.msra.gmra.mrb[4].mxu1 %vm267_vm2, %v7284_v7 }
 0x7ea   :  { %6446 = vmatpush3.bf16.msra.mxu1 %v7183_v14  ;;  %6068 = vmatprep.mubr.msk.f32.mxu1 %vm7002_vm0, %v7003_v12 }
 0x7eb   :  { %6447 = vmatprep.subr.bf16.mxu1 %v7001_v6 }
 0x7ee   :  { %6449 = vmatpush3.bf16.msra.mxu1 %v7189_v16 }
 0x7ef   :  { %6454 = vmatprep.subr.bf16.mxu1 %v7001_v6 }
 0x8bc   :  { %v640_v13 = vpop.f32.mrb[4].mxu1 }
 0x8bd   :  { %644 = vst.msk [vmem:[#allocation3] sm:$0x3] %vm233_vm11, %v640_v13  ;;  %654 = vrot.lane.b32.xlu0 %v640_v13, %s7007_s28  ;;  %v6039_v15 = vpop.f32.mrb[5].mxu1 }
 0x8c4   :  { %v645_v30 = vld [vmem:[#allocation3] sm:$0x3] }
 0x92f   :  { %v655_v22 = vpop.permute.xlu0 %654 }
 0x930   :  { %v661_v24 = vadd.f32 %v655_v22, %v649_v17  ;;  %v662_v25 = vadd.f32 %v655_v22, %v650_v18  ;;  %v663_v26 = vadd.f32 %v655_v22, %v651_v19  ;;  %v664_v28 = vadd.f32 %v655_v22, %v652_v20 }
 0x931   :  { %v657_v33 = vadd.f32 %v655_v22, %v645_v30  ;;  %v658_v34 = vadd.f32 %v655_v22, %v646_v27  ;;  %v659_v36 = vadd.f32 %v655_v22, %v647_v31  ;;  %v660_v37 = vadd.f32 %v655_v22, %v648_v32 }
 0x932   :  { %6640 = vtanh.f32 %v661_v24 }
 0x933   :  { %6642 = vtanh.f32 %v662_v25 }
 0x934   :  { %6644 = vtanh.f32 %v663_v26 }
 0x935   :  { %6646 = vtanh.f32 %v664_v28 }
 0x936   :  { %6648 = vtanh.f32 %v657_v33 }
 0x937   :  { %6650 = vtanh.f32 %v658_v34 }
 0x938   :  { %6652 = vtanh.f32 %v659_v36 }
 0x939   :  { %6654 = vtanh.f32 %v660_v37 }
 0x93c   :  { %v6641_v38 = vpop.eup %6640 }
 0x93d   :  { %v6643_v41 = vpop.eup %6642 }
 0x93e   :  { %v6645_v42 = vpop.eup %6644  ;;  %v698_v44 = vcombine.low %v6641_v38, %v6643_v41 }
 0x93f   :  { %v6647_v43 = vpop.eup %6646 }
 0x940   :  { %v6649_v45 = vpop.eup %6648  ;;  %v699_v46 = vcombine.low %v6645_v42, %v6647_v43  ;;  %v706_v50 = vrot.slane %v698_v44, %v7113_v23 }
 0x941   :  { %v6651_v47 = vpop.eup %6650 }
 0x942   :  { %v6653_v48 = vpop.eup %6652  ;;  %v681_v49 = vcombine.low %v6649_v45, %v6651_v47  ;;  %v713_v53 = vrot.slane %v699_v46, %v7113_v23 }
 0x943   :  { %v6655_v0 = vpop.eup %6654 }
 0x944   :  { %v682_v54 = vcombine.low %v6653_v48, %v6655_v0  ;;  %v689_v55 = vrot.slane %v681_v49, %v7113_v23  ;;  %v714_v57 = vcombine.low %v706_v50, %v713_v53 }
 0x946   :  { %v696_v56 = vrot.slane %v682_v54, %v7113_v23 }
 0x948   :  { %v697_v58 = vcombine.low %v689_v55, %v696_v56 }
 0x94a   :  { %6044 = vmatprep.mubr.msk.f32.mxu0 %vm715_vm12, %v697_v58 }
 0x94b   :  { %6045 = vmatmul.mubr.msk.f32.vlgmr.msra.gmra.mrb[4].mxu0 %vm715_vm12, %v714_v57 }
 0x94c   :  { %6440 = vmatpush3.bf16.msra.mxu0 %v7124_v29  ;;  %6057 = vmatprep.mubr.msk.f32.mxu0 %vm7002_vm0, %v7003_v12 }
 0x94d   :  { %6441 = vmatprep.subr.bf16.mxu0 %v7001_v6 }
 0x950   :  { %6443 = vmatpush3.bf16.msra.mxu0 %v7134_v35 }
 0x951   :  { %6055 = vmatprep.subr.mxu0 %v7003_v12 }
 0x954   :  { %6056 = vmatpush3.msra.mxu0 %v7148_v39 }
 0x955   :  { %6058 = vmatmul.mubr.msk.f32.vlgmr.msra.gmra.mrb[6].mxu0 %vm267_vm2, %v7284_v7  ;;  %6450 = vmatprep.subr.bf16.mxu0 %v7001_v6 }
 0x956   :  { %6453 = vmatpush3.bf16.msk.msra.mxu0 %vm7225_vm8, %v7223_v51  ;;  %6075 = vmatprep.mubr.msk.f32.mxu0 %vm7002_vm0, %v7003_v12 }
 0x957   :  { %6461 = vmatprep.subr.bf16.mxu0 %v7300_v11 }
 0xa1e   :  { %v6046_v59 = vpop.f32.mrb[4].mxu0 }
 0xa1f   :  { %v7329_v60 = vpop.f32.mrb[5].mxu0 }
 0xa28   :  { %v1021_v63 = vpop.f32.mrb[6].mxu0 }
 0xa29   :  { %v1025_v3 = vadd.f32 %v1021_v63, %v954_v61  ;;  %v6059_v4 = vpop.f32.mrb[7].mxu0 }
 0xa2b   :  { %6656 = vtanh.f32 %v1025_v3  ;;  %v5662_v7 = vmul.f32 -1.442695, %v1025_v3 }
 0xa2d   :  { %6658 = vpow2.f32 %v5662_v7 }
 0xa35   :  { %v6657_v5 = vpop.eup %6656 }
 0xa36   :  { %1035 = vrot.lane.b32.xlu1 %v6657_v5, %s7004_s5 }
 0xa37   :  { %v6659_v8 = vpop.eup %6658 }
 0xa38   :  { %v1029_v10 = vadd.f32 1.0, %v6659_v8  ;;  %v1318_v8 = vld [vmem:[#allocation3 + $0x8] sm:$0x3] }
 0xa3a   :  { %6660 = vrcp.f32 %v1029_v10  ;;  %v1319_v10 = vld [vmem:[#allocation3 + $0xa] sm:$0x3] }
 0xa44   :  { %v6661_v13 = vpop.eup %6660 }
 0xa45   :  { %v1033_v18 = vmul.f32 %v6661_v13, %v7171_v9 }
 0xaa8   :  { %v1036_v15 = vpop.permute.xlu1 %1035 }
 0xaa9   :  { %v1038_v17 = vmul.f32 %v6661_v13, %v1036_v15  ;;  %v1321_v15 = vld [vmem:[#allocation3 + $0xe] sm:$0x3] }
 0xaab   :  { %1040 = vrot.lane.b32.xlu1 %v1038_v17, %s7005_s21 }
 0xb1d   :  { %v1041_v19 = vpop.permute.xlu1 %1040 }
 0xb1e   :  { %v7334_v20 = vadd.f32 %v1041_v19, %v1033_v18 }
 0xb20   :  { %6662 = vtanh.f32 %v7334_v20 }
 0xb2a   :  { %v6663_v22 = vpop.eup %6662 }
 0xb2b   :  { %1046 = vrot.lane.b32.xlu0 %v6663_v22, %s7004_s5 }
 0xb9d   :  { %v1047_v24 = vpop.permute.xlu0 %1046 }
 0xb9e   :  { %v1049_v25 = vmul.f32 %v6661_v13, %v1047_v24  ;;  %v1320_v13 = vld [vmem:[#allocation3 + $0xc] sm:$0x3] }
 0xba0   :  { %1051 = vrot.lane.b32.xlu1 %v1049_v25, %s7005_s21  ;;  %v1314_v25 = vld [vmem:[#allocation3] sm:$0x3] }
 0xc12   :  { %v1052_v26 = vpop.permute.xlu1 %1051 }
 0xc13   :  { %6069 = vmatmul.mubr.msk.f32.vlgmr.msra.gmra.mrb[6].mxu1 %vm101_vm1, %v1052_v26 }
 0xc14   :  { %6456 = vmatpush3.bf16.msra.mxu1 %v7247_v62  ;;  %6088 = vmatprep.mubr.msk.f32.mxu1 %vm7002_vm0, %v7003_v12 }
 0xc15   :  { %6457 = vmatprep.subr.bf16.mxu1 %v7001_v6 }
 0xc18   :  { %6459 = vmatpush3.bf16.msra.mxu1 %v7253_v1 }
 0xc19   :  { %6086 = vmatprep.subr.mxu1 %v7003_v12 }
 0xc1c   :  { %6087 = vmatpush3.msra.mxu1 %v7261_v2 }
 0xc1d   :  { %6470 = vmatprep.subr.bf16.mxu1 %v7001_v6 }
 0xce6   :  { %v1121_v9 = vpop.f32.mrb[6].mxu1 }
 0xce7   :  { %v1122_v27 = vadd.f32 %v7202_v21, %v1121_v9  ;;  %v6070_v28 = vpop.f32.mrb[7].mxu1 }
 0xce9   :  { %v1125_v30 = vsel %vm451_vm3, %v1122_v27, -inf }
 0xcea   :  { %1126 = vmax.xlane.f32.xlu0 %v1125_v30 }
 0xd77   :  { %v1127_v31 = vpop.xlane.xlu0 %1126 }
 0xd78   :  { %v1128_v32 = vsub.f32 %v1122_v27, %v1127_v31  ;;  %v1317_v27 = vld [vmem:[#allocation3 + $0x6] sm:$0x3] }
 0xd7a   :  { %v1129_v33 = vmul.f32 1.442695, %v1128_v32 }
 0xd7c   :  { %6664 = vpow2.f32 %v1129_v33 }
 0xd86   :  { %v6665_v34 = vpop.eup %6664 }
 0xd87   :  { %v1131_v36 = vsel %vm451_vm3, %v6665_v34, 0.0 }
 0xd88   :  { %1132 = vadd.xlane.f32.xlu1 %v1131_v36 }
 0xe15   :  { %v1133_v37 = vpop.xlane.xlu1 %1132 }
 0xe16   :  { %6666 = vlog2.f32 %v1133_v37 }
 0xe20   :  { %v6667_v38 = vpop.eup %6666 }
 0xe21   :  { %v1135_v41 = vmul.f32 0.6931472, %v6667_v38 }
 0xe23   :  { %v1136_v42 = vsub.f32 %v1128_v32, %v1135_v41 }
 0xe25   :  { %v1137_v43 = vsel %vm451_vm3, %v1136_v42, -inf  ;;  %5670 = vst.msk [vmem:[%s8426_s11 + $0x2] sm:$0x3] %vm451_vm3, %v1136_v42 }
 0xe26   :  { %1138 = vmax.xlane.f32.xlu0 %v1137_v43 }
 0xeb3   :  { %v1139_v44 = vpop.xlane.xlu0 %1138 }
 0xeb4   :  { %vm1140_vm13 = vcmp.ge.f32.partialorder %v1136_v42, %v1139_v44 }
 0xeb5   :  { %v1141_v45 = vsel %vm1140_vm13, %v7213_v40, 9 }
 0xeb6   :  { %v1142_v46 = vsel %vm451_vm3, %v1141_v45, 2147483647 }
 0xeb7   :  { %v1144_v47 = vshra.s32 %v1142_v46, 16  ;;  %v1143_v49 = vand.u32 65535, %v1142_v46 }
 0xeb9   :  { %v1146_v48 = vcvt.s32.f32 %v1144_v47  ;;  %v1145_v50 = vcvt.s32.f32 %v1143_v49 }
 0xebb   :  { %1147 = vmin.xlane.f32.xlu0 %v1146_v48 }
 0xf48   :  { %v1148_v0 = vpop.xlane.xlu0 %1147 }
 0xf49   :  { %vm1149_vm14 = vcmp.eq.f32.partialorder %v1146_v48, %v1148_v0  ;;  %v1154_v54 = vcvt.f32.s32 %v1148_v0 }
 0xf4a   :  { %v1150_v53 = vsel %vm1149_vm14, %v1145_v50, inf }
 0xf4b   :  { %1151 = vmin.xlane.f32.xlu1 %v1150_v53  ;;  %v1155_v56 = vshll.u32 %v1154_v54, 16 }
 0xfd8   :  { %v1152_v55 = vpop.xlane.xlu1 %1151 }
 0xfd9   :  { %v1153_v57 = vcvt.f32.s32 %v1152_v55 }
 0xfdb   :  { %v1156_v58 = vadd.s32 %v1155_v56, %v1153_v57  ;;  %v1623_v57 = vld [vmem:[#allocation2 + $0x4] sm:$0x3] }
 0xfdd   :  { %vm1157_vm15 = vcmp.eq.s32.totalorder %v7213_v40, %v1156_v58 }
 0xfde   :  { %v5664_v59 = vsel %vm1157_vm15, 1.0, %v7003_v12 }
 0xfdf   :  { %6076 = vmatmul.mubr.msk.f32.vlgmr.msra.gmra.mrb[8].mxu0 %vm487_vm9, %v5664_v59 }
 0xfe0   :  { %6463 = vmatpush3.bf16.msra.mxu0 %v7300_v11 }
 0xfe1   :  { %6464 = vmatprep.subr.bf16.mxu0 %v7001_v6 }
0x10b2   :  { %v1229_v61 = vpop.f32.mrb[8].mxu0 }
0x10b3   :  { %1235 = vrot.lane.b32.xlu0 %v1229_v61, %s7005_s21  ;;  %v6077_v63 = vpop.f32.mrb[9].mxu0 }
0x1125   :  { %v1236_v3 = vpop.permute.xlu0 %1235 }
0x1126   :  { %v1238_v4 = vsel %vm101_vm1, %v1052_v26, %v1236_v3  ;;  %v1316_v26 = vld [vmem:[#allocation3 + $0x4] sm:$0x3] }
0x1127   :  { %6089 = vmatmul.mubr.msk.f32.vlgmr.msra.gmra.mrb[8].mxu1 %vm267_vm2, %v1238_v4 }
0x1128   :  { %6472 = vmatpush3.bf16.msra.mxu1 %v7183_v14  ;;  %6119 = vmatprep.mubr.msk.f32.mxu1 %vm7002_vm0, %v7003_v12 }
0x1129   :  { %6473 = vmatprep.subr.bf16.mxu1 %v7001_v6 }
0x112c   :  { %6475 = vmatpush3.bf16.msra.mxu1 %v7189_v16 }
0x112d   :  { %6480 = vmatprep.subr.bf16.mxu1 %v7001_v6 }
0x11fa   :  { %v1308_v5 = vpop.f32.mrb[8].mxu1 }
0x11fb   :  { %1313 = vst.msk [vmem:[#allocation3 + $0x2] sm:$0x3] %vm233_vm11, %v1308_v5  ;;  %1323 = vrot.lane.b32.xlu1 %v1308_v5, %s7007_s28  ;;  %v6090_v7 = vpop.f32.mrb[9].mxu1 }
0x1202   :  { %v1315_v9 = vld [vmem:[#allocation3 + $0x2] sm:$0x3] }
0x126d   :  { %v1324_v17 = vpop.permute.xlu1 %1323 }
0x126e   :  { %v1330_v18 = vadd.f32 %v1324_v17, %v1318_v8  ;;  %v1331_v19 = vadd.f32 %v1324_v17, %v1319_v10  ;;  %v1332_v22 = vadd.f32 %v1324_v17, %v1320_v13  ;;  %v1333_v24 = vadd.f32 %v1324_v17, %v1321_v15 }
0x126f   :  { %v1326_v28 = vadd.f32 %v1324_v17, %v1314_v25  ;;  %v1327_v30 = vadd.f32 %v1324_v17, %v1315_v9  ;;  %v1328_v31 = vadd.f32 %v1324_v17, %v1316_v26  ;;  %v1329_v32 = vadd.f32 %v1324_v17, %v1317_v27 }
0x1270   :  { %6668 = vtanh.f32 %v1330_v18 }
0x1271   :  { %6670 = vtanh.f32 %v1331_v19 }
0x1272   :  { %6672 = vtanh.f32 %v1332_v22 }
0x1273   :  { %6674 = vtanh.f32 %v1333_v24 }
0x1274   :  { %6676 = vtanh.f32 %v1326_v28 }
0x1275   :  { %6678 = vtanh.f32 %v1327_v30 }
0x1276   :  { %6680 = vtanh.f32 %v1328_v31 }
0x1277   :  { %6682 = vtanh.f32 %v1329_v32 }
0x127a   :  { %v6669_v33 = vpop.eup %6668 }
0x127b   :  { %v6671_v34 = vpop.eup %6670 }
0x127c   :  { %v6673_v36 = vpop.eup %6672  ;;  %v1367_v38 = vcombine.low %v6669_v33, %v6671_v34 }
0x127d   :  { %v6675_v37 = vpop.eup %6674 }
0x127e   :  { %v6677_v41 = vpop.eup %6676  ;;  %v1368_v42 = vcombine.low %v6673_v36, %v6675_v37  ;;  %v1375_v47 = vrot.slane %v1367_v38, %v7113_v23 }
0x127f   :  { %v6679_v43 = vpop.eup %6678 }
0x1280   :  { %v6681_v44 = vpop.eup %6680  ;;  %v1350_v45 = vcombine.low %v6677_v41, %v6679_v43  ;;  %v1382_v48 = vrot.slane %v1368_v42, %v7113_v23 }
0x1281   :  { %v6683_v46 = vpop.eup %6682 }
0x1282   :  { %v1351_v49 = vcombine.low %v6681_v44, %v6683_v46  ;;  %v1358_v0 = vrot.slane %v1350_v45, %v7113_v23  ;;  %v1383_v53 = vcombine.low %v1375_v47, %v1382_v48 }
0x1284   :  { %v1365_v50 = vrot.slane %v1351_v49, %v7113_v23 }
0x1286   :  { %v1366_v54 = vcombine.low %v1358_v0, %v1365_v50 }
0x1288   :  { %6095 = vmatprep.mubr.msk.f32.mxu0 %vm715_vm12, %v1366_v54 }
0x1289   :  { %6096 = vmatmul.mubr.msk.f32.vlgmr.msra.gmra.mrb[10].mxu0 %vm715_vm12, %v1383_v53 }
0x128a   :  { %6466 = vmatpush3.bf16.msra.mxu0 %v7124_v29  ;;  %6108 = vmatprep.mubr.msk.f32.mxu0 %vm7002_vm0, %v7003_v12 }
0x128b   :  { %6467 = vmatprep.subr.bf16.mxu0 %v7001_v6 }
0x128e   :  { %6469 = vmatpush3.bf16.msra.mxu0 %v7134_v35 }
0x128f   :  { %6106 = vmatprep.subr.mxu0 %v7003_v12 }
0x1292   :  { %6107 = vmatpush3.msra.mxu0 %v7148_v39 }
0x1293   :  { %6109 = vmatmul.mubr.msk.f32.vlgmr.msra.gmra.mrb[12].mxu0 %vm267_vm2, %v1238_v4  ;;  %6476 = vmatprep.subr.bf16.mxu0 %v7001_v6 }
0x1294   :  { %6479 = vmatpush3.bf16.msk.msra.mxu0 %vm7225_vm8, %v7223_v51  ;;  %6126 = vmatprep.mubr.msk.f32.mxu0 %vm7002_vm0, %v7003_v12 }
0x1295   :  { %6487 = vmatprep.subr.bf16.mxu0 %v7300_v11 }
0x135c   :  { %v6097_v55 = vpop.f32.mrb[10].mxu0 }
0x135d   :  { %v7395_v56 = vpop.f32.mrb[11].mxu0 }
0x1366   :  { %v1690_v58 = vpop.f32.mrb[12].mxu0 }
0x1367   :  { %v1694_v59 = vadd.f32 %v1690_v58, %v1623_v57  ;;  %v6110_v39 = vpop.f32.mrb[13].mxu0 }
0x1369   :  { %6684 = vtanh.f32 %v1694_v59  ;;  %v5680_v63 = vmul.f32 -1.442695, %v1694_v59 }
0x136b   :  { %6686 = vpow2.f32 %v5680_v63 }
0x1373   :  { %v6685_v61 = vpop.eup %6684 }
0x1374   :  { %1704 = vrot.lane.b32.xlu1 %v6685_v61, %s7004_s5 }
0x1375   :  { %v6687_v3 = vpop.eup %6686 }
0x1376   :  { %v1698_v4 = vadd.f32 1.0, %v6687_v3  ;;  %v1987_v3 = vld [vmem:[#allocation3 + $0x8] sm:$0x3] }
0x1378   :  { %6688 = vrcp.f32 %v1698_v4  ;;  %v1988_v4 = vld [vmem:[#allocation3 + $0xa] sm:$0x3] }
0x1382   :  { %v6689_v5 = vpop.eup %6688 }
0x1383   :  { %v1702_v10 = vmul.f32 %v6689_v5, %v7334_v20 }
0x13e6   :  { %v1705_v7 = vpop.permute.xlu1 %1704 }
0x13e7   :  { %v1707_v8 = vmul.f32 %v6689_v5, %v1705_v7  ;;  %v1990_v7 = vld [vmem:[#allocation3 + $0xe] sm:$0x3] }
0x13e9   :  { %1709 = vrot.lane.b32.xlu0 %v1707_v8, %s7005_s21 }
0x145b   :  { %v1710_v13 = vpop.permute.xlu0 %1709 }
0x145c   :  { %v7400_v15 = vadd.f32 %v1710_v13, %v1702_v10 }
0x145e   :  { %6690 = vtanh.f32 %v7400_v15 }
0x1468   :  { %v6691_v17 = vpop.eup %6690 }
0x1469   :  { %1715 = vrot.lane.b32.xlu1 %v6691_v17, %s7004_s5 }
0x14db   :  { %v1716_v18 = vpop.permute.xlu1 %1715 }
0x14dc   :  { %v1718_v19 = vmul.f32 %v6689_v5, %v1716_v18  ;;  %v1989_v5 = vld [vmem:[#allocation3 + $0xc] sm:$0x3] }
0x14de   :  { %1720 = vrot.lane.b32.xlu0 %v1718_v19, %s7005_s21  ;;  %v1983_v19 = vld [vmem:[#allocation3] sm:$0x3] }
0x1550   :  { %v1721_v22 = vpop.permute.xlu0 %1720 }
0x1551   :  { %6120 = vmatmul.mubr.msk.f32.vlgmr.msra.gmra.mrb[10].mxu1 %vm101_vm1, %v1721_v22 }
0x1552   :  { %6482 = vmatpush3.bf16.msra.mxu1 %v7247_v62  ;;  %6139 = vmatprep.mubr.msk.f32.mxu1 %vm7002_vm0, %v7003_v12 }
0x1553   :  { %6483 = vmatprep.subr.bf16.mxu1 %v7001_v6 }
0x1556   :  { %6485 = vmatpush3.bf16.msra.mxu1 %v7253_v1 }
0x1557   :  { %6137 = vmatprep.subr.mxu1 %v7003_v12 }
0x155a   :  { %6138 = vmatpush3.msra.mxu1 %v7261_v2 }
0x155b   :  { %6496 = vmatprep.subr.bf16.mxu1 %v7001_v6 }
0x1624   :  { %v1790_v20 = vpop.f32.mrb[10].mxu1 }
0x1625   :  { %v1791_v24 = vadd.f32 %v7202_v21, %v1790_v20  ;;  %v6121_v25 = vpop.f32.mrb[11].mxu1  ;;  %v1986_v20 = vld [vmem:[#allocation3 + $0x6] sm:$0x3] }
0x1627   :  { %v1794_v26 = vsel %vm451_vm3, %v1791_v24, -inf }
0x1628   :  { %1795 = vmax.xlane.f32.xlu1 %v1794_v26 }
0x16b5   :  { %v1796_v9 = vpop.xlane.xlu1 %1795 }
0x16b6   :  { %v1797_v27 = vsub.f32 %v1791_v24, %v1796_v9 }
0x16b8   :  { %v1798_v28 = vmul.f32 1.442695, %v1797_v27 }
0x16ba   :  { %6692 = vpow2.f32 %v1798_v28 }
0x16c4   :  { %v6693_v30 = vpop.eup %6692 }
0x16c5   :  { %v1800_v31 = vsel %vm451_vm3, %v6693_v30, 0.0 }
0x16c6   :  { %1801 = vadd.xlane.f32.xlu0 %v1800_v31 }
0x1753   :  { %v1802_v32 = vpop.xlane.xlu0 %1801 }
0x1754   :  { %6694 = vlog2.f32 %v1802_v32 }
0x175e   :  { %v6695_v33 = vpop.eup %6694 }
0x175f   :  { %v1804_v34 = vmul.f32 0.6931472, %v6695_v33 }
0x1761   :  { %v1805_v36 = vsub.f32 %v1797_v27, %v1804_v34 }
0x1763   :  { %v1806_v37 = vsel %vm451_vm3, %v1805_v36, -inf  ;;  %5688 = vst.msk [vmem:[%s8426_s11 + $0x4] sm:$0x3] %vm451_vm3, %v1805_v36 }
0x1764   :  { %1807 = vmax.xlane.f32.xlu0 %v1806_v37 }
0x17f1   :  { %v1808_v38 = vpop.xlane.xlu0 %1807 }
0x17f2   :  { %vm1809_vm4 = vcmp.ge.f32.partialorder %v1805_v36, %v1808_v38 }
0x17f3   :  { %v1810_v41 = vsel %vm1809_vm4, %v7213_v40, 9 }
0x17f4   :  { %v1811_v42 = vsel %vm451_vm3, %v1810_v41, 2147483647 }
0x17f5   :  { %v1813_v43 = vshra.s32 %v1811_v42, 16  ;;  %v1812_v45 = vand.u32 65535, %v1811_v42 }
0x17f7   :  { %v1815_v44 = vcvt.s32.f32 %v1813_v43  ;;  %v1814_v47 = vcvt.s32.f32 %v1812_v45 }
0x17f9   :  { %1816 = vmin.xlane.f32.xlu1 %v1815_v44 }
0x1886   :  { %v1817_v46 = vpop.xlane.xlu1 %1816 }
0x1887   :  { %vm1818_vm5 = vcmp.eq.f32.partialorder %v1815_v44, %v1817_v46  ;;  %v1823_v49 = vcvt.f32.s32 %v1817_v46 }
0x1888   :  { %v1819_v48 = vsel %vm1818_vm5, %v1814_v47, inf }
0x1889   :  { %1820 = vmin.xlane.f32.xlu0 %v1819_v48  ;;  %v1824_v50 = vshll.u32 %v1823_v49, 16 }
0x1916   :  { %v1821_v0 = vpop.xlane.xlu0 %1820 }
0x1917   :  { %v1822_v53 = vcvt.f32.s32 %v1821_v0  ;;  %v7458_v0 = vld [vmem:[%s8420_s4 + $0x20] sm:$0xff] }
0x1919   :  { %v1825_v54 = vadd.s32 %v1824_v50, %v1822_v53 }
0x191b   :  { %vm1826_vm6 = vcmp.eq.s32.totalorder %v7213_v40, %v1825_v54  ;;  %v2292_v54 = vld [vmem:[#allocation2 + $0x6] sm:$0x3] }
0x191c   :  { %v5682_v55 = vsel %vm1826_vm6, 1.0, %v7003_v12 }
0x191d   :  { %6127 = vmatmul.mubr.msk.f32.vlgmr.msra.gmra.mrb[14].mxu0 %vm487_vm9, %v5682_v55 }
0x191e   :  { %6489 = vmatpush3.bf16.msra.mxu0 %v7300_v11 }
0x191f   :  { %6490 = vmatprep.subr.bf16.mxu0 %v7001_v6 }
0x19f0   :  { %v1898_v57 = vpop.f32.mrb[14].mxu0 }
0x19f1   :  { %1904 = vrot.lane.b32.xlu1 %v1898_v57, %s7005_s21  ;;  %v6128_v58 = vpop.f32.mrb[15].mxu0 }
0x1a63   :  { %v1905_v59 = vpop.permute.xlu1 %1904 }
0x1a64   :  { %v7431_v39 = vsel %vm101_vm1, %v1721_v22, %v1905_v59  ;;  %v1984_v22 = vld [vmem:[#allocation3 + $0x2] sm:$0x3] }
0x1a65   :  { %6140 = vmatmul.mubr.msk.f32.vlgmr.msra.gmra.mrb[12].mxu1 %vm267_vm2, %v7431_v39 }
0x1a66   :  { %6498 = vmatpush3.bf16.msra.mxu1 %v7183_v14  ;;  %6170 = vmatprep.mubr.msk.f32.mxu1 %vm7002_vm0, %v7003_v12 }
0x1a67   :  { %6499 = vmatprep.subr.bf16.mxu1 %v7001_v6 }
0x1a6a   :  { %6501 = vmatpush3.bf16.msra.mxu1 %v7189_v16 }
0x1a6b   :  { %6506 = vmatprep.subr.bf16.mxu1 %v7001_v6 }
0x1b38   :  { %v1977_v61 = vpop.f32.mrb[12].mxu1 }
0x1b39   :  { %1982 = vst.msk [vmem:[#allocation3 + $0x4] sm:$0x3] %vm233_vm11, %v1977_v61  ;;  %1992 = vrot.lane.b32.xlu0 %v1977_v61, %s7007_s28  ;;  %v6141_v63 = vpop.f32.mrb[13].mxu1 }
0x1b40   :  { %v1985_v25 = vld [vmem:[#allocation3 + $0x4] sm:$0x3] }
0x1bab   :  { %v1993_v8 = vpop.permute.xlu0 %1992 }
0x1bac   :  { %v1999_v10 = vadd.f32 %v1993_v8, %v1987_v3  ;;  %v2000_v13 = vadd.f32 %v1993_v8, %v1988_v4  ;;  %v2001_v17 = vadd.f32 %v1993_v8, %v1989_v5  ;;  %v2002_v18 = vadd.f32 %v1993_v8, %v1990_v7 }
0x1bad   :  { %v1995_v24 = vadd.f32 %v1993_v8, %v1983_v19  ;;  %v1996_v26 = vadd.f32 %v1993_v8, %v1984_v22  ;;  %v1997_v9 = vadd.f32 %v1993_v8, %v1985_v25  ;;  %v1998_v27 = vadd.f32 %v1993_v8, %v1986_v20 }
0x1bae   :  { %6696 = vtanh.f32 %v1999_v10 }
0x1baf   :  { %6698 = vtanh.f32 %v2000_v13 }
0x1bb0   :  { %6700 = vtanh.f32 %v2001_v17 }
0x1bb1   :  { %6702 = vtanh.f32 %v2002_v18 }
0x1bb2   :  { %6704 = vtanh.f32 %v1995_v24 }
0x1bb3   :  { %6706 = vtanh.f32 %v1996_v26 }
0x1bb4   :  { %6708 = vtanh.f32 %v1997_v9 }
0x1bb5   :  { %6710 = vtanh.f32 %v1998_v27 }
0x1bb8   :  { %v6697_v28 = vpop.eup %6696 }
0x1bb9   :  { %v6699_v30 = vpop.eup %6698 }
0x1bba   :  { %v6701_v31 = vpop.eup %6700  ;;  %v2036_v33 = vcombine.low %v6697_v28, %v6699_v30 }
0x1bbb   :  { %v6703_v32 = vpop.eup %6702 }
0x1bbc   :  { %v6705_v34 = vpop.eup %6704  ;;  %v2037_v36 = vcombine.low %v6701_v31, %v6703_v32  ;;  %v2044_v43 = vrot.slane %v2036_v33, %v7113_v23 }
0x1bbd   :  { %v6707_v37 = vpop.eup %6706 }
0x1bbe   :  { %v6709_v38 = vpop.eup %6708  ;;  %v2019_v41 = vcombine.low %v6705_v34, %v6707_v37  ;;  %v2051_v44 = vrot.slane %v2037_v36, %v7113_v23 }
0x1bbf   :  { %v6711_v42 = vpop.eup %6710 }
0x1bc0   :  { %v2020_v45 = vcombine.low %v6709_v38, %v6711_v42  ;;  %v2027_v46 = vrot.slane %v2019_v41, %v7113_v23  ;;  %v2052_v48 = vcombine.low %v2044_v43, %v2051_v44 }
0x1bc2   :  { %v2034_v47 = vrot.slane %v2020_v45, %v7113_v23 }
0x1bc4   :  { %v2035_v49 = vcombine.low %v2027_v46, %v2034_v47 }
0x1bc6   :  { %6146 = vmatprep.mubr.msk.f32.mxu0 %vm715_vm12, %v2035_v49 }
0x1bc7   :  { %6147 = vmatmul.mubr.msk.f32.vlgmr.msra.gmra.mrb[16].mxu0 %vm715_vm12, %v2052_v48 }
0x1bc8   :  { %6492 = vmatpush3.bf16.msra.mxu0 %v7124_v29  ;;  %6159 = vmatprep.mubr.msk.f32.mxu0 %vm7002_vm0, %v7003_v12 }
0x1bc9   :  { %6493 = vmatprep.subr.bf16.mxu0 %v7001_v6 }
0x1bcc   :  { %6495 = vmatpush3.bf16.msra.mxu0 %v7134_v35 }
0x1bcd   :  { %6157 = vmatprep.subr.mxu0 %v7003_v12 }
0x1bd0   :  { %6158 = vmatpush3.msra.mxu0 %v7458_v0 }
0x1bd1   :  { %6160 = vmatmul.mubr.msk.f32.vlgmr.msra.gmra.mrb[18].mxu0 %vm267_vm2, %v7431_v39  ;;  %6502 = vmatprep.subr.bf16.mxu0 %v7001_v6 }
0x1bd2   :  { %6505 = vmatpush3.bf16.msk.msra.mxu0 %vm7225_vm8, %v7223_v51  ;;  %6177 = vmatprep.mubr.msk.f32.mxu0 %vm7002_vm0, %v7003_v12 }
0x1bd3   :  { %6513 = vmatprep.subr.bf16.mxu0 %v7300_v11 }
0x1c9a   :  { %v6148_v50 = vpop.f32.mrb[16].mxu0 }
0x1c9b   :  { %v7470_v53 = vpop.f32.mrb[17].mxu0 }
0x1ca4   :  { %v2359_v55 = vpop.f32.mrb[18].mxu0 }
0x1ca5   :  { %v2363_v57 = vadd.f32 %v2359_v55, %v2292_v54  ;;  %v6161_v58 = vpop.f32.mrb[19].mxu0 }
0x1ca7   :  { %6712 = vtanh.f32 %v2363_v57  ;;  %v5698_v39 = vmul.f32 -1.442695, %v2363_v57 }
0x1ca9   :  { %6714 = vpow2.f32 %v5698_v39 }
0x1cb1   :  { %v6713_v59 = vpop.eup %6712 }
0x1cb2   :  { %2373 = vrot.lane.b32.xlu1 %v6713_v59, %s7004_s5 }
0x1cb3   :  { %v6715_v61 = vpop.eup %6714 }
0x1cb4   :  { %v2367_v63 = vadd.f32 1.0, %v6715_v61  ;;  %v2656_v61 = vld [vmem:[#allocation3 + $0x8] sm:$0x3] }
0x1cb6   :  { %6716 = vrcp.f32 %v2367_v63  ;;  %v2657_v63 = vld [vmem:[#allocation3 + $0xa] sm:$0x3] }
0x1cc0   :  { %v6717_v3 = vpop.eup %6716 }
0x1cc1   :  { %v2371_v7 = vmul.f32 %v6717_v3, %v7400_v15 }
0x1d24   :  { %v2374_v4 = vpop.permute.xlu1 %2373 }
0x1d25   :  { %v2376_v5 = vmul.f32 %v6717_v3, %v2374_v4  ;;  %v2659_v4 = vld [vmem:[#allocation3 + $0xe] sm:$0x3] }
0x1d27   :  { %2378 = vrot.lane.b32.xlu1 %v2376_v5, %s7005_s21 }
0x1d99   :  { %v2379_v8 = vpop.permute.xlu1 %2378 }
0x1d9a   :  { %v7475_v10 = vadd.f32 %v2379_v8, %v2371_v7 }
0x1d9c   :  { %6718 = vtanh.f32 %v7475_v10 }
0x1da6   :  { %v6719_v13 = vpop.eup %6718 }
0x1da7   :  { %2384 = vrot.lane.b32.xlu0 %v6719_v13, %s7004_s5 }
0x1e19   :  { %v2385_v17 = vpop.permute.xlu0 %2384 }
0x1e1a   :  { %v2387_v18 = vmul.f32 %v6717_v3, %v2385_v17  ;;  %v2658_v3 = vld [vmem:[#allocation3 + $0xc] sm:$0x3] }
0x1e1c   :  { %2389 = vrot.lane.b32.xlu1 %v2387_v18, %s7005_s21  ;;  %v2652_v18 = vld [vmem:[#allocation3] sm:$0x3] }
0x1e8e   :  { %v2390_v19 = vpop.permute.xlu1 %2389 }
0x1e8f   :  { %6171 = vmatmul.mubr.msk.f32.vlgmr.msra.gmra.mrb[14].mxu1 %vm101_vm1, %v2390_v19 }
0x1e90   :  { %6508 = vmatpush3.bf16.msra.mxu1 %v7247_v62  ;;  %6190 = vmatprep.mubr.msk.f32.mxu1 %vm7002_vm0, %v7003_v12 }
0x1e91   :  { %6509 = vmatprep.subr.bf16.mxu1 %v7001_v6 }
0x1e94   :  { %6511 = vmatpush3.bf16.msra.mxu1 %v7253_v1 }
0x1e95   :  { %6188 = vmatprep.subr.mxu1 %v7003_v12 }
0x1e98   :  { %6189 = vmatpush3.msra.mxu1 %v7261_v2 }
0x1e99   :  { %6522 = vmatprep.subr.bf16.mxu1 %v7001_v6 }
0x1f62   :  { %v2459_v15 = vpop.f32.mrb[14].mxu1 }
0x1f63   :  { %v2460_v22 = vadd.f32 %v7202_v21, %v2459_v15  ;;  %v6172_v20 = vpop.f32.mrb[15].mxu1 }
0x1f65   :  { %v2463_v24 = vsel %vm451_vm3, %v2460_v22, -inf }
0x1f66   :  { %2464 = vmax.xlane.f32.xlu0 %v2463_v24 }
0x1ff3   :  { %v2465_v25 = vpop.xlane.xlu0 %2464 }
0x1ff4   :  { %v2466_v26 = vsub.f32 %v2460_v22, %v2465_v25  ;;  %v2654_v22 = vld [vmem:[#allocation3 + $0x4] sm:$0x3] }
0x1ff6   :  { %v2467_v9 = vmul.f32 1.442695, %v2466_v26 }
0x1ff8   :  { %6720 = vpow2.f32 %v2467_v9 }
0x2002   :  { %v6721_v27 = vpop.eup %6720 }
0x2003   :  { %v2469_v28 = vsel %vm451_vm3, %v6721_v27, 0.0 }
0x2004   :  { %2470 = vadd.xlane.f32.xlu1 %v2469_v28 }
0x2091   :  { %v2471_v30 = vpop.xlane.xlu1 %2470 }
0x2092   :  { %6722 = vlog2.f32 %v2471_v30 }
0x209c   :  { %v6723_v2 = vpop.eup %6722 }
0x209d   :  { %v2473_v31 = vmul.f32 0.6931472, %v6723_v2 }
0x209f   :  { %v2474_v32 = vsub.f32 %v2466_v26, %v2473_v31 }
0x20a1   :  { %v2475_v33 = vsel %vm451_vm3, %v2474_v32, -inf  ;;  %5706 = vst.msk [vmem:[%s8426_s11 + $0x6] sm:$0x3] %vm451_vm3, %v2474_v32 }
0x20a2   :  { %2476 = vmax.xlane.f32.xlu0 %v2475_v33 }
0x212f   :  { %v2477_v21 = vpop.xlane.xlu0 %2476 }
0x2130   :  { %vm2478_vm7 = vcmp.ge.f32.partialorder %v2474_v32, %v2477_v21 }
0x2131   :  { %v2479_v34 = vsel %vm2478_vm7, %v7213_v40, 9 }
0x2132   :  { %v2480_v36 = vsel %vm451_vm3, %v2479_v34, 2147483647 }
0x2133   :  { %v2482_v37 = vshra.s32 %v2480_v36, 16  ;;  %v2481_v41 = vand.u32 65535, %v2480_v36 }
0x2135   :  { %v2484_v38 = vcvt.s32.f32 %v2482_v37  ;;  %v2483_v43 = vcvt.s32.f32 %v2481_v41 }
0x2137   :  { %2485 = vmin.xlane.f32.xlu0 %v2484_v38 }
0x21c4   :  { %v2486_v42 = vpop.xlane.xlu0 %2485 }
0x21c5   :  { %vm2487_vm10 = vcmp.eq.f32.partialorder %v2484_v38, %v2486_v42  ;;  %v2492_v45 = vcvt.f32.s32 %v2486_v42 }
0x21c6   :  { %v2488_v44 = vsel %vm2487_vm10, %v2483_v43, inf }
0x21c7   :  { %2489 = vmin.xlane.f32.xlu1 %v2488_v44  ;;  %v2493_v47 = vshll.u32 %v2492_v45, 16 }
0x2254   :  { %v2490_v46 = vpop.xlane.xlu1 %2489 }
0x2255   :  { %v2491_v48 = vcvt.f32.s32 %v2490_v46 }
0x2257   :  { %v2494_v49 = vadd.s32 %v2493_v47, %v2491_v48  ;;  %v2961_v48 = vld [vmem:[#allocation2 + $0x8] sm:$0x3] }
0x2259   :  { %vm2495_vm13 = vcmp.eq.s32.totalorder %v7213_v40, %v2494_v49 }
0x225a   :  { %v5700_v50 = vsel %vm2495_vm13, 1.0, %v7003_v12 }
0x225b   :  { %6178 = vmatmul.mubr.msk.f32.vlgmr.msra.gmra.mrb[20].mxu0 %vm487_vm9, %v5700_v50 }
0x225c   :  { %6515 = vmatpush3.bf16.msra.mxu0 %v7300_v11 }
0x225d   :  { %6516 = vmatprep.subr.bf16.mxu0 %v7001_v6 }
0x232e   :  { %v2567_v54 = vpop.f32.mrb[20].mxu0 }
0x232f   :  { %2573 = vrot.lane.b32.xlu0 %v2567_v54, %s7005_s21  ;;  %v6179_v55 = vpop.f32.mrb[21].mxu0 }
0x23a1   :  { %v2574_v57 = vpop.permute.xlu0 %2573 }
0x23a2   :  { %v2576_v58 = vsel %vm101_vm1, %v2390_v19, %v2574_v57  ;;  %v2653_v19 = vld [vmem:[#allocation3 + $0x2] sm:$0x3] }
0x23a3   :  { %6191 = vmatmul.mubr.msk.f32.vlgmr.msra.gmra.mrb[16].mxu1 %vm267_vm2, %v2576_v58 }
0x23a4   :  { %6524 = vmatpush3.bf16.msra.mxu1 %v7183_v14  ;;  %6221 = vmatprep.mubr.msk.f32.mxu1 %vm7002_vm0, %v7003_v12 }
0x23a5   :  { %6525 = vmatprep.subr.bf16.mxu1 %v7001_v6 }
0x23a8   :  { %6527 = vmatpush3.bf16.msra.mxu1 %v7189_v16 }
0x23a9   :  { %6532 = vmatprep.subr.bf16.mxu1 %v7001_v6 }
0x2476   :  { %v2646_v59 = vpop.f32.mrb[16].mxu1 }
0x2477   :  { %2651 = vst.msk [vmem:[#allocation3 + $0x6] sm:$0x3] %vm233_vm11, %v2646_v59  ;;  %2661 = vrot.lane.b32.xlu1 %v2646_v59, %s7007_s28  ;;  %v6192_v39 = vpop.f32.mrb[17].mxu1 }
0x247e   :  { %v2655_v24 = vld [vmem:[#allocation3 + $0x6] sm:$0x3] }
0x24e9   :  { %v2662_v5 = vpop.permute.xlu1 %2661 }
0x24ea   :  { %v2668_v7 = vadd.f32 %v2662_v5, %v2656_v61  ;;  %v2669_v8 = vadd.f32 %v2662_v5, %v2657_v63  ;;  %v2670_v13 = vadd.f32 %v2662_v5, %v2658_v3  ;;  %v2671_v17 = vadd.f32 %v2662_v5, %v2659_v4 }
0x24eb   :  { %v2664_v15 = vadd.f32 %v2662_v5, %v2652_v18  ;;  %v2665_v20 = vadd.f32 %v2662_v5, %v2653_v19  ;;  %v2666_v25 = vadd.f32 %v2662_v5, %v2654_v22  ;;  %v2667_v26 = vadd.f32 %v2662_v5, %v2655_v24  ;;  %v7563_v19 = vld [vmem:[%s8425_s7] ss:$0 sm:$0xff] }
0x24ec   :  { %6724 = vtanh.f32 %v2668_v7 }
0x24ed   :  { %6726 = vtanh.f32 %v2669_v8 }
0x24ee   :  { %6728 = vtanh.f32 %v2670_v13 }
0x24ef   :  { %6730 = vtanh.f32 %v2671_v17 }
0x24f0   :  { %6732 = vtanh.f32 %v2664_v15 }
0x24f1   :  { %6734 = vtanh.f32 %v2665_v20 }
0x24f2   :  { %6736 = vtanh.f32 %v2666_v25 }
0x24f3   :  { %6738 = vtanh.f32 %v2667_v26 }
0x24f6   :  { %v6725_v9 = vpop.eup %6724 }
0x24f7   :  { %v6727_v27 = vpop.eup %6726 }
0x24f8   :  { %v6729_v28 = vpop.eup %6728  ;;  %v2705_v2 = vcombine.low %v6725_v9, %v6727_v27 }
0x24f9   :  { %v6731_v30 = vpop.eup %6730 }
0x24fa   :  { %v6733_v31 = vpop.eup %6732  ;;  %v2706_v32 = vcombine.low %v6729_v28, %v6731_v30  ;;  %v2713_v37 = vrot.slane %v2705_v2, %v7113_v23 }
0x24fb   :  { %v6735_v33 = vpop.eup %6734 }
0x24fc   :  { %v6737_v21 = vpop.eup %6736  ;;  %v2688_v34 = vcombine.low %v6733_v31, %v6735_v33  ;;  %v2720_v38 = vrot.slane %v2706_v32, %v7113_v23 }
0x24fd   :  { %v6739_v36 = vpop.eup %6738 }
0x24fe   :  { %v2689_v41 = vcombine.low %v6737_v21, %v6739_v36  ;;  %v2696_v42 = vrot.slane %v2688_v34, %v7113_v23  ;;  %v2721_v44 = vcombine.low %v2713_v37, %v2720_v38 }
0x2500   :  { %v2703_v43 = vrot.slane %v2689_v41, %v7113_v23 }
0x2502   :  { %v2704_v45 = vcombine.low %v2696_v42, %v2703_v43 }
0x2504   :  { %6197 = vmatprep.mubr.msk.f32.mxu0 %vm715_vm12, %v2704_v45 }
0x2505   :  { %6198 = vmatmul.mubr.msk.f32.vlgmr.msra.gmra.mrb[22].mxu0 %vm715_vm12, %v2721_v44 }
0x2506   :  { %6518 = vmatpush3.bf16.msra.mxu0 %v7124_v29  ;;  %6210 = vmatprep.mubr.msk.f32.mxu0 %vm7002_vm0, %v7003_v12 }
0x2507   :  { %6519 = vmatprep.subr.bf16.mxu0 %v7001_v6 }
0x250a   :  { %6521 = vmatpush3.bf16.msra.mxu0 %v7134_v35 }
0x250b   :  { %6208 = vmatprep.subr.mxu0 %v7003_v12 }
0x250e   :  { %6209 = vmatpush3.msra.mxu0 %v7458_v0 }
0x250f   :  { %6211 = vmatmul.mubr.msk.f32.vlgmr.msra.gmra.mrb[24].mxu0 %vm267_vm2, %v2576_v58  ;;  %6528 = vmatprep.subr.bf16.mxu0 %v7001_v6 }
0x2510   :  { %6531 = vmatpush3.bf16.msk.msra.mxu0 %vm7225_vm8, %v7223_v51  ;;  %6228 = vmatprep.mubr.msk.f32.mxu0 %vm7002_vm0, %v7003_v12 }
0x2511   :  { %6539 = vmatprep.subr.bf16.mxu0 %v7300_v11 }
0x25d8   :  { %v6199_v46 = vpop.f32.mrb[22].mxu0 }
0x25d9   :  { %v7536_v47 = vpop.f32.mrb[23].mxu0 }
0x25e2   :  { %v3028_v49 = vpop.f32.mrb[24].mxu0 }
0x25e3   :  { %v3032_v50 = vadd.f32 %v3028_v49, %v2961_v48  ;;  %v6212_v54 = vpop.f32.mrb[25].mxu0 }
0x25e5   :  { %6740 = vtanh.f32 %v3032_v50  ;;  %v5716_v57 = vmul.f32 -1.442695, %v3032_v50 }
0x25e7   :  { %6742 = vpow2.f32 %v5716_v57 }
0x25ef   :  { %v6741_v55 = vpop.eup %6740 }
0x25f0   :  { %3042 = vrot.lane.b32.xlu1 %v6741_v55, %s7004_s5 }
0x25f1   :  { %v6743_v58 = vpop.eup %6742 }
0x25f2   :  { %v3036_v59 = vadd.f32 1.0, %v6743_v58 }
0x25f4   :  { %6744 = vrcp.f32 %v3036_v59 }
0x25fe   :  { %v6745_v39 = vpop.eup %6744 }
0x25ff   :  { %v3040_v3 = vmul.f32 %v6745_v39, %v7475_v10  ;;  %v7556_v10 = vld [vmem:[%s8428_s9 + $0x20] sm:$0xff] }
0x2662   :  { %v3043_v61 = vpop.permute.xlu1 %3042 }
0x2663   :  { %v3045_v63 = vmul.f32 %v6745_v39, %v3043_v61  ;;  %v3326_v61 = vld [vmem:[#allocation3 + $0xa] sm:$0x3] }
0x2665   :  { %3047 = vrot.lane.b32.xlu0 %v3045_v63, %s7005_s21  ;;  %v3327_v63 = vld [vmem:[#allocation3 + $0xc] sm:$0x3] }
0x26d7   :  { %v3048_v4 = vpop.permute.xlu0 %3047 }
0x26d8   :  { %v7541_v5 = vadd.f32 %v3048_v4, %v3040_v3  ;;  %v3328_v3 = vld [vmem:[#allocation3 + $0xe] sm:$0x3] }
0x26da   :  { %6746 = vtanh.f32 %v7541_v5 }
0x26e4   :  { %v6747_v7 = vpop.eup %6746 }
0x26e5   :  { %3053 = vrot.lane.b32.xlu1 %v6747_v7, %s7004_s5 }
0x2757   :  { %v3054_v8 = vpop.permute.xlu1 %3053 }
0x2758   :  { %v3056_v13 = vmul.f32 %v6745_v39, %v3054_v8 }
0x275a   :  { %3058 = vrot.lane.b32.xlu0 %v3056_v13, %s7005_s21 }
0x27cc   :  { %v3059_v17 = vpop.permute.xlu0 %3058 }
0x27cd   :  { %6222 = vmatmul.mubr.msk.f32.vlgmr.msra.gmra.mrb[18].mxu1 %vm101_vm1, %v3059_v17 }
0x27ce   :  { %6534 = vmatpush3.bf16.msra.mxu1 %v7247_v62  ;;  %6241 = vmatprep.mubr.msk.f32.mxu1 %vm7002_vm0, %v7003_v12 }
0x27cf   :  { %6535 = vmatprep.subr.bf16.mxu1 %v7001_v6 }
0x27d2   :  { %6537 = vmatpush3.bf16.msra.mxu1 %v7253_v1 }
0x27d3   :  { %6239 = vmatprep.subr.mxu1 %v7003_v12 }
0x27d6   :  { %6240 = vmatpush3.msra.mxu1 %v7556_v10 }
0x27d7   :  { %6548 = vmatprep.subr.bf16.mxu1 %v7001_v6 }
0x28a0   :  { %v3128_v18 = vpop.f32.mrb[18].mxu1 }
0x28a1   :  { %v3129_v15 = vadd.f32 %v7563_v19, %v3128_v18  ;;  %v6223_v22 = vpop.f32.mrb[19].mxu1 }
0x28a2   :  { %v3322_v22 = vld [vmem:[#allocation3 + $0x2] sm:$0x3] }
0x28a3   :  { %v3132_v20 = vsel %vm451_vm3, %v3129_v15, -inf }
0x28a4   :  { %3133 = vmax.xlane.f32.xlu1 %v3132_v20 }
0x2931   :  { %v3134_v24 = vpop.xlane.xlu1 %3133 }
0x2932   :  { %v3135_v25 = vsub.f32 %v3129_v15, %v3134_v24  ;;  %v3321_v15 = vld [vmem:[#allocation3] sm:$0x3]  ;;  %v3323_v24 = vld [vmem:[#allocation3 + $0x4] sm:$0x3] }
0x2934   :  { %v3136_v26 = vmul.f32 1.442695, %v3135_v25 }
0x2936   :  { %6748 = vpow2.f32 %v3136_v26  ;;  %v3324_v26 = vld [vmem:[#allocation3 + $0x6] sm:$0x3] }
0x2940   :  { %v6749_v9 = vpop.eup %6748 }
0x2941   :  { %v3138_v27 = vsel %vm451_vm3, %v6749_v9, 0.0 }
0x2942   :  { %3139 = vadd.xlane.f32.xlu0 %v3138_v27 }
0x29cf   :  { %v3140_v28 = vpop.xlane.xlu0 %3139 }
0x29d0   :  { %6750 = vlog2.f32 %v3140_v28 }
0x29da   :  { %v6751_v30 = vpop.eup %6750 }
0x29db   :  { %v3142_v2 = vmul.f32 0.6931472, %v6751_v30 }
0x29dd   :  { %v3143_v31 = vsub.f32 %v3135_v25, %v3142_v2 }
0x29df   :  { %v3144_v32 = vsel %vm451_vm3, %v3143_v31, -inf  ;;  %5724 = vst.msk [vmem:[%s8426_s11 + $0x8] sm:$0x3] %vm451_vm3, %v3143_v31 }
0x29e0   :  { %3145 = vmax.xlane.f32.xlu0 %v3144_v32 }
0x2a6d   :  { %v3146_v33 = vpop.xlane.xlu0 %3145 }
0x2a6e   :  { %vm3147_vm14 = vcmp.ge.f32.partialorder %v3143_v31, %v3146_v33 }
0x2a6f   :  { %v3148_v21 = vsel %vm3147_vm14, %v7213_v40, 9 }
0x2a70   :  { %v3149_v34 = vsel %vm451_vm3, %v3148_v21, 2147483647 }
0x2a71   :  { %v3151_v36 = vshra.s32 %v3149_v34, 16  ;;  %v3150_v38 = vand.u32 65535, %v3149_v34 }
0x2a73   :  { %v3153_v37 = vcvt.s32.f32 %v3151_v36  ;;  %v3152_v42 = vcvt.s32.f32 %v3150_v38 }
0x2a75   :  { %3154 = vmin.xlane.f32.xlu1 %v3153_v37 }
0x2b02   :  { %v3155_v41 = vpop.xlane.xlu1 %3154 }
0x2b03   :  { %vm3156_vm15 = vcmp.eq.f32.partialorder %v3153_v37, %v3155_v41  ;;  %v3161_v44 = vcvt.f32.s32 %v3155_v41 }
0x2b04   :  { %v3157_v43 = vsel %vm3156_vm15, %v3152_v42, inf }
0x2b05   :  { %3158 = vmin.xlane.f32.xlu0 %v3157_v43  ;;  %v3162_v46 = vshll.u32 %v3161_v44, 16 }
0x2b92   :  { %v3159_v45 = vpop.xlane.xlu0 %3158 }
0x2b93   :  { %v3160_v48 = vcvt.f32.s32 %v3159_v45 }
0x2b95   :  { %v3163_v49 = vadd.s32 %v3162_v46, %v3160_v48 }
0x2b97   :  { %vm3164_vm4 = vcmp.eq.s32.totalorder %v7213_v40, %v3163_v49 }
0x2b98   :  { %v5718_v50 = vsel %vm3164_vm4, 1.0, %v7003_v12 }
0x2b99   :  { %6229 = vmatmul.mubr.msk.f32.vlgmr.msra.gmra.mrb[26].mxu0 %vm487_vm9, %v5718_v50 }
0x2b9a   :  { %6541 = vmatpush3.bf16.msra.mxu0 %v7300_v11 }
0x2b9b   :  { %6542 = vmatprep.subr.bf16.mxu0 %v7001_v6 }
0x2c6c   :  { %v3236_v54 = vpop.f32.mrb[26].mxu0 }
0x2c6d   :  { %3242 = vrot.lane.b32.xlu1 %v3236_v54, %s7005_s21  ;;  %v6230_v55 = vpop.f32.mrb[27].mxu0  ;;  %v3630_v54 = vld [vmem:[#allocation2 + $0xa] sm:$0x3] }
0x2cdf   :  { %v3243_v57 = vpop.permute.xlu1 %3242 }
0x2ce0   :  { %v3245_v58 = vsel %vm101_vm1, %v3059_v17, %v3243_v57 }
0x2ce1   :  { %6242 = vmatmul.mubr.msk.f32.vlgmr.msra.gmra.mrb[20].mxu1 %vm267_vm2, %v3245_v58 }
0x2ce2   :  { %6550 = vmatpush3.bf16.msra.mxu1 %v7183_v14  ;;  %6272 = vmatprep.mubr.msk.f32.mxu1 %vm7002_vm0, %v7003_v12 }
0x2ce3   :  { %6551 = vmatprep.subr.bf16.mxu1 %v7001_v6 }
0x2ce6   :  { %6553 = vmatpush3.bf16.msra.mxu1 %v7189_v16 }
0x2ce7   :  { %6558 = vmatprep.subr.bf16.mxu1 %v7001_v6 }
0x2db4   :  { %v3315_v59 = vpop.f32.mrb[20].mxu1 }
0x2db5   :  { %3320 = vst.msk [vmem:[#allocation3 + $0x8] sm:$0x3] %vm233_vm11, %v3315_v59  ;;  %3330 = vrot.lane.b32.xlu0 %v3315_v59, %s7007_s28  ;;  %v6243_v39 = vpop.f32.mrb[21].mxu1 }
0x2dbc   :  { %v3325_v7 = vld [vmem:[#allocation3 + $0x8] sm:$0x3] }
0x2e27   :  { %v3331_v4 = vpop.permute.xlu0 %3330 }
0x2e28   :  { %v3337_v8 = vadd.f32 %v3331_v4, %v3325_v7  ;;  %v3338_v13 = vadd.f32 %v3331_v4, %v3326_v61  ;;  %v3339_v17 = vadd.f32 %v3331_v4, %v3327_v63  ;;  %v3340_v18 = vadd.f32 %v3331_v4, %v3328_v3 }
0x2e29   :  { %v3333_v20 = vadd.f32 %v3331_v4, %v3321_v15  ;;  %v3334_v25 = vadd.f32 %v3331_v4, %v3322_v22  ;;  %v3335_v9 = vadd.f32 %v3331_v4, %v3323_v24  ;;  %v3336_v27 = vadd.f32 %v3331_v4, %v3324_v26 }
0x2e2a   :  { %6752 = vtanh.f32 %v3337_v8 }
0x2e2b   :  { %6754 = vtanh.f32 %v3338_v13 }
0x2e2c   :  { %6756 = vtanh.f32 %v3339_v17 }
0x2e2d   :  { %6758 = vtanh.f32 %v3340_v18 }
0x2e2e   :  { %6760 = vtanh.f32 %v3333_v20 }
0x2e2f   :  { %6762 = vtanh.f32 %v3334_v25 }
0x2e30   :  { %6764 = vtanh.f32 %v3335_v9 }
0x2e31   :  { %6766 = vtanh.f32 %v3336_v27 }
0x2e34   :  { %v6753_v28 = vpop.eup %6752 }
0x2e35   :  { %v6755_v30 = vpop.eup %6754 }
0x2e36   :  { %v6757_v2 = vpop.eup %6756  ;;  %v3374_v32 = vcombine.low %v6753_v28, %v6755_v30 }
0x2e37   :  { %v6759_v31 = vpop.eup %6758 }
0x2e38   :  { %v6761_v33 = vpop.eup %6760  ;;  %v3375_v21 = vcombine.low %v6757_v2, %v6759_v31  ;;  %v3382_v41 = vrot.slane %v3374_v32, %v7113_v23 }
0x2e39   :  { %v6763_v34 = vpop.eup %6762 }
0x2e3a   :  { %v6765_v36 = vpop.eup %6764  ;;  %v3357_v37 = vcombine.low %v6761_v33, %v6763_v34  ;;  %v3389_v42 = vrot.slane %v3375_v21, %v7113_v23 }
0x2e3b   :  { %v6767_v38 = vpop.eup %6766 }
0x2e3c   :  { %v3358_v43 = vcombine.low %v6765_v36, %v6767_v38  ;;  %v3365_v44 = vrot.slane %v3357_v37, %v7113_v23  ;;  %v3390_v46 = vcombine.low %v3382_v41, %v3389_v42 }
0x2e3e   :  { %v3372_v45 = vrot.slane %v3358_v43, %v7113_v23 }
0x2e40   :  { %v3373_v48 = vcombine.low %v3365_v44, %v3372_v45 }
0x2e42   :  { %6248 = vmatprep.mubr.msk.f32.mxu0 %vm715_vm12, %v3373_v48 }
0x2e43   :  { %6249 = vmatmul.mubr.msk.f32.vlgmr.msra.gmra.mrb[28].mxu0 %vm715_vm12, %v3390_v46 }
0x2e44   :  { %6544 = vmatpush3.bf16.msra.mxu0 %v7124_v29  ;;  %6261 = vmatprep.mubr.msk.f32.mxu0 %vm7002_vm0, %v7003_v12 }
0x2e45   :  { %6545 = vmatprep.subr.bf16.mxu0 %v7001_v6 }
0x2e48   :  { %6547 = vmatpush3.bf16.msra.mxu0 %v7134_v35 }
0x2e49   :  { %6259 = vmatprep.subr.mxu0 %v7003_v12 }
0x2e4c   :  { %6260 = vmatpush3.msra.mxu0 %v7458_v0 }
0x2e4d   :  { %6262 = vmatmul.mubr.msk.f32.vlgmr.msra.gmra.mrb[30].mxu0 %vm267_vm2, %v3245_v58  ;;  %6554 = vmatprep.subr.bf16.mxu0 %v7001_v6 }
0x2e4e   :  { %6557 = vmatpush3.bf16.msk.msra.mxu0 %vm7225_vm8, %v7223_v51  ;;  %6279 = vmatprep.mubr.msk.f32.mxu0 %vm7002_vm0, %v7003_v12 }
0x2e4f   :  { %6565 = vmatprep.subr.bf16.mxu0 %v7300_v11 }
0x2f16   :  { %v7612_v49 = vpop.f32.mrb[28].mxu0 }
0x2f17   :  { %v7614_v50 = vpop.f32.mrb[29].mxu0 }
0x2f20   :  { %v3697_v55 = vpop.f32.mrb[30].mxu0 }
0x2f21   :  { %v3701_v57 = vadd.f32 %v3697_v55, %v3630_v54  ;;  %v6263_v59 = vpop.f32.mrb[31].mxu0 }
0x2f23   :  { %6768 = vtanh.f32 %v3701_v57  ;;  %v5734_v39 = vmul.f32 -1.442695, %v3701_v57 }
0x2f25   :  { %6770 = vpow2.f32 %v5734_v39 }
0x2f2d   :  { %v6769_v58 = vpop.eup %6768 }
0x2f2e   :  { %3711 = vrot.lane.b32.xlu1 %v6769_v58, %s7004_s5 }
0x2f2f   :  { %v6771_v61 = vpop.eup %6770 }
0x2f30   :  { %v3705_v63 = vadd.f32 1.0, %v6771_v61 }
0x2f32   :  { %6772 = vrcp.f32 %v3705_v63 }
0x2f3c   :  { %v6773_v3 = vpop.eup %6772 }
0x2f3d   :  { %v3709_v8 = vmul.f32 %v6773_v3, %v7541_v5 }
0x2fa0   :  { %v3712_v4 = vpop.permute.xlu1 %3711 }
0x2fa1   :  { %v3714_v7 = vmul.f32 %v6773_v3, %v3712_v4 }
0x2fa3   :  { %3716 = vrot.lane.b32.xlu1 %v3714_v7, %s7005_s21 }
0x3015   :  { %v3717_v13 = vpop.permute.xlu1 %3716 }
0x3016   :  { %v7619_v17 = vadd.f32 %v3717_v13, %v3709_v8  ;;  %v3990_v8 = vld [vmem:[#allocation3] sm:$0x3]  ;;  %v3991_v13 = vld [vmem:[#allocation3 + $0x2] sm:$0x3] }
0x3018   :  { %6774 = vtanh.f32 %v7619_v17 }
0x3022   :  { %v6775_v18 = vpop.eup %6774 }
0x3023   :  { %3722 = vrot.lane.b32.xlu0 %v6775_v18, %s7004_s5  ;;  %v3992_v18 = vld [vmem:[#allocation3 + $0x4] sm:$0x3] }
0x3095   :  { %v3723_v15 = vpop.permute.xlu0 %3722 }
0x3096   :  { %v3725_v22 = vmul.f32 %v6773_v3, %v3723_v15 }
0x3098   :  { %3727 = vrot.lane.b32.xlu1 %v3725_v22, %s7005_s21  ;;  %v3993_v22 = vld [vmem:[#allocation3 + $0x6] sm:$0x3] }
0x310a   :  { %v3728_v20 = vpop.permute.xlu1 %3727 }
0x310b   :  { %6273 = vmatmul.mubr.msk.f32.vlgmr.msra.gmra.mrb[22].mxu1 %vm101_vm1, %v3728_v20 }
0x310c   :  { %6560 = vmatpush3.bf16.msra.mxu1 %v7247_v62  ;;  %6292 = vmatprep.mubr.msk.f32.mxu1 %vm7002_vm0, %v7003_v12 }
0x310d   :  { %6561 = vmatprep.subr.bf16.mxu1 %v7001_v6 }
0x3110   :  { %6563 = vmatpush3.bf16.msra.mxu1 %v7253_v1 }
0x3111   :  { %6290 = vmatprep.subr.mxu1 %v7003_v12 }
0x3114   :  { %6291 = vmatpush3.msra.mxu1 %v7556_v10 }
0x3115   :  { %6574 = vmatprep.subr.bf16.mxu1 %v7001_v6 }
0x31de   :  { %v3797_v5 = vpop.f32.mrb[22].mxu1 }
0x31df   :  { %v3798_v24 = vadd.f32 %v7563_v19, %v3797_v5  ;;  %v6274_v25 = vpop.f32.mrb[23].mxu1 }
0x31e0   :  { %v3994_v25 = vld [vmem:[#allocation3 + $0x8] sm:$0x3] }
0x31e1   :  { %v3801_v26 = vsel %vm451_vm3, %v3798_v24, -inf }
0x31e2   :  { %3802 = vmax.xlane.f32.xlu0 %v3801_v26  ;;  %v3996_v26 = vld [vmem:[#allocation3 + $0xc] sm:$0x3] }
0x326f   :  { %v3803_v9 = vpop.xlane.xlu0 %3802 }
0x3270   :  { %v3804_v27 = vsub.f32 %v3798_v24, %v3803_v9 }
0x3272   :  { %v3805_v28 = vmul.f32 1.442695, %v3804_v27 }
0x3274   :  { %6776 = vpow2.f32 %v3805_v28 }
0x327e   :  { %v6777_v30 = vpop.eup %6776 }
0x327f   :  { %v3807_v2 = vsel %vm451_vm3, %v6777_v30, 0.0 }
0x3280   :  { %3808 = vadd.xlane.f32.xlu1 %v3807_v2 }
0x330d   :  { %v3809_v31 = vpop.xlane.xlu1 %3808 }
0x330e   :  { %6778 = vlog2.f32 %v3809_v31 }
0x3318   :  { %v6779_v32 = vpop.eup %6778 }
0x3319   :  { %v3811_v33 = vmul.f32 0.6931472, %v6779_v32 }
0x331b   :  { %v3812_v21 = vsub.f32 %v3804_v27, %v3811_v33  ;;  %v3997_v27 = vld [vmem:[#allocation3 + $0xe] sm:$0x3] }
0x331d   :  { %v3813_v34 = vsel %vm451_vm3, %v3812_v21, -inf  ;;  %5742 = vst.msk [vmem:[%s8426_s11 + $0xa] sm:$0x3] %vm451_vm3, %v3812_v21 }
0x331e   :  { %3814 = vmax.xlane.f32.xlu0 %v3813_v34 }
0x33ab   :  { %v3815_v36 = vpop.xlane.xlu0 %3814 }
0x33ac   :  { %vm3816_vm5 = vcmp.ge.f32.partialorder %v3812_v21, %v3815_v36 }
0x33ad   :  { %v3817_v37 = vsel %vm3816_vm5, %v7213_v40, 9 }
0x33ae   :  { %v3818_v38 = vsel %vm451_vm3, %v3817_v37, 2147483647 }
0x33af   :  { %v3820_v41 = vshra.s32 %v3818_v38, 16  ;;  %v3819_v43 = vand.u32 65535, %v3818_v38 }
0x33b1   :  { %v3822_v42 = vcvt.s32.f32 %v3820_v41  ;;  %v3821_v45 = vcvt.s32.f32 %v3819_v43 }
0x33b3   :  { %3823 = vmin.xlane.f32.xlu0 %v3822_v42 }
0x3440   :  { %v3824_v44 = vpop.xlane.xlu0 %3823 }
0x3441   :  { %vm3825_vm6 = vcmp.eq.f32.partialorder %v3822_v42, %v3824_v44  ;;  %v3830_v48 = vcvt.f32.s32 %v3824_v44 }
0x3442   :  { %v3826_v46 = vsel %vm3825_vm6, %v3821_v45, inf }
0x3443   :  { %3827 = vmin.xlane.f32.xlu1 %v3826_v46  ;;  %v3831_v55 = vshll.u32 %v3830_v48, 16 }
0x34d0   :  { %v3828_v54 = vpop.xlane.xlu1 %3827 }
0x34d1   :  { %v3829_v57 = vcvt.f32.s32 %v3828_v54 }
0x34d3   :  { %v3832_v59 = vadd.s32 %v3831_v55, %v3829_v57 }
0x34d5   :  { %vm3833_vm7 = vcmp.eq.s32.totalorder %v7213_v40, %v3832_v59 }
0x34d6   :  { %v5736_v58 = vsel %vm3833_vm7, 1.0, %v7003_v12 }
0x34d7   :  { %6280 = vmatmul.mubr.msk.f32.vlgmr.msra.gmra.mrb[32].mxu0 %vm487_vm9, %v5736_v58 }
0x34d8   :  { %6567 = vmatpush3.bf16.msra.mxu0 %v7300_v11 }
0x34d9   :  { %6568 = vmatprep.subr.bf16.mxu0 %v7001_v6 }
0x35aa   :  { %v3905_v39 = vpop.f32.mrb[32].mxu0 }
0x35ab   :  { %3911 = vrot.lane.b32.xlu0 %v3905_v39, %s7005_s21  ;;  %v6281_v61 = vpop.f32.mrb[33].mxu0 }
0x361d   :  { %v3912_v63 = vpop.permute.xlu0 %3911 }
0x361e   :  { %v3914_v3 = vsel %vm101_vm1, %v3728_v20, %v3912_v63  ;;  %v4299_v63 = vld [vmem:[#allocation2 + $0xc] sm:$0x3] }
0x361f   :  { %6293 = vmatmul.mubr.msk.f32.vlgmr.msra.gmra.mrb[24].mxu1 %vm267_vm2, %v3914_v3 }
0x3620   :  { %6576 = vmatpush3.bf16.msra.mxu1 %v7183_v14  ;;  %6323 = vmatprep.mubr.msk.f32.mxu1 %vm7002_vm0, %v7003_v12 }
0x3621   :  { %6577 = vmatprep.subr.bf16.mxu1 %v7001_v6 }
0x3624   :  { %6579 = vmatpush3.bf16.msra.mxu1 %v7189_v16 }
0x3625   :  { %6584 = vmatprep.subr.bf16.mxu1 %v7001_v6 }
0x36f2   :  { %v3984_v4 = vpop.f32.mrb[24].mxu1 }
0x36f3   :  { %3989 = vst.msk [vmem:[#allocation3 + $0xa] sm:$0x3] %vm233_vm11, %v3984_v4  ;;  %3999 = vrot.lane.b32.xlu1 %v3984_v4, %s7007_s28  ;;  %v6294_v7 = vpop.f32.mrb[25].mxu1 }
0x36fa   :  { %v3995_v28 = vld [vmem:[#allocation3 + $0xa] sm:$0x3] }
0x3765   :  { %v4000_v15 = vpop.permute.xlu1 %3999 }
0x3766   :  { %v4002_v20 = vadd.f32 %v4000_v15, %v3990_v8  ;;  %v4003_v5 = vadd.f32 %v4000_v15, %v3991_v13  ;;  %v4004_v24 = vadd.f32 %v4000_v15, %v3992_v18  ;;  %v4005_v9 = vadd.f32 %v4000_v15, %v3993_v22 }
0x3767   :  { %v4006_v30 = vadd.f32 %v4000_v15, %v3994_v25  ;;  %v4007_v2 = vadd.f32 %v4000_v15, %v3995_v28  ;;  %v4008_v31 = vadd.f32 %v4000_v15, %v3996_v26  ;;  %v4009_v32 = vadd.f32 %v4000_v15, %v3997_v27 }
0x3768   :  { %6780 = vtanh.f32 %v4002_v20 }
0x3769   :  { %6782 = vtanh.f32 %v4003_v5 }
0x376a   :  { %6784 = vtanh.f32 %v4004_v24 }
0x376b   :  { %6786 = vtanh.f32 %v4005_v9 }
0x376c   :  { %6788 = vtanh.f32 %v4006_v30 }
0x376d   :  { %6790 = vtanh.f32 %v4007_v2 }
0x376e   :  { %6792 = vtanh.f32 %v4008_v31 }
0x376f   :  { %6794 = vtanh.f32 %v4009_v32 }
0x3772   :  { %v6781_v33 = vpop.eup %6780 }
0x3773   :  { %v6783_v21 = vpop.eup %6782 }
0x3774   :  { %v6785_v34 = vpop.eup %6784  ;;  %v4026_v36 = vcombine.low %v6781_v33, %v6783_v21 }
0x3775   :  { %v6787_v37 = vpop.eup %6786 }
0x3776   :  { %v6789_v38 = vpop.eup %6788  ;;  %v4027_v41 = vcombine.low %v6785_v34, %v6787_v37  ;;  %v4034_v42 = vrot.slane %v4026_v36, %v7113_v23 }
0x3777   :  { %v6791_v43 = vpop.eup %6790 }
0x3778   :  { %v6793_v44 = vpop.eup %6792  ;;  %v4041_v45 = vrot.slane %v4027_v41, %v7113_v23  ;;  %v4043_v46 = vcombine.low %v6789_v38, %v6791_v43 }
0x3779   :  { %v6795_v48 = vpop.eup %6794 }
0x377a   :  { %v4042_v54 = vcombine.low %v4034_v42, %v4041_v45  ;;  %v4044_v55 = vcombine.low %v6793_v44, %v6795_v48  ;;  %v4051_v57 = vrot.slane %v4043_v46, %v7113_v23 }
0x377c   :  { %6299 = vmatprep.mubr.msk.f32.mxu0 %vm715_vm12, %v4042_v54  ;;  %v4058_v59 = vrot.slane %v4044_v55, %v7113_v23 }
0x377e   :  { %v4059_v58 = vcombine.low %v4051_v57, %v4058_v59 }
0x3780   :  { %6300 = vmatmul.mubr.msk.f32.vlgmr.msra.gmra.mrb[34].mxu0 %vm715_vm12, %v4059_v58 }
0x3781   :  { %6570 = vmatpush3.bf16.msra.mxu0 %v7124_v29  ;;  %6312 = vmatprep.mubr.msk.f32.mxu0 %vm7002_vm0, %v7003_v12 }
0x3782   :  { %6571 = vmatprep.subr.bf16.mxu0 %v7001_v6 }
0x3785   :  { %6573 = vmatpush3.bf16.msra.mxu0 %v7134_v35 }
0x3786   :  { %6310 = vmatprep.subr.mxu0 %v7003_v12 }
0x3789   :  { %6311 = vmatpush3.msra.mxu0 %v7458_v0 }
0x378a   :  { %6313 = vmatmul.mubr.msk.f32.vlgmr.msra.gmra.mrb[36].mxu0 %vm267_vm2, %v3914_v3  ;;  %6580 = vmatprep.subr.bf16.mxu0 %v7001_v6 }
0x378b   :  { %6583 = vmatpush3.bf16.msk.msra.mxu0 %vm7225_vm8, %v7223_v51  ;;  %6330 = vmatprep.mubr.msk.f32.mxu0 %vm7002_vm0, %v7003_v12 }
0x378c   :  { %6591 = vmatprep.subr.bf16.mxu0 %v7300_v11 }
0x3853   :  { %v7680_v39 = vpop.f32.mrb[34].mxu0 }
0x3854   :  { %v7682_v61 = vpop.f32.mrb[35].mxu0 }
0x385d   :  { %v4366_v4 = vpop.f32.mrb[36].mxu0 }
0x385e   :  { %v4370_v0 = vadd.f32 %v4366_v4, %v4299_v63  ;;  %v6314_v7 = vpop.f32.mrb[37].mxu0 }
0x3860   :  { %6796 = vtanh.f32 %v4370_v0  ;;  %v5752_v8 = vmul.f32 -1.442695, %v4370_v0 }
0x3862   :  { %6798 = vpow2.f32 %v5752_v8 }
0x386a   :  { %v6797_v3 = vpop.eup %6796 }
0x386b   :  { %4380 = vrot.lane.b32.xlu1 %v6797_v3, %s7004_s5 }
0x386c   :  { %v6799_v13 = vpop.eup %6798 }
0x386d   :  { %v4374_v18 = vadd.f32 1.0, %v6799_v13 }
0x386f   :  { %6800 = vrcp.f32 %v4374_v18 }
0x3879   :  { %v6801_v15 = vpop.eup %6800 }
0x387a   :  { %v4378_v5 = vmul.f32 %v6801_v15, %v7619_v17 }
0x38dd   :  { %v4381_v22 = vpop.permute.xlu1 %4380 }
0x38de   :  { %v4383_v20 = vmul.f32 %v6801_v15, %v4381_v22 }
0x38e0   :  { %4385 = vrot.lane.b32.xlu0 %v4383_v20, %s7005_s21 }
0x3952   :  { %v4386_v24 = vpop.permute.xlu0 %4385 }
0x3953   :  { %v7687_v25 = vadd.f32 %v4386_v24, %v4378_v5  ;;  %v4659_v24 = vld [vmem:[#allocation3] sm:$0x3] }
0x3955   :  { %6802 = vtanh.f32 %v7687_v25 }
0x395f   :  { %v6803_v26 = vpop.eup %6802 }
0x3960   :  { %4391 = vrot.lane.b32.xlu1 %v6803_v26, %s7004_s5  ;;  %v4660_v26 = vld [vmem:[#allocation3 + $0x2] sm:$0x3] }
0x39d2   :  { %v4392_v9 = vpop.permute.xlu1 %4391 }
0x39d3   :  { %v4394_v27 = vmul.f32 %v6801_v15, %v4392_v9  ;;  %v4661_v9 = vld [vmem:[#allocation3 + $0x4] sm:$0x3] }
0x39d5   :  { %4396 = vrot.lane.b32.xlu0 %v4394_v27, %s7005_s21 }
0x3a47   :  { %v4397_v28 = vpop.permute.xlu0 %4396 }
0x3a48   :  { %6324 = vmatmul.mubr.msk.f32.vlgmr.msra.gmra.mrb[26].mxu1 %vm101_vm1, %v4397_v28 }
0x3a49   :  { %6586 = vmatpush3.bf16.msra.mxu1 %v7247_v62  ;;  %6343 = vmatprep.mubr.msk.f32.mxu1 %vm7002_vm0, %v7003_v12 }
0x3a4a   :  { %6587 = vmatprep.subr.bf16.mxu1 %v7001_v6 }
0x3a4d   :  { %6589 = vmatpush3.bf16.msra.mxu1 %v7253_v1 }
0x3a4e   :  { %6341 = vmatprep.subr.mxu1 %v7003_v12 }
0x3a51   :  { %6342 = vmatpush3.msra.mxu1 %v7556_v10 }
0x3a52   :  { %6600 = vmatprep.subr.bf16.mxu1 %v7001_v6 }
0x3b1b   :  { %v4466_v17 = vpop.f32.mrb[26].mxu1 }
0x3b1c   :  { %v4467_v30 = vadd.f32 %v7563_v19, %v4466_v17  ;;  %v6325_v2 = vpop.f32.mrb[27].mxu1 }
0x3b1d   :  { %v4663_v2 = vld [vmem:[#allocation3 + $0x8] sm:$0x3] }
0x3b1e   :  { %v4470_v31 = vsel %vm451_vm3, %v4467_v30, -inf }
0x3b1f   :  { %4471 = vmax.xlane.f32.xlu1 %v4470_v31 }
0x3bac   :  { %v4472_v32 = vpop.xlane.xlu1 %4471 }
0x3bad   :  { %v4473_v33 = vsub.f32 %v4467_v30, %v4472_v32  ;;  %v4664_v32 = vld [vmem:[#allocation3 + $0xa] sm:$0x3] }
0x3baf   :  { %v4474_v21 = vmul.f32 1.442695, %v4473_v33 }
0x3bb1   :  { %6804 = vpow2.f32 %v4474_v21 }
0x3bbb   :  { %v6805_v34 = vpop.eup %6804 }
0x3bbc   :  { %v4476_v36 = vsel %vm451_vm3, %v6805_v34, 0.0 }
0x3bbd   :  { %4477 = vadd.xlane.f32.xlu0 %v4476_v36 }
0x3c4a   :  { %v4478_v37 = vpop.xlane.xlu0 %4477 }
0x3c4b   :  { %6806 = vlog2.f32 %v4478_v37 }
0x3c55   :  { %v6807_v38 = vpop.eup %6806 }
0x3c56   :  { %v4480_v41 = vmul.f32 0.6931472, %v6807_v38 }
0x3c58   :  { %v4481_v42 = vsub.f32 %v4473_v33, %v4480_v41 }
0x3c5a   :  { %v4482_v43 = vsel %vm451_vm3, %v4481_v42, -inf  ;;  %5760 = vst.msk [vmem:[%s8426_s11 + $0xc] sm:$0x3] %vm451_vm3, %v4481_v42 }
0x3c5b   :  { %4483 = vmax.xlane.f32.xlu0 %v4482_v43 }
0x3ce8   :  { %v4484_v44 = vpop.xlane.xlu0 %4483 }
0x3ce9   :  { %vm4485_vm10 = vcmp.ge.f32.partialorder %v4481_v42, %v4484_v44 }
0x3cea   :  { %v4486_v45 = vsel %vm4485_vm10, %v7213_v40, 9 }
0x3ceb   :  { %v4487_v46 = vsel %vm451_vm3, %v4486_v45, 2147483647 }
0x3cec   :  { %v4489_v48 = vshra.s32 %v4487_v46, 16  ;;  %v4488_v55 = vand.u32 65535, %v4487_v46 }
0x3cee   :  { %v4491_v54 = vcvt.s32.f32 %v4489_v48  ;;  %v4490_v59 = vcvt.s32.f32 %v4488_v55 }
0x3cf0   :  { %4492 = vmin.xlane.f32.xlu1 %v4491_v54 }
0x3d7d   :  { %v4493_v57 = vpop.xlane.xlu1 %4492 }
0x3d7e   :  { %vm4494_vm13 = vcmp.eq.f32.partialorder %v4491_v54, %v4493_v57  ;;  %v4499_v63 = vcvt.f32.s32 %v4493_v57 }
0x3d7f   :  { %v4495_v58 = vsel %vm4494_vm13, %v4490_v59, inf }
0x3d80   :  { %4496 = vmin.xlane.f32.xlu0 %v4495_v58  ;;  %v4500_v0 = vshll.u32 %v4499_v63, 16 }
0x3e0d   :  { %v4497_v4 = vpop.xlane.xlu0 %4496 }
0x3e0e   :  { %v4498_v7 = vcvt.f32.s32 %v4497_v4 }
0x3e10   :  { %v4501_v3 = vadd.s32 %v4500_v0, %v4498_v7 }
0x3e12   :  { %vm4502_vm14 = vcmp.eq.s32.totalorder %v7213_v40, %v4501_v3 }
0x3e13   :  { %v5754_v8 = vsel %vm4502_vm14, 1.0, %v7003_v12 }
0x3e14   :  { %6331 = vmatmul.mubr.msk.f32.vlgmr.msra.gmra.mrb[38].mxu0 %vm487_vm9, %v5754_v8  ;;  %v6999_v8 = vld [vmem:[%s8420_s4 + $0x20] sm:$0xff] }
0x3e15   :  { %6593 = vmatpush3.bf16.msra.mxu0 %v7300_v11 }
0x3e16   :  { %6594 = vmatprep.subr.bf16.mxu0 %v7001_v6 }
0x3ee7   :  { %v4574_v13 = vpop.f32.mrb[38].mxu0 }
0x3ee8   :  { %4580 = vrot.lane.b32.xlu1 %v4574_v13, %s7005_s21  ;;  %v6332_v18 = vpop.f32.mrb[39].mxu0  ;;  %v4968_v13 = vld [vmem:[#allocation2 + $0xe] sm:$0x3] }
0x3f5a   :  { %v4581_v15 = vpop.permute.xlu1 %4580 }
0x3f5b   :  { %v7718_v22 = vsel %vm101_vm1, %v4397_v28, %v4581_v15 }
0x3f5c   :  { %6344 = vmatmul.mubr.msk.f32.vlgmr.msra.gmra.mrb[28].mxu1 %vm267_vm2, %v7718_v22 }
0x3f5d   :  { %6602 = vmatpush3.bf16.msra.mxu1 %v7183_v14  ;;  %6374 = vmatprep.mubr.msk.f32.mxu1 %vm7002_vm0, %v7003_v12  ;;  %v4662_v14 = vld [vmem:[#allocation3 + $0x6] sm:$0x3] }
0x3f5e   :  { %6603 = vmatprep.subr.bf16.mxu1 %v7001_v6 }
0x3f61   :  { %6605 = vmatpush3.bf16.msra.mxu1 %v7189_v16  ;;  %v4666_v16 = vld [vmem:[#allocation3 + $0xe] sm:$0x3] }
0x3f62   :  { %6610 = vmatprep.subr.bf16.mxu1 %v7001_v6 }
0x402f   :  { %v4653_v20 = vpop.f32.mrb[28].mxu1 }
0x4030   :  { %4658 = vst.msk [vmem:[#allocation3 + $0xc] sm:$0x3] %vm233_vm11, %v4653_v20  ;;  %4668 = vrot.lane.b32.xlu0 %v4653_v20, %s7007_s28  ;;  %v6345_v5 = vpop.f32.mrb[29].mxu1 }
0x4037   :  { %v4665_v21 = vld [vmem:[#allocation3 + $0xc] sm:$0x3] }
0x40a2   :  { %v4669_v27 = vpop.permute.xlu0 %4668 }
0x40a3   :  { %v4671_v28 = vadd.f32 %v4669_v27, %v4659_v24  ;;  %v4672_v17 = vadd.f32 %v4669_v27, %v4660_v26  ;;  %v4673_v30 = vadd.f32 %v4669_v27, %v4661_v9  ;;  %v4674_v31 = vadd.f32 %v4669_v27, %v4662_v14 }
0x40a4   :  { %v4675_v33 = vadd.f32 %v4669_v27, %v4663_v2  ;;  %v4676_v34 = vadd.f32 %v4669_v27, %v4664_v32  ;;  %v4677_v36 = vadd.f32 %v4669_v27, %v4665_v21  ;;  %v4678_v37 = vadd.f32 %v4669_v27, %v4666_v16 }
0x40a5   :  { %6808 = vtanh.f32 %v4671_v28 }
0x40a6   :  { %6810 = vtanh.f32 %v4672_v17 }
0x40a7   :  { %6812 = vtanh.f32 %v4673_v30 }
0x40a8   :  { %6814 = vtanh.f32 %v4674_v31 }
0x40a9   :  { %6816 = vtanh.f32 %v4675_v33 }
0x40aa   :  { %6818 = vtanh.f32 %v4676_v34 }
0x40ab   :  { %6820 = vtanh.f32 %v4677_v36 }
0x40ac   :  { %6822 = vtanh.f32 %v4678_v37 }
0x40af   :  { %v6809_v38 = vpop.eup %6808 }
0x40b0   :  { %v6811_v41 = vpop.eup %6810 }
0x40b1   :  { %v6813_v42 = vpop.eup %6812  ;;  %v4695_v43 = vcombine.low %v6809_v38, %v6811_v41 }
0x40b2   :  { %v6815_v44 = vpop.eup %6814 }
0x40b3   :  { %v6817_v45 = vpop.eup %6816  ;;  %v4696_v46 = vcombine.low %v6813_v42, %v6815_v44  ;;  %v4703_v48 = vrot.slane %v4695_v43, %v7113_v23 }
0x40b4   :  { %v6819_v54 = vpop.eup %6818 }
0x40b5   :  { %v6821_v55 = vpop.eup %6820  ;;  %v4710_v57 = vrot.slane %v4696_v46, %v7113_v23  ;;  %v4712_v59 = vcombine.low %v6817_v45, %v6819_v54 }
0x40b6   :  { %v6823_v58 = vpop.eup %6822 }
0x40b7   :  { %v4711_v63 = vcombine.low %v4703_v48, %v4710_v57  ;;  %v4713_v4 = vcombine.low %v6821_v55, %v6823_v58  ;;  %v4720_v0 = vrot.slane %v4712_v59, %v7113_v23 }
0x40b9   :  { %6350 = vmatprep.mubr.msk.f32.mxu0 %vm715_vm12, %v4711_v63  ;;  %v4727_v7 = vrot.slane %v4713_v4, %v7113_v23 }
0x40bb   :  { %v4728_v3 = vcombine.low %v4720_v0, %v4727_v7 }
0x40bd   :  { %6351 = vmatmul.mubr.msk.f32.vlgmr.msra.gmra.mrb[40].mxu0 %vm715_vm12, %v4728_v3 }
0x40be   :  { %6596 = vmatpush3.bf16.msra.mxu0 %v7124_v29  ;;  %6363 = vmatprep.mubr.msk.f32.mxu0 %vm7002_vm0, %v7003_v12 }
0x40bf   :  { %6597 = vmatprep.subr.bf16.mxu0 %v7001_v6 }
0x40c2   :  { %6599 = vmatpush3.bf16.msra.mxu0 %v7134_v35 }
0x40c3   :  { %6361 = vmatprep.subr.mxu0 %v7003_v12 }
0x40c6   :  { %6362 = vmatpush3.msra.mxu0 %v6999_v8 }
0x40c7   :  { %6364 = vmatmul.mubr.msk.f32.vlgmr.msra.gmra.mrb[42].mxu0 %vm267_vm2, %v7718_v22  ;;  %6606 = vmatprep.subr.bf16.mxu0 %v7001_v6 }
0x40c8   :  { %6609 = vmatpush3.bf16.msk.msra.mxu0 %vm7225_vm8, %v7223_v51  ;;  %6381 = vmatprep.mubr.msk.f32.mxu0 %vm7002_vm0, %v7003_v12 }
0x40c9   :  { %6617 = vmatprep.subr.bf16.mxu0 %v7300_v11 }
0x4190   :  { %v7754_v29 = vpop.f32.mrb[40].mxu0 }
0x4191   :  { %v7756_v35 = vpop.f32.mrb[41].mxu0 }
0x419a   :  { %v5035_v18 = vpop.f32.mrb[42].mxu0 }
0x419b   :  { %v5039_v15 = vadd.f32 %v5035_v18, %v4968_v13  ;;  %v6365_v20 = vpop.f32.mrb[43].mxu0 }
0x419d   :  { %6824 = vtanh.f32 %v5039_v15  ;;  %v5770_v5 = vmul.f32 -1.442695, %v5039_v15  ;;  %v7792_v15 = vrot.slane %v7329_v60, %v7113_v23  ;;  %v5328_v60 = vld [vmem:[#allocation3] sm:$0x3] }
0x419f   :  { %6826 = vpow2.f32 %v5770_v5 }
0x41a7   :  { %v6825_v22 = vpop.eup %6824 }
0x41a8   :  { %5049 = vrot.lane.b32.xlu1 %v6825_v22, %s7004_s5 }
0x41a9   :  { %v6827_v51 = vpop.eup %6826 }
0x41aa   :  { %v5043_v52 = vadd.f32 1.0, %v6827_v51  ;;  %v5330_v51 = vld [vmem:[#allocation3 + $0x4] sm:$0x3] }
0x41ac   :  { %6828 = vrcp.f32 %v5043_v52 }
0x41b6   :  { %v6829_v24 = vpop.eup %6828 }
0x41b7   :  { %v5047_v27 = vmul.f32 %v6829_v24, %v7687_v25 }
0x421a   :  { %v5050_v26 = vpop.permute.xlu1 %5049 }
0x421b   :  { %v5052_v9 = vmul.f32 %v6829_v24, %v5050_v26 }
0x421d   :  { %5054 = vrot.lane.b32.xlu1 %v5052_v9, %s7005_s21 }
0x428f   :  { %v5055_v14 = vpop.permute.xlu1 %5054 }
0x4290   :  { %v5057_v28 = vadd.f32 %v5055_v14, %v5047_v27  ;;  %v5332_v14 = vld [vmem:[#allocation3 + $0x8] sm:$0x3] }
0x4292   :  { %6830 = vtanh.f32 %v5057_v28 }
0x429c   :  { %v6831_v17 = vpop.eup %6830 }
0x429d   :  { %5060 = vrot.lane.b32.xlu0 %v6831_v17, %s7004_s5  ;;  %v5333_v17 = vld [vmem:[#allocation3 + $0xa] sm:$0x3] }
0x430f   :  { %v5061_v30 = vpop.permute.xlu0 %5060 }
0x4310   :  { %v5063_v2 = vmul.f32 %v6829_v24, %v5061_v30  ;;  %v5331_v24 = vld [vmem:[#allocation3 + $0x6] sm:$0x3] }
0x4312   :  { %5065 = vrot.lane.b32.xlu1 %v5063_v2, %s7005_s21  ;;  %v5334_v2 = vld [vmem:[#allocation3 + $0xc] sm:$0x3] }
0x4384   :  { %v5066_v31 = vpop.permute.xlu1 %5065 }
0x4385   :  { %6375 = vmatmul.mubr.msk.f32.vlgmr.msra.gmra.mrb[30].mxu1 %vm101_vm1, %v5066_v31 }
0x4386   :  { %6612 = vmatpush3.bf16.msra.mxu1 %v7247_v62  ;;  %6394 = vmatprep.mubr.msk.f32.mxu1 %vm7002_vm0, %v7003_v12 }
0x4387   :  { %6613 = vmatprep.subr.bf16.mxu1 %v7001_v6 }
0x438a   :  { %6615 = vmatpush3.bf16.msra.mxu1 %v7253_v1 }
0x438b   :  { %6392 = vmatprep.subr.mxu1 %v7003_v12 }
0x438e   :  { %6393 = vmatpush3.msra.mxu1 %v7556_v10 }
0x4458   :  { %v5135_v25 = vpop.f32.mrb[30].mxu1 }
0x4459   :  { %v5136_v32 = vadd.f32 %v7563_v19, %v5135_v25  ;;  %v6376_v16 = vpop.f32.mrb[31].mxu1 }
0x445b   :  { %v5139_v33 = vsel %vm451_vm3, %v5136_v32, -inf }
0x445c   :  { %5140 = vmax.xlane.f32.xlu0 %v5139_v33 }
0x44e9   :  { %v5141_v21 = vpop.xlane.xlu0 %5140 }
0x44ea   :  { %v5142_v62 = vsub.f32 %v5136_v32, %v5141_v21 }
0x44ec   :  { %v5143_v34 = vmul.f32 1.442695, %v5142_v62 }
0x44ee   :  { %6832 = vpow2.f32 %v5143_v34 }
0x44f8   :  { %v6833_v36 = vpop.eup %6832 }
0x44f9   :  { %v5145_v6 = vsel %vm451_vm3, %v6833_v36, 0.0 }
0x44fa   :  { %5146 = vadd.xlane.f32.xlu1 %v5145_v6 }
0x4587   :  { %v5147_v1 = vpop.xlane.xlu1 %5146 }
0x4588   :  { %6834 = vlog2.f32 %v5147_v1 }
0x4592   :  { %v6835_v37 = vpop.eup %6834 }
0x4593   :  { %v5149_v38 = vmul.f32 0.6931472, %v6835_v37 }
0x4595   :  { %v5150_v10 = vsub.f32 %v5142_v62, %v5149_v38 }
0x4597   :  { %v5151_v41 = vsel %vm451_vm3, %v5150_v10, -inf  ;;  %5778 = vst.msk [vmem:[%s8426_s11 + $0xe] sm:$0x3] %vm451_vm3, %v5150_v10 }
0x4598   :  { %5152 = vmax.xlane.f32.xlu0 %v5151_v41 }
0x4625   :  { %v5153_v19 = vpop.xlane.xlu0 %5152 }
0x4626   :  { %vm5154_vm0 = vcmp.ge.f32.partialorder %v5150_v10, %v5153_v19 }
0x4627   :  { %v5155_v42 = vsel %vm5154_vm0, %v7213_v40, 9 }
0x4628   :  { %v5156_v43 = vsel %vm451_vm3, %v5155_v42, 2147483647  ;;  %vm839_vm3 = vcmask 33792  }
0x4629   :  { %v5158_v44 = vshra.s32 %v5156_v43, 16  ;;  %v5157_v46 = vand.u32 65535, %v5156_v43  ;;  %v840_v20 = vsel %vm839_vm3, %v7792_v15, -inf  ;;  %946 = vst.msk [vmem:[%s8430_s12 + $0x2] sm:$0x3] %vm839_vm3, %v7003_v12 }
0x462a   :  { %947 = vst.msk [vmem:[%s8430_s12 + $0x4] sm:$0x3] %vm839_vm3, %v7003_v12  ;;  %948 = vst.msk [vmem:[%s8430_s12 + $0x6] sm:$0x3] %vm839_vm3, %v7003_v12 }
0x462b   :  { %v5160_v45 = vcvt.s32.f32 %v5158_v44  ;;  %v5159_v54 = vcvt.s32.f32 %v5157_v46  ;;  %949 = vst.msk [vmem:[%s8430_s12 + $0x8] sm:$0x3] %vm839_vm3, %v7003_v12  ;;  %950 = vst.msk [vmem:[%s8430_s12 + $0xa] sm:$0x3] %vm839_vm3, %v7003_v12 }
0x462c   :  { %951 = vst.msk [vmem:[%s8430_s12 + $0xc] sm:$0x3] %vm839_vm3, %v7003_v12  ;;  %952 = vst.msk [vmem:[%s8430_s12 + $0xe] sm:$0x3] %vm839_vm3, %v7003_v12 }
0x462d   :  { %5161 = vmin.xlane.f32.xlu0 %v5160_v45  ;;  %5673 = vst.msk [vmem:[%s8430_s12 + $0x14] sm:$0x3] %vm839_vm3, %v7003_v12  ;;  %5674 = vst.msk [vmem:[%s8430_s12 + $0x16] sm:$0x3] %vm839_vm3, %v7003_v12 }
0x462e   :  { %5675 = vst.msk [vmem:[%s8430_s12 + $0x18] sm:$0x3] %vm839_vm3, %v7003_v12  ;;  %5676 = vst.msk [vmem:[%s8430_s12 + $0x1a] sm:$0x3] %vm839_vm3, %v7003_v12 }
0x462f   :  { %5677 = vst.msk [vmem:[%s8430_s12 + $0x1c] sm:$0x3] %vm839_vm3, %v7003_v12  ;;  %5678 = vst.msk [vmem:[%s8430_s12 + $0x1e] sm:$0x3] %vm839_vm3, %v7003_v12 }
0x4630   :  { %5692 = vst.msk [vmem:[%s8430_s12 + $0x26] sm:$0x3] %vm839_vm3, %v7003_v12  ;;  %5693 = vst.msk [vmem:[%s8430_s12 + $0x28] sm:$0x3] %vm839_vm3, %v7003_v12 }
0x4631   :  { %5694 = vst.msk [vmem:[%s8430_s12 + $0x2a] sm:$0x3] %vm839_vm3, %v7003_v12  ;;  %5695 = vst.msk [vmem:[%s8430_s12 + $0x2c] sm:$0x3] %vm839_vm3, %v7003_v12 }
0x4632   :  { %5696 = vst.msk [vmem:[%s8430_s12 + $0x2e] sm:$0x3] %vm839_vm3, %v7003_v12  ;;  %5711 = vst.msk [vmem:[%s8430_s12 + $0x38] sm:$0x3] %vm839_vm3, %v7003_v12 }
0x4633   :  { %5712 = vst.msk [vmem:[%s8430_s12 + $0x3a] sm:$0x3] %vm839_vm3, %v7003_v12  ;;  %5713 = vst.msk [vmem:[%s8430_s12 + $0x3c] sm:$0x3] %vm839_vm3, %v7003_v12 }
0x4634   :  { %5714 = vst.msk [vmem:[%s8430_s12 + $0x3e] sm:$0x3] %vm839_vm3, %v7003_v12  ;;  %5730 = vst.msk [vmem:[%s8430_s12 + $0x4a] sm:$0x3] %vm839_vm3, %v7003_v12 }
0x4635   :  { %5731 = vst.msk [vmem:[%s8430_s12 + $0x4c] sm:$0x3] %vm839_vm3, %v7003_v12  ;;  %5732 = vst.msk [vmem:[%s8430_s12 + $0x4e] sm:$0x3] %vm839_vm3, %v7003_v12 }
0x4636   :  { %5749 = vst.msk [vmem:[%s8430_s12 + $0x5c] sm:$0x3] %vm839_vm3, %v7003_v12  ;;  %5750 = vst.msk [vmem:[%s8430_s12 + $0x5e] sm:$0x3] %vm839_vm3, %v7003_v12 }
0x4637   :  { %5768 = vst.msk [vmem:[%s8430_s12 + $0x6e] sm:$0x3] %vm839_vm3, %v7003_v12 }
0x46ba   :  { %v5162_v48 = vpop.xlane.xlu0 %5161 }
0x46bb   :  { %vm5163_vm8 = vcmp.eq.f32.partialorder %v5160_v45, %v5162_v48  ;;  %v5168_v57 = vcvt.f32.s32 %v5162_v48 }
0x46bc   :  { %v5164_v55 = vsel %vm5163_vm8, %v5159_v54, inf }
0x46bd   :  { %5165 = vmin.xlane.f32.xlu1 %v5164_v55  ;;  %v5169_v58 = vshll.u32 %v5168_v57, 16 }
0x474a   :  { %v5166_v59 = vpop.xlane.xlu1 %5165 }
0x474b   :  { %v5167_v63 = vcvt.f32.s32 %v5166_v59 }
0x474d   :  { %v5170_v4 = vadd.s32 %v5169_v58, %v5167_v63 }
0x474f   :  { %vm5171_vm15 = vcmp.eq.s32.totalorder %v7213_v40, %v5170_v4  ;;  %v2141_v4 = vrot.slane %v7470_v53, %v7113_v23 }
0x4750   :  { %v5772_v0 = vsel %vm5171_vm15, 1.0, %v7003_v12 }
0x4751   :  { %6382 = vmatmul.mubr.msk.f32.vlgmr.msra.gmra.mrb[44].mxu0 %vm487_vm9, %v5772_v0 }
0x4752   :  { %6619 = vmatpush3.bf16.msra.mxu0 %v7300_v11  ;;  %v7796_v11 = vrot.slane %v7395_v56, %v7113_v23  ;;  %v5329_v56 = vld [vmem:[#allocation3 + $0x2] sm:$0x3] }
0x4754   :  { %v7802_v22 = vcombine.high %v7796_v11, %v7796_v11 }
0x4756   :  { %v1510_v5 = vsel %vm839_vm3, %v7802_v22, -inf }
0x4824   :  { %v5243_v7 = vpop.f32.mrb[44].mxu0 }
0x4825   :  { %5249 = vrot.lane.b32.xlu0 %v5243_v7, %s7005_s21  ;;  %v6383_v3 = vpop.f32.mrb[45].mxu0 }
0x4826   :  { %v1507_v3 = vsel %vm839_vm3, %v7796_v11, -inf }
0x4897   :  { %v5250_v8 = vpop.permute.xlu0 %5249 }
0x4898   :  { %v5252_v13 = vsel %vm101_vm1, %v5066_v31, %v5250_v8 }
0x4899   :  { %6395 = vmatmul.mubr.msk.f32.vlgmr.msra.gmra.mrb[32].mxu1 %vm267_vm2, %v5252_v13  ;;  %v2149_v13 = vcombine.high %v2141_v4, %v2141_v4 }
0x496c   :  { %v5322_v18 = vpop.f32.mrb[32].mxu1 }
0x496d   :  { %5327 = vst.msk [vmem:[#allocation3 + $0xe] sm:$0x3] %vm233_vm11, %v5322_v18  ;;  %5337 = vrot.lane.b32.xlu1 %v5322_v18, %s7007_s28  ;;  %v6396_v40 = vpop.f32.mrb[33].mxu1  ;;  %v2179_v18 = vsel %vm839_vm3, %v2149_v13, -inf }
0x4974   :  { %v5335_v25 = vld [vmem:[#allocation3 + $0xe] sm:$0x3] }
0x4991   :  { %841 = vmax.xlane.f32.xlu1 %v840_v20 }
0x4995   :  { %1511 = vmax.xlane.f32.xlu1 %v1510_v5 }
0x49df   :  { %v5338_v52 = vpop.permute.xlu1 %5337 }
0x49e0   :  { %v5340_v26 = vadd.f32 %v5338_v52, %v5328_v60  ;;  %v5341_v9 = vadd.f32 %v5338_v52, %v5329_v56  ;;  %v5342_v27 = vadd.f32 %v5338_v52, %v5330_v51  ;;  %v5343_v28 = vadd.f32 %v5338_v52, %v5331_v24 }
0x49e1   :  { %v5344_v30 = vadd.f32 %v5338_v52, %v5332_v14  ;;  %v5345_v31 = vadd.f32 %v5338_v52, %v5333_v17  ;;  %v5346_v32 = vadd.f32 %v5338_v52, %v5334_v2  ;;  %v5347_v12 = vadd.f32 %v5338_v52, %v5335_v25 }
0x49e2   :  { %6836 = vtanh.f32 %v5340_v26 }
0x49e3   :  { %6838 = vtanh.f32 %v5341_v9 }
0x49e4   :  { %6840 = vtanh.f32 %v5342_v27 }
0x49e5   :  { %6842 = vtanh.f32 %v5343_v28 }
0x49e6   :  { %6844 = vtanh.f32 %v5344_v30  ;;  %v2134_v30 = vcombine.high %v7470_v53, %v7470_v53  ;;  %v2803_v53 = vcombine.high %v7536_v47, %v7536_v47 }
0x49e7   :  { %6846 = vtanh.f32 %v5345_v31  ;;  %v2176_v31 = vsel %vm839_vm3, %v2141_v4, -inf }
0x49e8   :  { %6848 = vtanh.f32 %v5346_v32  ;;  %v2148_v25 = vrot.slane %v2134_v30, %v7113_v23 }
0x49e9   :  { %6850 = vtanh.f32 %v5347_v12 }
0x49ea   :  { %v2182_v32 = vsel %vm839_vm3, %v2148_v25, -inf }
0x49ec   :  { %v6837_v16 = vpop.eup %6836 }
0x49ed   :  { %v6839_v33 = vpop.eup %6838 }
0x49ee   :  { %v6841_v21 = vpop.eup %6840  ;;  %v5364_v62 = vcombine.low %v6837_v16, %v6839_v33  ;;  %v2810_v16 = vrot.slane %v7536_v47, %v7113_v23 }
0x49ef   :  { %v6843_v34 = vpop.eup %6842 }
0x49f0   :  { %v6845_v36 = vpop.eup %6844  ;;  %v5365_v6 = vcombine.low %v6841_v21, %v6843_v34  ;;  %v5372_v1 = vrot.slane %v5364_v62, %v7113_v23  ;;  %v2817_v21 = vrot.slane %v2803_v53, %v7113_v23  ;;  %v2845_v62 = vsel %vm839_vm3, %v2810_v16, -inf }
0x49f1   :  { %v6847_v37 = vpop.eup %6846 }
0x49f2   :  { %v6849_v38 = vpop.eup %6848  ;;  %v5379_v10 = vrot.slane %v5365_v6, %v7113_v23  ;;  %v5381_v41 = vcombine.low %v6845_v36, %v6847_v37  ;;  %v2851_v34 = vsel %vm839_vm3, %v2817_v21, -inf }
0x49f3   :  { %v6851_v19 = vpop.eup %6850 }
0x49f4   :  { %v5380_v42 = vcombine.low %v5372_v1, %v5379_v10  ;;  %v5382_v43 = vcombine.low %v6849_v38, %v6851_v19  ;;  %v5389_v44 = vrot.slane %v5381_v41, %v7113_v23 }
0x49f6   :  { %6401 = vmatprep.mubr.msk.f32.mxu0 %vm715_vm12, %v5380_v42  ;;  %v5396_v45 = vrot.slane %v5382_v43, %v7113_v23 }
0x49f8   :  { %v5397_v46 = vcombine.low %v5389_v44, %v5396_v45 }
0x49fa   :  { %6402 = vmatmul.mubr.msk.f32.vlgmr.msra.gmra.mrb[46].mxu0 %vm715_vm12, %v5397_v46 }
0x4a1e   :  { %v842_v48 = vpop.xlane.xlu1 %841 }
0x4a1f   :  { %v864_v54 = vsub.f32 %v7792_v15, %v842_v48 }
0x4a21   :  { %v872_v55 = vmul.f32 1.442695, %v864_v54 }
0x4a22   :  { %v1512_v57 = vpop.xlane.xlu1 %1511 }
0x4a23   :  { %6852 = vpow2.f32 %v872_v55  ;;  %v1532_v59 = vsub.f32 %v7802_v22, %v1512_v57 }
0x4a25   :  { %v1541_v58 = vmul.f32 1.442695, %v1532_v59 }
0x4a27   :  { %6854 = vpow2.f32 %v1541_v58 }
0x4a2d   :  { %v6853_v63 = vpop.eup %6852 }
0x4a2e   :  { %v888_v0 = vsel %vm839_vm3, %v6853_v63, 0.0 }
0x4a2f   :  { %889 = vadd.xlane.f32.xlu0 %v888_v0  ;;  %v2818_v0 = vcombine.high %v2810_v16, %v2810_v16 }
0x4a31   :  { %v6855_v7 = vpop.eup %6854 }
0x4a32   :  { %v1558_v8 = vsel %vm839_vm3, %v6855_v7, 0.0 }
0x4a33   :  { %1508 = vmax.xlane.f32.xlu0 %v1507_v3  ;;  %1559 = vadd.xlane.f32.xlu1 %v1558_v8  ;;  %v2848_v8 = vsel %vm839_vm3, %v2818_v0, -inf }
0x4a37   :  { %2180 = vmax.xlane.f32.xlu1 %v2179_v18 }
0x4abc   :  { %v890_v40 = vpop.xlane.xlu0 %889 }
0x4abd   :  { %6856 = vlog2.f32 %v890_v40 }
0x4ac0   :  { %v1509_v15 = vpop.xlane.xlu0 %1508  ;;  %v1560_v20 = vpop.xlane.xlu1 %1559 }
0x4ac1   :  { %v1531_v22 = vsub.f32 %v7796_v11, %v1509_v15  ;;  %6858 = vlog2.f32 %v1560_v20 }
0x4ac3   :  { %v1539_v5 = vmul.f32 1.442695, %v1531_v22 }
0x4ac4   :  { %v2181_v60 = vpop.xlane.xlu1 %2180 }
0x4ac5   :  { %6860 = vpow2.f32 %v1539_v5  ;;  %v7962_v51 = vsub.f32 %v2149_v13, %v2181_v60  ;;  %v2819_v13 = vcombine.high %v2817_v21, %v2817_v21  ;;  %v3479_v5 = vrot.slane %v7614_v50, %v7113_v23 }
0x4ac7   :  { %v6857_v56 = vpop.eup %6856  ;;  %v2210_v9 = vmul.f32 1.442695, %v7962_v51  ;;  %v2854_v40 = vsel %vm839_vm3, %v2819_v13, -inf }
0x4ac8   :  { %v913_v52 = vmul.f32 0.6931472, %v6857_v56 }
0x4ac9   :  { %6862 = vpow2.f32 %v2210_v9 }
0x4aca   :  { %v928_v24 = vsub.f32 %v864_v54, %v913_v52  ;;  %v3496_v52 = vrot.slane %v7612_v49, %v7113_v23 }
0x4acb   :  { %v6859_v26 = vpop.eup %6858 }
0x4acc   :  { %945 = vst.msk [vmem:[%s8430_s12] sm:$0x3] %vm839_vm3, %v928_v24  ;;  %v1582_v27 = vmul.f32 0.6931472, %v6859_v26  ;;  %v3526_v26 = vsel %vm839_vm3, %v3496_v52, -inf }
0x4acd   :  { %v7969_v14 = vpop.f32.mrb[46].mxu0 }
0x4ace   :  { %v1596_v11 = vsub.f32 %v1532_v59, %v1582_v27  ;;  %v7971_v28 = vpop.f32.mrb[47].mxu0 }
0x4acf   :  { %v6861_v17 = vpop.eup %6860 }
0x4ad0   :  { %5672 = vst.msk [vmem:[%s8430_s12 + $0x12] sm:$0x3] %vm839_vm3, %v1596_v11  ;;  %v1555_v2 = vsel %vm839_vm3, %v6861_v17, 0.0 }
0x4ad1   :  { %1556 = vadd.xlane.f32.xlu0 %v1555_v2 }
0x4ad3   :  { %v6863_v12 = vpop.eup %6862 }
0x4ad4   :  { %v2227_v33 = vsel %vm839_vm3, %v6863_v12, 0.0 }
0x4ad5   :  { %2177 = vmax.xlane.f32.xlu0 %v2176_v31 }
0x4ad9   :  { %2183 = vmax.xlane.f32.xlu0 %v2182_v32 }
0x4add   :  { %2228 = vadd.xlane.f32.xlu0 %v2227_v33 }
0x4ae1   :  { %2846 = vmax.xlane.f32.xlu0 %v2845_v62 }
0x4ae5   :  { %2852 = vmax.xlane.f32.xlu0 %v2851_v34 }
0x4b5e   :  { %v1557_v36 = vpop.xlane.xlu0 %1556 }
0x4b5f   :  { %6864 = vlog2.f32 %v1557_v36 }
0x4b62   :  { %v2178_v6 = vpop.xlane.xlu0 %2177 }
0x4b63   :  { %v7991_v1 = vsub.f32 %v2141_v4, %v2178_v6 }
0x4b65   :  { %v2208_v37 = vmul.f32 1.442695, %v7991_v1 }
0x4b66   :  { %v2184_v38 = vpop.xlane.xlu0 %2183 }
0x4b67   :  { %6866 = vpow2.f32 %v2208_v37  ;;  %v7994_v47 = vsub.f32 %v2148_v25, %v2184_v38 }
0x4b69   :  { %v6865_v10 = vpop.eup %6864  ;;  %v2212_v41 = vmul.f32 1.442695, %v7994_v47 }
0x4b6a   :  { %v1580_v19 = vmul.f32 0.6931472, %v6865_v10  ;;  %v2229_v42 = vpop.xlane.xlu0 %2228 }
0x4b6b   :  { %6868 = vpow2.f32 %v2212_v41 }
0x4b6c   :  { %v1595_v43 = vsub.f32 %v1531_v22, %v1580_v19  ;;  %6870 = vlog2.f32 %v2229_v42  ;;  %v3472_v22 = vcombine.high %v7614_v50, %v7614_v50 }
0x4b6e   :  { %5671 = vst.msk [vmem:[%s8430_s12 + $0x10] sm:$0x3] %vm839_vm3, %v1595_v43  ;;  %v2847_v44 = vpop.xlane.xlu0 %2846  ;;  %v3486_v56 = vrot.slane %v3472_v22, %v7113_v23  ;;  %v8083_v22 = vrot.slane %v7680_v39, %v7113_v23 }
0x4b6f   :  { %v8001_v45 = vsub.f32 %v2810_v16, %v2847_v44 }
0x4b70   :  { %v3520_v24 = vsel %vm839_vm3, %v3486_v56, -inf }
0x4b71   :  { %v6867_v46 = vpop.eup %6866  ;;  %v2877_v48 = vmul.f32 1.442695, %v8001_v45 }
0x4b72   :  { %v2853_v54 = vpop.xlane.xlu0 %2852  ;;  %v2224_v55 = vsel %vm839_vm3, %v6867_v46, 0.0 }
0x4b73   :  { %6872 = vpow2.f32 %v2877_v48  ;;  %v8005_v57 = vsub.f32 %v2817_v21, %v2853_v54  ;;  %2225 = vadd.xlane.f32.xlu1 %v2224_v55  ;;  %v3487_v48 = vcombine.high %v3479_v5, %v3479_v5 }
0x4b75   :  { %v6869_v59 = vpop.eup %6868  ;;  %v2881_v58 = vmul.f32 1.442695, %v8005_v57 }
0x4b76   :  { %v6871_v63 = vpop.eup %6870  ;;  %v2230_v4 = vsel %vm839_vm3, %v6869_v59, 0.0 }
0x4b77   :  { %v2251_v7 = vmul.f32 0.6931472, %v6871_v63  ;;  %6874 = vpow2.f32 %v2881_v58  ;;  %2231 = vadd.xlane.f32.xlu1 %v2230_v4  ;;  %v3517_v58 = vsel %vm839_vm3, %v3487_v48, -inf  ;;  %v3488_v63 = vcombine.high %v3486_v56, %v3486_v56 }
0x4b79   :  { %v2265_v3 = vsub.f32 %v7962_v51, %v2251_v7  ;;  %v3514_v51 = vsel %vm839_vm3, %v3479_v5, -inf  ;;  %v3523_v4 = vsel %vm839_vm3, %v3488_v63, -inf }
0x4b7b   :  { %5690 = vst.msk [vmem:[%s8430_s12 + $0x22] sm:$0x3] %vm839_vm3, %v2265_v3  ;;  %2849 = vmax.xlane.f32.xlu1 %v2848_v8  ;;  %v4141_v3 = vcombine.high %v7682_v61, %v7682_v61  ;;  %v8072_v8 = vrot.slane %v7682_v61, %v7113_v23 }
0x4b7d   :  { %v6873_v18 = vpop.eup %6872 }
0x4b7e   :  { %v2893_v15 = vsel %vm839_vm3, %v6873_v18, 0.0 }
0x4b7f   :  { %2855 = vmax.xlane.f32.xlu1 %v2854_v40  ;;  %2894 = vadd.xlane.f32.xlu0 %v2893_v15  ;;  %v8076_v40 = vrot.slane %v4141_v3, %v7113_v23  ;;  %v8145_v3 = vrot.slane %v7756_v35, %v7113_v23 }
0x4b81   :  { %v6875_v20 = vpop.eup %6874 }
0x4b82   :  { %v2899_v60 = vsel %vm839_vm3, %v6875_v20, 0.0  ;;  %v4156_v20 = vcombine.high %v8072_v8, %v8072_v8 }
0x4b83   :  { %2900 = vadd.xlane.f32.xlu0 %v2899_v60 }
0x4b84   :  { %v4186_v61 = vsel %vm839_vm3, %v4156_v20, -inf }
0x4b87   :  { %3515 = vmax.xlane.f32.xlu0 %v3514_v51 }
0x4b8b   :  { %3521 = vmax.xlane.f32.xlu0 %v3520_v24 }
0x4b8f   :  { %3527 = vmax.xlane.f32.xlu0 %v3526_v26 }
0x4c00   :  { %v2226_v9 = vpop.xlane.xlu1 %2225 }
0x4c01   :  { %6876 = vlog2.f32 %v2226_v9 }
0x4c04   :  { %v2232_v50 = vpop.xlane.xlu1 %2231 }
0x4c05   :  { %6878 = vlog2.f32 %v2232_v50 }
0x4c08   :  { %v2850_v27 = vpop.xlane.xlu1 %2849 }
0x4c09   :  { %v8028_v11 = vsub.f32 %v2818_v0, %v2850_v27 }
0x4c0b   :  { %v6877_v17 = vpop.eup %6876  ;;  %v2879_v30 = vmul.f32 1.442695, %v8028_v11 }
0x4c0c   :  { %v2249_v2 = vmul.f32 0.6931472, %v6877_v17  ;;  %v2895_v31 = vpop.xlane.xlu0 %2894  ;;  %v2856_v25 = vpop.xlane.xlu1 %2855 }
0x4c0d   :  { %6880 = vpow2.f32 %v2879_v30  ;;  %v8031_v49 = vsub.f32 %v2819_v13, %v2856_v25 }
0x4c0e   :  { %v2264_v32 = vsub.f32 %v7991_v1, %v2249_v2  ;;  %6882 = vlog2.f32 %v2895_v31 }
0x4c0f   :  { %v6879_v12 = vpop.eup %6878  ;;  %v2883_v53 = vmul.f32 1.442695, %v8031_v49 }
0x4c10   :  { %5689 = vst.msk [vmem:[%s8430_s12 + $0x20] sm:$0x3] %vm839_vm3, %v2264_v32  ;;  %v2253_v16 = vmul.f32 0.6931472, %v6879_v12  ;;  %v2901_v33 = vpop.xlane.xlu0 %2900 }
0x4c11   :  { %6884 = vpow2.f32 %v2883_v53 }
0x4c12   :  { %v2266_v21 = vsub.f32 %v7994_v47, %v2253_v16  ;;  %6886 = vlog2.f32 %v2901_v33 }
0x4c14   :  { %5691 = vst.msk [vmem:[%s8430_s12 + $0x24] sm:$0x3] %vm839_vm3, %v2266_v21  ;;  %v3516_v62 = vpop.xlane.xlu0 %3515 }
0x4c15   :  { %v8044_v34 = vsub.f32 %v3479_v5, %v3516_v62  ;;  %v4157_v5 = vcombine.high %v8076_v40, %v8076_v40 }
0x4c17   :  { %v6881_v36 = vpop.eup %6880  ;;  %v3546_v6 = vmul.f32 1.442695, %v8044_v34  ;;  %v4192_v60 = vsel %vm839_vm3, %v4157_v5, -inf }
0x4c18   :  { %v6883_v1 = vpop.eup %6882  ;;  %v3522_v37 = vpop.xlane.xlu0 %3521  ;;  %v2896_v38 = vsel %vm839_vm3, %v6881_v36, 0.0 }
0x4c19   :  { %v2918_v10 = vmul.f32 0.6931472, %v6883_v1  ;;  %v8048_v41 = vsub.f32 %v3486_v56, %v3522_v37  ;;  %2897 = vadd.xlane.f32.xlu1 %v2896_v38  ;;  %6888 = vpow2.f32 %v3546_v6  ;;  %v4173_v56 = vcombine.high %v8083_v22, %v8083_v22 }
0x4c1b   :  { %v6885_v47 = vpop.eup %6884  ;;  %v2933_v19 = vsub.f32 %v8001_v45, %v2918_v10  ;;  %v3550_v42 = vmul.f32 1.442695, %v8048_v41  ;;  %v4198_v51 = vsel %vm839_vm3, %v4173_v56, -inf }
0x4c1c   :  { %v6887_v43 = vpop.eup %6886  ;;  %v3528_v44 = vpop.xlane.xlu0 %3527  ;;  %v2902_v46 = vsel %vm839_vm3, %v6885_v47, 0.0 }
0x4c1d   :  { %5707 = vst.msk [vmem:[%s8430_s12 + $0x30] sm:$0x3] %vm839_vm3, %v2933_v19  ;;  %v2922_v54 = vmul.f32 0.6931472, %v6887_v43  ;;  %v8057_v55 = vsub.f32 %v3496_v52, %v3528_v44  ;;  %2903 = vadd.xlane.f32.xlu1 %v2902_v46  ;;  %6890 = vpow2.f32 %v3550_v42  ;;  %v4183_v43 = vsel %vm839_vm3, %v8072_v8, -inf }
0x4c1f   :  { %v2935_v59 = vsub.f32 %v8005_v57, %v2922_v54  ;;  %v3554_v45 = vmul.f32 1.442695, %v8057_v55 }
0x4c21   :  { %5709 = vst.msk [vmem:[%s8430_s12 + $0x34] sm:$0x3] %vm839_vm3, %v2935_v59  ;;  %3518 = vmax.xlane.f32.xlu1 %v3517_v58  ;;  %6892 = vpow2.f32 %v3554_v45  ;;  %v4189_v45 = vsel %vm839_vm3, %v8076_v40, -inf }
0x4c23   :  { %v6889_v0 = vpop.eup %6888 }
0x4c24   :  { %v3562_v7 = vsel %vm839_vm3, %v6889_v0, 0.0 }
0x4c25   :  { %3524 = vmax.xlane.f32.xlu1 %v3523_v4  ;;  %v4195_v4 = vsel %vm839_vm3, %v8083_v22, -inf }
0x4c27   :  { %v6891_v57 = vpop.eup %6890 }
0x4c28   :  { %v3568_v13 = vsel %vm839_vm3, %v6891_v57, 0.0 }
0x4c29   :  { %3563 = vadd.xlane.f32.xlu1 %v3562_v7 }
0x4c2b   :  { %v6893_v18 = vpop.eup %6892 }
0x4c2c   :  { %v3574_v15 = vsel %vm839_vm3, %v6893_v18, 0.0 }
0x4c2d   :  { %3569 = vadd.xlane.f32.xlu1 %v3568_v13 }
0x4c31   :  { %3575 = vadd.xlane.f32.xlu1 %v3574_v15 }
0x4c35   :  { %4187 = vmax.xlane.f32.xlu1 %v4186_v61  ;;  %v4825_v61 = vcombine.high %v8145_v3, %v8145_v3 }
0x4c39   :  { %4193 = vmax.xlane.f32.xlu1 %v4192_v60 }
0x4c3d   :  { %4199 = vmax.xlane.f32.xlu1 %v4198_v51 }
0x4ca6   :  { %v2898_v52 = vpop.xlane.xlu1 %2897 }
0x4ca7   :  { %6894 = vlog2.f32 %v2898_v52 }
0x4caa   :  { %v2904_v24 = vpop.xlane.xlu1 %2903 }
0x4cab   :  { %6896 = vlog2.f32 %v2904_v24 }
0x4cae   :  { %v3519_v39 = vpop.xlane.xlu1 %3518 }
0x4caf   :  { %v8092_v26 = vsub.f32 %v3487_v48, %v3519_v39 }
0x4cb1   :  { %v6895_v9 = vpop.eup %6894  ;;  %v3548_v50 = vmul.f32 1.442695, %v8092_v26 }
0x4cb2   :  { %v2920_v27 = vmul.f32 0.6931472, %v6895_v9  ;;  %v3525_v17 = vpop.xlane.xlu1 %3524 }
0x4cb3   :  { %6898 = vpow2.f32 %v3548_v50  ;;  %v8095_v30 = vsub.f32 %v3488_v63, %v3525_v17 }
0x4cb4   :  { %v2934_v2 = vsub.f32 %v8028_v11, %v2920_v27 }
0x4cb5   :  { %v6897_v31 = vpop.eup %6896  ;;  %v3552_v25 = vmul.f32 1.442695, %v8095_v30 }
0x4cb6   :  { %5708 = vst.msk [vmem:[%s8430_s12 + $0x32] sm:$0x3] %vm839_vm3, %v2934_v2  ;;  %v2924_v32 = vmul.f32 0.6931472, %v6897_v31  ;;  %v3564_v12 = vpop.xlane.xlu1 %3563 }
0x4cb7   :  { %6900 = vpow2.f32 %v3552_v25 }
0x4cb8   :  { %v2936_v53 = vsub.f32 %v8031_v49, %v2924_v32  ;;  %6902 = vlog2.f32 %v3564_v12 }
0x4cba   :  { %5710 = vst.msk [vmem:[%s8430_s12 + $0x36] sm:$0x3] %vm839_vm3, %v2936_v53  ;;  %v3570_v11 = vpop.xlane.xlu1 %3569 }
0x4cbb   :  { %6904 = vlog2.f32 %v3570_v11 }
0x4cbd   :  { %v6899_v16 = vpop.eup %6898 }
0x4cbe   :  { %v3576_v33 = vpop.xlane.xlu1 %3575  ;;  %v3565_v21 = vsel %vm839_vm3, %v6899_v16, 0.0 }
0x4cbf   :  { %6906 = vlog2.f32 %v3576_v33  ;;  %3566 = vadd.xlane.f32.xlu0 %v3565_v21 }
0x4cc1   :  { %v6901_v62 = vpop.eup %6900 }
0x4cc2   :  { %v6903_v36 = vpop.eup %6902  ;;  %v4188_v6 = vpop.xlane.xlu1 %4187  ;;  %v3571_v1 = vsel %vm839_vm3, %v6901_v62, 0.0 }
0x4cc3   :  { %v3587_v49 = vmul.f32 0.6931472, %v6903_v36  ;;  %v8110_v37 = vsub.f32 %v4156_v20, %v4188_v6  ;;  %3572 = vadd.xlane.f32.xlu0 %v3571_v1 }
0x4cc5   :  { %v6905_v38 = vpop.eup %6904  ;;  %v3602_v10 = vsub.f32 %v8044_v34, %v3587_v49  ;;  %v4217_v47 = vmul.f32 1.442695, %v8110_v37 }
0x4cc6   :  { %v3591_v19 = vmul.f32 0.6931472, %v6905_v38  ;;  %v4194_v42 = vpop.xlane.xlu1 %4193 }
0x4cc7   :  { %5725 = vst.msk [vmem:[%s8430_s12 + $0x40] sm:$0x3] %vm839_vm3, %v3602_v10  ;;  %6908 = vpow2.f32 %v4217_v47  ;;  %v8120_v44 = vsub.f32 %v4157_v5, %v4194_v42  ;;  %4184 = vmax.xlane.f32.xlu0 %v4183_v43  ;;  %v8156_v5 = vrot.slane %v7754_v29, %v7113_v23 }
0x4cc8   :  { %v3604_v46 = vsub.f32 %v8048_v41, %v3591_v19 }
0x4cc9   :  { %v6907_v48 = vpop.eup %6906  ;;  %v4221_v34 = vmul.f32 1.442695, %v8120_v44  ;;  %v8164_v51 = vcombine.high %v8156_v5, %v8156_v5 }
0x4cca   :  { %5727 = vst.msk [vmem:[%s8430_s12 + $0x44] sm:$0x3] %vm839_vm3, %v3604_v46  ;;  %v3595_v54 = vmul.f32 0.6931472, %v6907_v48  ;;  %v4200_v59 = vpop.xlane.xlu1 %4199 }
0x4ccb   :  { %6910 = vpow2.f32 %v4221_v34  ;;  %v8130_v58 = vsub.f32 %v4173_v56, %v4200_v59  ;;  %4190 = vmax.xlane.f32.xlu0 %v4189_v45  ;;  %v4867_v52 = vsel %vm839_vm3, %v8164_v51, -inf }
0x4ccc   :  { %v3606_v63 = vsub.f32 %v8057_v55, %v3595_v54  ;;  %v4810_v55 = vcombine.high %v7756_v35, %v7756_v35  ;;  %v4855_v35 = vsel %vm839_vm3, %v4825_v61, -inf  ;;  %v4852_v54 = vsel %vm839_vm3, %v8145_v3, -inf }
0x4ccd   :  { %v4225_v41 = vmul.f32 1.442695, %v8130_v58 }
0x4cce   :  { %5729 = vst.msk [vmem:[%s8430_s12 + $0x48] sm:$0x3] %vm839_vm3, %v3606_v63  ;;  %v8149_v15 = vrot.slane %v4810_v55, %v7113_v23 }
0x4ccf   :  { %6912 = vpow2.f32 %v4225_v41  ;;  %4196 = vmax.xlane.f32.xlu0 %v4195_v4  ;;  %v4827_v41 = vcombine.high %v7754_v29, %v7754_v29  ;;  %v4864_v29 = vsel %vm839_vm3, %v8156_v5, -inf }
0x4cd0   :  { %v4826_v60 = vcombine.high %v8149_v15, %v8149_v15 }
0x4cd1   :  { %v6909_v0 = vpop.eup %6908 }
0x4cd2   :  { %v4234_v7 = vsel %vm839_vm3, %v6909_v0, 0.0  ;;  %v4861_v56 = vsel %vm839_vm3, %v4826_v60, -inf }
0x4cd3   :  { %4235 = vadd.xlane.f32.xlu1 %v4234_v7  ;;  %v4858_v7 = vsel %vm839_vm3, %v8149_v15, -inf }
0x4cd5   :  { %v6911_v57 = vpop.eup %6910 }
0x4cd6   :  { %v4240_v13 = vsel %vm839_vm3, %v6911_v57, 0.0 }
0x4cd7   :  { %4241 = vadd.xlane.f32.xlu1 %v4240_v13  ;;  %v4841_v13 = vrot.slane %v4827_v41, %v7113_v23 }
0x4cd9   :  { %v6913_v18 = vpop.eup %6912 }
0x4cda   :  { %v4246_v20 = vsel %vm839_vm3, %v6913_v18, 0.0  ;;  %v4870_v18 = vsel %vm839_vm3, %v4841_v13, -inf }
0x4cdb   :  { %4247 = vadd.xlane.f32.xlu1 %v4246_v20 }
0x4cdf   :  { %4856 = vmax.xlane.f32.xlu1 %v4855_v35 }
0x4ce3   :  { %4862 = vmax.xlane.f32.xlu1 %v4861_v56  ;;  %v8232_v56 = vrot.slane %v7969_v14, %v7113_v23 }
0x4ce7   :  { %4868 = vmax.xlane.f32.xlu1 %v4867_v52  ;;  %v5479_v52 = vcombine.high %v7971_v28, %v7971_v28 }
0x4d4c   :  { %v3567_v24 = vpop.xlane.xlu0 %3566 }
0x4d4d   :  { %6914 = vlog2.f32 %v3567_v24  ;;  %v8239_v24 = vrot.slane %v7971_v28, %v7113_v23 }
0x4d50   :  { %v3573_v39 = vpop.xlane.xlu0 %3572 }
0x4d51   :  { %6916 = vlog2.f32 %v3573_v39  ;;  %v5533_v39 = vsel %vm839_vm3, %v8232_v56, -inf }
0x4d54   :  { %v4185_v9 = vpop.xlane.xlu0 %4184 }
0x4d55   :  { %v8169_v50 = vsub.f32 %v8072_v8, %v4185_v9  ;;  %v5496_v9 = vcombine.high %v7969_v14, %v7969_v14 }
0x4d57   :  { %v6915_v27 = vpop.eup %6914  ;;  %v4215_v17 = vmul.f32 1.442695, %v8169_v50 }
0x4d58   :  { %v3589_v2 = vmul.f32 0.6931472, %v6915_v27  ;;  %v4191_v31 = vpop.xlane.xlu0 %4190  ;;  %v8246_v27 = vrot.slane %v5479_v52, %v7113_v23 }
0x4d59   :  { %6918 = vpow2.f32 %v4215_v17  ;;  %v8173_v25 = vsub.f32 %v8076_v40, %v4191_v31  ;;  %v5521_v17 = vsel %vm839_vm3, %v8239_v24, -inf }
0x4d5a   :  { %v3603_v32 = vsub.f32 %v8092_v26, %v3589_v2  ;;  %v8251_v2 = vrot.slane %v5496_v9, %v7113_v23  ;;  %v5527_v28 = vsel %vm839_vm3, %v8246_v27, -inf }
0x4d5b   :  { %v6917_v12 = vpop.eup %6916  ;;  %v4219_v53 = vmul.f32 1.442695, %v8173_v25 }
0x4d5c   :  { %5726 = vst.msk [vmem:[%s8430_s12 + $0x42] sm:$0x3] %vm839_vm3, %v3603_v32  ;;  %v3593_v8 = vmul.f32 0.6931472, %v6917_v12  ;;  %v4197_v11 = vpop.xlane.xlu0 %4196  ;;  %v5539_v31 = vsel %vm839_vm3, %v8251_v2, -inf }
0x4d5d   :  { %6920 = vpow2.f32 %v4219_v53  ;;  %v8182_v16 = vsub.f32 %v8083_v22, %v4197_v11 }
0x4d5e   :  { %v3605_v33 = vsub.f32 %v8095_v30, %v3593_v8 }
0x4d5f   :  { %v4223_v40 = vmul.f32 1.442695, %v8182_v16 }
0x4d60   :  { %5728 = vst.msk [vmem:[%s8430_s12 + $0x46] sm:$0x3] %vm839_vm3, %v3605_v33  ;;  %v4236_v26 = vpop.xlane.xlu1 %4235 }
0x4d61   :  { %6922 = vpow2.f32 %v4223_v40 }
0x4d62   :  { %6924 = vlog2.f32 %v4236_v26 }
0x4d63   :  { %v6919_v21 = vpop.eup %6918 }
0x4d64   :  { %v4242_v62 = vpop.xlane.xlu1 %4241  ;;  %v4231_v36 = vsel %vm839_vm3, %v6919_v21, 0.0 }
0x4d65   :  { %6926 = vlog2.f32 %v4242_v62  ;;  %4232 = vadd.xlane.f32.xlu0 %v4231_v36 }
0x4d67   :  { %v6921_v22 = vpop.eup %6920 }
0x4d68   :  { %v4248_v6 = vpop.xlane.xlu1 %4247  ;;  %v4237_v30 = vsel %vm839_vm3, %v6921_v22, 0.0 }
0x4d69   :  { %6928 = vlog2.f32 %v4248_v6  ;;  %4238 = vadd.xlane.f32.xlu0 %v4237_v30 }
0x4d6b   :  { %v6923_v1 = vpop.eup %6922 }
0x4d6c   :  { %v6925_v49 = vpop.eup %6924  ;;  %v4857_v38 = vpop.xlane.xlu1 %4856  ;;  %v4243_v10 = vsel %vm839_vm3, %v6923_v1, 0.0 }
0x4d6d   :  { %v4258_v47 = vmul.f32 0.6931472, %v6925_v49  ;;  %v8193_v19 = vsub.f32 %v4825_v61, %v4857_v38  ;;  %4244 = vadd.xlane.f32.xlu0 %v4243_v10 }
0x4d6f   :  { %v6927_v42 = vpop.eup %6926  ;;  %v4272_v43 = vsub.f32 %v8110_v37, %v4258_v47  ;;  %v4886_v46 = vmul.f32 1.442695, %v8193_v19 }
0x4d70   :  { %v4262_v48 = vmul.f32 0.6931472, %v6927_v42  ;;  %v4863_v34 = vpop.xlane.xlu1 %4862 }
0x4d71   :  { %5744 = vst.msk [vmem:[%s8430_s12 + $0x52] sm:$0x3] %vm839_vm3, %v4272_v43  ;;  %v8203_v59 = vsub.f32 %v4826_v60, %v4863_v34  ;;  %4853 = vmax.xlane.f32.xlu0 %v4852_v54  ;;  %6930 = vpow2.f32 %v4886_v46 }
0x4d72   :  { %v4274_v45 = vsub.f32 %v8120_v44, %v4262_v48 }
0x4d73   :  { %v6929_v63 = vpop.eup %6928  ;;  %v4890_v37 = vmul.f32 1.442695, %v8203_v59 }
0x4d74   :  { %5746 = vst.msk [vmem:[%s8430_s12 + $0x56] sm:$0x3] %vm839_vm3, %v4274_v45  ;;  %v4266_v4 = vmul.f32 0.6931472, %v6929_v63  ;;  %v4869_v0 = vpop.xlane.xlu1 %4868 }
0x4d75   :  { %v8216_v57 = vsub.f32 %v8164_v51, %v4869_v0  ;;  %4859 = vmax.xlane.f32.xlu0 %v4858_v7  ;;  %6932 = vpow2.f32 %v4890_v37 }
0x4d76   :  { %v4276_v44 = vsub.f32 %v8130_v58, %v4266_v4  ;;  %v8293_v4 = vcombine.high %v8232_v56, %v8232_v56 }
0x4d77   :  { %v4894_v55 = vmul.f32 1.442695, %v8216_v57 }
0x4d78   :  { %5748 = vst.msk [vmem:[%s8430_s12 + $0x5a] sm:$0x3] %vm839_vm3, %v4276_v44 }
0x4d79   :  { %4865 = vmax.xlane.f32.xlu0 %v4864_v29  ;;  %6934 = vpow2.f32 %v4894_v55 }
0x4d7b   :  { %v6931_v20 = vpop.eup %6930 }
0x4d7c   :  { %v4903_v58 = vsel %vm839_vm3, %v6931_v20, 0.0  ;;  %v5536_v20 = vsel %vm839_vm3, %v8293_v4, -inf }
0x4d7d   :  { %4871 = vmax.xlane.f32.xlu0 %v4870_v18 }
0x4d7f   :  { %v6933_v61 = vpop.eup %6932 }
0x4d80   :  { %v4909_v35 = vsel %vm839_vm3, %v6933_v61, 0.0 }
0x4d81   :  { %4904 = vadd.xlane.f32.xlu0 %v4903_v58  ;;  %v8304_v58 = vcombine.high %v8239_v24, %v8239_v24 }
0x4d83   :  { %v6935_v60 = vpop.eup %6934  ;;  %v5524_v52 = vsel %vm839_vm3, %v8304_v58, -inf }
0x4d84   :  { %v4915_v51 = vsel %vm839_vm3, %v6935_v60, 0.0 }
0x4d85   :  { %4910 = vadd.xlane.f32.xlu0 %v4909_v35 }
0x4d89   :  { %4916 = vadd.xlane.f32.xlu0 %v4915_v51 }
0x4d8d   :  { %5534 = vmax.xlane.f32.xlu0 %v5533_v39 }
0x4d91   :  { %5522 = vmax.xlane.f32.xlu0 %v5521_v17 }
0x4d95   :  { %5528 = vmax.xlane.f32.xlu0 %v5527_v28 }
0x4d99   :  { %5540 = vmax.xlane.f32.xlu0 %v5539_v31  ;;  %v5512_v31 = vcombine.high %v8251_v2, %v8251_v2 }
0x4df2   :  { %v4233_v32 = vpop.xlane.xlu0 %4232 }
0x4df3   :  { %6936 = vlog2.f32 %v4233_v32 }
0x4df6   :  { %v4239_v14 = vpop.xlane.xlu0 %4238 }
0x4df7   :  { %6938 = vlog2.f32 %v4239_v14 }
0x4dfa   :  { %v4245_v12 = vpop.xlane.xlu0 %4244 }
0x4dfb   :  { %6940 = vlog2.f32 %v4245_v12  ;;  %v5542_v12 = vsel %vm839_vm3, %v5512_v31, -inf }
0x4dfd   :  { %v6937_v53 = vpop.eup %6936 }
0x4dfe   :  { %v4256_v8 = vmul.f32 0.6931472, %v6937_v53  ;;  %v4854_v11 = vpop.xlane.xlu0 %4853 }
0x4dff   :  { %v8258_v23 = vsub.f32 %v8145_v3, %v4854_v11 }
0x4e00   :  { %v4271_v33 = vsub.f32 %v8169_v50, %v4256_v8 }
0x4e01   :  { %v6939_v40 = vpop.eup %6938  ;;  %v4884_v26 = vmul.f32 1.442695, %v8258_v23 }
0x4e02   :  { %5743 = vst.msk [vmem:[%s8430_s12 + $0x50] sm:$0x3] %vm839_vm3, %v4271_v33  ;;  %v4260_v21 = vmul.f32 0.6931472, %v6939_v40  ;;  %v4860_v62 = vpop.xlane.xlu0 %4859 }
0x4e03   :  { %6942 = vpow2.f32 %v4884_v26  ;;  %v8267_v36 = vsub.f32 %v8149_v15, %v4860_v62 }
0x4e04   :  { %v4273_v22 = vsub.f32 %v8173_v25, %v4260_v21 }
0x4e05   :  { %v6941_v3 = vpop.eup %6940  ;;  %v4888_v6 = vmul.f32 1.442695, %v8267_v36 }
0x4e06   :  { %5745 = vst.msk [vmem:[%s8430_s12 + $0x54] sm:$0x3] %vm839_vm3, %v4273_v22  ;;  %v4264_v50 = vmul.f32 0.6931472, %v6941_v3  ;;  %v4866_v30 = vpop.xlane.xlu0 %4865 }
0x4e07   :  { %6944 = vpow2.f32 %v4888_v6  ;;  %v8276_v1 = vsub.f32 %v8156_v5, %v4866_v30 }
0x4e08   :  { %v4275_v49 = vsub.f32 %v8182_v16, %v4264_v50 }
0x4e09   :  { %v4892_v15 = vmul.f32 1.442695, %v8276_v1 }
0x4e0a   :  { %5747 = vst.msk [vmem:[%s8430_s12 + $0x58] sm:$0x3] %vm839_vm3, %v4275_v49  ;;  %v4872_v25 = vpop.xlane.xlu0 %4871 }
0x4e0b   :  { %6946 = vpow2.f32 %v4892_v15  ;;  %v8284_v38 = vsub.f32 %v4841_v13, %v4872_v25 }
0x4e0d   :  { %v6943_v10 = vpop.eup %6942  ;;  %v4896_v47 = vmul.f32 1.442695, %v8284_v38 }
0x4e0e   :  { %v4905_v42 = vpop.xlane.xlu0 %4904  ;;  %v4900_v5 = vsel %vm839_vm3, %v6943_v10, 0.0 }
0x4e0f   :  { %6948 = vpow2.f32 %v4896_v47  ;;  %4901 = vadd.xlane.f32.xlu1 %v4900_v5 }
0x4e10   :  { %6950 = vlog2.f32 %v4905_v42 }
0x4e11   :  { %v6945_v16 = vpop.eup %6944 }
0x4e12   :  { %v4911_v43 = vpop.xlane.xlu0 %4910  ;;  %v4906_v46 = vsel %vm839_vm3, %v6945_v16, 0.0 }
0x4e13   :  { %6952 = vlog2.f32 %v4911_v43  ;;  %4907 = vadd.xlane.f32.xlu1 %v4906_v46 }
0x4e15   :  { %v6947_v48 = vpop.eup %6946 }
0x4e16   :  { %v4917_v34 = vpop.xlane.xlu0 %4916  ;;  %v4912_v54 = vsel %vm839_vm3, %v6947_v48, 0.0 }
0x4e17   :  { %6954 = vlog2.f32 %v4917_v34  ;;  %4913 = vadd.xlane.f32.xlu1 %v4912_v54 }
0x4e19   :  { %v6949_v45 = vpop.eup %6948 }
0x4e1a   :  { %v6951_v63 = vpop.eup %6950  ;;  %v5535_v37 = vpop.xlane.xlu0 %5534  ;;  %v4918_v41 = vsel %vm839_vm3, %v6949_v45, 0.0 }
0x4e1b   :  { %v4927_v0 = vmul.f32 0.6931472, %v6951_v63  ;;  %v8296_v7 = vsub.f32 %v8232_v56, %v5535_v37  ;;  %4919 = vadd.xlane.f32.xlu1 %v4918_v41 }
0x4e1d   :  { %v6953_v44 = vpop.eup %6952  ;;  %v4941_v55 = vsub.f32 %v8193_v19, %v4927_v0  ;;  %v5561_v29 = vmul.f32 1.442695, %v8296_v7 }
0x4e1e   :  { %v4931_v13 = vmul.f32 0.6931472, %v6953_v44  ;;  %v5523_v18 = vpop.xlane.xlu0 %5522 }
0x4e1f   :  { %5762 = vst.msk [vmem:[%s8430_s12 + $0x62] sm:$0x3] %vm839_vm3, %v4941_v55  ;;  %6956 = vpow2.f32 %v5561_v29  ;;  %v8311_v61 = vsub.f32 %v8239_v24, %v5523_v18  ;;  %5537 = vmax.xlane.f32.xlu1 %v5536_v20  ;;  %v5495_v24 = vcombine.high %v8246_v27, %v8246_v27 }
0x4e20   :  { %v4943_v19 = vsub.f32 %v8203_v59, %v4931_v13 }
0x4e21   :  { %v6955_v35 = vpop.eup %6954  ;;  %v5553_v60 = vmul.f32 1.442695, %v8311_v61  ;;  %v5530_v28 = vsel %vm839_vm3, %v5495_v24, -inf }
0x4e22   :  { %5764 = vst.msk [vmem:[%s8430_s12 + $0x66] sm:$0x3] %vm839_vm3, %v4943_v19  ;;  %v4935_v56 = vmul.f32 0.6931472, %v6955_v35  ;;  %v5529_v51 = vpop.xlane.xlu0 %5528 }
0x4e23   :  { %6958 = vpow2.f32 %v5553_v60  ;;  %v8324_v39 = vsub.f32 %v8246_v27, %v5529_v51  ;;  %5525 = vmax.xlane.f32.xlu1 %v5524_v52 }
0x4e24   :  { %v4945_v59 = vsub.f32 %v8216_v57, %v4935_v56 }
0x4e25   :  { %v5557_v9 = vmul.f32 1.442695, %v8324_v39 }
0x4e26   :  { %5766 = vst.msk [vmem:[%s8430_s12 + $0x6a] sm:$0x3] %vm839_vm3, %v4945_v59  ;;  %v5541_v17 = vpop.xlane.xlu0 %5540 }
0x4e27   :  { %6960 = vpow2.f32 %v5557_v9  ;;  %v8336_v27 = vsub.f32 %v8251_v2, %v5541_v17  ;;  %5531 = vmax.xlane.f32.xlu1 %v5530_v28 }
0x4e29   :  { %v6957_v32 = vpop.eup %6956  ;;  %v5565_v57 = vmul.f32 1.442695, %v8336_v27 }
0x4e2a   :  { %v5581_v14 = vsel %vm839_vm3, %v6957_v32, 0.0 }
0x4e2b   :  { %6962 = vpow2.f32 %v5565_v57  ;;  %5582 = vadd.xlane.f32.xlu0 %v5581_v14  ;;  %5543 = vmax.xlane.f32.xlu1 %v5542_v12 }
0x4e2d   :  { %v6959_v53 = vpop.eup %6958 }
0x4e2e   :  { %v5569_v8 = vsel %vm839_vm3, %v6959_v53, 0.0 }
0x4e2f   :  { %5570 = vadd.xlane.f32.xlu0 %v5569_v8 }
0x4e31   :  { %v6961_v11 = vpop.eup %6960 }
0x4e32   :  { %v5575_v33 = vsel %vm839_vm3, %v6961_v11, 0.0 }
0x4e33   :  { %5576 = vadd.xlane.f32.xlu0 %v5575_v33 }
0x4e35   :  { %v6963_v2 = vpop.eup %6962 }
0x4e36   :  { %v5587_v40 = vsel %vm839_vm3, %v6963_v2, 0.0 }
0x4e37   :  { %5588 = vadd.xlane.f32.xlu0 %v5587_v40 }
0x4e9c   :  { %v4902_v26 = vpop.xlane.xlu1 %4901 }
0x4e9d   :  { %6964 = vlog2.f32 %v4902_v26 }
0x4ea0   :  { %v4908_v21 = vpop.xlane.xlu1 %4907 }
0x4ea1   :  { %6966 = vlog2.f32 %v4908_v21 }
0x4ea4   :  { %v4914_v62 = vpop.xlane.xlu1 %4913 }
0x4ea5   :  { %6968 = vlog2.f32 %v4914_v62 }
0x4ea7   :  { %v6965_v22 = vpop.eup %6964 }
0x4ea8   :  { %v4925_v3 = vmul.f32 0.6931472, %v6965_v22  ;;  %v4920_v6 = vpop.xlane.xlu1 %4919 }
0x4ea9   :  { %6970 = vlog2.f32 %v4920_v6 }
0x4eaa   :  { %v4940_v50 = vsub.f32 %v8258_v23, %v4925_v3 }
0x4eab   :  { %v6967_v30 = vpop.eup %6966 }
0x4eac   :  { %5761 = vst.msk [vmem:[%s8430_s12 + $0x60] sm:$0x3] %vm839_vm3, %v4940_v50  ;;  %v4929_v49 = vmul.f32 0.6931472, %v6967_v30  ;;  %v5538_v15 = vpop.xlane.xlu1 %5537 }
0x4ead   :  { %v8350_v25 = vsub.f32 %v8293_v4, %v5538_v15 }
0x4eae   :  { %v4942_v10 = vsub.f32 %v8267_v36, %v4929_v49 }
0x4eaf   :  { %v6969_v47 = vpop.eup %6968  ;;  %v5563_v42 = vmul.f32 1.442695, %v8350_v25 }
0x4eb0   :  { %5763 = vst.msk [vmem:[%s8430_s12 + $0x64] sm:$0x3] %vm839_vm3, %v4942_v10  ;;  %v4933_v23 = vmul.f32 0.6931472, %v6969_v47  ;;  %v5526_v5 = vpop.xlane.xlu1 %5525 }
0x4eb1   :  { %6972 = vpow2.f32 %v5563_v42  ;;  %v8359_v16 = vsub.f32 %v8304_v58, %v5526_v5 }
0x4eb2   :  { %v4944_v43 = vsub.f32 %v8276_v1, %v4933_v23 }
0x4eb3   :  { %v6971_v46 = vpop.eup %6970  ;;  %v5555_v48 = vmul.f32 1.442695, %v8359_v16 }
0x4eb4   :  { %5765 = vst.msk [vmem:[%s8430_s12 + $0x68] sm:$0x3] %vm839_vm3, %v4944_v43  ;;  %v4937_v36 = vmul.f32 0.6931472, %v6971_v46  ;;  %v5532_v34 = vpop.xlane.xlu1 %5531 }
0x4eb5   :  { %6974 = vpow2.f32 %v5555_v48  ;;  %v8367_v54 = vsub.f32 %v5495_v24, %v5532_v34 }
0x4eb6   :  { %v4946_v45 = vsub.f32 %v8284_v38, %v4937_v36 }
0x4eb7   :  { %v5559_v63 = vmul.f32 1.442695, %v8367_v54 }
0x4eb8   :  { %5767 = vst.msk [vmem:[%s8430_s12 + $0x6c] sm:$0x3] %vm839_vm3, %v4946_v45  ;;  %v5583_v1 = vpop.xlane.xlu0 %5582  ;;  %v5544_v37 = vpop.xlane.xlu1 %5543 }
0x4eb9   :  { %6976 = vpow2.f32 %v5559_v63  ;;  %v5552_v41 = vsub.f32 %v5512_v31, %v5544_v37 }
0x4eba   :  { %6978 = vlog2.f32 %v5583_v1 }
0x4ebb   :  { %v6973_v4 = vpop.eup %6972  ;;  %v5567_v0 = vmul.f32 1.442695, %v5552_v41 }
0x4ebc   :  { %v5571_v44 = vpop.xlane.xlu0 %5570  ;;  %v5584_v55 = vsel %vm839_vm3, %v6973_v4, 0.0 }
0x4ebd   :  { %6980 = vpow2.f32 %v5567_v0  ;;  %5585 = vadd.xlane.f32.xlu1 %v5584_v55 }
0x4ebe   :  { %6982 = vlog2.f32 %v5571_v44 }
0x4ebf   :  { %v6975_v38 = vpop.eup %6974 }
0x4ec0   :  { %v5577_v29 = vpop.xlane.xlu0 %5576  ;;  %v5572_v13 = vsel %vm839_vm3, %v6975_v38, 0.0 }
0x4ec1   :  { %6984 = vlog2.f32 %v5577_v29  ;;  %5573 = vadd.xlane.f32.xlu1 %v5572_v13 }
0x4ec3   :  { %v6977_v18 = vpop.eup %6976 }
0x4ec4   :  { %v6979_v20 = vpop.eup %6978  ;;  %v5589_v58 = vpop.xlane.xlu0 %5588  ;;  %v5578_v19 = vsel %vm839_vm3, %v6977_v18, 0.0 }
0x4ec5   :  { %v5602_v35 = vmul.f32 0.6931472, %v6979_v20  ;;  %6986 = vlog2.f32 %v5589_v58  ;;  %5579 = vadd.xlane.f32.xlu1 %v5578_v19 }
0x4ec7   :  { %v6981_v60 = vpop.eup %6980  ;;  %v5613_v56 = vsub.f32 %v8296_v7, %v5602_v35 }
0x4ec8   :  { %v6983_v51 = vpop.eup %6982  ;;  %v5590_v52 = vsel %vm839_vm3, %v6981_v60, 0.0 }
0x4ec9   :  { %5783 = vst.msk [vmem:[%s8430_s12 + $0x78] sm:$0x3] %vm839_vm3, %v5613_v56  ;;  %v5594_v24 = vmul.f32 0.6931472, %v6983_v51  ;;  %5591 = vadd.xlane.f32.xlu1 %v5590_v52 }
0x4ecb   :  { %v6985_v59 = vpop.eup %6984  ;;  %v5609_v9 = vsub.f32 %v8311_v61, %v5594_v24 }
0x4ecc   :  { %v5598_v17 = vmul.f32 0.6931472, %v6985_v59 }
0x4ecd   :  { %5779 = vst.msk [vmem:[%s8430_s12 + $0x70] sm:$0x3] %vm839_vm3, %v5609_v9 }
0x4ece   :  { %v5611_v7 = vsub.f32 %v8324_v39, %v5598_v17 }
0x4ecf   :  { %v6987_v28 = vpop.eup %6986 }
0x4ed0   :  { %5781 = vst.msk [vmem:[%s8430_s12 + $0x74] sm:$0x3] %vm839_vm3, %v5611_v7  ;;  %v5606_v31 = vmul.f32 0.6931472, %v6987_v28 }
0x4ed2   :  { %v5615_v32 = vsub.f32 %v8336_v27, %v5606_v31 }
0x4ed4   :  { %5785 = vst.msk [vmem:[%s8430_s12 + $0x7c] sm:$0x3] %vm839_vm3, %v5615_v32 }
0x4f4a   :  { %v5586_v61 = vpop.xlane.xlu1 %5585 }
0x4f4b   :  { %6988 = vlog2.f32 %v5586_v61 }
0x4f4e   :  { %v5574_v57 = vpop.xlane.xlu1 %5573 }
0x4f4f   :  { %6990 = vlog2.f32 %v5574_v57 }
0x4f52   :  { %v5580_v14 = vpop.xlane.xlu1 %5579 }
0x4f53   :  { %6992 = vlog2.f32 %v5580_v14 }
0x4f55   :  { %v6989_v39 = vpop.eup %6988 }
0x4f56   :  { %v5604_v12 = vmul.f32 0.6931472, %v6989_v39  ;;  %v5592_v53 = vpop.xlane.xlu1 %5591 }
0x4f57   :  { %6994 = vlog2.f32 %v5592_v53 }
0x4f58   :  { %v5614_v8 = vsub.f32 %v8350_v25, %v5604_v12 }
0x4f59   :  { %v6991_v11 = vpop.eup %6990 }
0x4f5a   :  { %5784 = vst.msk [vmem:[%s8430_s12 + $0x7a] sm:$0x3] %vm839_vm3, %v5614_v8  ;;  %v5596_v27 = vmul.f32 0.6931472, %v6991_v11 }
0x4f5c   :  { %v5610_v33 = vsub.f32 %v8359_v16, %v5596_v27 }
0x4f5d   :  { %v6993_v2 = vpop.eup %6992 }
0x4f5e   :  { %5780 = vst.msk [vmem:[%s8430_s12 + $0x72] sm:$0x3] %vm839_vm3, %v5610_v33  ;;  %v5600_v40 = vmul.f32 0.6931472, %v6993_v2 }
0x4f60   :  { %v5612_v26 = vsub.f32 %v8367_v54, %v5600_v40 }
0x4f61   :  { %v6995_v21 = vpop.eup %6994 }
0x4f62   :  { %5782 = vst.msk [vmem:[%s8430_s12 + $0x76] sm:$0x3] %vm839_vm3, %v5612_v26  ;;  %v5608_v62 = vmul.f32 0.6931472, %v6995_v21 }
0x4f64   :  { %v5616_v22 = vsub.f32 %v5552_v41, %v5608_v62 }
0x4f66   :  { %5786 = vst.msk [vmem:[%s8430_s12 + $0x7e] sm:$0x3] %vm839_vm3, %v5616_v22 }

// kernel: joint_ere_forward.2
= control target key start
LH: loop header
LB: loop body
LE: loop exit
PB: predicated region body
PF: predicated region fallthrough
CT: control target
= control target key end

     0   :  { %v62_v0 = vlaneseq  ;;  %v4925_v4 = vmov 1983009808   ;;  %v4926_v25 = vmov 0.0|0.0   ;;  %vm91_vm0 = vcmask 130048   ;;  %s4930_s22 = smov 32   ;;  %s4931_s23 = smov 112   ;;  %s5545_s1 = inlined_call_operand.vmem [shape: f32[2,16,48], index: 1, kind: input, shape index: {}]   ;;  %s5546_s0 = inlined_call_operand.vmem [shape: f32[8,2,16], index: 0, kind: input, shape index: {}]   ;;  %s5547_s2 = inlined_call_operand.vmem [shape: f32[2,16,48], index: 2, kind: input, shape index: {}]   ;;  %s5548_s3 = inlined_call_operand.vmem [shape: f32[2,1,48], index: 3, kind: input, shape index: {}]   ;;  %s5549_s4 = inlined_call_operand.vmem [shape: f32[4,48], index: 4, kind: input, shape index: {}]   ;;  %s5550_s5 = inlined_call_operand.vmem [shape: f32[2,32,48], index: 5, kind: input, shape index: {}]   ;;  %s5551_s6 = inlined_call_operand.vmem [shape: f32[2,16,48], index: 6, kind: input, shape index: {}]   ;;  %s5552_s7 = inlined_call_operand.vmem [shape: f32[2,1,48], index: 7, kind: input, shape index: {}]   ;;  %s5553_s8 = inlined_call_operand.vmem [shape: f32[4,48], index: 8, kind: input, shape index: {}]   ;;  %s5554_s9 = inlined_call_operand.vmem [shape: f32[8,2,32], index: 9, kind: output, shape index: {}]  }
   0x1   :  { %v4240_v1 = vld [vmem:[%s5545_s1 + $0x10] sm:$0xff]  ;;  %v4241_v2 = vld [vmem:[%s5545_s1 + $0x18] sm:$0xff]  ;;  %v40_v3 = vld [vmem:[%s5545_s1] sm:$0xff]  ;;  %v60_v5 = vunpack.c.l.s4 %v4925_v4  ;;  %vm4927_vm1 = vmmov 0   ;;  %v4928_v37 = vmov 0.0   ;;  %vm215_vm2 = vcmask 386048  }
   0x2   :  { %v4699_v6 = vpack.c.bf16 %v4241_v2, %v4240_v1  ;;  %v41_v7 = vld [vmem:[%s5545_s1 + $0x8] sm:$0xff]  ;;  %v32_v8 = vld [vmem:[%s5546_s0] sm:$0x3]  ;;  %v33_v9 = vld [vmem:[%s5546_s0 + $0x2] sm:$0x3]  ;;  %v63_v10 = vshrl.u32 %v62_v0, 7 }
   0x3   :  { %v4695_v11 = vpack.c.bf16 %v41_v7, %v40_v3  ;;  %v34_v12 = vld [vmem:[%s5546_s0 + $0x4] sm:$0x3]  ;;  %v35_v13 = vld [vmem:[%s5546_s0 + $0x6] sm:$0x3]  ;;  %v57_v14 = vcombine.low %v32_v8, %v33_v9  ;;  %v61_v15 = vunpack.c.0.s8 %v60_v5  ;;  %v36_v16 = vld [vmem:[%s5546_s0 + $0x8] sm:$0x3] }
   0x4   :  { %4700 = vmatprep.subr.bf16.mxu1 %v4699_v6  ;;  %v58_v17 = vcombine.low %v34_v12, %v35_v13  ;;  %v37_v18 = vld [vmem:[%s5546_s0 + $0xa] sm:$0x3]  ;;  %v38_v19 = vld [vmem:[%s5546_s0 + $0xc] sm:$0x3]  ;;  %v39_v20 = vld [vmem:[%s5546_s0 + $0xe] sm:$0x3] }
   0x5   :  { %4696 = vmatprep.subr.bf16.mxu0 %v4695_v11  ;;  %4702 = vmatpush3.bf16.msra.mxu1 %v4699_v6  ;;  %v5019_v21 = vsub.s32 %v61_v15, %v63_v10  ;;  %v74_v22 = vcombine.low %v36_v16, %v37_v18  ;;  %v75_v23 = vcombine.low %v38_v19, %v39_v20  ;;  %v4246_v24 = vld [vmem:[%s5547_s2 + $0x10] sm:$0xff]  ;;  %v4247_v26 = vld [vmem:[%s5547_s2 + $0x18] sm:$0xff]  ;;  %v362_v27 = vld [vmem:[%s5547_s2] sm:$0xff]  ;;  %vm374_vm3 = vcmask 1041408  }
   0x6   :  { %4698 = vmatpush3.bf16.msra.mxu0 %v4695_v11  ;;  %4706 = vmatprep.subr.bf16.mxu1 %v4926_v25  ;;  %v363_v28 = vld [vmem:[%s5547_s2 + $0x8] sm:$0xff]  ;;  %v5039_v35 = vpack.c.bf16 %v4247_v26, %v4246_v24  ;;  %v4237_v38 = vld [vmem:[%s5548_s3] ss:$0 sm:$0xff]  ;;  %v4243_v39 = vld [vmem:[%s5548_s3 + $0x1] ss:$0 sm:$0xff]  ;;  %vm554_vm4 = vcmask 123904  }
   0x7   :  { %v65_v29 = vrot.slane %v57_v14, %v5019_v21  ;;  %v72_v30 = vrot.slane %v58_v17, %v5019_v21  ;;  %v82_v31 = vrot.slane %v74_v22, %v5019_v21  ;;  %v89_v32 = vrot.slane %v75_v23, %v5019_v21  ;;  %4703 = vmatprep.subr.bf16.mxu0 %v4926_v25  ;;  %v5090_v7 = vld [vmem:[%s5549_s4] sm:$0xf]  ;;  %s4929_s4 = smov 96  }
   0x8   :  { %v5041_v36 = vpack.c.bf16 %v363_v28, %v362_v27  ;;  %vm557_vm5 = vcmask 125954   ;;  %vm4088_vm6 = vcmask 261120   ;;  %vm4224_vm7 = vcmask 254976  }
   0x9   :  { %v73_v33 = vcombine.low %v65_v29, %v72_v30  ;;  %v90_v34 = vcombine.low %v82_v31, %v89_v32 }
   0xb   :  { %4433 = vmatprep.mubr.msk.f32.mxu0 %vm91_vm0, %v73_v33  ;;  %4440 = vmatprep.mubr.msk.f32.mxu1 %vm91_vm0, %v73_v33 }
   0xc   :  { %4434 = vmatmul.mubr.msk.f32.vlgmr.msra.gmra.mrb[0].mxu0 %vm91_vm0, %v90_v34  ;;  %4441 = vmatmul.mubr.msk.f32.vlgmr.msra.gmra.mrb[0].mxu1 %vm91_vm0, %v90_v34 }
   0xd   :  { %4708 = vmatpush3.bf16.msra.mxu1 %v5039_v35  ;;  %4705 = vmatpush3.bf16.msra.mxu0 %v5041_v36 }
   0xe   :  { %4454 = vmatprep.mubr.msk.f32.mxu1 %vm4927_vm1, %v4928_v37  ;;  %4447 = vmatprep.mubr.msk.f32.mxu0 %vm4927_vm1, %v4928_v37 }
   0xf   :  { %4709 = vmatprep.subr.bf16.mxu0 %v4926_v25  ;;  %4712 = vmatprep.subr.bf16.mxu1 %v4926_v25 }
  0x10   :  { %4455 = vmatmul.mubr.f32.vlgmr.msra.gmra.mrb[2].mxu1 %v4928_v37  ;;  %4448 = vmatmul.mubr.f32.vlgmr.msra.gmra.mrb[2].mxu0 %v4928_v37 }
  0x11   :  { %4711 = vmatpush3.bf16.msra.mxu0 %v5041_v36  ;;  %4714 = vmatpush3.bf16.msra.mxu1 %v5039_v35 }
  0x12   :  { %4461 = vmatprep.mubr.msk.f32.mxu0 %vm4927_vm1, %v4928_v37  ;;  %4468 = vmatprep.mubr.msk.f32.mxu1 %vm4927_vm1, %v4928_v37 }
  0x13   :  { %4715 = vmatprep.subr.bf16.mxu0 %v4926_v25  ;;  %4718 = vmatprep.subr.bf16.mxu1 %v4926_v25 }
  0xdf   :  { %v4435_v40 = vpop.f32.mrb[0].mxu0  ;;  %v4442_v41 = vpop.f32.mrb[0].mxu1 }
  0xe0   :  { %v168_v42 = vadd.f32 %v4435_v40, %v4237_v38  ;;  %v307_v43 = vadd.f32 %v4442_v41, %v4243_v39  ;;  %v162_v44 = vpop.f32.mrb[1].mxu0  ;;  %v301_v45 = vpop.f32.mrb[1].mxu1 }
  0xe1   :  { %v163_v46 = vadd.f32 %v4237_v38, %v162_v44  ;;  %v302_v47 = vadd.f32 %v4243_v39, %v301_v45 }
  0xe2   :  { %v190_v48 = vcombine.high %v168_v42, %v168_v42  ;;  %v197_v49 = vrot.slane %v168_v42, %v5019_v21  ;;  %v329_v50 = vcombine.high %v307_v43, %v307_v43  ;;  %v336_v51 = vrot.slane %v307_v43, %v5019_v21 }
  0xe3   :  { %v173_v52 = vcombine.high %v163_v46, %v163_v46  ;;  %v180_v53 = vrot.slane %v163_v46, %v5019_v21  ;;  %v312_v54 = vcombine.high %v302_v47, %v302_v47  ;;  %v319_v55 = vrot.slane %v302_v47, %v5019_v21  ;;  %v515_v56 = vpop.f32.mrb[2].mxu1  ;;  %v445_v57 = vpop.f32.mrb[2].mxu0 }
  0xe4   :  { %v204_v58 = vrot.slane %v190_v48, %v5019_v21  ;;  %v205_v59 = vcombine.high %v197_v49, %v197_v49  ;;  %220 = vst.msk [vmem:[#allocation2 + $0x8] sm:$0x3] %vm215_vm2, %v197_v49  ;;  %v343_v60 = vrot.slane %v329_v50, %v5019_v21  ;;  %v344_v61 = vcombine.high %v336_v51, %v336_v51  ;;  %v4456_v62 = vpop.f32.mrb[3].mxu1  ;;  %v4449_v63 = vpop.f32.mrb[3].mxu0 }
  0xe5   :  { %358 = vst.msk [vmem:[#allocation3 + $0x8] sm:$0x3] %vm215_vm2, %v336_v51  ;;  %v187_v0 = vrot.slane %v173_v52, %v5019_v21  ;;  %v188_v1 = vcombine.high %v180_v53, %v180_v53  ;;  %216 = vst.msk [vmem:[#allocation2] sm:$0x3] %vm215_vm2, %v180_v53  ;;  %v326_v2 = vrot.slane %v312_v54, %v5019_v21  ;;  %v520_v6 = vrot.slane %v515_v56, 6 }
  0xe6   :  { %v327_v3 = vcombine.high %v319_v55, %v319_v55  ;;  %354 = vst.msk [vmem:[#allocation3] sm:$0x3] %vm215_vm2, %v319_v55  ;;  %v206_v4 = vcombine.high %v204_v58, %v204_v58  ;;  %221 = vst.msk [vmem:[#allocation2 + $0xa] sm:$0x3] %vm215_vm2, %v205_v59  ;;  %v345_v5 = vcombine.high %v343_v60, %v343_v60 }
  0xe7   :  { %222 = vst.msk [vmem:[#allocation2 + $0xc] sm:$0x3] %vm215_vm2, %v204_v58  ;;  %359 = vst.msk [vmem:[#allocation3 + $0xa] sm:$0x3] %vm215_vm2, %v344_v61  ;;  %v189_v8 = vcombine.high %v187_v0, %v187_v0  ;;  %v328_v9 = vcombine.high %v326_v2, %v326_v2  ;;  %v522_v10 = vsel %vm374_vm3, %v445_v57, %v520_v6 }
  0xe8   :  { %360 = vst.msk [vmem:[#allocation3 + $0xc] sm:$0x3] %vm215_vm2, %v343_v60  ;;  %217 = vst.msk [vmem:[#allocation2 + $0x2] sm:$0x3] %vm215_vm2, %v188_v1  ;;  %v523_v11 = vadd.f32 %v522_v10, %v5090_v7 }
  0xe9   :  { %218 = vst.msk [vmem:[#allocation2 + $0x4] sm:$0x3] %vm215_vm2, %v187_v0  ;;  %355 = vst.msk [vmem:[#allocation3 + $0x2] sm:$0x3] %vm215_vm2, %v327_v3 }
  0xea   :  { %356 = vst.msk [vmem:[#allocation3 + $0x4] sm:$0x3] %vm215_vm2, %v326_v2  ;;  %223 = vst.msk [vmem:[#allocation2 + $0xe] sm:$0x3] %vm215_vm2, %v206_v4  ;;  %532 = vrot.lane.b32.xlu0 %v523_v11, %s4929_s4 }
  0xeb   :  { %361 = vst.msk [vmem:[#allocation3 + $0xe] sm:$0x3] %vm215_vm2, %v345_v5  ;;  %219 = vst.msk [vmem:[#allocation2 + $0x6] sm:$0x3] %vm215_vm2, %v189_v8 }
  0xec   :  { %357 = vst.msk [vmem:[#allocation3 + $0x6] sm:$0x3] %vm215_vm2, %v328_v9  ;;  %v368_v14 = vld [vmem:[#allocation2] sm:$0x3] }
  0xef   :  { %v562_v46 = vld [vmem:[#allocation3 + $0xc] sm:$0x3]  ;;  %v560_v48 = vld [vmem:[#allocation2 + $0x2] sm:$0x3] }
  0xf0   :  { %v564_v47 = vrot.slane %v562_v46, 6  ;;  %v950_v46 = vld [vmem:[#allocation3 + $0x8] sm:$0x3] }
  0xf2   :  { %v370_v12 = vld [vmem:[#allocation3 + $0xe] sm:$0x3]  ;;  %v566_v49 = vsel %vm374_vm3, %v560_v48, %v564_v47  ;;  %v948_v47 = vld [vmem:[#allocation2 + $0x6] sm:$0x3]  ;;  %v952_v48 = vrot.slane %v950_v46, 6 }
  0xf3   :  { %v372_v13 = vrot.slane %v370_v12, 6  ;;  %v756_v12 = vld [vmem:[#allocation3 + $0xa] sm:$0x3]  ;;  %v1338_v46 = vld [vmem:[#allocation3 + $0x4] sm:$0x3] }
  0xf5   :  { %v375_v15 = vsel %vm374_vm3, %v368_v14, %v372_v13  ;;  %v758_v13 = vrot.slane %v756_v12, 6  ;;  %v754_v14 = vld [vmem:[#allocation2 + $0x4] sm:$0x3]  ;;  %v1144_v12 = vld [vmem:[#allocation3 + $0x6] sm:$0x3] }
  0xf6   :  { %v524_v16 = vadd.f32 %v523_v11, %v375_v15 }
  0xf8   :  { %v4248_v17 = vmul.f32 -1.442695, %v524_v16 }
  0xfa   :  { %4827 = vpow2.f32 %v4248_v17 }
 0x104   :  { %v4828_v18 = vpop.eup %4827 }
 0x105   :  { %v528_v19 = vadd.f32 1.0, %v4828_v18 }
 0x107   :  { %4829 = vrcp.f32 %v528_v19 }
 0x111   :  { %v4830_v20 = vpop.eup %4829 }
 0x112   :  { %v542_v28 = vsub.f32 1.0, %v4830_v20  ;;  %v548_v30 = vmul.f32 0.0, %v4830_v20 }
 0x15c   :  { %v533_v22 = vpop.permute.xlu0 %532 }
 0x15d   :  { %v535_v23 = vmul.f32 %v4830_v20, %v533_v22 }
 0x15f   :  { %537 = vrot.lane.b32.xlu0 %v535_v23, %s4930_s22 }
 0x1d1   :  { %v538_v24 = vpop.permute.xlu0 %537 }
 0x1d2   :  { %v540_v26 = vadd.f32 %v538_v24, %v375_v15  ;;  %v760_v15 = vsel %vm374_vm3, %v754_v14, %v758_v13  ;;  %v1146_v13 = vrot.slane %v1144_v12, 6  ;;  %v1142_v14 = vld [vmem:[#allocation2 + $0x8] sm:$0x3] }
 0x1d4   :  { %4831 = vtanh.f32 %v540_v26 }
 0x1de   :  { %v4832_v27 = vpop.eup %4831 }
 0x1df   :  { %544 = vrot.lane.b32.xlu1 %v4832_v27, %s4931_s23 }
 0x251   :  { %v545_v29 = vpop.permute.xlu1 %544 }
 0x252   :  { %v547_v31 = vmul.f32 %v545_v29, %v542_v28 }
 0x254   :  { %v549_v32 = vadd.f32 %v548_v30, %v547_v31 }
 0x256   :  { %551 = vrot.lane.b32.xlu0 %v549_v32, %s4931_s23  ;;  %v639_v33 = vrot.slane %v549_v32, 2 }
 0x258   :  { %640 = vrot.lane.b32.xlu1 %v639_v33, %s4931_s23 }
 0x2c8   :  { %v552_v34 = vpop.permute.xlu0 %551 }
 0x2c9   :  { %555 = vst.msk [vmem:[#allocation4] sm:$0x3] %vm554_vm4, %v552_v34  ;;  %4462 = vmatmul.mubr.msk.f32.vlgmr.msra.gmra.mrb[4].mxu0 %vm91_vm0, %v552_v34 }
 0x2ca   :  { %558 = vst.msk [vmem:[#allocation5 + $0xc] sm:$0xc] %vm557_vm5, %v552_v34  ;;  %v641_v38 = vpop.permute.xlu1 %640  ;;  %4717 = vmatpush3.bf16.msra.mxu0 %v5041_v36  ;;  %4475 = vmatprep.mubr.msk.f32.mxu0 %vm4927_vm1, %v4928_v37 }
 0x2cb   :  { %4469 = vmatmul.mubr.msk.f32.vlgmr.msra.gmra.mrb[4].mxu1 %vm91_vm0, %v641_v38  ;;  %4721 = vmatprep.subr.bf16.mxu0 %v4926_v25 }
 0x2cc   :  { %4720 = vmatpush3.bf16.msra.mxu1 %v5039_v35  ;;  %4482 = vmatprep.mubr.msk.f32.mxu1 %vm4927_vm1, %v4928_v37 }
 0x2cd   :  { %4724 = vmatprep.subr.bf16.mxu1 %v4926_v25 }
 0x39c   :  { %v635_v39 = vpop.f32.mrb[4].mxu0 }
 0x39d   :  { %v4463_v40 = vpop.f32.mrb[5].mxu0 }
 0x39e   :  { %v710_v41 = vpop.f32.mrb[4].mxu1 }
 0x39f   :  { %v715_v42 = vrot.slane %v710_v41, 6  ;;  %v4470_v43 = vpop.f32.mrb[5].mxu1 }
 0x3a1   :  { %v717_v44 = vsel %vm374_vm3, %v635_v39, %v715_v42 }
 0x3a2   :  { %v718_v45 = vadd.f32 %v717_v44, %v5090_v7 }
 0x3a4   :  { %727 = vrot.lane.b32.xlu1 %v718_v45, %s4929_s4  ;;  %v719_v50 = vadd.f32 %v718_v45, %v566_v49 }
 0x3a6   :  { %v4251_v51 = vmul.f32 -1.442695, %v719_v50 }
 0x3a8   :  { %4833 = vpow2.f32 %v4251_v51 }
 0x3b2   :  { %v4834_v52 = vpop.eup %4833 }
 0x3b3   :  { %v723_v53 = vadd.f32 1.0, %v4834_v52 }
 0x3b5   :  { %4835 = vrcp.f32 %v723_v53 }
 0x3bf   :  { %v4836_v54 = vpop.eup %4835 }
 0x3c0   :  { %v737_v60 = vsub.f32 1.0, %v4836_v54  ;;  %v743_v62 = vmul.f32 %v4836_v54, %v549_v32 }
 0x416   :  { %v728_v55 = vpop.permute.xlu1 %727 }
 0x417   :  { %v730_v56 = vmul.f32 %v4836_v54, %v728_v55 }
 0x419   :  { %732 = vrot.lane.b32.xlu0 %v730_v56, %s4930_s22 }
 0x48b   :  { %v733_v57 = vpop.permute.xlu0 %732 }
 0x48c   :  { %v735_v58 = vadd.f32 %v733_v57, %v566_v49  ;;  %v954_v49 = vsel %vm374_vm3, %v948_v47, %v952_v48  ;;  %v1340_v47 = vrot.slane %v1338_v46, 6  ;;  %v1336_v48 = vld [vmem:[#allocation2 + $0xa] sm:$0x3]  ;;  %v1724_v46 = vld [vmem:[#allocation2 + $0xe] sm:$0x3] }
 0x48e   :  { %4837 = vtanh.f32 %v735_v58 }
 0x498   :  { %v4838_v59 = vpop.eup %4837 }
 0x499   :  { %739 = vrot.lane.b32.xlu1 %v4838_v59, %s4931_s23 }
 0x50b   :  { %v740_v61 = vpop.permute.xlu1 %739 }
 0x50c   :  { %v742_v63 = vmul.f32 %v740_v61, %v737_v60 }
 0x50e   :  { %v744_v0 = vadd.f32 %v743_v62, %v742_v63 }
 0x510   :  { %746 = vrot.lane.b32.xlu1 %v744_v0, %s4931_s23  ;;  %v833_v1 = vrot.slane %v744_v0, 2 }
 0x512   :  { %834 = vrot.lane.b32.xlu0 %v833_v1, %s4931_s23 }
 0x582   :  { %v747_v2 = vpop.permute.xlu1 %746 }
 0x583   :  { %750 = vst.msk [vmem:[#allocation4 + $0x2] sm:$0x3] %vm554_vm4, %v747_v2  ;;  %4476 = vmatmul.mubr.msk.f32.vlgmr.msra.gmra.mrb[6].mxu0 %vm91_vm0, %v747_v2 }
 0x584   :  { %752 = vst.msk [vmem:[#allocation5 + $0xa] sm:$0xc] %vm557_vm5, %v747_v2  ;;  %v835_v3 = vpop.permute.xlu0 %834  ;;  %4723 = vmatpush3.bf16.msra.mxu0 %v5041_v36  ;;  %4489 = vmatprep.mubr.msk.f32.mxu0 %vm4927_vm1, %v4928_v37 }
 0x585   :  { %4483 = vmatmul.mubr.msk.f32.vlgmr.msra.gmra.mrb[6].mxu1 %vm91_vm0, %v835_v3  ;;  %4727 = vmatprep.subr.bf16.mxu0 %v4926_v25 }
 0x586   :  { %4726 = vmatpush3.bf16.msra.mxu1 %v5039_v35  ;;  %4496 = vmatprep.mubr.msk.f32.mxu1 %vm4927_vm1, %v4928_v37 }
 0x587   :  { %4730 = vmatprep.subr.bf16.mxu1 %v4926_v25 }
 0x656   :  { %v829_v4 = vpop.f32.mrb[6].mxu0 }
 0x657   :  { %v4477_v5 = vpop.f32.mrb[7].mxu0 }
 0x658   :  { %v904_v6 = vpop.f32.mrb[6].mxu1 }
 0x659   :  { %v909_v8 = vrot.slane %v904_v6, 6  ;;  %v4484_v9 = vpop.f32.mrb[7].mxu1 }
 0x65b   :  { %v911_v10 = vsel %vm374_vm3, %v829_v4, %v909_v8 }
 0x65c   :  { %v912_v11 = vadd.f32 %v911_v10, %v5090_v7 }
 0x65e   :  { %921 = vrot.lane.b32.xlu0 %v912_v11, %s4929_s4  ;;  %v913_v16 = vadd.f32 %v912_v11, %v760_v15 }
 0x660   :  { %v4254_v17 = vmul.f32 -1.442695, %v913_v16 }
 0x662   :  { %4839 = vpow2.f32 %v4254_v17 }
 0x66c   :  { %v4840_v18 = vpop.eup %4839 }
 0x66d   :  { %v917_v19 = vadd.f32 1.0, %v4840_v18 }
 0x66f   :  { %4841 = vrcp.f32 %v917_v19 }
 0x679   :  { %v4842_v20 = vpop.eup %4841 }
 0x67a   :  { %v931_v28 = vsub.f32 1.0, %v4842_v20  ;;  %v937_v30 = vmul.f32 %v4842_v20, %v744_v0 }
 0x6d0   :  { %v922_v22 = vpop.permute.xlu0 %921 }
 0x6d1   :  { %v924_v23 = vmul.f32 %v4842_v20, %v922_v22 }
 0x6d3   :  { %926 = vrot.lane.b32.xlu1 %v924_v23, %s4930_s22 }
 0x745   :  { %v927_v24 = vpop.permute.xlu1 %926 }
 0x746   :  { %v929_v26 = vadd.f32 %v927_v24, %v760_v15  ;;  %v1148_v15 = vsel %vm374_vm3, %v1142_v14, %v1146_v13  ;;  %v1530_v13 = vld [vmem:[#allocation2 + $0xc] sm:$0x3] }
 0x748   :  { %4843 = vtanh.f32 %v929_v26 }
 0x752   :  { %v4844_v27 = vpop.eup %4843 }
 0x753   :  { %933 = vrot.lane.b32.xlu0 %v4844_v27, %s4931_s23 }
 0x7c5   :  { %v934_v29 = vpop.permute.xlu0 %933 }
 0x7c6   :  { %v936_v31 = vmul.f32 %v934_v29, %v931_v28 }
 0x7c8   :  { %v938_v32 = vadd.f32 %v937_v30, %v936_v31 }
 0x7ca   :  { %940 = vrot.lane.b32.xlu0 %v938_v32, %s4931_s23  ;;  %v1027_v33 = vrot.slane %v938_v32, 2 }
 0x7cc   :  { %1028 = vrot.lane.b32.xlu1 %v1027_v33, %s4931_s23 }
 0x83c   :  { %v941_v34 = vpop.permute.xlu0 %940 }
 0x83d   :  { %944 = vst.msk [vmem:[#allocation4 + $0x4] sm:$0x3] %vm554_vm4, %v941_v34  ;;  %4490 = vmatmul.mubr.msk.f32.vlgmr.msra.gmra.mrb[8].mxu0 %vm91_vm0, %v941_v34 }
 0x83e   :  { %946 = vst.msk [vmem:[#allocation5 + $0x8] sm:$0xc] %vm557_vm5, %v941_v34  ;;  %v1029_v38 = vpop.permute.xlu1 %1028  ;;  %4729 = vmatpush3.bf16.msra.mxu0 %v5041_v36  ;;  %4503 = vmatprep.mubr.msk.f32.mxu0 %vm4927_vm1, %v4928_v37 }
 0x83f   :  { %4497 = vmatmul.mubr.msk.f32.vlgmr.msra.gmra.mrb[8].mxu1 %vm91_vm0, %v1029_v38  ;;  %4733 = vmatprep.subr.bf16.mxu0 %v4926_v25 }
 0x840   :  { %4732 = vmatpush3.bf16.msra.mxu1 %v5039_v35  ;;  %4510 = vmatprep.mubr.msk.f32.mxu1 %vm4927_vm1, %v4928_v37 }
 0x841   :  { %4736 = vmatprep.subr.bf16.mxu1 %v4926_v25 }
 0x910   :  { %v1023_v39 = vpop.f32.mrb[8].mxu0 }
 0x911   :  { %v4491_v40 = vpop.f32.mrb[9].mxu0 }
 0x912   :  { %v1098_v41 = vpop.f32.mrb[8].mxu1 }
 0x913   :  { %v1103_v42 = vrot.slane %v1098_v41, 6  ;;  %v4498_v43 = vpop.f32.mrb[9].mxu1 }
 0x915   :  { %v1105_v44 = vsel %vm374_vm3, %v1023_v39, %v1103_v42 }
 0x916   :  { %v1106_v45 = vadd.f32 %v1105_v44, %v5090_v7 }
 0x918   :  { %1115 = vrot.lane.b32.xlu1 %v1106_v45, %s4929_s4  ;;  %v1107_v50 = vadd.f32 %v1106_v45, %v954_v49 }
 0x91a   :  { %v4257_v51 = vmul.f32 -1.442695, %v1107_v50 }
 0x91c   :  { %4845 = vpow2.f32 %v4257_v51 }
 0x926   :  { %v4846_v52 = vpop.eup %4845 }
 0x927   :  { %v1111_v53 = vadd.f32 1.0, %v4846_v52 }
 0x929   :  { %4847 = vrcp.f32 %v1111_v53 }
 0x933   :  { %v4848_v54 = vpop.eup %4847 }
 0x934   :  { %v1125_v60 = vsub.f32 1.0, %v4848_v54  ;;  %v1131_v62 = vmul.f32 %v4848_v54, %v938_v32 }
 0x98a   :  { %v1116_v55 = vpop.permute.xlu1 %1115 }
 0x98b   :  { %v1118_v56 = vmul.f32 %v4848_v54, %v1116_v55 }
 0x98d   :  { %1120 = vrot.lane.b32.xlu0 %v1118_v56, %s4930_s22 }
 0x9ff   :  { %v1121_v57 = vpop.permute.xlu0 %1120 }
 0xa00   :  { %v1123_v58 = vadd.f32 %v1121_v57, %v954_v49  ;;  %v1342_v49 = vsel %vm374_vm3, %v1336_v48, %v1340_v47 }
 0xa02   :  { %4849 = vtanh.f32 %v1123_v58 }
 0xa0c   :  { %v4850_v59 = vpop.eup %4849 }
 0xa0d   :  { %1127 = vrot.lane.b32.xlu1 %v4850_v59, %s4931_s23 }
 0xa7f   :  { %v1128_v61 = vpop.permute.xlu1 %1127 }
 0xa80   :  { %v1130_v63 = vmul.f32 %v1128_v61, %v1125_v60 }
 0xa82   :  { %v1132_v0 = vadd.f32 %v1131_v62, %v1130_v63 }
 0xa84   :  { %1134 = vrot.lane.b32.xlu1 %v1132_v0, %s4931_s23  ;;  %v1221_v1 = vrot.slane %v1132_v0, 2 }
 0xa86   :  { %1222 = vrot.lane.b32.xlu0 %v1221_v1, %s4931_s23 }
 0xaf6   :  { %v1135_v2 = vpop.permute.xlu1 %1134 }
 0xaf7   :  { %1138 = vst.msk [vmem:[#allocation4 + $0x6] sm:$0x3] %vm554_vm4, %v1135_v2  ;;  %4504 = vmatmul.mubr.msk.f32.vlgmr.msra.gmra.mrb[10].mxu0 %vm91_vm0, %v1135_v2 }
 0xaf8   :  { %1140 = vst.msk [vmem:[#allocation5 + $0x6] sm:$0xc] %vm557_vm5, %v1135_v2  ;;  %v1223_v3 = vpop.permute.xlu0 %1222  ;;  %4735 = vmatpush3.bf16.msra.mxu0 %v5041_v36  ;;  %4517 = vmatprep.mubr.msk.f32.mxu0 %vm4927_vm1, %v4928_v37 }
 0xaf9   :  { %4511 = vmatmul.mubr.msk.f32.vlgmr.msra.gmra.mrb[10].mxu1 %vm91_vm0, %v1223_v3  ;;  %4739 = vmatprep.subr.bf16.mxu0 %v4926_v25 }
 0xafa   :  { %4738 = vmatpush3.bf16.msra.mxu1 %v5039_v35  ;;  %4524 = vmatprep.mubr.msk.f32.mxu1 %vm4927_vm1, %v4928_v37 }
 0xafb   :  { %4742 = vmatprep.subr.bf16.mxu1 %v4926_v25 }
 0xbca   :  { %v1217_v4 = vpop.f32.mrb[10].mxu0 }
 0xbcb   :  { %v4505_v5 = vpop.f32.mrb[11].mxu0 }
 0xbcc   :  { %v1292_v6 = vpop.f32.mrb[10].mxu1 }
 0xbcd   :  { %v1297_v8 = vrot.slane %v1292_v6, 6  ;;  %v4512_v9 = vpop.f32.mrb[11].mxu1 }
 0xbcf   :  { %v1299_v10 = vsel %vm374_vm3, %v1217_v4, %v1297_v8 }
 0xbd0   :  { %v1300_v11 = vadd.f32 %v1299_v10, %v5090_v7 }
 0xbd2   :  { %1309 = vrot.lane.b32.xlu0 %v1300_v11, %s4929_s4  ;;  %v1301_v16 = vadd.f32 %v1300_v11, %v1148_v15 }
 0xbd4   :  { %v4260_v17 = vmul.f32 -1.442695, %v1301_v16 }
 0xbd6   :  { %4851 = vpow2.f32 %v4260_v17 }
 0xbe0   :  { %v4852_v18 = vpop.eup %4851 }
 0xbe1   :  { %v1305_v19 = vadd.f32 1.0, %v4852_v18 }
 0xbe3   :  { %4853 = vrcp.f32 %v1305_v19 }
 0xbed   :  { %v4854_v20 = vpop.eup %4853 }
 0xbee   :  { %v1319_v28 = vsub.f32 1.0, %v4854_v20  ;;  %v1325_v30 = vmul.f32 %v4854_v20, %v1132_v0 }
 0xc44   :  { %v1310_v22 = vpop.permute.xlu0 %1309 }
 0xc45   :  { %v1312_v23 = vmul.f32 %v4854_v20, %v1310_v22 }
 0xc47   :  { %1314 = vrot.lane.b32.xlu1 %v1312_v23, %s4930_s22 }
 0xcb9   :  { %v1315_v24 = vpop.permute.xlu1 %1314 }
 0xcba   :  { %v1317_v26 = vadd.f32 %v1315_v24, %v1148_v15 }
 0xcbc   :  { %4855 = vtanh.f32 %v1317_v26 }
 0xcc6   :  { %v4856_v27 = vpop.eup %4855 }
 0xcc7   :  { %1321 = vrot.lane.b32.xlu0 %v4856_v27, %s4931_s23 }
 0xd39   :  { %v1322_v29 = vpop.permute.xlu0 %1321 }
 0xd3a   :  { %v1324_v31 = vmul.f32 %v1322_v29, %v1319_v28 }
 0xd3c   :  { %v1326_v32 = vadd.f32 %v1325_v30, %v1324_v31 }
 0xd3e   :  { %1328 = vrot.lane.b32.xlu0 %v1326_v32, %s4931_s23  ;;  %v1415_v33 = vrot.slane %v1326_v32, 2 }
 0xd40   :  { %1416 = vrot.lane.b32.xlu1 %v1415_v33, %s4931_s23 }
 0xdb0   :  { %v1329_v34 = vpop.permute.xlu0 %1328 }
 0xdb1   :  { %1332 = vst.msk [vmem:[#allocation4 + $0x8] sm:$0x3] %vm554_vm4, %v1329_v34  ;;  %4518 = vmatmul.mubr.msk.f32.vlgmr.msra.gmra.mrb[12].mxu0 %vm91_vm0, %v1329_v34 }
 0xdb2   :  { %1334 = vst.msk [vmem:[#allocation5 + $0x4] sm:$0xc] %vm557_vm5, %v1329_v34  ;;  %v1417_v38 = vpop.permute.xlu1 %1416  ;;  %4741 = vmatpush3.bf16.msra.mxu0 %v5041_v36  ;;  %4531 = vmatprep.mubr.msk.f32.mxu0 %vm4927_vm1, %v4928_v37 }
 0xdb3   :  { %4525 = vmatmul.mubr.msk.f32.vlgmr.msra.gmra.mrb[12].mxu1 %vm91_vm0, %v1417_v38  ;;  %4745 = vmatprep.subr.bf16.mxu0 %v4926_v25 }
 0xdb4   :  { %4744 = vmatpush3.bf16.msra.mxu1 %v5039_v35  ;;  %4538 = vmatprep.mubr.msk.f32.mxu1 %vm4927_vm1, %v4928_v37 }
 0xdb5   :  { %4748 = vmatprep.subr.bf16.mxu1 %v4926_v25 }
 0xe84   :  { %v1411_v39 = vpop.f32.mrb[12].mxu0 }
 0xe85   :  { %v4519_v40 = vpop.f32.mrb[13].mxu0 }
 0xe86   :  { %v1486_v41 = vpop.f32.mrb[12].mxu1 }
 0xe87   :  { %v1491_v42 = vrot.slane %v1486_v41, 6  ;;  %v4526_v43 = vpop.f32.mrb[13].mxu1 }
 0xe89   :  { %v1493_v44 = vsel %vm374_vm3, %v1411_v39, %v1491_v42 }
 0xe8a   :  { %v1494_v45 = vadd.f32 %v1493_v44, %v5090_v7  ;;  %v1725_v44 = vld [vmem:[#allocation3] sm:$0x3] }
 0xe8c   :  { %1503 = vrot.lane.b32.xlu1 %v1494_v45, %s4929_s4  ;;  %v1495_v50 = vadd.f32 %v1494_v45, %v1342_v49  ;;  %v1727_v45 = vrot.slane %v1725_v44, 6 }
 0xe8e   :  { %v4263_v51 = vmul.f32 -1.442695, %v1495_v50  ;;  %v1729_v47 = vsel %vm374_vm3, %v1724_v46, %v1727_v45  ;;  %v1919_v46 = vld [vmem:[#allocation4 + $0x8] sm:$0x3] }
 0xe90   :  { %4857 = vpow2.f32 %v4263_v51 }
 0xe9a   :  { %v4858_v52 = vpop.eup %4857 }
 0xe9b   :  { %v1499_v53 = vadd.f32 1.0, %v4858_v52 }
 0xe9d   :  { %4859 = vrcp.f32 %v1499_v53 }
 0xea7   :  { %v4860_v54 = vpop.eup %4859 }
 0xea8   :  { %v1513_v60 = vsub.f32 1.0, %v4860_v54  ;;  %v1519_v62 = vmul.f32 %v4860_v54, %v1326_v32 }
 0xefe   :  { %v1504_v55 = vpop.permute.xlu1 %1503 }
 0xeff   :  { %v1506_v56 = vmul.f32 %v4860_v54, %v1504_v55 }
 0xf01   :  { %1508 = vrot.lane.b32.xlu0 %v1506_v56, %s4930_s22 }
 0xf73   :  { %v1509_v57 = vpop.permute.xlu0 %1508 }
 0xf74   :  { %v1511_v58 = vadd.f32 %v1509_v57, %v1342_v49  ;;  %v4272_v57 = vld [vmem:[%s5550_s5 + $0x30] sm:$0xff] }
 0xf76   :  { %4861 = vtanh.f32 %v1511_v58  ;;  %v4273_v58 = vld [vmem:[%s5550_s5 + $0x38] sm:$0xff] }
 0xf80   :  { %v4862_v59 = vpop.eup %4861 }
 0xf81   :  { %1515 = vrot.lane.b32.xlu1 %v4862_v59, %s4931_s23  ;;  %v1933_v59 = vld [vmem:[%s5550_s5 + $0x10] sm:$0xff] }
 0xff3   :  { %v1516_v61 = vpop.permute.xlu1 %1515 }
 0xff4   :  { %v1518_v63 = vmul.f32 %v1516_v61, %v1513_v60  ;;  %v4759_v60 = vpack.c.bf16 %v4273_v58, %v4272_v57  ;;  %v1934_v61 = vld [vmem:[%s5550_s5 + $0x18] sm:$0xff]  ;;  %v4284_v57 = vld [vmem:[%s5552_s7 + $0x1] ss:$0 sm:$0xff] }
 0xff6   :  { %v1520_v0 = vadd.f32 %v1519_v62, %v1518_v63  ;;  %v4751_v62 = vpack.c.bf16 %v1934_v61, %v1933_v59 }
 0xff8   :  { %1522 = vrot.lane.b32.xlu1 %v1520_v0, %s4931_s23  ;;  %v1609_v1 = vrot.slane %v1520_v0, 2 }
 0xffa   :  { %1610 = vrot.lane.b32.xlu0 %v1609_v1, %s4931_s23 }
0x106a   :  { %v1523_v2 = vpop.permute.xlu1 %1522 }
0x106b   :  { %1526 = vst.msk [vmem:[#allocation4 + $0xa] sm:$0x3] %vm554_vm4, %v1523_v2  ;;  %4532 = vmatmul.mubr.msk.f32.vlgmr.msra.gmra.mrb[14].mxu0 %vm91_vm0, %v1523_v2 }
0x106c   :  { %1528 = vst.msk [vmem:[#allocation5 + $0x2] sm:$0xc] %vm557_vm5, %v1523_v2  ;;  %v1611_v3 = vpop.permute.xlu0 %1610  ;;  %4747 = vmatpush3.bf16.msra.mxu0 %v5041_v36  ;;  %4545 = vmatprep.mubr.msk.f32.mxu0 %vm4927_vm1, %v4928_v37  ;;  %v1532_v36 = vld [vmem:[#allocation3 + $0x2] sm:$0x3] }
0x106d   :  { %4539 = vmatmul.mubr.msk.f32.vlgmr.msra.gmra.mrb[14].mxu1 %vm91_vm0, %v1611_v3  ;;  %v1534_v12 = vrot.slane %v1532_v36, 6  ;;  %4752 = vmatprep.subr.bf16.mxu0 %v4751_v62  ;;  %v1927_v36 = vld [vmem:[#allocation5 + $0x8] sm:$0x3] }
0x106e   :  { %4750 = vmatpush3.bf16.msra.mxu1 %v5039_v35  ;;  %4552 = vmatprep.mubr.msk.f32.mxu1 %vm4927_vm1, %v4928_v37 }
0x106f   :  { %v1536_v14 = vsel %vm374_vm3, %v1530_v13, %v1534_v12  ;;  %4760 = vmatprep.subr.bf16.mxu1 %v4759_v60  ;;  %v1918_v13 = vld [vmem:[#allocation4 + $0x6] sm:$0x3] }
0x1073   :  { %v1925_v12 = vld [vmem:[#allocation5 + $0x4] sm:$0x3] }
0x113e   :  { %v1605_v4 = vpop.f32.mrb[14].mxu0 }
0x113f   :  { %v4533_v5 = vpop.f32.mrb[15].mxu0 }
0x1140   :  { %v1680_v6 = vpop.f32.mrb[14].mxu1  ;;  %v4271_v5 = vld [vmem:[%s5550_s5 + $0x28] sm:$0xff] }
0x1141   :  { %v1685_v8 = vrot.slane %v1680_v6, 6  ;;  %v4540_v9 = vpop.f32.mrb[15].mxu1 }
0x1142   :  { %v1932_v9 = vld [vmem:[%s5550_s5 + $0x8] sm:$0xff] }
0x1143   :  { %v1687_v10 = vsel %vm374_vm3, %v1605_v4, %v1685_v8  ;;  %v4270_v4 = vld [vmem:[%s5550_s5 + $0x20] sm:$0xff] }
0x1144   :  { %v1688_v11 = vadd.f32 %v1687_v10, %v5090_v7  ;;  %v4763_v6 = vpack.c.bf16 %v4271_v5, %v4270_v4  ;;  %v1931_v8 = vld [vmem:[%s5550_s5] sm:$0xff] }
0x1145   :  { %v4755_v10 = vpack.c.bf16 %v1932_v9, %v1931_v8 }
0x1146   :  { %1697 = vrot.lane.b32.xlu0 %v1688_v11, %s4929_s4  ;;  %v1689_v35 = vadd.f32 %v1688_v11, %v1536_v14 }
0x1148   :  { %v4266_v15 = vmul.f32 -1.442695, %v1689_v35  ;;  %v1929_v35 = vld [vmem:[#allocation5 + $0xc] sm:$0x3] }
0x114a   :  { %4863 = vpow2.f32 %v4266_v15  ;;  %v1926_v15 = vld [vmem:[#allocation5 + $0x6] sm:$0x3] }
0x1154   :  { %v4864_v16 = vpop.eup %4863 }
0x1155   :  { %v1693_v17 = vadd.f32 1.0, %v4864_v16 }
0x1157   :  { %4865 = vrcp.f32 %v1693_v17  ;;  %v1916_v17 = vld [vmem:[#allocation4 + $0x2] sm:$0x3] }
0x1161   :  { %v4866_v18 = vpop.eup %4865 }
0x1162   :  { %v1707_v26 = vsub.f32 1.0, %v4866_v18  ;;  %v1713_v28 = vmul.f32 %v4866_v18, %v1520_v0 }
0x11b8   :  { %v1698_v19 = vpop.permute.xlu0 %1697 }
0x11b9   :  { %v1700_v20 = vmul.f32 %v4866_v18, %v1698_v19  ;;  %v1917_v18 = vld [vmem:[#allocation4 + $0x4] sm:$0x3]  ;;  %v1949_v19 = vcombine.low %v1925_v12, %v1926_v15 }
0x11bb   :  { %1702 = vrot.lane.b32.xlu1 %v1700_v20, %s4930_s22  ;;  %v1930_v20 = vld [vmem:[#allocation5 + $0xe] sm:$0x3] }
0x122d   :  { %v1703_v22 = vpop.permute.xlu1 %1702 }
0x122e   :  { %v1705_v23 = vadd.f32 %v1703_v22, %v1536_v14  ;;  %v1928_v14 = vld [vmem:[#allocation5 + $0xa] sm:$0x3]  ;;  %v2070_v22 = vcombine.low %v1917_v18, %v1918_v13 }
0x122f   :  { %v1965_v16 = vcombine.low %v1927_v36, %v1928_v14 }
0x1230   :  { %4867 = vtanh.f32 %v1705_v23 }
0x123a   :  { %v4868_v24 = vpop.eup %4867 }
0x123b   :  { %1709 = vrot.lane.b32.xlu0 %v4868_v24, %s4931_s23 }
0x12ad   :  { %v1710_v27 = vpop.permute.xlu0 %1709 }
0x12ae   :  { %v1712_v29 = vmul.f32 %v1710_v27, %v1707_v26  ;;  %v1966_v26 = vcombine.low %v1929_v35, %v1930_v20  ;;  %v1915_v27 = vld [vmem:[#allocation4] sm:$0x3] }
0x12b0   :  { %v1714_v30 = vadd.f32 %v1713_v28, %v1712_v29  ;;  %v2069_v29 = vcombine.low %v1915_v27, %v1916_v17 }
0x12b2   :  { %1716 = vrot.lane.b32.xlu0 %v1714_v30, %s4931_s23  ;;  %v1802_v31 = vrot.slane %v1714_v30, 2 }
0x12b4   :  { %1803 = vrot.lane.b32.xlu1 %v1802_v31, %s4931_s23 }
0x1324   :  { %v1717_v32 = vpop.permute.xlu0 %1716 }
0x1325   :  { %1720 = vst.msk [vmem:[#allocation4 + $0xc] sm:$0x3] %vm554_vm4, %v1717_v32  ;;  %4546 = vmatmul.mubr.msk.f32.vlgmr.msra.gmra.mrb[16].mxu0 %vm91_vm0, %v1717_v32 }
0x1326   :  { %1722 = vst.msk [vmem:[#allocation5] sm:$0xc] %vm557_vm5, %v1717_v32  ;;  %v1804_v33 = vpop.permute.xlu1 %1803  ;;  %4754 = vmatpush3.bf16.msra.mxu0 %v4751_v62  ;;  %v1963_v32 = vrot.slane %v1949_v19, %v5019_v21 }
0x1327   :  { %4553 = vmatmul.mubr.msk.f32.vlgmr.msra.gmra.mrb[16].mxu1 %vm91_vm0, %v1804_v33  ;;  %4756 = vmatprep.subr.bf16.mxu0 %v4755_v10  ;;  %v2084_v33 = vrot.slane %v2070_v22, %v5019_v21 }
0x1328   :  { %4762 = vmatpush3.bf16.msra.mxu1 %v4759_v60 }
0x1329   :  { %4764 = vmatprep.subr.bf16.mxu1 %v4763_v6 }
0x132d   :  { %v1924_v24 = vld [vmem:[#allocation5 + $0x2] sm:$0x3] }
0x13f8   :  { %v1798_v34 = vpop.f32.mrb[16].mxu0 }
0x13f9   :  { %v4547_v38 = vpop.f32.mrb[17].mxu0 }
0x13fa   :  { %v1873_v39 = vpop.f32.mrb[16].mxu1  ;;  %v1980_v38 = vrot.slane %v1966_v26, %v5019_v21  ;;  %v5340_v26 = vld [vmem:[%s5553_s8] sm:$0xf]  ;;  %s4932_s8 = smov 16  }
0x13fb   :  { %v1878_v40 = vrot.slane %v1873_v39, 6  ;;  %v4554_v41 = vpop.f32.mrb[17].mxu1 }
0x13fc   :  { %v1920_v41 = vld [vmem:[#allocation4 + $0xa] sm:$0x3] }
0x13fd   :  { %v1880_v42 = vsel %vm374_vm3, %v1798_v34, %v1878_v40  ;;  %v2077_v40 = vrot.slane %v2069_v29, %v5019_v21 }
0x13fe   :  { %v1881_v43 = vadd.f32 %v1880_v42, %v5090_v7  ;;  %v1921_v42 = vld [vmem:[#allocation4 + $0xc] sm:$0x3] }
0x13ff   :  { %v2085_v45 = vcombine.low %v2077_v40, %v2084_v33 }
0x1400   :  { %1890 = vrot.lane.b32.xlu1 %v1881_v43, %s4929_s4  ;;  %v1882_v48 = vadd.f32 %v1881_v43, %v1729_v47 }
0x1402   :  { %v4269_v49 = vmul.f32 -1.442695, %v1882_v48  ;;  %v4285_v48 = vld [vmem:[%s5551_s6 + $0x10] sm:$0xff] }
0x1404   :  { %4869 = vpow2.f32 %v4269_v49 }
0x140e   :  { %v4870_v50 = vpop.eup %4869 }
0x140f   :  { %v1886_v51 = vadd.f32 1.0, %v4870_v50  ;;  %v4286_v50 = vld [vmem:[%s5551_s6 + $0x18] sm:$0xff] }
0x1411   :  { %4871 = vrcp.f32 %v1886_v51  ;;  %v2455_v51 = vld [vmem:[%s5551_s6] sm:$0xff] }
0x141b   :  { %v4872_v52 = vpop.eup %4871 }
0x141c   :  { %v1900_v63 = vsub.f32 1.0, %v4872_v52  ;;  %v1906_v1 = vmul.f32 %v4872_v52, %v1714_v30  ;;  %v1973_v30 = vrot.slane %v1965_v16, %v5019_v21 }
0x141e   :  { %v1981_v43 = vcombine.low %v1973_v30, %v1980_v38 }
0x1472   :  { %v1891_v53 = vpop.permute.xlu1 %1890 }
0x1473   :  { %v1893_v54 = vmul.f32 %v4872_v52, %v1891_v53  ;;  %v2456_v52 = vld [vmem:[%s5551_s6 + $0x8] sm:$0xff] }
0x1475   :  { %1895 = vrot.lane.b32.xlu0 %v1893_v54, %s4930_s22  ;;  %v5291_v54 = vpack.c.bf16 %v4286_v50, %v4285_v48 }
0x14e7   :  { %v1896_v55 = vpop.permute.xlu0 %1895 }
0x14e8   :  { %v1898_v7 = vadd.f32 %v1896_v55, %v1729_v47  ;;  %v2086_v47 = vcombine.low %v1919_v46, %v1920_v41  ;;  %v5293_v55 = vpack.c.bf16 %v2456_v52, %v2455_v51 }
0x14ea   :  { %4873 = vtanh.f32 %v1898_v7  ;;  %v2094_v53 = vrot.slane %v2086_v47, %v5019_v21 }
0x14f4   :  { %v4874_v56 = vpop.eup %4873 }
0x14f5   :  { %1902 = vrot.lane.b32.xlu1 %v4874_v56, %s4931_s23  ;;  %v4278_v56 = vld [vmem:[%s5552_s7] ss:$0 sm:$0xff] }
0x1567   :  { %v1903_v0 = vpop.permute.xlu1 %1902 }
0x1568   :  { %v1905_v2 = vmul.f32 %v1903_v0, %v1900_v63 }
0x156a   :  { %v1907_v3 = vadd.f32 %v1906_v1, %v1905_v2 }
0x156c   :  { %1909 = vrot.lane.b32.xlu0 %v1907_v3, %s4931_s23 }
0x15de   :  { %v1910_v11 = vpop.permute.xlu0 %1909 }
0x15df   :  { %1913 = vst.msk [vmem:[#allocation4 + $0xe] sm:$0x3] %vm554_vm4, %v1910_v11 }
0x15e0   :  { %1914 = vst.msk [vmem:[#allocation5 - $0x2] sm:$0xc] %vm557_vm5, %v1910_v11 }
0x15e6   :  { %v1922_v34 = vld [vmem:[#allocation4 + $0xe] sm:$0x3] }
0x15e7   :  { %v1923_v23 = vld [vmem:[#allocation5] sm:$0x3]  ;;  %v2087_v44 = vcombine.low %v1921_v42, %v1922_v34 }
0x15e8   :  { %v1948_v28 = vcombine.low %v1923_v23, %v1924_v24 }
0x15e9   :  { %v2101_v49 = vrot.slane %v2087_v44, %v5019_v21 }
0x15ea   :  { %v1956_v31 = vrot.slane %v1948_v28, %v5019_v21 }
0x15eb   :  { %v2102_v7 = vcombine.low %v2094_v53, %v2101_v49 }
0x15ec   :  { %v1964_v39 = vcombine.low %v1956_v31, %v1963_v32 }
0x15ee   :  { %4559 = vmatprep.mubr.msk.f32.mxu0 %vm91_vm0, %v1964_v39  ;;  %4573 = vmatprep.mubr.msk.f32.mxu1 %vm91_vm0, %v1964_v39 }
0x15ef   :  { %4560 = vmatmul.mubr.msk.f32.vlgmr.msra.gmra.mrb[18].mxu0 %vm91_vm0, %v1981_v43  ;;  %4574 = vmatmul.mubr.msk.f32.vlgmr.msra.gmra.mrb[18].mxu1 %vm91_vm0, %v1981_v43 }
0x15f0   :  { %4766 = vmatpush3.bf16.msra.mxu1 %v4763_v6  ;;  %4566 = vmatprep.mubr.msk.f32.mxu0 %vm91_vm0, %v2085_v45 }
0x15f1   :  { %4580 = vmatprep.mubr.msk.f32.mxu1 %vm91_vm0, %v2085_v45  ;;  %4758 = vmatpush3.bf16.msra.mxu0 %v4755_v10 }
0x15f2   :  { %4770 = vmatprep.subr.bf16.mxu1 %v4926_v25  ;;  %4767 = vmatprep.subr.bf16.mxu0 %v4926_v25 }
0x15f7   :  { %4567 = vmatmul.mubr.msk.f32.vlgmr.msra.gmra.mrb[18].mxu0 %vm91_vm0, %v2102_v7  ;;  %4581 = vmatmul.mubr.msk.f32.vlgmr.msra.gmra.mrb[18].mxu1 %vm91_vm0, %v2102_v7 }
0x15f8   :  { %4772 = vmatpush3.bf16.msra.mxu1 %v5291_v54  ;;  %4769 = vmatpush3.bf16.msra.mxu0 %v5293_v55 }
0x15f9   :  { %4594 = vmatprep.mubr.msk.f32.mxu1 %vm4927_vm1, %v4928_v37  ;;  %4587 = vmatprep.mubr.msk.f32.mxu0 %vm4927_vm1, %v4928_v37 }
0x15fa   :  { %4773 = vmatprep.subr.bf16.mxu0 %v4926_v25  ;;  %4776 = vmatprep.subr.bf16.mxu1 %v4926_v25 }
0x15fb   :  { %4595 = vmatmul.mubr.f32.vlgmr.msra.gmra.mrb[20].mxu1 %v4928_v37  ;;  %4588 = vmatmul.mubr.f32.vlgmr.msra.gmra.mrb[20].mxu0 %v4928_v37 }
0x15fc   :  { %4775 = vmatpush3.bf16.msra.mxu0 %v5293_v55  ;;  %4778 = vmatpush3.bf16.msra.mxu1 %v5291_v54 }
0x15fd   :  { %4601 = vmatprep.mubr.msk.f32.mxu0 %vm4927_vm1, %v4928_v37  ;;  %4608 = vmatprep.mubr.msk.f32.mxu1 %vm4927_vm1, %v4928_v37 }
0x15fe   :  { %4779 = vmatprep.subr.bf16.mxu0 %v4926_v25  ;;  %4782 = vmatprep.subr.bf16.mxu1 %v4926_v25 }
0x16ca   :  { %v4568_v58 = vpop.f32.mrb[18].mxu0  ;;  %v4582_v59 = vpop.f32.mrb[18].mxu1 }
0x16cb   :  { %v2190_v60 = vadd.f32 %v4568_v58, %v4278_v56  ;;  %v2402_v61 = vadd.f32 %v4582_v59, %v4284_v57  ;;  %v2173_v62 = vpop.f32.mrb[19].mxu0  ;;  %v2384_v63 = vpop.f32.mrb[19].mxu1 }
0x16cc   :  { %v2189_v0 = vadd.f32 %v4278_v56, %v2173_v62  ;;  %v2401_v1 = vadd.f32 %v4284_v57, %v2384_v63 }
0x16cd   :  { %v2210_v2 = vcombine.high %v2190_v60, %v2190_v60  ;;  %v2217_v3 = vrot.slane %v2190_v60, %v5019_v21  ;;  %v2422_v4 = vcombine.high %v2402_v61, %v2402_v61  ;;  %v2429_v5 = vrot.slane %v2402_v61, %v5019_v21 }
0x16ce   :  { %v2193_v6 = vcombine.high %v2189_v0, %v2189_v0  ;;  %v2200_v8 = vrot.slane %v2189_v0, %v5019_v21  ;;  %v2405_v9 = vcombine.high %v2401_v1, %v2401_v1  ;;  %v2412_v10 = vrot.slane %v2401_v1, %v5019_v21  ;;  %v2603_v11 = vpop.f32.mrb[20].mxu1  ;;  %v2533_v36 = vpop.f32.mrb[20].mxu0 }
0x16cf   :  { %v2224_v12 = vrot.slane %v2210_v2, %v5019_v21  ;;  %v2225_v13 = vcombine.high %v2217_v3, %v2217_v3  ;;  %2239 = vst.msk [vmem:[#allocation2 + $0x8] sm:$0x3] %vm215_vm2, %v2217_v3  ;;  %v2436_v14 = vrot.slane %v2422_v4, %v5019_v21  ;;  %v2437_v35 = vcombine.high %v2429_v5, %v2429_v5  ;;  %v4596_v15 = vpop.f32.mrb[21].mxu1  ;;  %v4589_v16 = vpop.f32.mrb[21].mxu0 }
0x16d0   :  { %2451 = vst.msk [vmem:[#allocation3 + $0x8] sm:$0x3] %vm215_vm2, %v2429_v5  ;;  %v2207_v17 = vrot.slane %v2193_v6, %v5019_v21  ;;  %v2208_v18 = vcombine.high %v2200_v8, %v2200_v8  ;;  %2235 = vst.msk [vmem:[#allocation2] sm:$0x3] %vm215_vm2, %v2200_v8  ;;  %v2419_v19 = vrot.slane %v2405_v9, %v5019_v21  ;;  %v2608_v24 = vrot.slane %v2603_v11, 6 }
0x16d1   :  { %v2420_v20 = vcombine.high %v2412_v10, %v2412_v10  ;;  %2447 = vst.msk [vmem:[#allocation3] sm:$0x3] %vm215_vm2, %v2412_v10  ;;  %v2226_v22 = vcombine.high %v2224_v12, %v2224_v12  ;;  %2240 = vst.msk [vmem:[#allocation2 + $0xa] sm:$0x3] %vm215_vm2, %v2225_v13  ;;  %v2438_v23 = vcombine.high %v2436_v14, %v2436_v14 }
0x16d2   :  { %2241 = vst.msk [vmem:[#allocation2 + $0xc] sm:$0x3] %vm215_vm2, %v2224_v12  ;;  %2452 = vst.msk [vmem:[#allocation3 + $0xa] sm:$0x3] %vm215_vm2, %v2437_v35  ;;  %v2209_v27 = vcombine.high %v2207_v17, %v2207_v17  ;;  %v2421_v28 = vcombine.high %v2419_v19, %v2419_v19  ;;  %v2610_v29 = vsel %vm374_vm3, %v2533_v36, %v2608_v24 }
0x16d3   :  { %2453 = vst.msk [vmem:[#allocation3 + $0xc] sm:$0x3] %vm215_vm2, %v2436_v14  ;;  %2236 = vst.msk [vmem:[#allocation2 + $0x2] sm:$0x3] %vm215_vm2, %v2208_v18  ;;  %v2611_v30 = vadd.f32 %v2610_v29, %v5340_v26 }
0x16d4   :  { %2237 = vst.msk [vmem:[#allocation2 + $0x4] sm:$0x3] %vm215_vm2, %v2207_v17  ;;  %2448 = vst.msk [vmem:[#allocation3 + $0x2] sm:$0x3] %vm215_vm2, %v2420_v20 }
0x16d5   :  { %2449 = vst.msk [vmem:[#allocation3 + $0x4] sm:$0x3] %vm215_vm2, %v2419_v19  ;;  %2242 = vst.msk [vmem:[#allocation2 + $0xe] sm:$0x3] %vm215_vm2, %v2226_v22  ;;  %2620 = vrot.lane.b32.xlu1 %v2611_v30, %s4929_s4 }
0x16d6   :  { %2454 = vst.msk [vmem:[#allocation3 + $0xe] sm:$0x3] %vm215_vm2, %v2438_v23  ;;  %2238 = vst.msk [vmem:[#allocation2 + $0x6] sm:$0x3] %vm215_vm2, %v2209_v27 }
0x16d7   :  { %2450 = vst.msk [vmem:[#allocation3 + $0x6] sm:$0x3] %vm215_vm2, %v2421_v28  ;;  %v2461_v33 = vld [vmem:[#allocation2] sm:$0x3] }
0x16da   :  { %v2646_v0 = vld [vmem:[#allocation3 + $0xc] sm:$0x3]  ;;  %v2645_v2 = vld [vmem:[#allocation2 + $0x2] sm:$0x3] }
0x16db   :  { %v2648_v1 = vrot.slane %v2646_v0, 6  ;;  %v3030_v0 = vld [vmem:[#allocation3 + $0x8] sm:$0x3] }
0x16dd   :  { %v2462_v31 = vld [vmem:[#allocation3 + $0xe] sm:$0x3]  ;;  %v2650_v3 = vsel %vm374_vm3, %v2645_v2, %v2648_v1  ;;  %v3029_v1 = vld [vmem:[#allocation2 + $0x6] sm:$0x3]  ;;  %v3032_v2 = vrot.slane %v3030_v0, 6 }
0x16de   :  { %v2464_v32 = vrot.slane %v2462_v31, 6  ;;  %v2838_v31 = vld [vmem:[#allocation3 + $0xa] sm:$0x3]  ;;  %v3414_v0 = vld [vmem:[#allocation3 + $0x4] sm:$0x3] }
0x16e0   :  { %v2466_v34 = vsel %vm374_vm3, %v2461_v33, %v2464_v32  ;;  %v2840_v32 = vrot.slane %v2838_v31, 6  ;;  %v2837_v33 = vld [vmem:[#allocation2 + $0x4] sm:$0x3]  ;;  %v3222_v31 = vld [vmem:[#allocation3 + $0x6] sm:$0x3] }
0x16e1   :  { %v2612_v38 = vadd.f32 %v2611_v30, %v2466_v34 }
0x16e3   :  { %v4287_v39 = vmul.f32 -1.442695, %v2612_v38 }
0x16e5   :  { %4875 = vpow2.f32 %v4287_v39 }
0x16ef   :  { %v4876_v40 = vpop.eup %4875 }
0x16f0   :  { %v2616_v41 = vadd.f32 1.0, %v4876_v40 }
0x16f2   :  { %4877 = vrcp.f32 %v2616_v41 }
0x16fc   :  { %v4878_v42 = vpop.eup %4877 }
0x16fd   :  { %v2630_v48 = vsub.f32 1.0, %v4878_v42  ;;  %v2636_v50 = vmul.f32 0.0, %v4878_v42 }
0x1747   :  { %v2621_v43 = vpop.permute.xlu1 %2620 }
0x1748   :  { %v2623_v44 = vmul.f32 %v4878_v42, %v2621_v43 }
0x174a   :  { %2625 = vrot.lane.b32.xlu0 %v2623_v44, %s4930_s22 }
0x17bc   :  { %v2626_v45 = vpop.permute.xlu0 %2625 }
0x17bd   :  { %v2628_v46 = vadd.f32 %v2626_v45, %v2466_v34  ;;  %v2842_v34 = vsel %vm374_vm3, %v2837_v33, %v2840_v32  ;;  %v3224_v32 = vrot.slane %v3222_v31, 6  ;;  %v3221_v33 = vld [vmem:[#allocation2 + $0x8] sm:$0x3]  ;;  %v3605_v31 = vld [vmem:[#allocation2 + $0xc] sm:$0x3] }
0x17bf   :  { %4879 = vtanh.f32 %v2628_v46 }
0x17c9   :  { %v4880_v47 = vpop.eup %4879 }
0x17ca   :  { %2632 = vrot.lane.b32.xlu1 %v4880_v47, %s4931_s23 }
0x183c   :  { %v2633_v49 = vpop.permute.xlu1 %2632 }
0x183d   :  { %v2635_v51 = vmul.f32 %v2633_v49, %v2630_v48 }
0x183f   :  { %v2637_v52 = vadd.f32 %v2636_v50, %v2635_v51 }
0x1841   :  { %2639 = vrot.lane.b32.xlu1 %v2637_v52, %s4931_s23  ;;  %v2723_v53 = vrot.slane %v2637_v52, 2 }
0x1843   :  { %2724 = vrot.lane.b32.xlu0 %v2723_v53, %s4931_s23 }
0x18b3   :  { %v2640_v7 = vpop.permute.xlu1 %2639 }
0x18b4   :  { %2642 = vst.msk [vmem:[#allocation6] sm:$0x3] %vm554_vm4, %v2640_v7  ;;  %4602 = vmatmul.mubr.msk.f32.vlgmr.msra.gmra.mrb[22].mxu0 %vm91_vm0, %v2640_v7 }
0x18b5   :  { %2644 = vst.msk [vmem:[#allocation7 + $0xc] sm:$0xc] %vm557_vm5, %v2640_v7  ;;  %v2725_v56 = vpop.permute.xlu0 %2724  ;;  %4781 = vmatpush3.bf16.msra.mxu0 %v5293_v55  ;;  %4615 = vmatprep.mubr.msk.f32.mxu0 %vm4927_vm1, %v4928_v37 }
0x18b6   :  { %4609 = vmatmul.mubr.msk.f32.vlgmr.msra.gmra.mrb[22].mxu1 %vm91_vm0, %v2725_v56  ;;  %4785 = vmatprep.subr.bf16.mxu0 %v4926_v25 }
0x18b7   :  { %4784 = vmatpush3.bf16.msra.mxu1 %v5291_v54  ;;  %4622 = vmatprep.mubr.msk.f32.mxu1 %vm4927_vm1, %v4928_v37 }
0x18b8   :  { %4788 = vmatprep.subr.bf16.mxu1 %v4926_v25 }
0x1987   :  { %v2719_v57 = vpop.f32.mrb[22].mxu0 }
0x1988   :  { %v4603_v58 = vpop.f32.mrb[23].mxu0 }
0x1989   :  { %v2794_v59 = vpop.f32.mrb[22].mxu1 }
0x198a   :  { %v2799_v60 = vrot.slane %v2794_v59, 6  ;;  %v4610_v61 = vpop.f32.mrb[23].mxu1 }
0x198c   :  { %v2801_v62 = vsel %vm374_vm3, %v2719_v57, %v2799_v60 }
0x198d   :  { %v2802_v63 = vadd.f32 %v2801_v62, %v5340_v26 }
0x198f   :  { %2811 = vrot.lane.b32.xlu0 %v2802_v63, %s4929_s4  ;;  %v2803_v4 = vadd.f32 %v2802_v63, %v2650_v3 }
0x1991   :  { %v4290_v5 = vmul.f32 -1.442695, %v2803_v4 }
0x1993   :  { %4881 = vpow2.f32 %v4290_v5 }
0x199d   :  { %v4882_v6 = vpop.eup %4881 }
0x199e   :  { %v2807_v8 = vadd.f32 1.0, %v4882_v6 }
0x19a0   :  { %4883 = vrcp.f32 %v2807_v8 }
0x19aa   :  { %v4884_v9 = vpop.eup %4883 }
0x19ab   :  { %v2821_v14 = vsub.f32 1.0, %v4884_v9  ;;  %v2827_v15 = vmul.f32 %v4884_v9, %v2637_v52 }
0x1a01   :  { %v2812_v10 = vpop.permute.xlu0 %2811 }
0x1a02   :  { %v2814_v11 = vmul.f32 %v4884_v9, %v2812_v10 }
0x1a04   :  { %2816 = vrot.lane.b32.xlu1 %v2814_v11, %s4930_s22 }
0x1a76   :  { %v2817_v36 = vpop.permute.xlu1 %2816 }
0x1a77   :  { %v2819_v12 = vadd.f32 %v2817_v36, %v2650_v3  ;;  %v3034_v3 = vsel %vm374_vm3, %v3029_v1, %v3032_v2  ;;  %v3416_v1 = vrot.slane %v3414_v0, 6  ;;  %v3413_v2 = vld [vmem:[#allocation2 + $0xa] sm:$0x3] }
0x1a79   :  { %4885 = vtanh.f32 %v2819_v12 }
0x1a83   :  { %v4886_v13 = vpop.eup %4885 }
0x1a84   :  { %2823 = vrot.lane.b32.xlu0 %v4886_v13, %s4931_s23 }
0x1af6   :  { %v2824_v35 = vpop.permute.xlu0 %2823 }
0x1af7   :  { %v2826_v16 = vmul.f32 %v2824_v35, %v2821_v14 }
0x1af9   :  { %v2828_v17 = vadd.f32 %v2827_v15, %v2826_v16 }
0x1afb   :  { %2830 = vrot.lane.b32.xlu0 %v2828_v17, %s4931_s23  ;;  %v2915_v18 = vrot.slane %v2828_v17, 2 }
0x1afd   :  { %2916 = vrot.lane.b32.xlu1 %v2915_v18, %s4931_s23 }
0x1b6d   :  { %v2831_v19 = vpop.permute.xlu0 %2830 }
0x1b6e   :  { %2834 = vst.msk [vmem:[#allocation6 + $0x2] sm:$0x3] %vm554_vm4, %v2831_v19  ;;  %4616 = vmatmul.mubr.msk.f32.vlgmr.msra.gmra.mrb[24].mxu0 %vm91_vm0, %v2831_v19 }
0x1b6f   :  { %2836 = vst.msk [vmem:[#allocation7 + $0xa] sm:$0xc] %vm557_vm5, %v2831_v19  ;;  %v2917_v20 = vpop.permute.xlu1 %2916  ;;  %4787 = vmatpush3.bf16.msra.mxu0 %v5293_v55  ;;  %4629 = vmatprep.mubr.msk.f32.mxu0 %vm4927_vm1, %v4928_v37 }
0x1b70   :  { %4623 = vmatmul.mubr.msk.f32.vlgmr.msra.gmra.mrb[24].mxu1 %vm91_vm0, %v2917_v20  ;;  %4791 = vmatprep.subr.bf16.mxu0 %v4926_v25 }
0x1b71   :  { %4790 = vmatpush3.bf16.msra.mxu1 %v5291_v54  ;;  %4636 = vmatprep.mubr.msk.f32.mxu1 %vm4927_vm1, %v4928_v37 }
0x1b72   :  { %4794 = vmatprep.subr.bf16.mxu1 %v4926_v25 }
0x1c41   :  { %v2911_v22 = vpop.f32.mrb[24].mxu0 }
0x1c42   :  { %v4617_v23 = vpop.f32.mrb[25].mxu0 }
0x1c43   :  { %v2986_v24 = vpop.f32.mrb[24].mxu1 }
0x1c44   :  { %v2991_v27 = vrot.slane %v2986_v24, 6  ;;  %v4624_v28 = vpop.f32.mrb[25].mxu1 }
0x1c46   :  { %v2993_v29 = vsel %vm374_vm3, %v2911_v22, %v2991_v27 }
0x1c47   :  { %v2994_v30 = vadd.f32 %v2993_v29, %v5340_v26 }
0x1c49   :  { %3003 = vrot.lane.b32.xlu1 %v2994_v30, %s4929_s4  ;;  %v2995_v38 = vadd.f32 %v2994_v30, %v2842_v34 }
0x1c4b   :  { %v4293_v39 = vmul.f32 -1.442695, %v2995_v38 }
0x1c4d   :  { %4887 = vpow2.f32 %v4293_v39 }
0x1c57   :  { %v4888_v40 = vpop.eup %4887 }
0x1c58   :  { %v2999_v41 = vadd.f32 1.0, %v4888_v40 }
0x1c5a   :  { %4889 = vrcp.f32 %v2999_v41 }
0x1c64   :  { %v4890_v42 = vpop.eup %4889 }
0x1c65   :  { %v3013_v48 = vsub.f32 1.0, %v4890_v42  ;;  %v3019_v50 = vmul.f32 %v4890_v42, %v2828_v17 }
0x1cbb   :  { %v3004_v43 = vpop.permute.xlu1 %3003 }
0x1cbc   :  { %v3006_v44 = vmul.f32 %v4890_v42, %v3004_v43 }
0x1cbe   :  { %3008 = vrot.lane.b32.xlu0 %v3006_v44, %s4930_s22 }
0x1d30   :  { %v3009_v45 = vpop.permute.xlu0 %3008 }
0x1d31   :  { %v3011_v46 = vadd.f32 %v3009_v45, %v2842_v34  ;;  %v3226_v34 = vsel %vm374_vm3, %v3221_v33, %v3224_v32 }
0x1d33   :  { %4891 = vtanh.f32 %v3011_v46 }
0x1d3d   :  { %v4892_v47 = vpop.eup %4891 }
0x1d3e   :  { %3015 = vrot.lane.b32.xlu1 %v4892_v47, %s4931_s23 }
0x1db0   :  { %v3016_v49 = vpop.permute.xlu1 %3015 }
0x1db1   :  { %v3018_v51 = vmul.f32 %v3016_v49, %v3013_v48 }
0x1db3   :  { %v3020_v52 = vadd.f32 %v3019_v50, %v3018_v51 }
0x1db5   :  { %3022 = vrot.lane.b32.xlu1 %v3020_v52, %s4931_s23  ;;  %v3107_v53 = vrot.slane %v3020_v52, 2 }
0x1db7   :  { %3108 = vrot.lane.b32.xlu0 %v3107_v53, %s4931_s23 }
0x1e27   :  { %v3023_v7 = vpop.permute.xlu1 %3022 }
0x1e28   :  { %3026 = vst.msk [vmem:[#allocation6 + $0x4] sm:$0x3] %vm554_vm4, %v3023_v7  ;;  %4630 = vmatmul.mubr.msk.f32.vlgmr.msra.gmra.mrb[26].mxu0 %vm91_vm0, %v3023_v7 }
0x1e29   :  { %3028 = vst.msk [vmem:[#allocation7 + $0x8] sm:$0xc] %vm557_vm5, %v3023_v7  ;;  %v3109_v56 = vpop.permute.xlu0 %3108  ;;  %4793 = vmatpush3.bf16.msra.mxu0 %v5293_v55  ;;  %4643 = vmatprep.mubr.msk.f32.mxu0 %vm4927_vm1, %v4928_v37 }
0x1e2a   :  { %4637 = vmatmul.mubr.msk.f32.vlgmr.msra.gmra.mrb[26].mxu1 %vm91_vm0, %v3109_v56  ;;  %4797 = vmatprep.subr.bf16.mxu0 %v4926_v25 }
0x1e2b   :  { %4796 = vmatpush3.bf16.msra.mxu1 %v5291_v54  ;;  %4650 = vmatprep.mubr.msk.f32.mxu1 %vm4927_vm1, %v4928_v37 }
0x1e2c   :  { %4800 = vmatprep.subr.bf16.mxu1 %v4926_v25 }
0x1efb   :  { %v3103_v57 = vpop.f32.mrb[26].mxu0 }
0x1efc   :  { %v4631_v58 = vpop.f32.mrb[27].mxu0 }
0x1efd   :  { %v3178_v59 = vpop.f32.mrb[26].mxu1 }
0x1efe   :  { %v3183_v60 = vrot.slane %v3178_v59, 6  ;;  %v4638_v61 = vpop.f32.mrb[27].mxu1 }
0x1f00   :  { %v3185_v62 = vsel %vm374_vm3, %v3103_v57, %v3183_v60 }
0x1f01   :  { %v3186_v63 = vadd.f32 %v3185_v62, %v5340_v26 }
0x1f03   :  { %3195 = vrot.lane.b32.xlu0 %v3186_v63, %s4929_s4  ;;  %v3187_v4 = vadd.f32 %v3186_v63, %v3034_v3 }
0x1f05   :  { %v4296_v5 = vmul.f32 -1.442695, %v3187_v4 }
0x1f07   :  { %4893 = vpow2.f32 %v4296_v5 }
0x1f11   :  { %v4894_v6 = vpop.eup %4893 }
0x1f12   :  { %v3191_v8 = vadd.f32 1.0, %v4894_v6 }
0x1f14   :  { %4895 = vrcp.f32 %v3191_v8 }
0x1f1e   :  { %v4896_v9 = vpop.eup %4895 }
0x1f1f   :  { %v3205_v14 = vsub.f32 1.0, %v4896_v9  ;;  %v3211_v15 = vmul.f32 %v4896_v9, %v3020_v52 }
0x1f75   :  { %v3196_v10 = vpop.permute.xlu0 %3195 }
0x1f76   :  { %v3198_v11 = vmul.f32 %v4896_v9, %v3196_v10 }
0x1f78   :  { %3200 = vrot.lane.b32.xlu1 %v3198_v11, %s4930_s22 }
0x1fea   :  { %v3201_v36 = vpop.permute.xlu1 %3200 }
0x1feb   :  { %v3203_v12 = vadd.f32 %v3201_v36, %v3034_v3  ;;  %v3418_v3 = vsel %vm374_vm3, %v3413_v2, %v3416_v1 }
0x1fed   :  { %4897 = vtanh.f32 %v3203_v12 }
0x1ff7   :  { %v4898_v13 = vpop.eup %4897 }
0x1ff8   :  { %3207 = vrot.lane.b32.xlu0 %v4898_v13, %s4931_s23 }
0x206a   :  { %v3208_v35 = vpop.permute.xlu0 %3207 }
0x206b   :  { %v3210_v16 = vmul.f32 %v3208_v35, %v3205_v14 }
0x206d   :  { %v3212_v17 = vadd.f32 %v3211_v15, %v3210_v16 }
0x206f   :  { %3214 = vrot.lane.b32.xlu0 %v3212_v17, %s4931_s23  ;;  %v3299_v18 = vrot.slane %v3212_v17, 2 }
0x2071   :  { %3300 = vrot.lane.b32.xlu1 %v3299_v18, %s4931_s23 }
0x20e1   :  { %v3215_v19 = vpop.permute.xlu0 %3214 }
0x20e2   :  { %3218 = vst.msk [vmem:[#allocation6 + $0x6] sm:$0x3] %vm554_vm4, %v3215_v19  ;;  %4644 = vmatmul.mubr.msk.f32.vlgmr.msra.gmra.mrb[28].mxu0 %vm91_vm0, %v3215_v19 }
0x20e3   :  { %3220 = vst.msk [vmem:[#allocation7 + $0x6] sm:$0xc] %vm557_vm5, %v3215_v19  ;;  %v3301_v20 = vpop.permute.xlu1 %3300  ;;  %4799 = vmatpush3.bf16.msra.mxu0 %v5293_v55  ;;  %4657 = vmatprep.mubr.msk.f32.mxu0 %vm4927_vm1, %v4928_v37 }
0x20e4   :  { %4651 = vmatmul.mubr.msk.f32.vlgmr.msra.gmra.mrb[28].mxu1 %vm91_vm0, %v3301_v20  ;;  %4803 = vmatprep.subr.bf16.mxu0 %v4926_v25 }
0x20e5   :  { %4802 = vmatpush3.bf16.msra.mxu1 %v5291_v54  ;;  %4664 = vmatprep.mubr.msk.f32.mxu1 %vm4927_vm1, %v4928_v37 }
0x20e6   :  { %4806 = vmatprep.subr.bf16.mxu1 %v4926_v25 }
0x21b5   :  { %v3295_v22 = vpop.f32.mrb[28].mxu0 }
0x21b6   :  { %v4645_v23 = vpop.f32.mrb[29].mxu0 }
0x21b7   :  { %v3370_v24 = vpop.f32.mrb[28].mxu1 }
0x21b8   :  { %v3375_v27 = vrot.slane %v3370_v24, 6  ;;  %v4652_v28 = vpop.f32.mrb[29].mxu1 }
0x21ba   :  { %v3377_v29 = vsel %vm374_vm3, %v3295_v22, %v3375_v27 }
0x21bb   :  { %v3378_v30 = vadd.f32 %v3377_v29, %v5340_v26 }
0x21bd   :  { %3387 = vrot.lane.b32.xlu1 %v3378_v30, %s4929_s4  ;;  %v3379_v38 = vadd.f32 %v3378_v30, %v3226_v34 }
0x21bf   :  { %v4299_v39 = vmul.f32 -1.442695, %v3379_v38 }
0x21c1   :  { %4899 = vpow2.f32 %v4299_v39 }
0x21cb   :  { %v4900_v40 = vpop.eup %4899 }
0x21cc   :  { %v3383_v41 = vadd.f32 1.0, %v4900_v40 }
0x21ce   :  { %4901 = vrcp.f32 %v3383_v41 }
0x21d8   :  { %v4902_v42 = vpop.eup %4901 }
0x21d9   :  { %v3397_v48 = vsub.f32 1.0, %v4902_v42  ;;  %v3403_v50 = vmul.f32 %v4902_v42, %v3212_v17 }
0x222f   :  { %v3388_v43 = vpop.permute.xlu1 %3387 }
0x2230   :  { %v3390_v44 = vmul.f32 %v4902_v42, %v3388_v43 }
0x2232   :  { %3392 = vrot.lane.b32.xlu0 %v3390_v44, %s4930_s22 }
0x22a4   :  { %v3393_v45 = vpop.permute.xlu0 %3392 }
0x22a5   :  { %v3395_v46 = vadd.f32 %v3393_v45, %v3226_v34 }
0x22a7   :  { %4903 = vtanh.f32 %v3395_v46 }
0x22b1   :  { %v4904_v47 = vpop.eup %4903 }
0x22b2   :  { %3399 = vrot.lane.b32.xlu1 %v4904_v47, %s4931_s23 }
0x2324   :  { %v3400_v49 = vpop.permute.xlu1 %3399 }
0x2325   :  { %v3402_v51 = vmul.f32 %v3400_v49, %v3397_v48 }
0x2327   :  { %v3404_v52 = vadd.f32 %v3403_v50, %v3402_v51 }
0x2329   :  { %3406 = vrot.lane.b32.xlu1 %v3404_v52, %s4931_s23  ;;  %v3491_v53 = vrot.slane %v3404_v52, 2 }
0x232b   :  { %3492 = vrot.lane.b32.xlu0 %v3491_v53, %s4931_s23 }
0x239b   :  { %v3407_v7 = vpop.permute.xlu1 %3406 }
0x239c   :  { %3410 = vst.msk [vmem:[#allocation6 + $0x8] sm:$0x3] %vm554_vm4, %v3407_v7  ;;  %4658 = vmatmul.mubr.msk.f32.vlgmr.msra.gmra.mrb[30].mxu0 %vm91_vm0, %v3407_v7 }
0x239d   :  { %3412 = vst.msk [vmem:[#allocation7 + $0x4] sm:$0xc] %vm557_vm5, %v3407_v7  ;;  %v3493_v56 = vpop.permute.xlu0 %3492  ;;  %4805 = vmatpush3.bf16.msra.mxu0 %v5293_v55  ;;  %4671 = vmatprep.mubr.msk.f32.mxu0 %vm4927_vm1, %v4928_v37 }
0x239e   :  { %4665 = vmatmul.mubr.msk.f32.vlgmr.msra.gmra.mrb[30].mxu1 %vm91_vm0, %v3493_v56  ;;  %4809 = vmatprep.subr.bf16.mxu0 %v4926_v25 }
0x239f   :  { %4808 = vmatpush3.bf16.msra.mxu1 %v5291_v54  ;;  %4678 = vmatprep.mubr.msk.f32.mxu1 %vm4927_vm1, %v4928_v37 }
0x23a0   :  { %4812 = vmatprep.subr.bf16.mxu1 %v4926_v25 }
0x246f   :  { %v3487_v57 = vpop.f32.mrb[30].mxu0 }
0x2470   :  { %v4659_v58 = vpop.f32.mrb[31].mxu0 }
0x2471   :  { %v3562_v59 = vpop.f32.mrb[30].mxu1 }
0x2472   :  { %v3567_v60 = vrot.slane %v3562_v59, 6  ;;  %v4666_v61 = vpop.f32.mrb[31].mxu1 }
0x2474   :  { %v3569_v62 = vsel %vm374_vm3, %v3487_v57, %v3567_v60  ;;  %v3798_v60 = vld [vmem:[#allocation3] sm:$0x3] }
0x2475   :  { %v3570_v63 = vadd.f32 %v3569_v62, %v5340_v26  ;;  %v3800_v61 = vrot.slane %v3798_v60, 6  ;;  %v3797_v62 = vld [vmem:[#allocation2 + $0xe] sm:$0x3] }
0x2477   :  { %3579 = vrot.lane.b32.xlu0 %v3570_v63, %s4929_s4  ;;  %v3571_v4 = vadd.f32 %v3570_v63, %v3418_v3  ;;  %v3802_v63 = vsel %vm374_vm3, %v3797_v62, %v3800_v61 }
0x2479   :  { %v4302_v5 = vmul.f32 -1.442695, %v3571_v4 }
0x247b   :  { %4905 = vpow2.f32 %v4302_v5 }
0x2485   :  { %v4906_v25 = vpop.eup %4905 }
0x2486   :  { %v3575_v6 = vadd.f32 1.0, %v4906_v25 }
0x2488   :  { %4907 = vrcp.f32 %v3575_v6 }
0x2492   :  { %v4908_v8 = vpop.eup %4907 }
0x2493   :  { %v3589_v13 = vsub.f32 1.0, %v4908_v8  ;;  %v3595_v35 = vmul.f32 %v4908_v8, %v3404_v52 }
0x24e9   :  { %v3580_v9 = vpop.permute.xlu0 %3579 }
0x24ea   :  { %v3582_v10 = vmul.f32 %v4908_v8, %v3580_v9 }
0x24ec   :  { %3584 = vrot.lane.b32.xlu1 %v3582_v10, %s4930_s22  ;;  %v4000_v10 = vld [vmem:[#allocation7 + $0x8] sm:$0x3] }
0x255e   :  { %v3585_v11 = vpop.permute.xlu1 %3584 }
0x255f   :  { %v3587_v36 = vadd.f32 %v3585_v11, %v3418_v3 }
0x2561   :  { %4909 = vtanh.f32 %v3587_v36 }
0x256b   :  { %v4910_v12 = vpop.eup %4909 }
0x256c   :  { %3591 = vrot.lane.b32.xlu0 %v4910_v12, %s4931_s23 }
0x25de   :  { %v3592_v14 = vpop.permute.xlu0 %3591 }
0x25df   :  { %v3594_v15 = vmul.f32 %v3592_v14, %v3589_v13 }
0x25e1   :  { %v3596_v16 = vadd.f32 %v3595_v35, %v3594_v15  ;;  %v3999_v15 = vld [vmem:[#allocation7 + $0x6] sm:$0x3] }
0x25e3   :  { %3598 = vrot.lane.b32.xlu0 %v3596_v16, %s4931_s23  ;;  %v3683_v17 = vrot.slane %v3596_v16, 2 }
0x25e5   :  { %3684 = vrot.lane.b32.xlu1 %v3683_v17, %s4931_s23  ;;  %v4003_v17 = vld [vmem:[#allocation7 + $0xe] sm:$0x3] }
0x2655   :  { %v3599_v18 = vpop.permute.xlu0 %3598 }
0x2656   :  { %3602 = vst.msk [vmem:[#allocation6 + $0xa] sm:$0x3] %vm554_vm4, %v3599_v18  ;;  %4672 = vmatmul.mubr.msk.f32.vlgmr.msra.gmra.mrb[32].mxu0 %vm91_vm0, %v3599_v18 }
0x2657   :  { %3604 = vst.msk [vmem:[#allocation7 + $0x2] sm:$0xc] %vm557_vm5, %v3599_v18  ;;  %v3685_v19 = vpop.permute.xlu1 %3684  ;;  %4811 = vmatpush3.bf16.msra.mxu0 %v5293_v55  ;;  %4685 = vmatprep.mubr.msk.f32.mxu0 %vm4927_vm1, %v4928_v37  ;;  %v3606_v55 = vld [vmem:[#allocation3 + $0x2] sm:$0x3] }
0x2658   :  { %4679 = vmatmul.mubr.msk.f32.vlgmr.msra.gmra.mrb[32].mxu1 %vm91_vm0, %v3685_v19  ;;  %v3608_v30 = vrot.slane %v3606_v55, 6 }
0x2659   :  { %4814 = vmatpush3.bf16.msra.mxu1 %v5291_v54  ;;  %4692 = vmatprep.mubr.msk.f32.mxu1 %vm4927_vm1, %v4928_v37 }
0x265a   :  { %v3610_v32 = vsel %vm374_vm3, %v3605_v31, %v3608_v30  ;;  %v3988_v30 = vld [vmem:[#allocation6] sm:$0x3]  ;;  %v3990_v31 = vld [vmem:[#allocation6 + $0x4] sm:$0x3] }
0x265e   :  { %v3998_v9 = vld [vmem:[#allocation7 + $0x4] sm:$0x3] }
0x2729   :  { %v3679_v20 = vpop.f32.mrb[32].mxu0 }
0x272a   :  { %v4673_v22 = vpop.f32.mrb[33].mxu0 }
0x272b   :  { %v3754_v23 = vpop.f32.mrb[32].mxu1 }
0x272c   :  { %v3759_v24 = vrot.slane %v3754_v23, 6  ;;  %v4680_v27 = vpop.f32.mrb[33].mxu1 }
0x272e   :  { %v3761_v28 = vsel %vm374_vm3, %v3679_v20, %v3759_v24  ;;  %v4002_v20 = vld [vmem:[#allocation7 + $0xc] sm:$0x3] }
0x272f   :  { %v3762_v29 = vadd.f32 %v3761_v28, %v5340_v26 }
0x2731   :  { %3771 = vrot.lane.b32.xlu1 %v3762_v29, %s4929_s4  ;;  %v3763_v54 = vadd.f32 %v3762_v29, %v3610_v32  ;;  %v3991_v29 = vld [vmem:[#allocation6 + $0x6] sm:$0x3] }
0x2733   :  { %v4305_v33 = vmul.f32 -1.442695, %v3763_v54  ;;  %v3993_v54 = vld [vmem:[#allocation6 + $0xa] sm:$0x3] }
0x2735   :  { %4911 = vpow2.f32 %v4305_v33 }
0x273f   :  { %v4912_v37 = vpop.eup %4911 }
0x2740   :  { %v3767_v34 = vadd.f32 1.0, %v4912_v37 }
0x2742   :  { %4913 = vrcp.f32 %v3767_v34 }
0x274c   :  { %v4914_v38 = vpop.eup %4913 }
0x274d   :  { %v3781_v44 = vsub.f32 1.0, %v4914_v38  ;;  %v3787_v46 = vmul.f32 %v4914_v38, %v3596_v16  ;;  %v4001_v16 = vld [vmem:[#allocation7 + $0xa] sm:$0x3] }
0x27a3   :  { %v3772_v39 = vpop.permute.xlu1 %3771 }
0x27a4   :  { %v3774_v40 = vmul.f32 %v4914_v38, %v3772_v39 }
0x27a6   :  { %3776 = vrot.lane.b32.xlu0 %v3774_v40, %s4930_s22  ;;  %v3992_v40 = vld [vmem:[#allocation6 + $0x8] sm:$0x3] }
0x2818   :  { %v3777_v41 = vpop.permute.xlu0 %3776 }
0x2819   :  { %v3779_v42 = vadd.f32 %v3777_v41, %v3610_v32  ;;  %v3989_v32 = vld [vmem:[#allocation6 + $0x2] sm:$0x3] }
0x281b   :  { %4915 = vtanh.f32 %v3779_v42 }
0x2825   :  { %v4916_v43 = vpop.eup %4915 }
0x2826   :  { %3783 = vrot.lane.b32.xlu1 %v4916_v43, %s4931_s23 }
0x2898   :  { %v3784_v45 = vpop.permute.xlu1 %3783 }
0x2899   :  { %v3786_v47 = vmul.f32 %v3784_v45, %v3781_v44 }
0x289b   :  { %v3788_v48 = vadd.f32 %v3787_v46, %v3786_v47 }
0x289d   :  { %3790 = vrot.lane.b32.xlu1 %v3788_v48, %s4931_s23  ;;  %v3875_v49 = vrot.slane %v3788_v48, 2 }
0x289f   :  { %3876 = vrot.lane.b32.xlu0 %v3875_v49, %s4931_s23 }
0x290f   :  { %v3791_v50 = vpop.permute.xlu1 %3790 }
0x2910   :  { %3794 = vst.msk [vmem:[#allocation6 + $0xc] sm:$0x3] %vm554_vm4, %v3791_v50  ;;  %4686 = vmatmul.mubr.msk.f32.vlgmr.msra.gmra.mrb[34].mxu0 %vm91_vm0, %v3791_v50 }
0x2911   :  { %3796 = vst.msk [vmem:[#allocation7] sm:$0xc] %vm557_vm5, %v3791_v50  ;;  %v3877_v51 = vpop.permute.xlu0 %3876 }
0x2912   :  { %4693 = vmatmul.mubr.msk.f32.vlgmr.msra.gmra.mrb[34].mxu1 %vm91_vm0, %v3877_v51 }
0x2918   :  { %v3997_v35 = vld [vmem:[#allocation7 + $0x2] sm:$0x3] }
0x29e3   :  { %v3871_v52 = vpop.f32.mrb[34].mxu0 }
0x29e4   :  { %v4687_v53 = vpop.f32.mrb[35].mxu0 }
0x29e5   :  { %v3946_v7 = vpop.f32.mrb[34].mxu1 }
0x29e6   :  { %v3951_v56 = vrot.slane %v3946_v7, 6  ;;  %v4694_v57 = vpop.f32.mrb[35].mxu1 }
0x29e8   :  { %v3953_v58 = vsel %vm374_vm3, %v3871_v52, %v3951_v56 }
0x29e9   :  { %v3954_v59 = vadd.f32 %v3953_v58, %v5340_v26 }
0x29eb   :  { %3963 = vrot.lane.b32.xlu0 %v3954_v59, %s4929_s4  ;;  %v3955_v0 = vadd.f32 %v3954_v59, %v3802_v63 }
0x29ed   :  { %v4308_v1 = vmul.f32 -1.442695, %v3955_v0 }
0x29ef   :  { %4917 = vpow2.f32 %v4308_v1 }
0x29f9   :  { %v4918_v2 = vpop.eup %4917 }
0x29fa   :  { %v3959_v3 = vadd.f32 1.0, %v4918_v2 }
0x29fc   :  { %4919 = vrcp.f32 %v3959_v3 }
0x2a06   :  { %v4920_v4 = vpop.eup %4919 }
0x2a07   :  { %v3973_v11 = vsub.f32 1.0, %v4920_v4  ;;  %v3979_v12 = vmul.f32 %v4920_v4, %v3788_v48  ;;  %v3994_v48 = vld [vmem:[#allocation6 + $0xc] sm:$0x3] }
0x2a5d   :  { %v3964_v5 = vpop.permute.xlu0 %3963 }
0x2a5e   :  { %v3966_v25 = vmul.f32 %v4920_v4, %v3964_v5 }
0x2a60   :  { %3968 = vrot.lane.b32.xlu1 %v3966_v25, %s4930_s22 }
0x2ad2   :  { %v3969_v6 = vpop.permute.xlu1 %3968 }
0x2ad3   :  { %v3971_v26 = vadd.f32 %v3969_v6, %v3802_v63 }
0x2ad5   :  { %4921 = vtanh.f32 %v3971_v26 }
0x2adf   :  { %v4922_v8 = vpop.eup %4921 }
0x2ae0   :  { %3975 = vrot.lane.b32.xlu0 %v4922_v8, %s4931_s23 }
0x2ae4   :  { %4016 = vrot.lane.b32.xlu0 %v3998_v9, %s4932_s8 }
0x2ae8   :  { %4020 = vrot.lane.b32.xlu0 %v4000_v10, %s4932_s8 }
0x2b52   :  { %v3976_v36 = vpop.permute.xlu0 %3975 }
0x2b53   :  { %v3978_v13 = vmul.f32 %v3976_v36, %v3973_v11 }
0x2b55   :  { %v3980_v14 = vadd.f32 %v3979_v12, %v3978_v13 }
0x2b56   :  { %v4017_v23 = vpop.permute.xlu0 %4016 }
0x2b57   :  { %3982 = vrot.lane.b32.xlu1 %v3980_v14, %s4931_s23  ;;  %v4038_v37 = vsel %vm91_vm0, %v3990_v31, %v4017_v23 }
0x2b5a   :  { %v4021_v27 = vpop.permute.xlu0 %4020 }
0x2b5b   :  { %4014 = vrot.lane.b32.xlu1 %v3997_v35, %s4932_s8  ;;  %v4040_v44 = vsel %vm91_vm0, %v3992_v40, %v4021_v27 }
0x2b5f   :  { %4018 = vrot.lane.b32.xlu1 %v3999_v15, %s4932_s8 }
0x2b63   :  { %4022 = vrot.lane.b32.xlu1 %v4001_v16, %s4932_s8 }
0x2b67   :  { %4026 = vrot.lane.b32.xlu1 %v4003_v17, %s4932_s8 }
0x2bc9   :  { %v3983_v18 = vpop.permute.xlu1 %3982 }
0x2bca   :  { %3986 = vst.msk [vmem:[#allocation6 + $0xe] sm:$0x3] %vm554_vm4, %v3983_v18 }
0x2bcb   :  { %3987 = vst.msk [vmem:[#allocation7 - $0x2] sm:$0xc] %vm557_vm5, %v3983_v18 }
0x2bcd   :  { %v4015_v22 = vpop.permute.xlu1 %4014 }
0x2bce   :  { %v4037_v34 = vsel %vm91_vm0, %v3989_v32, %v4015_v22 }
0x2bd1   :  { %v4019_v24 = vpop.permute.xlu1 %4018  ;;  %v3995_v46 = vld [vmem:[#allocation6 + $0xe] sm:$0x3] }
0x2bd2   :  { %v3996_v19 = vld [vmem:[#allocation7] sm:$0x3]  ;;  %v4039_v55 = vsel %vm91_vm0, %v3991_v29, %v4019_v24 }
0x2bd3   :  { %4012 = vrot.lane.b32.xlu0 %v3996_v19, %s4932_s8  ;;  %v4053_v41 = vcombine.low %v4038_v37, %v4039_v55 }
0x2bd5   :  { %v4023_v28 = vpop.permute.xlu1 %4022  ;;  %v4067_v52 = vrot.slane %v4053_v41, %v5019_v21 }
0x2bd6   :  { %v4041_v38 = vsel %vm91_vm0, %v3993_v54, %v4023_v28 }
0x2bd7   :  { %4024 = vrot.lane.b32.xlu0 %v4002_v20, %s4932_s8  ;;  %v4069_v45 = vcombine.low %v4040_v44, %v4041_v38 }
0x2bd9   :  { %v4027_v42 = vpop.permute.xlu1 %4026  ;;  %v4077_v7 = vrot.slane %v4069_v45, %v5019_v21 }
0x2bda   :  { %v4043_v50 = vsel %vm91_vm0, %v3995_v46, %v4027_v42 }
0x2c45   :  { %v4013_v33 = vpop.permute.xlu0 %4012 }
0x2c46   :  { %v4036_v39 = vsel %vm91_vm0, %v3988_v30, %v4013_v33 }
0x2c47   :  { %v4052_v43 = vcombine.low %v4036_v39, %v4037_v34 }
0x2c49   :  { %v4060_v47 = vrot.slane %v4052_v43, %v5019_v21  ;;  %v4025_v49 = vpop.permute.xlu0 %4024 }
0x2c4a   :  { %v4042_v51 = vsel %vm91_vm0, %v3994_v48, %v4025_v49 }
0x2c4b   :  { %v4070_v53 = vcombine.low %v4042_v51, %v4043_v50  ;;  %v4068_v56 = vcombine.low %v4060_v47, %v4067_v52 }
0x2c4d   :  { %v4084_v57 = vrot.slane %v4070_v53, %v5019_v21  ;;  %v4089_v59 = vsel %vm4088_vm6, %v4068_v56, 0.0 }
0x2c4f   :  { %v4085_v58 = vcombine.low %v4077_v7, %v4084_v57 }
0x2c51   :  { %v4090_v60 = vsel %vm4088_vm6, %v4085_v58, 0.0 }
0x2c52   :  { %v4091_v61 = vadd.f32 %v4090_v60, %v4089_v59 }
0x2c54   :  { %v4092_v62 = vrot.slane %v4091_v61, 4 }
0x2c56   :  { %v4093_v63 = vadd.f32 %v4092_v62, %v4091_v61 }
0x2c58   :  { %v4094_v0 = vrot.slane %v4093_v63, 2 }
0x2c5a   :  { %v4095_v1 = vadd.f32 %v4094_v0, %v4093_v63 }
0x2c5c   :  { %v4096_v2 = vrot.slane %v4095_v1, 1 }
0x2c5e   :  { %v4097_v3 = vadd.f32 %v4096_v2, %v4095_v1 }
0x2c60   :  { %v4099_v4 = vmul.f32 0.0625, %v4097_v3 }
0x2c62   :  { %v4101_v5 = vcombine.high %v4099_v4, %v4099_v4  ;;  %v4108_v25 = vrot.slane %v4099_v4, %v5019_v21 }
0x2c64   :  { %v4115_v6 = vrot.slane %v4101_v5, %v5019_v21  ;;  %v4116_v26 = vcombine.high %v4108_v25, %v4108_v25  ;;  %v4122_v8 = vsub.f32 %v4036_v39, %v4108_v25  ;;  %v4126_v9 = vsub.f32 %v4040_v44, %v4108_v25 }
0x2c66   :  { %v4117_v10 = vcombine.high %v4115_v6, %v4115_v6  ;;  %v4123_v11 = vsub.f32 %v4037_v34, %v4116_v26  ;;  %v4124_v36 = vsub.f32 %v4038_v37, %v4115_v6  ;;  %v4127_v12 = vsub.f32 %v4041_v38, %v4116_v26 }
0x2c67   :  { %v4128_v13 = vsub.f32 %v4042_v51, %v4115_v6  ;;  %v4130_v15 = vmul.f32 %v4122_v8, %v4122_v8  ;;  %v4134_v18 = vmul.f32 %v4126_v9, %v4126_v9 }
0x2c68   :  { %v4125_v14 = vsub.f32 %v4039_v55, %v4117_v10  ;;  %v4129_v35 = vsub.f32 %v4043_v50, %v4117_v10  ;;  %v4131_v16 = vmul.f32 %v4123_v11, %v4123_v11  ;;  %v4132_v17 = vmul.f32 %v4124_v36, %v4124_v36 }
0x2c69   :  { %v4135_v19 = vmul.f32 %v4127_v12, %v4127_v12  ;;  %v4136_v22 = vmul.f32 %v4128_v13, %v4128_v13 }
0x2c6a   :  { %v4133_v20 = vmul.f32 %v4125_v14, %v4125_v14  ;;  %v4137_v23 = vmul.f32 %v4129_v35, %v4129_v35  ;;  %v4146_v24 = vcombine.low %v4130_v15, %v4131_v16 }
0x2c6b   :  { %v4163_v27 = vcombine.low %v4134_v18, %v4135_v19 }
0x2c6c   :  { %v4147_v28 = vcombine.low %v4132_v17, %v4133_v20  ;;  %v4164_v29 = vcombine.low %v4136_v22, %v4137_v23  ;;  %v4154_v30 = vrot.slane %v4146_v24, %v5019_v21 }
0x2c6d   :  { %v4171_v32 = vrot.slane %v4163_v27, %v5019_v21 }
0x2c6e   :  { %v4161_v31 = vrot.slane %v4147_v28, %v5019_v21  ;;  %v4178_v55 = vrot.slane %v4164_v29, %v5019_v21 }
0x2c70   :  { %v4162_v54 = vcombine.low %v4154_v30, %v4161_v31  ;;  %v4179_v33 = vcombine.low %v4171_v32, %v4178_v55 }
0x2c72   :  { %v4182_v37 = vsel %vm4088_vm6, %v4162_v54, 0.0  ;;  %v4183_v34 = vsel %vm4088_vm6, %v4179_v33, 0.0 }
0x2c73   :  { %v4184_v38 = vadd.f32 %v4183_v34, %v4182_v37 }
0x2c75   :  { %v4185_v39 = vrot.slane %v4184_v38, 4 }
0x2c77   :  { %v4186_v40 = vadd.f32 %v4185_v39, %v4184_v38 }
0x2c79   :  { %v4187_v41 = vrot.slane %v4186_v40, 2 }
0x2c7b   :  { %v4188_v42 = vadd.f32 %v4187_v41, %v4186_v40 }
0x2c7d   :  { %v4189_v43 = vrot.slane %v4188_v42, 1 }
0x2c7f   :  { %v4190_v44 = vadd.f32 %v4189_v43, %v4188_v42 }
0x2c81   :  { %v4191_v45 = vmul.f32 0.0625, %v4190_v44 }
0x2c83   :  { %v4192_v46 = vadd.f32 1e-05, %v4191_v45 }
0x2c85   :  { %4923 = vrsqrt.f32 %v4192_v46 }
0x2c8f   :  { %v4924_v47 = vpop.eup %4923 }
0x2c90   :  { %v4195_v48 = vcombine.high %v4924_v47, %v4924_v47  ;;  %v4202_v49 = vrot.slane %v4924_v47, %v5019_v21 }
0x2c92   :  { %v4209_v50 = vrot.slane %v4195_v48, %v5019_v21  ;;  %v4210_v51 = vcombine.high %v4202_v49, %v4202_v49  ;;  %v4216_v52 = vmul.f32 %v4202_v49, %v4122_v8  ;;  %v4220_v53 = vmul.f32 %v4202_v49, %v4126_v9 }
0x2c94   :  { %v4211_v7 = vcombine.high %v4209_v50, %v4209_v50  ;;  %v4217_v56 = vmul.f32 %v4210_v51, %v4123_v11  ;;  %v4218_v57 = vmul.f32 %v4209_v50, %v4124_v36  ;;  %v4221_v58 = vmul.f32 %v4210_v51, %v4127_v12  ;;  %4225 = vst.msk [vmem:[%s5554_s9] sm:$0x3] %vm4224_vm7, %v4216_v52 }
0x2c95   :  { %4229 = vst.msk [vmem:[%s5554_s9 + $0x8] sm:$0x3] %vm4224_vm7, %v4220_v53  ;;  %v4222_v59 = vmul.f32 %v4209_v50, %v4128_v13 }
0x2c96   :  { %v4219_v60 = vmul.f32 %v4211_v7, %v4125_v14  ;;  %v4223_v21 = vmul.f32 %v4211_v7, %v4129_v35  ;;  %4226 = vst.msk [vmem:[%s5554_s9 + $0x2] sm:$0x3] %vm4224_vm7, %v4217_v56  ;;  %4227 = vst.msk [vmem:[%s5554_s9 + $0x4] sm:$0x3] %vm4224_vm7, %v4218_v57 }
0x2c97   :  { %4230 = vst.msk [vmem:[%s5554_s9 + $0xa] sm:$0x3] %vm4224_vm7, %v4221_v58  ;;  %4231 = vst.msk [vmem:[%s5554_s9 + $0xc] sm:$0x3] %vm4224_vm7, %v4222_v59 }
0x2c98   :  { %4228 = vst.msk [vmem:[%s5554_s9 + $0x6] sm:$0x3] %vm4224_vm7, %v4219_v60  ;;  %4232 = vst.msk [vmem:[%s5554_s9 + $0xe] sm:$0x3] %vm4224_vm7, %v4223_v21 }

</bundles_post_ra>
